<compile_context>
chip_gen: v5e
topology: v5e:2x2
jax: 0.10.0
libtpu: 0.0.40
codegen_flags: <defaults>
</compile_context>

<pallas_src>
import functools

import jax
import jax.numpy as jnp
import numpy as np
from jax.experimental import pallas as pl
from jax.experimental.pallas import tpu as pltpu

EPS = 1e-5
NUM_CLASSES = 10

# Network geometry (spatial size 28 is implied by the module: fc takes 7*7*32).
H1 = W1 = 28               # layer-1 conv spatial size
C0, C1, C2 = 1, 16, 32     # channel counts
H2 = W2 = 14               # layer-2 conv spatial size (after pool 1)
L1 = (W1 + 4) * C0         # 32  : lanes of the padded layer-1 input slabs
G1 = W2 + 4                # 18  : layer-1 output col groups (pre-padded for layer 2)
M1 = G1 * C1               # 288 : lanes of layer-1 output / layer-2 input slabs
M2 = (W2 // 2) * C2        # 224 : lanes of layer-2 pooled output
PR1 = H1 // 4              # 7   : rows per layer-1 conv piece
PR2 = H2 // 2              # 7   : rows per layer-2 conv piece == pooled rows
SLAB1_ROWS = (H1 + 4) // 4 # 8   : rows of each mod-4 layer-1 input slab
SLAB2_ROWS = (H2 + 4) // 2 # 9   : rows of each mod-2 layer-2 input slab
FC_IN = PR2 * M2           # 1568
FC_PAD = 128               # lane-padded class dim


# ----------------------------------------------------------------------------
# Layer kernels: fused conv(banded matmuls) + BN(two-sweep stats) + ReLU + pool
# ----------------------------------------------------------------------------
def _layer1_kernel(x0, x1, x2, x3, band_ref, csum_ref, expand_ref,
                   g_ref, be_ref, oe_ref, oo_ref, stats_ref, bn_ref, *, count):
    """Layer 1.  Inputs: 4 row-residue (mod 4) slabs of the padded 28x28 image,
    each [1, 8, 32].  Outputs: the even / odd row slabs of the zero-padded
    layer-2 input, each [1, 9, 288] (lane = (w_padded*16 + c))."""
    phase = pl.program_id(0)   # 0: accumulate BN stats, 1: apply + write
    img = pl.program_id(1)
    slabs = (x0, x1, x2, x3)

    def conv_piece(row_base, q):
        # Conv output rows 4*m + row_base (m = 0..6), columns of parity q.
        acc = jnp.zeros((PR1, M1), jnp.float32)
        for kh in range(5):
            c = row_base + kh
            lhs = slabs[c % 4][0, (c // 4):(c // 4) + PR1, :]        # [7, 32]
            acc = acc + jnp.dot(lhs, band_ref[kh, q],
                                preferred_element_type=jnp.float32)  # [7, 288]
        return acc

    # 8 pieces: (pooled-row parity) x (row-in-window) x (column parity)
    pieces = [[conv_piece(2 * par + s, q) for s in range(2) for q in range(2)]
              for par in range(2)]
    flat = pieces[0] + pieces[1]

    @pl.when(jnp.logical_and(phase == 0, img == 0))
    def _init():
        stats_ref[...] = jnp.zeros_like(stats_ref)

    @pl.when(phase == 0)
    def _accumulate():
        tot = flat[0]
        sq = flat[0] * flat[0]
        for pc in flat[1:]:
            tot = tot + pc
            sq = sq + pc * pc
        row_sum = jnp.sum(tot, axis=0, keepdims=True)                # [1, 288]
        row_sq = jnp.sum(sq, axis=0, keepdims=True)
        stats_ref[0:1, :] += jnp.dot(row_sum, csum_ref[...],
                                     preferred_element_type=jnp.float32)
        stats_ref[1:2, :] += jnp.dot(row_sq, csum_ref[...],
                                     preferred_element_type=jnp.float32)

    @pl.when(jnp.logical_and(phase == 1, img == 0))
    def _fold_bn():
        # Expand the folded per-channel scale/shift to the 288-lane layout
        # ONCE per apply sweep (padding lanes stay exactly zero).
        inv_n = jnp.float32(1.0 / count)
        mean = stats_ref[0:1, :] * inv_n                             # [1, 16]
        var = stats_ref[1:2, :] * inv_n - mean * mean
        scale = g_ref[...] * jax.lax.rsqrt(var + EPS)
        shift = be_ref[...] - scale * mean
        bn_ref[0:1, :] = jnp.dot(scale, expand_ref[...],
                                 preferred_element_type=jnp.float32)  # [1, 288]
        bn_ref[1:2, :] = jnp.dot(shift, expand_ref[...],
                                 preferred_element_type=jnp.float32)

    @pl.when(phase == 1)
    def _apply():
        sc = bn_ref[0:1, :]
        sh = bn_ref[1:2, :]
        for par, out_ref in ((0, oe_ref), (1, oo_ref)):
            # BN before the max (exact even for negative gamma); ReLU after
            # the max is equivalent to ReLU before it (monotone).
            bn = [p * sc + sh for p in pieces[par]]
            act = jnp.maximum(
                jnp.maximum(jnp.maximum(bn[0], bn[1]), jnp.maximum(bn[2], bn[3])),
                0.0)                                                 # [7, 288]
            # zero-padded slab: rows 0 and 8 are layer-2 row padding; lane
            # borders are already zero (banded/expander matrices leave them 0).
            out_ref[0, 0:1, :] = jnp.zeros((1, M1), jnp.float32)
            out_ref[0, SLAB2_ROWS - 1:SLAB2_ROWS, :] = jnp.zeros((1, M1),
                                                                 jnp.float32)
            out_ref[0, 1:1 + PR1, :] = act


def _layer2_fc_kernel(xe, xo, band_ref, csum_ref, expand_ref, g_ref, be_ref,
                      wfc_ref, bfc_ref, o_ref, stats_ref, bn_ref, *, count):
    """Layer 2 + FC.  Inputs: even / odd row slabs [1, 9, 288] from layer 1.
    Output: lane-padded logits [1, 1, 128] per image."""
    phase = pl.program_id(0)
    img = pl.program_id(1)
    slabs = (xe, xo)

    def conv_piece(s, q):
        acc = jnp.zeros((PR2, M2), jnp.float32)
        for kh in range(5):
            c = s + kh
            lhs = slabs[c % 2][0, (c // 2):(c // 2) + PR2, :]        # [7, 288]
            acc = acc + jnp.dot(lhs, band_ref[kh, q],
                                preferred_element_type=jnp.float32)  # [7, 224]
        return acc

    pieces = [conv_piece(s, q) for s in range(2) for q in range(2)]

    @pl.when(jnp.logical_and(phase == 0, img == 0))
    def _init():
        stats_ref[...] = jnp.zeros_like(stats_ref)

    @pl.when(phase == 0)
    def _accumulate():
        tot = pieces[0]
        sq = pieces[0] * pieces[0]
        for pc in pieces[1:]:
            tot = tot + pc
            sq = sq + pc * pc
        stats_ref[0:1, :] += jnp.dot(jnp.sum(tot, axis=0, keepdims=True),
                                     csum_ref[...],
                                     preferred_element_type=jnp.float32)
        stats_ref[1:2, :] += jnp.dot(jnp.sum(sq, axis=0, keepdims=True),
                                     csum_ref[...],
                                     preferred_element_type=jnp.float32)

    @pl.when(jnp.logical_and(phase == 1, img == 0))
    def _fold_bn():
        inv_n = jnp.float32(1.0 / count)
        mean = stats_ref[0:1, :] * inv_n                             # [1, 32]
        var = stats_ref[1:2, :] * inv_n - mean * mean
        scale = g_ref[...] * jax.lax.rsqrt(var + EPS)
        shift = be_ref[...] - scale * mean
        bn_ref[0:1, :] = jnp.dot(scale, expand_ref[...],
                                 preferred_element_type=jnp.float32)  # [1, 224]
        bn_ref[1:2, :] = jnp.dot(shift, expand_ref[...],
                                 preferred_element_type=jnp.float32)

    @pl.when(phase == 1)
    def _apply():
        sc = bn_ref[0:1, :]
        sh = bn_ref[1:2, :]
        bn = [p * sc + sh for p in pieces]
        act = jnp.maximum(
            jnp.maximum(jnp.maximum(bn[0], bn[1]), jnp.maximum(bn[2], bn[3])),
            0.0)                                                     # [7, 224]
        # Fused FC: (h, w, c)-flattened features dotted with the permuted,
        # lane-padded weight, accumulated row-by-row (no in-kernel reshape).
        logits = bfc_ref[...]                                        # [1, 128]
        for h in range(PR2):
            logits = logits + jnp.dot(act[h:h + 1, :], wfc_ref[h],
                                      preferred_element_type=jnp.float32)
        o_ref[0, :, :] = logits


# ----------------------------------------------------------------------------
# pallas_call wrappers
# ----------------------------------------------------------------------------
def _layer1_call(slabs, params, n):
    kernel = functools.partial(_layer1_kernel, count=n * H1 * W1)
    grid_spec = pltpu.PrefetchScalarGridSpec(
        num_scalar_prefetch=0,
        grid=(2, n),
        in_specs=(
            [pl.BlockSpec((1, SLAB1_ROWS, L1), lambda p, t: (t, 0, 0))] * 4
            + [
                pl.BlockSpec((5, 2, L1, M1), lambda p, t: (0, 0, 0, 0)),
                pl.BlockSpec((M1, C1), lambda p, t: (0, 0)),
                pl.BlockSpec((C1, M1), lambda p, t: (0, 0)),
                pl.BlockSpec((1, C1), lambda p, t: (0, 0)),
                pl.BlockSpec((1, C1), lambda p, t: (0, 0)),
            ]
        ),
        out_specs=[
            # held on block 0 during the stats sweep, per-image in sweep 1
            pl.BlockSpec((1, SLAB2_ROWS, M1), lambda p, t: (p * t, 0, 0)),
            pl.BlockSpec((1, SLAB2_ROWS, M1), lambda p, t: (p * t, 0, 0)),
        ],
        scratch_shapes=[pltpu.VMEM((2, C1), jnp.float32),
                        pltpu.VMEM((2, M1), jnp.float32)],
    )
    return pl.pallas_call(
        kernel,
        grid_spec=grid_spec,
        out_shape=[jax.ShapeDtypeStruct((n, SLAB2_ROWS, M1), jnp.float32)] * 2,
        compiler_params=pltpu.CompilerParams(
            dimension_semantics=("arbitrary", "arbitrary")),
    )(*slabs, params["s1"], params["t1"], params["e1"],
      params["g1"], params["be1"])


def _layer2_fc_call(even, odd, params, n):
    kernel = functools.partial(_layer2_fc_kernel, count=n * H2 * W2)
    grid_spec = pltpu.PrefetchScalarGridSpec(
        num_scalar_prefetch=0,
        grid=(2, n),
        in_specs=[
            pl.BlockSpec((1, SLAB2_ROWS, M1), lambda p, t: (t, 0, 0)),
            pl.BlockSpec((1, SLAB2_ROWS, M1), lambda p, t: (t, 0, 0)),
            pl.BlockSpec((5, 2, M1, M2), lambda p, t: (0, 0, 0, 0)),
            pl.BlockSpec((M2, C2), lambda p, t: (0, 0)),
            pl.BlockSpec((C2, M2), lambda p, t: (0, 0)),
            pl.BlockSpec((1, C2), lambda p, t: (0, 0)),
            pl.BlockSpec((1, C2), lambda p, t: (0, 0)),
            pl.BlockSpec((PR2, M2, FC_PAD), lambda p, t: (0, 0, 0)),
            pl.BlockSpec((1, FC_PAD), lambda p, t: (0, 0)),
        ],
        out_specs=[pl.BlockSpec((1, 1, FC_PAD), lambda p, t: (p * t, 0, 0))],
        scratch_shapes=[pltpu.VMEM((2, C2), jnp.float32),
                        pltpu.VMEM((2, M2), jnp.float32)],
    )
    (out,) = pl.pallas_call(
        kernel,
        grid_spec=grid_spec,
        out_shape=[jax.ShapeDtypeStruct((n, 1, FC_PAD), jnp.float32)],
        compiler_params=pltpu.CompilerParams(
            dimension_semantics=("arbitrary", "arbitrary")),
    )(even, odd, params["s2"], params["t2"], params["e2"],
      params["g2"], params["be2"], params["w_fc_rhc"], params["b_fc_pad"])
    return out


@jax.jit
def convnet_forward(x_nchw, params):
    """Forward pass.  x_nchw: [N, 1, 28, 28] float32 -> logits [N, 10]."""
    n = x_nchw.shape[0]
    x = x_nchw.reshape(n, H1, W1)                     # Cin == 1: NCHW == NHWC
    xp = jnp.pad(x, ((0, 0), (2, 2), (2, 2)))         # [n, 32, 32]
    slabs = tuple(xp[:, r::4, :] for r in range(4))   # 4 x [n, 8, 32]
    even, odd = _layer1_call(slabs, params, n)        # 2 x [n, 9, 288]
    logits = _layer2_fc_call(even, odd, params, n)    # [n, 1, 128]
    return logits[:, 0, :NUM_CLASSES]


# ----------------------------------------------------------------------------
# One-time weight folding: banded conv matrices, channel-sum / expander
# matrices, FC permutation + lane padding.
# ----------------------------------------------------------------------------
def _banded_mats(w_hwio, width, out_groups, group_off):
    """Build S[kh, q] so that (input row-slab) @ S[kh, q] computes the 5x5
    'same' conv for column parity q; output lanes are (group_off + w/2)*Cout + c
    so padding lanes for the next layer come out as zeros.  Also returns the
    channel-sum matrix T (for BN stats) and its transpose E (scale expander)."""
    kh_n, kw_n, cin, cout = w_hwio.shape
    wp = width // 2
    s = np.zeros((kh_n, 2, (width + 4) * cin, out_groups * cout), np.float32)
    w_np = np.asarray(w_hwio, dtype=np.float32)
    for kh in range(kh_n):
        for q in range(2):
            for wo in range(wp):
                col = 2 * wo + q
                for kw in range(kw_n):
                    src = col + kw
                    s[kh, q, src * cin:(src + 1) * cin,
                      (wo + group_off) * cout:(wo + group_off + 1) * cout] = w_np[kh, kw]
    e = np.zeros((cout, out_groups * cout), np.float32)
    for wo in range(wp):
        e[np.arange(cout), (wo + group_off) * cout + np.arange(cout)] = 1.0
    return jnp.asarray(s), jnp.asarray(e.T.copy()), jnp.asarray(e)


def init_params(key):
    ks = jax.random.split(key, 10)
    w1 = 0.1 * jax.random.normal(ks[0], (5, 5, C0, C1), jnp.float32)
    b1 = 0.1 * jax.random.normal(ks[1], (C1,), jnp.float32)
    w2 = 0.05 * jax.random.normal(ks[2], (5, 5, C1, C2), jnp.float32)
    b2 = 0.1 * jax.random.normal(ks[3], (C2,), jnp.float32)
    g1 = 1.0 + 0.1 * jax.random.normal(ks[4], (C1,), jnp.float32)
    be1 = 0.1 * jax.random.normal(ks[5], (C1,), jnp.float32)
    g2 = 1.0 + 0.1 * jax.random.normal(ks[6], (C2,), jnp.float32)
    be2 = 0.1 * jax.random.normal(ks[7], (C2,), jnp.float32)
    w_fc = 0.05 * jax.random.normal(ks[8], (FC_IN, NUM_CLASSES), jnp.float32)
    b_fc = 0.1 * jax.random.normal(ks[9], (NUM_CLASSES,), jnp.float32)

    s1, t1, e1 = _banded_mats(np.asarray(w1), W1, G1, 2)        # pre-pad for L2
    s2, t2, e2 = _banded_mats(np.asarray(w2), W2, W2 // 2, 0)

    # Fold the PyTorch NCHW flatten (c, h, w) into the FC weight so the kernel
    # can consume the NHWC (h, w, c) flatten directly; lane-pad 10 -> 128 and
    # reshape to [7 rows, 224 lanes, 128] for the fused in-kernel FC.
    w_fc_np = np.asarray(w_fc).reshape(C2, H2 // 2, W2 // 2, NUM_CLASSES)
    w_fc_nhwc = np.transpose(w_fc_np, (1, 2, 0, 3)).reshape(FC_IN, NUM_CLASSES)
    w_fc_pad = np.zeros((FC_IN, FC_PAD), np.float32)
    w_fc_pad[:, :NUM_CLASSES] = w_fc_nhwc
    w_fc_rhc = w_fc_pad.reshape(PR2, M2, FC_PAD)
    b_fc_pad = np.zeros((1, FC_PAD), np.float32)
    b_fc_pad[0, :NUM_CLASSES] = np.asarray(b_fc)

    return {
        # kernel-side (folded) parameters
        "s1": s1, "t1": t1, "e1": e1,
        "g1": g1.reshape(1, C1), "be1": be1.reshape(1, C1),
        "s2": s2, "t2": t2, "e2": e2,
        "g2": g2.reshape(1, C2), "be2": be2.reshape(1, C2),
        "w_fc_rhc": jnp.asarray(w_fc_rhc), "b_fc_pad": jnp.asarray(b_fc_pad),
        # raw parameters (pure-JAX reference only)
        "w1_hwio": w1, "b1": b1, "w2_hwio": w2, "b2": b2,
        "g1_raw": g1, "be1_raw": be1, "g2_raw": g2, "be2_raw": be2,
        "w_fc": w_fc, "b_fc": b_fc,
    }


# ----------------------------------------------------------------------------
# Pure-JAX reference for the correctness cross-check
# ----------------------------------------------------------------------------
def ref_forward(x_nchw, params):
    x = jnp.transpose(x_nchw, (0, 2, 3, 1))

    def block(x, w_hwio, b, g, be):
        y = jax.lax.conv_general_dilated(
            x, w_hwio, (1, 1), ((2, 2), (2, 2)),
            dimension_numbers=("NHWC", "HWIO", "NHWC"),
            precision=jax.lax.Precision.HIGHEST) + b.reshape(1, 1, 1, -1)
        mean = y.mean(axis=(0, 1, 2))
        var = ((y - mean) ** 2).mean(axis=(0, 1, 2))
        y = (y - mean) * jax.lax.rsqrt(var + EPS) * g.reshape(1, 1, 1, -1) \
            + be.reshape(1, 1, 1, -1)
        y = jnp.maximum(y, 0.0)
        n, h, w, c = y.shape
        return y.reshape(n, h // 2, 2, w // 2, 2, c).max(axis=(2, 4))

    x = block(x, params["w1_hwio"], params["b1"], params["g1_raw"], params["be1_raw"])
    x = block(x, params["w2_hwio"], params["b2"], params["g2_raw"], params["be2_raw"])
    n = x.shape[0]
    x = jnp.transpose(x, (0, 3, 1, 2)).reshape(n, -1)
    return jnp.dot(x, params["w_fc"],
                   precision=jax.lax.Precision.HIGHEST) + params["b_fc"].reshape(1, -1)


if __name__ == "__main__":
    key = jax.random.PRNGKey(0)
    k_x, k_p = jax.random.split(key)
    x = jax.random.normal(k_x, (2, 1, 28, 28), jnp.float32)
    params = init_params(k_p)

    logits = jax.block_until_ready(convnet_forward(x, params))
    assert logits.shape == (2, NUM_CLASSES) and logits.dtype == jnp.float32

    ref = jax.block_until_ready(ref_forward(x, params))
    np.testing.assert_allclose(np.asarray(logits), np.asarray(ref),
                               rtol=2e-2, atol=2e-2)
    print("KERNEL_OK")
</pallas_src>

<mosaic_0001>
module attributes {stable_mosaic.version = 11 : i64} {
  func.func @_layer1_kernel(%arg0: i32, %arg1: i32, %arg2: memref<1x8x32xf32, #tpu.memory_space<vmem>>, %arg3: memref<1x8x32xf32, #tpu.memory_space<vmem>>, %arg4: memref<1x8x32xf32, #tpu.memory_space<vmem>>, %arg5: memref<1x8x32xf32, #tpu.memory_space<vmem>>, %arg6: memref<5x2x32x288xf32, #tpu.memory_space<vmem>>, %arg7: memref<288x16xf32, #tpu.memory_space<vmem>>, %arg8: memref<16x288xf32, #tpu.memory_space<vmem>>, %arg9: memref<1x16xf32, #tpu.memory_space<vmem>>, %arg10: memref<1x16xf32, #tpu.memory_space<vmem>>, %arg11: memref<1x9x288xf32, #tpu.memory_space<vmem>>, %arg12: memref<1x9x288xf32, #tpu.memory_space<vmem>>, %arg13: memref<2x16xf32, #tpu.memory_space<vmem>>, %arg14: memref<2x288xf32, #tpu.memory_space<vmem>>) attributes {dimension_semantics = [#tpu.dimension_semantics<arbitrary>, #tpu.dimension_semantics<arbitrary>], iteration_bounds = array<i64: 2, 2>, scalar_prefetch = 0 : i64, scratch_operands = 2 : i64, tpu.core_type = #tpu.core_type<tc>, window_params = [{transform_indices = @transform_0, window_bounds = array<i64: 1, 8, 32>}, {transform_indices = @transform_1, window_bounds = array<i64: 1, 8, 32>}, {transform_indices = @transform_2, window_bounds = array<i64: 1, 8, 32>}, {transform_indices = @transform_3, window_bounds = array<i64: 1, 8, 32>}, {pipeline_mode = #tpu.pipeline_mode<synchronous>, transform_indices = @transform_4, window_bounds = array<i64: 5, 2, 32, 288>}, {pipeline_mode = #tpu.pipeline_mode<synchronous>, transform_indices = @transform_5, window_bounds = array<i64: 288, 16>}, {pipeline_mode = #tpu.pipeline_mode<synchronous>, transform_indices = @transform_6, window_bounds = array<i64: 16, 288>}, {pipeline_mode = #tpu.pipeline_mode<synchronous>, transform_indices = @transform_7, window_bounds = array<i64: 1, 16>}, {pipeline_mode = #tpu.pipeline_mode<synchronous>, transform_indices = @transform_8, window_bounds = array<i64: 1, 16>}, {transform_indices = @transform_9, window_bounds = array<i64: 1, 9, 288>}, {transform_indices = @transform_10, window_bounds = array<i64: 1, 9, 288>}]} {
    %cst = arith.constant 0.000000e+00 : f32
    %0 = vector.broadcast %cst : f32 to vector<7x288xf32>
    %c0 = arith.constant 0 : index
    %c0_0 = arith.constant 0 : index
    %c0_1 = arith.constant 0 : index
    %1 = vector.load %arg2[%c0, %c0_0, %c0_1] : memref<1x8x32xf32, #tpu.memory_space<vmem>>, vector<1x7x32xf32>
    %2 = vector.shape_cast %1 : vector<1x7x32xf32> to vector<7x32xf32>
    %c0_2 = arith.constant 0 : index
    %c0_3 = arith.constant 0 : index
    %c0_4 = arith.constant 0 : index
    %c0_5 = arith.constant 0 : index
    %3 = vector.load %arg6[%c0_2, %c0_3, %c0_4, %c0_5] : memref<5x2x32x288xf32, #tpu.memory_space<vmem>>, vector<1x1x32x288xf32>
    %4 = vector.shape_cast %3 : vector<1x1x32x288xf32> to vector<32x288xf32>
    %cst_6 = arith.constant dense<0.000000e+00> : vector<7x288xf32>
    %5 = tpu.matmul %2, %4, %cst_6 {dimension_numbers = #tpu.dot_dimension_numbers<[1], [0], [0], [1], [0, 0, 1, 1], [], []>} : vector<7x32xf32>, vector<32x288xf32>, vector<7x288xf32> -> vector<7x288xf32>
    %6 = arith.addf %0, %5 : vector<7x288xf32>
    %c0_7 = arith.constant 0 : index
    %c0_8 = arith.constant 0 : index
    %c0_9 = arith.constant 0 : index
    %7 = vector.load %arg3[%c0_7, %c0_8, %c0_9] : memref<1x8x32xf32, #tpu.memory_space<vmem>>, vector<1x7x32xf32>
    %8 = vector.shape_cast %7 : vector<1x7x32xf32> to vector<7x32xf32>
    %c1 = arith.constant 1 : index
    %c0_10 = arith.constant 0 : index
    %c0_11 = arith.constant 0 : index
    %c0_12 = arith.constant 0 : index
    %9 = vector.load %arg6[%c1, %c0_10, %c0_11, %c0_12] : memref<5x2x32x288xf32, #tpu.memory_space<vmem>>, vector<1x1x32x288xf32>
    %10 = vector.shape_cast %9 : vector<1x1x32x288xf32> to vector<32x288xf32>
    %cst_13 = arith.constant dense<0.000000e+00> : vector<7x288xf32>
    %11 = tpu.matmul %8, %10, %cst_13 {dimension_numbers = #tpu.dot_dimension_numbers<[1], [0], [0], [1], [0, 0, 1, 1], [], []>} : vector<7x32xf32>, vector<32x288xf32>, vector<7x288xf32> -> vector<7x288xf32>
    %12 = arith.addf %6, %11 : vector<7x288xf32>
    %c0_14 = arith.constant 0 : index
    %c0_15 = arith.constant 0 : index
    %c0_16 = arith.constant 0 : index
    %13 = vector.load %arg4[%c0_14, %c0_15, %c0_16] : memref<1x8x32xf32, #tpu.memory_space<vmem>>, vector<1x7x32xf32>
    %14 = vector.shape_cast %13 : vector<1x7x32xf32> to vector<7x32xf32>
    %c2 = arith.constant 2 : index
    %c0_17 = arith.constant 0 : index
    %c0_18 = arith.constant 0 : index
    %c0_19 = arith.constant 0 : index
    %15 = vector.load %arg6[%c2, %c0_17, %c0_18, %c0_19] : memref<5x2x32x288xf32, #tpu.memory_space<vmem>>, vector<1x1x32x288xf32>
    %16 = vector.shape_cast %15 : vector<1x1x32x288xf32> to vector<32x288xf32>
    %cst_20 = arith.constant dense<0.000000e+00> : vector<7x288xf32>
    %17 = tpu.matmul %14, %16, %cst_20 {dimension_numbers = #tpu.dot_dimension_numbers<[1], [0], [0], [1], [0, 0, 1, 1], [], []>} : vector<7x32xf32>, vector<32x288xf32>, vector<7x288xf32> -> vector<7x288xf32>
    %18 = arith.addf %12, %17 : vector<7x288xf32>
    %c0_21 = arith.constant 0 : index
    %c0_22 = arith.constant 0 : index
    %c0_23 = arith.constant 0 : index
    %19 = vector.load %arg5[%c0_21, %c0_22, %c0_23] : memref<1x8x32xf32, #tpu.memory_space<vmem>>, vector<1x7x32xf32>
    %20 = vector.shape_cast %19 : vector<1x7x32xf32> to vector<7x32xf32>
    %c3 = arith.constant 3 : index
    %c0_24 = arith.constant 0 : index
    %c0_25 = arith.constant 0 : index
    %c0_26 = arith.constant 0 : index
    %21 = vector.load %arg6[%c3, %c0_24, %c0_25, %c0_26] : memref<5x2x32x288xf32, #tpu.memory_space<vmem>>, vector<1x1x32x288xf32>
    %22 = vector.shape_cast %21 : vector<1x1x32x288xf32> to vector<32x288xf32>
    %cst_27 = arith.constant dense<0.000000e+00> : vector<7x288xf32>
    %23 = tpu.matmul %20, %22, %cst_27 {dimension_numbers = #tpu.dot_dimension_numbers<[1], [0], [0], [1], [0, 0, 1, 1], [], []>} : vector<7x32xf32>, vector<32x288xf32>, vector<7x288xf32> -> vector<7x288xf32>
    %24 = arith.addf %18, %23 : vector<7x288xf32>
    %c0_28 = arith.constant 0 : index
    %c1_29 = arith.constant 1 : index
    %c0_30 = arith.constant 0 : index
    %25 = vector.load %arg2[%c0_28, %c1_29, %c0_30] : memref<1x8x32xf32, #tpu.memory_space<vmem>>, vector<1x7x32xf32>
    %26 = vector.shape_cast %25 : vector<1x7x32xf32> to vector<7x32xf32>
    %c4 = arith.constant 4 : index
    %c0_31 = arith.constant 0 : index
    %c0_32 = arith.constant 0 : index
    %c0_33 = arith.constant 0 : index
    %27 = vector.load %arg6[%c4, %c0_31, %c0_32, %c0_33] : memref<5x2x32x288xf32, #tpu.memory_space<vmem>>, vector<1x1x32x288xf32>
    %28 = vector.shape_cast %27 : vector<1x1x32x288xf32> to vector<32x288xf32>
    %cst_34 = arith.constant dense<0.000000e+00> : vector<7x288xf32>
    %29 = tpu.matmul %26, %28, %cst_34 {dimension_numbers = #tpu.dot_dimension_numbers<[1], [0], [0], [1], [0, 0, 1, 1], [], []>} : vector<7x32xf32>, vector<32x288xf32>, vector<7x288xf32> -> vector<7x288xf32>
    %30 = arith.addf %24, %29 : vector<7x288xf32>
    %cst_35 = arith.constant 0.000000e+00 : f32
    %31 = vector.broadcast %cst_35 : f32 to vector<7x288xf32>
    %c0_36 = arith.constant 0 : index
    %c0_37 = arith.constant 0 : index
    %c0_38 = arith.constant 0 : index
    %32 = vector.load %arg2[%c0_36, %c0_37, %c0_38] : memref<1x8x32xf32, #tpu.memory_space<vmem>>, vector<1x7x32xf32>
    %33 = vector.shape_cast %32 : vector<1x7x32xf32> to vector<7x32xf32>
    %c0_39 = arith.constant 0 : index
    %c1_40 = arith.constant 1 : index
    %c0_41 = arith.constant 0 : index
    %c0_42 = arith.constant 0 : index
    %34 = vector.load %arg6[%c0_39, %c1_40, %c0_41, %c0_42] : memref<5x2x32x288xf32, #tpu.memory_space<vmem>>, vector<1x1x32x288xf32>
    %35 = vector.shape_cast %34 : vector<1x1x32x288xf32> to vector<32x288xf32>
    %cst_43 = arith.constant dense<0.000000e+00> : vector<7x288xf32>
    %36 = tpu.matmul %33, %35, %cst_43 {dimension_numbers = #tpu.dot_dimension_numbers<[1], [0], [0], [1], [0, 0, 1, 1], [], []>} : vector<7x32xf32>, vector<32x288xf32>, vector<7x288xf32> -> vector<7x288xf32>
    %37 = arith.addf %31, %36 : vector<7x288xf32>
    %c0_44 = arith.constant 0 : index
    %c0_45 = arith.constant 0 : index
    %c0_46 = arith.constant 0 : index
    %38 = vector.load %arg3[%c0_44, %c0_45, %c0_46] : memref<1x8x32xf32, #tpu.memory_space<vmem>>, vector<1x7x32xf32>
    %39 = vector.shape_cast %38 : vector<1x7x32xf32> to vector<7x32xf32>
    %c1_47 = arith.constant 1 : index
    %c1_48 = arith.constant 1 : index
    %c0_49 = arith.constant 0 : index
    %c0_50 = arith.constant 0 : index
    %40 = vector.load %arg6[%c1_47, %c1_48, %c0_49, %c0_50] : memref<5x2x32x288xf32, #tpu.memory_space<vmem>>, vector<1x1x32x288xf32>
    %41 = vector.shape_cast %40 : vector<1x1x32x288xf32> to vector<32x288xf32>
    %cst_51 = arith.constant dense<0.000000e+00> : vector<7x288xf32>
    %42 = tpu.matmul %39, %41, %cst_51 {dimension_numbers = #tpu.dot_dimension_numbers<[1], [0], [0], [1], [0, 0, 1, 1], [], []>} : vector<7x32xf32>, vector<32x288xf32>, vector<7x288xf32> -> vector<7x288xf32>
    %43 = arith.addf %37, %42 : vector<7x288xf32>
    %c0_52 = arith.constant 0 : index
    %c0_53 = arith.constant 0 : index
    %c0_54 = arith.constant 0 : index
    %44 = vector.load %arg4[%c0_52, %c0_53, %c0_54] : memref<1x8x32xf32, #tpu.memory_space<vmem>>, vector<1x7x32xf32>
    %45 = vector.shape_cast %44 : vector<1x7x32xf32> to vector<7x32xf32>
    %c2_55 = arith.constant 2 : index
    %c1_56 = arith.constant 1 : index
    %c0_57 = arith.constant 0 : index
    %c0_58 = arith.constant 0 : index
    %46 = vector.load %arg6[%c2_55, %c1_56, %c0_57, %c0_58] : memref<5x2x32x288xf32, #tpu.memory_space<vmem>>, vector<1x1x32x288xf32>
    %47 = vector.shape_cast %46 : vector<1x1x32x288xf32> to vector<32x288xf32>
    %cst_59 = arith.constant dense<0.000000e+00> : vector<7x288xf32>
    %48 = tpu.matmul %45, %47, %cst_59 {dimension_numbers = #tpu.dot_dimension_numbers<[1], [0], [0], [1], [0, 0, 1, 1], [], []>} : vector<7x32xf32>, vector<32x288xf32>, vector<7x288xf32> -> vector<7x288xf32>
    %49 = arith.addf %43, %48 : vector<7x288xf32>
    %c0_60 = arith.constant 0 : index
    %c0_61 = arith.constant 0 : index
    %c0_62 = arith.constant 0 : index
    %50 = vector.load %arg5[%c0_60, %c0_61, %c0_62] : memref<1x8x32xf32, #tpu.memory_space<vmem>>, vector<1x7x32xf32>
    %51 = vector.shape_cast %50 : vector<1x7x32xf32> to vector<7x32xf32>
    %c3_63 = arith.constant 3 : index
    %c1_64 = arith.constant 1 : index
    %c0_65 = arith.constant 0 : index
    %c0_66 = arith.constant 0 : index
    %52 = vector.load %arg6[%c3_63, %c1_64, %c0_65, %c0_66] : memref<5x2x32x288xf32, #tpu.memory_space<vmem>>, vector<1x1x32x288xf32>
    %53 = vector.shape_cast %52 : vector<1x1x32x288xf32> to vector<32x288xf32>
    %cst_67 = arith.constant dense<0.000000e+00> : vector<7x288xf32>
    %54 = tpu.matmul %51, %53, %cst_67 {dimension_numbers = #tpu.dot_dimension_numbers<[1], [0], [0], [1], [0, 0, 1, 1], [], []>} : vector<7x32xf32>, vector<32x288xf32>, vector<7x288xf32> -> vector<7x288xf32>
    %55 = arith.addf %49, %54 : vector<7x288xf32>
    %c0_68 = arith.constant 0 : index
    %c1_69 = arith.constant 1 : index
    %c0_70 = arith.constant 0 : index
    %56 = vector.load %arg2[%c0_68, %c1_69, %c0_70] : memref<1x8x32xf32, #tpu.memory_space<vmem>>, vector<1x7x32xf32>
    %57 = vector.shape_cast %56 : vector<1x7x32xf32> to vector<7x32xf32>
    %c4_71 = arith.constant 4 : index
    %c1_72 = arith.constant 1 : index
    %c0_73 = arith.constant 0 : index
    %c0_74 = arith.constant 0 : index
    %58 = vector.load %arg6[%c4_71, %c1_72, %c0_73, %c0_74] : memref<5x2x32x288xf32, #tpu.memory_space<vmem>>, vector<1x1x32x288xf32>
    %59 = vector.shape_cast %58 : vector<1x1x32x288xf32> to vector<32x288xf32>
    %cst_75 = arith.constant dense<0.000000e+00> : vector<7x288xf32>
    %60 = tpu.matmul %57, %59, %cst_75 {dimension_numbers = #tpu.dot_dimension_numbers<[1], [0], [0], [1], [0, 0, 1, 1], [], []>} : vector<7x32xf32>, vector<32x288xf32>, vector<7x288xf32> -> vector<7x288xf32>
    %61 = arith.addf %55, %60 : vector<7x288xf32>
    %cst_76 = arith.constant 0.000000e+00 : f32
    %62 = vector.broadcast %cst_76 : f32 to vector<7x288xf32>
    %c0_77 = arith.constant 0 : index
    %c0_78 = arith.constant 0 : index
    %c0_79 = arith.constant 0 : index
    %63 = vector.load %arg3[%c0_77, %c0_78, %c0_79] : memref<1x8x32xf32, #tpu.memory_space<vmem>>, vector<1x7x32xf32>
    %64 = vector.shape_cast %63 : vector<1x7x32xf32> to vector<7x32xf32>
    %c0_80 = arith.constant 0 : index
    %c0_81 = arith.constant 0 : index
    %c0_82 = arith.constant 0 : index
    %c0_83 = arith.constant 0 : index
    %65 = vector.load %arg6[%c0_80, %c0_81, %c0_82, %c0_83] : memref<5x2x32x288xf32, #tpu.memory_space<vmem>>, vector<1x1x32x288xf32>
    %66 = vector.shape_cast %65 : vector<1x1x32x288xf32> to vector<32x288xf32>
    %cst_84 = arith.constant dense<0.000000e+00> : vector<7x288xf32>
    %67 = tpu.matmul %64, %66, %cst_84 {dimension_numbers = #tpu.dot_dimension_numbers<[1], [0], [0], [1], [0, 0, 1, 1], [], []>} : vector<7x32xf32>, vector<32x288xf32>, vector<7x288xf32> -> vector<7x288xf32>
    %68 = arith.addf %62, %67 : vector<7x288xf32>
    %c0_85 = arith.constant 0 : index
    %c0_86 = arith.constant 0 : index
    %c0_87 = arith.constant 0 : index
    %69 = vector.load %arg4[%c0_85, %c0_86, %c0_87] : memref<1x8x32xf32, #tpu.memory_space<vmem>>, vector<1x7x32xf32>
    %70 = vector.shape_cast %69 : vector<1x7x32xf32> to vector<7x32xf32>
    %c1_88 = arith.constant 1 : index
    %c0_89 = arith.constant 0 : index
    %c0_90 = arith.constant 0 : index
    %c0_91 = arith.constant 0 : index
    %71 = vector.load %arg6[%c1_88, %c0_89, %c0_90, %c0_91] : memref<5x2x32x288xf32, #tpu.memory_space<vmem>>, vector<1x1x32x288xf32>
    %72 = vector.shape_cast %71 : vector<1x1x32x288xf32> to vector<32x288xf32>
    %cst_92 = arith.constant dense<0.000000e+00> : vector<7x288xf32>
    %73 = tpu.matmul %70, %72, %cst_92 {dimension_numbers = #tpu.dot_dimension_numbers<[1], [0], [0], [1], [0, 0, 1, 1], [], []>} : vector<7x32xf32>, vector<32x288xf32>, vector<7x288xf32> -> vector<7x288xf32>
    %74 = arith.addf %68, %73 : vector<7x288xf32>
    %c0_93 = arith.constant 0 : index
    %c0_94 = arith.constant 0 : index
    %c0_95 = arith.constant 0 : index
    %75 = vector.load %arg5[%c0_93, %c0_94, %c0_95] : memref<1x8x32xf32, #tpu.memory_space<vmem>>, vector<1x7x32xf32>
    %76 = vector.shape_cast %75 : vector<1x7x32xf32> to vector<7x32xf32>
    %c2_96 = arith.constant 2 : index
    %c0_97 = arith.constant 0 : index
    %c0_98 = arith.constant 0 : index
    %c0_99 = arith.constant 0 : index
    %77 = vector.load %arg6[%c2_96, %c0_97, %c0_98, %c0_99] : memref<5x2x32x288xf32, #tpu.memory_space<vmem>>, vector<1x1x32x288xf32>
    %78 = vector.shape_cast %77 : vector<1x1x32x288xf32> to vector<32x288xf32>
    %cst_100 = arith.constant dense<0.000000e+00> : vector<7x288xf32>
    %79 = tpu.matmul %76, %78, %cst_100 {dimension_numbers = #tpu.dot_dimension_numbers<[1], [0], [0], [1], [0, 0, 1, 1], [], []>} : vector<7x32xf32>, vector<32x288xf32>, vector<7x288xf32> -> vector<7x288xf32>
    %80 = arith.addf %74, %79 : vector<7x288xf32>
    %c0_101 = arith.constant 0 : index
    %c1_102 = arith.constant 1 : index
    %c0_103 = arith.constant 0 : index
    %81 = vector.load %arg2[%c0_101, %c1_102, %c0_103] : memref<1x8x32xf32, #tpu.memory_space<vmem>>, vector<1x7x32xf32>
    %82 = vector.shape_cast %81 : vector<1x7x32xf32> to vector<7x32xf32>
    %c3_104 = arith.constant 3 : index
    %c0_105 = arith.constant 0 : index
    %c0_106 = arith.constant 0 : index
    %c0_107 = arith.constant 0 : index
    %83 = vector.load %arg6[%c3_104, %c0_105, %c0_106, %c0_107] : memref<5x2x32x288xf32, #tpu.memory_space<vmem>>, vector<1x1x32x288xf32>
    %84 = vector.shape_cast %83 : vector<1x1x32x288xf32> to vector<32x288xf32>
    %cst_108 = arith.constant dense<0.000000e+00> : vector<7x288xf32>
    %85 = tpu.matmul %82, %84, %cst_108 {dimension_numbers = #tpu.dot_dimension_numbers<[1], [0], [0], [1], [0, 0, 1, 1], [], []>} : vector<7x32xf32>, vector<32x288xf32>, vector<7x288xf32> -> vector<7x288xf32>
    %86 = arith.addf %80, %85 : vector<7x288xf32>
    %c0_109 = arith.constant 0 : index
    %c1_110 = arith.constant 1 : index
    %c0_111 = arith.constant 0 : index
    %87 = vector.load %arg3[%c0_109, %c1_110, %c0_111] : memref<1x8x32xf32, #tpu.memory_space<vmem>>, vector<1x7x32xf32>
    %88 = vector.shape_cast %87 : vector<1x7x32xf32> to vector<7x32xf32>
    %c4_112 = arith.constant 4 : index
    %c0_113 = arith.constant 0 : index
    %c0_114 = arith.constant 0 : index
    %c0_115 = arith.constant 0 : index
    %89 = vector.load %arg6[%c4_112, %c0_113, %c0_114, %c0_115] : memref<5x2x32x288xf32, #tpu.memory_space<vmem>>, vector<1x1x32x288xf32>
    %90 = vector.shape_cast %89 : vector<1x1x32x288xf32> to vector<32x288xf32>
    %cst_116 = arith.constant dense<0.000000e+00> : vector<7x288xf32>
    %91 = tpu.matmul %88, %90, %cst_116 {dimension_numbers = #tpu.dot_dimension_numbers<[1], [0], [0], [1], [0, 0, 1, 1], [], []>} : vector<7x32xf32>, vector<32x288xf32>, vector<7x288xf32> -> vector<7x288xf32>
    %92 = arith.addf %86, %91 : vector<7x288xf32>
    %cst_117 = arith.constant 0.000000e+00 : f32
    %93 = vector.broadcast %cst_117 : f32 to vector<7x288xf32>
    %c0_118 = arith.constant 0 : index
    %c0_119 = arith.constant 0 : index
    %c0_120 = arith.constant 0 : index
    %94 = vector.load %arg3[%c0_118, %c0_119, %c0_120] : memref<1x8x32xf32, #tpu.memory_space<vmem>>, vector<1x7x32xf32>
    %95 = vector.shape_cast %94 : vector<1x7x32xf32> to vector<7x32xf32>
    %c0_121 = arith.constant 0 : index
    %c1_122 = arith.constant 1 : index
    %c0_123 = arith.constant 0 : index
    %c0_124 = arith.constant 0 : index
    %96 = vector.load %arg6[%c0_121, %c1_122, %c0_123, %c0_124] : memref<5x2x32x288xf32, #tpu.memory_space<vmem>>, vector<1x1x32x288xf32>
    %97 = vector.shape_cast %96 : vector<1x1x32x288xf32> to vector<32x288xf32>
    %cst_125 = arith.constant dense<0.000000e+00> : vector<7x288xf32>
    %98 = tpu.matmul %95, %97, %cst_125 {dimension_numbers = #tpu.dot_dimension_numbers<[1], [0], [0], [1], [0, 0, 1, 1], [], []>} : vector<7x32xf32>, vector<32x288xf32>, vector<7x288xf32> -> vector<7x288xf32>
    %99 = arith.addf %93, %98 : vector<7x288xf32>
    %c0_126 = arith.constant 0 : index
    %c0_127 = arith.constant 0 : index
    %c0_128 = arith.constant 0 : index
    %100 = vector.load %arg4[%c0_126, %c0_127, %c0_128] : memref<1x8x32xf32, #tpu.memory_space<vmem>>, vector<1x7x32xf32>
    %101 = vector.shape_cast %100 : vector<1x7x32xf32> to vector<7x32xf32>
    %c1_129 = arith.constant 1 : index
    %c1_130 = arith.constant 1 : index
    %c0_131 = arith.constant 0 : index
    %c0_132 = arith.constant 0 : index
    %102 = vector.load %arg6[%c1_129, %c1_130, %c0_131, %c0_132] : memref<5x2x32x288xf32, #tpu.memory_space<vmem>>, vector<1x1x32x288xf32>
    %103 = vector.shape_cast %102 : vector<1x1x32x288xf32> to vector<32x288xf32>
    %cst_133 = arith.constant dense<0.000000e+00> : vector<7x288xf32>
    %104 = tpu.matmul %101, %103, %cst_133 {dimension_numbers = #tpu.dot_dimension_numbers<[1], [0], [0], [1], [0, 0, 1, 1], [], []>} : vector<7x32xf32>, vector<32x288xf32>, vector<7x288xf32> -> vector<7x288xf32>
    %105 = arith.addf %99, %104 : vector<7x288xf32>
    %c0_134 = arith.constant 0 : index
    %c0_135 = arith.constant 0 : index
    %c0_136 = arith.constant 0 : index
    %106 = vector.load %arg5[%c0_134, %c0_135, %c0_136] : memref<1x8x32xf32, #tpu.memory_space<vmem>>, vector<1x7x32xf32>
    %107 = vector.shape_cast %106 : vector<1x7x32xf32> to vector<7x32xf32>
    %c2_137 = arith.constant 2 : index
    %c1_138 = arith.constant 1 : index
    %c0_139 = arith.constant 0 : index
    %c0_140 = arith.constant 0 : index
    %108 = vector.load %arg6[%c2_137, %c1_138, %c0_139, %c0_140] : memref<5x2x32x288xf32, #tpu.memory_space<vmem>>, vector<1x1x32x288xf32>
    %109 = vector.shape_cast %108 : vector<1x1x32x288xf32> to vector<32x288xf32>
    %cst_141 = arith.constant dense<0.000000e+00> : vector<7x288xf32>
    %110 = tpu.matmul %107, %109, %cst_141 {dimension_numbers = #tpu.dot_dimension_numbers<[1], [0], [0], [1], [0, 0, 1, 1], [], []>} : vector<7x32xf32>, vector<32x288xf32>, vector<7x288xf32> -> vector<7x288xf32>
    %111 = arith.addf %105, %110 : vector<7x288xf32>
    %c0_142 = arith.constant 0 : index
    %c1_143 = arith.constant 1 : index
    %c0_144 = arith.constant 0 : index
    %112 = vector.load %arg2[%c0_142, %c1_143, %c0_144] : memref<1x8x32xf32, #tpu.memory_space<vmem>>, vector<1x7x32xf32>
    %113 = vector.shape_cast %112 : vector<1x7x32xf32> to vector<7x32xf32>
    %c3_145 = arith.constant 3 : index
    %c1_146 = arith.constant 1 : index
    %c0_147 = arith.constant 0 : index
    %c0_148 = arith.constant 0 : index
    %114 = vector.load %arg6[%c3_145, %c1_146, %c0_147, %c0_148] : memref<5x2x32x288xf32, #tpu.memory_space<vmem>>, vector<1x1x32x288xf32>
    %115 = vector.shape_cast %114 : vector<1x1x32x288xf32> to vector<32x288xf32>
    %cst_149 = arith.constant dense<0.000000e+00> : vector<7x288xf32>
    %116 = tpu.matmul %113, %115, %cst_149 {dimension_numbers = #tpu.dot_dimension_numbers<[1], [0], [0], [1], [0, 0, 1, 1], [], []>} : vector<7x32xf32>, vector<32x288xf32>, vector<7x288xf32> -> vector<7x288xf32>
    %117 = arith.addf %111, %116 : vector<7x288xf32>
    %c0_150 = arith.constant 0 : index
    %c1_151 = arith.constant 1 : index
    %c0_152 = arith.constant 0 : index
    %118 = vector.load %arg3[%c0_150, %c1_151, %c0_152] : memref<1x8x32xf32, #tpu.memory_space<vmem>>, vector<1x7x32xf32>
    %119 = vector.shape_cast %118 : vector<1x7x32xf32> to vector<7x32xf32>
    %c4_153 = arith.constant 4 : index
    %c1_154 = arith.constant 1 : index
    %c0_155 = arith.constant 0 : index
    %c0_156 = arith.constant 0 : index
    %120 = vector.load %arg6[%c4_153, %c1_154, %c0_155, %c0_156] : memref<5x2x32x288xf32, #tpu.memory_space<vmem>>, vector<1x1x32x288xf32>
    %121 = vector.shape_cast %120 : vector<1x1x32x288xf32> to vector<32x288xf32>
    %cst_157 = arith.constant dense<0.000000e+00> : vector<7x288xf32>
    %122 = tpu.matmul %119, %121, %cst_157 {dimension_numbers = #tpu.dot_dimension_numbers<[1], [0], [0], [1], [0, 0, 1, 1], [], []>} : vector<7x32xf32>, vector<32x288xf32>, vector<7x288xf32> -> vector<7x288xf32>
    %123 = arith.addf %117, %122 : vector<7x288xf32>
    %cst_158 = arith.constant 0.000000e+00 : f32
    %124 = vector.broadcast %cst_158 : f32 to vector<7x288xf32>
    %c0_159 = arith.constant 0 : index
    %c0_160 = arith.constant 0 : index
    %c0_161 = arith.constant 0 : index
    %125 = vector.load %arg4[%c0_159, %c0_160, %c0_161] : memref<1x8x32xf32, #tpu.memory_space<vmem>>, vector<1x7x32xf32>
    %126 = vector.shape_cast %125 : vector<1x7x32xf32> to vector<7x32xf32>
    %c0_162 = arith.constant 0 : index
    %c0_163 = arith.constant 0 : index
    %c0_164 = arith.constant 0 : index
    %c0_165 = arith.constant 0 : index
    %127 = vector.load %arg6[%c0_162, %c0_163, %c0_164, %c0_165] : memref<5x2x32x288xf32, #tpu.memory_space<vmem>>, vector<1x1x32x288xf32>
    %128 = vector.shape_cast %127 : vector<1x1x32x288xf32> to vector<32x288xf32>
    %cst_166 = arith.constant dense<0.000000e+00> : vector<7x288xf32>
    %129 = tpu.matmul %126, %128, %cst_166 {dimension_numbers = #tpu.dot_dimension_numbers<[1], [0], [0], [1], [0, 0, 1, 1], [], []>} : vector<7x32xf32>, vector<32x288xf32>, vector<7x288xf32> -> vector<7x288xf32>
    %130 = arith.addf %124, %129 : vector<7x288xf32>
    %c0_167 = arith.constant 0 : index
    %c0_168 = arith.constant 0 : index
    %c0_169 = arith.constant 0 : index
    %131 = vector.load %arg5[%c0_167, %c0_168, %c0_169] : memref<1x8x32xf32, #tpu.memory_space<vmem>>, vector<1x7x32xf32>
    %132 = vector.shape_cast %131 : vector<1x7x32xf32> to vector<7x32xf32>
    %c1_170 = arith.constant 1 : index
    %c0_171 = arith.constant 0 : index
    %c0_172 = arith.constant 0 : index
    %c0_173 = arith.constant 0 : index
    %133 = vector.load %arg6[%c1_170, %c0_171, %c0_172, %c0_173] : memref<5x2x32x288xf32, #tpu.memory_space<vmem>>, vector<1x1x32x288xf32>
    %134 = vector.shape_cast %133 : vector<1x1x32x288xf32> to vector<32x288xf32>
    %cst_174 = arith.constant dense<0.000000e+00> : vector<7x288xf32>
    %135 = tpu.matmul %132, %134, %cst_174 {dimension_numbers = #tpu.dot_dimension_numbers<[1], [0], [0], [1], [0, 0, 1, 1], [], []>} : vector<7x32xf32>, vector<32x288xf32>, vector<7x288xf32> -> vector<7x288xf32>
    %136 = arith.addf %130, %135 : vector<7x288xf32>
    %c0_175 = arith.constant 0 : index
    %c1_176 = arith.constant 1 : index
    %c0_177 = arith.constant 0 : index
    %137 = vector.load %arg2[%c0_175, %c1_176, %c0_177] : memref<1x8x32xf32, #tpu.memory_space<vmem>>, vector<1x7x32xf32>
    %138 = vector.shape_cast %137 : vector<1x7x32xf32> to vector<7x32xf32>
    %c2_178 = arith.constant 2 : index
    %c0_179 = arith.constant 0 : index
    %c0_180 = arith.constant 0 : index
    %c0_181 = arith.constant 0 : index
    %139 = vector.load %arg6[%c2_178, %c0_179, %c0_180, %c0_181] : memref<5x2x32x288xf32, #tpu.memory_space<vmem>>, vector<1x1x32x288xf32>
    %140 = vector.shape_cast %139 : vector<1x1x32x288xf32> to vector<32x288xf32>
    %cst_182 = arith.constant dense<0.000000e+00> : vector<7x288xf32>
    %141 = tpu.matmul %138, %140, %cst_182 {dimension_numbers = #tpu.dot_dimension_numbers<[1], [0], [0], [1], [0, 0, 1, 1], [], []>} : vector<7x32xf32>, vector<32x288xf32>, vector<7x288xf32> -> vector<7x288xf32>
    %142 = arith.addf %136, %141 : vector<7x288xf32>
    %c0_183 = arith.constant 0 : index
    %c1_184 = arith.constant 1 : index
    %c0_185 = arith.constant 0 : index
    %143 = vector.load %arg3[%c0_183, %c1_184, %c0_185] : memref<1x8x32xf32, #tpu.memory_space<vmem>>, vector<1x7x32xf32>
    %144 = vector.shape_cast %143 : vector<1x7x32xf32> to vector<7x32xf32>
    %c3_186 = arith.constant 3 : index
    %c0_187 = arith.constant 0 : index
    %c0_188 = arith.constant 0 : index
    %c0_189 = arith.constant 0 : index
    %145 = vector.load %arg6[%c3_186, %c0_187, %c0_188, %c0_189] : memref<5x2x32x288xf32, #tpu.memory_space<vmem>>, vector<1x1x32x288xf32>
    %146 = vector.shape_cast %145 : vector<1x1x32x288xf32> to vector<32x288xf32>
    %cst_190 = arith.constant dense<0.000000e+00> : vector<7x288xf32>
    %147 = tpu.matmul %144, %146, %cst_190 {dimension_numbers = #tpu.dot_dimension_numbers<[1], [0], [0], [1], [0, 0, 1, 1], [], []>} : vector<7x32xf32>, vector<32x288xf32>, vector<7x288xf32> -> vector<7x288xf32>
    %148 = arith.addf %142, %147 : vector<7x288xf32>
    %c0_191 = arith.constant 0 : index
    %c1_192 = arith.constant 1 : index
    %c0_193 = arith.constant 0 : index
    %149 = vector.load %arg4[%c0_191, %c1_192, %c0_193] : memref<1x8x32xf32, #tpu.memory_space<vmem>>, vector<1x7x32xf32>
    %150 = vector.shape_cast %149 : vector<1x7x32xf32> to vector<7x32xf32>
    %c4_194 = arith.constant 4 : index
    %c0_195 = arith.constant 0 : index
    %c0_196 = arith.constant 0 : index
    %c0_197 = arith.constant 0 : index
    %151 = vector.load %arg6[%c4_194, %c0_195, %c0_196, %c0_197] : memref<5x2x32x288xf32, #tpu.memory_space<vmem>>, vector<1x1x32x288xf32>
    %152 = vector.shape_cast %151 : vector<1x1x32x288xf32> to vector<32x288xf32>
    %cst_198 = arith.constant dense<0.000000e+00> : vector<7x288xf32>
    %153 = tpu.matmul %150, %152, %cst_198 {dimension_numbers = #tpu.dot_dimension_numbers<[1], [0], [0], [1], [0, 0, 1, 1], [], []>} : vector<7x32xf32>, vector<32x288xf32>, vector<7x288xf32> -> vector<7x288xf32>
    %154 = arith.addf %148, %153 : vector<7x288xf32>
    %cst_199 = arith.constant 0.000000e+00 : f32
    %155 = vector.broadcast %cst_199 : f32 to vector<7x288xf32>
    %c0_200 = arith.constant 0 : index
    %c0_201 = arith.constant 0 : index
    %c0_202 = arith.constant 0 : index
    %156 = vector.load %arg4[%c0_200, %c0_201, %c0_202] : memref<1x8x32xf32, #tpu.memory_space<vmem>>, vector<1x7x32xf32>
    %157 = vector.shape_cast %156 : vector<1x7x32xf32> to vector<7x32xf32>
    %c0_203 = arith.constant 0 : index
    %c1_204 = arith.constant 1 : index
    %c0_205 = arith.constant 0 : index
    %c0_206 = arith.constant 0 : index
    %158 = vector.load %arg6[%c0_203, %c1_204, %c0_205, %c0_206] : memref<5x2x32x288xf32, #tpu.memory_space<vmem>>, vector<1x1x32x288xf32>
    %159 = vector.shape_cast %158 : vector<1x1x32x288xf32> to vector<32x288xf32>
    %cst_207 = arith.constant dense<0.000000e+00> : vector<7x288xf32>
    %160 = tpu.matmul %157, %159, %cst_207 {dimension_numbers = #tpu.dot_dimension_numbers<[1], [0], [0], [1], [0, 0, 1, 1], [], []>} : vector<7x32xf32>, vector<32x288xf32>, vector<7x288xf32> -> vector<7x288xf32>
    %161 = arith.addf %155, %160 : vector<7x288xf32>
    %c0_208 = arith.constant 0 : index
    %c0_209 = arith.constant 0 : index
    %c0_210 = arith.constant 0 : index
    %162 = vector.load %arg5[%c0_208, %c0_209, %c0_210] : memref<1x8x32xf32, #tpu.memory_space<vmem>>, vector<1x7x32xf32>
    %163 = vector.shape_cast %162 : vector<1x7x32xf32> to vector<7x32xf32>
    %c1_211 = arith.constant 1 : index
    %c1_212 = arith.constant 1 : index
    %c0_213 = arith.constant 0 : index
    %c0_214 = arith.constant 0 : index
    %164 = vector.load %arg6[%c1_211, %c1_212, %c0_213, %c0_214] : memref<5x2x32x288xf32, #tpu.memory_space<vmem>>, vector<1x1x32x288xf32>
    %165 = vector.shape_cast %164 : vector<1x1x32x288xf32> to vector<32x288xf32>
    %cst_215 = arith.constant dense<0.000000e+00> : vector<7x288xf32>
    %166 = tpu.matmul %163, %165, %cst_215 {dimension_numbers = #tpu.dot_dimension_numbers<[1], [0], [0], [1], [0, 0, 1, 1], [], []>} : vector<7x32xf32>, vector<32x288xf32>, vector<7x288xf32> -> vector<7x288xf32>
    %167 = arith.addf %161, %166 : vector<7x288xf32>
    %c0_216 = arith.constant 0 : index
    %c1_217 = arith.constant 1 : index
    %c0_218 = arith.constant 0 : index
    %168 = vector.load %arg2[%c0_216, %c1_217, %c0_218] : memref<1x8x32xf32, #tpu.memory_space<vmem>>, vector<1x7x32xf32>
    %169 = vector.shape_cast %168 : vector<1x7x32xf32> to vector<7x32xf32>
    %c2_219 = arith.constant 2 : index
    %c1_220 = arith.constant 1 : index
    %c0_221 = arith.constant 0 : index
    %c0_222 = arith.constant 0 : index
    %170 = vector.load %arg6[%c2_219, %c1_220, %c0_221, %c0_222] : memref<5x2x32x288xf32, #tpu.memory_space<vmem>>, vector<1x1x32x288xf32>
    %171 = vector.shape_cast %170 : vector<1x1x32x288xf32> to vector<32x288xf32>
    %cst_223 = arith.constant dense<0.000000e+00> : vector<7x288xf32>
    %172 = tpu.matmul %169, %171, %cst_223 {dimension_numbers = #tpu.dot_dimension_numbers<[1], [0], [0], [1], [0, 0, 1, 1], [], []>} : vector<7x32xf32>, vector<32x288xf32>, vector<7x288xf32> -> vector<7x288xf32>
    %173 = arith.addf %167, %172 : vector<7x288xf32>
    %c0_224 = arith.constant 0 : index
    %c1_225 = arith.constant 1 : index
    %c0_226 = arith.constant 0 : index
    %174 = vector.load %arg3[%c0_224, %c1_225, %c0_226] : memref<1x8x32xf32, #tpu.memory_space<vmem>>, vector<1x7x32xf32>
    %175 = vector.shape_cast %174 : vector<1x7x32xf32> to vector<7x32xf32>
    %c3_227 = arith.constant 3 : index
    %c1_228 = arith.constant 1 : index
    %c0_229 = arith.constant 0 : index
    %c0_230 = arith.constant 0 : index
    %176 = vector.load %arg6[%c3_227, %c1_228, %c0_229, %c0_230] : memref<5x2x32x288xf32, #tpu.memory_space<vmem>>, vector<1x1x32x288xf32>
    %177 = vector.shape_cast %176 : vector<1x1x32x288xf32> to vector<32x288xf32>
    %cst_231 = arith.constant dense<0.000000e+00> : vector<7x288xf32>
    %178 = tpu.matmul %175, %177, %cst_231 {dimension_numbers = #tpu.dot_dimension_numbers<[1], [0], [0], [1], [0, 0, 1, 1], [], []>} : vector<7x32xf32>, vector<32x288xf32>, vector<7x288xf32> -> vector<7x288xf32>
    %179 = arith.addf %173, %178 : vector<7x288xf32>
    %c0_232 = arith.constant 0 : index
    %c1_233 = arith.constant 1 : index
    %c0_234 = arith.constant 0 : index
    %180 = vector.load %arg4[%c0_232, %c1_233, %c0_234] : memref<1x8x32xf32, #tpu.memory_space<vmem>>, vector<1x7x32xf32>
    %181 = vector.shape_cast %180 : vector<1x7x32xf32> to vector<7x32xf32>
    %c4_235 = arith.constant 4 : index
    %c1_236 = arith.constant 1 : index
    %c0_237 = arith.constant 0 : index
    %c0_238 = arith.constant 0 : index
    %182 = vector.load %arg6[%c4_235, %c1_236, %c0_237, %c0_238] : memref<5x2x32x288xf32, #tpu.memory_space<vmem>>, vector<1x1x32x288xf32>
    %183 = vector.shape_cast %182 : vector<1x1x32x288xf32> to vector<32x288xf32>
    %cst_239 = arith.constant dense<0.000000e+00> : vector<7x288xf32>
    %184 = tpu.matmul %181, %183, %cst_239 {dimension_numbers = #tpu.dot_dimension_numbers<[1], [0], [0], [1], [0, 0, 1, 1], [], []>} : vector<7x32xf32>, vector<32x288xf32>, vector<7x288xf32> -> vector<7x288xf32>
    %185 = arith.addf %179, %184 : vector<7x288xf32>
    %cst_240 = arith.constant 0.000000e+00 : f32
    %186 = vector.broadcast %cst_240 : f32 to vector<7x288xf32>
    %c0_241 = arith.constant 0 : index
    %c0_242 = arith.constant 0 : index
    %c0_243 = arith.constant 0 : index
    %187 = vector.load %arg5[%c0_241, %c0_242, %c0_243] : memref<1x8x32xf32, #tpu.memory_space<vmem>>, vector<1x7x32xf32>
    %188 = vector.shape_cast %187 : vector<1x7x32xf32> to vector<7x32xf32>
    %c0_244 = arith.constant 0 : index
    %c0_245 = arith.constant 0 : index
    %c0_246 = arith.constant 0 : index
    %c0_247 = arith.constant 0 : index
    %189 = vector.load %arg6[%c0_244, %c0_245, %c0_246, %c0_247] : memref<5x2x32x288xf32, #tpu.memory_space<vmem>>, vector<1x1x32x288xf32>
    %190 = vector.shape_cast %189 : vector<1x1x32x288xf32> to vector<32x288xf32>
    %cst_248 = arith.constant dense<0.000000e+00> : vector<7x288xf32>
    %191 = tpu.matmul %188, %190, %cst_248 {dimension_numbers = #tpu.dot_dimension_numbers<[1], [0], [0], [1], [0, 0, 1, 1], [], []>} : vector<7x32xf32>, vector<32x288xf32>, vector<7x288xf32> -> vector<7x288xf32>
    %192 = arith.addf %186, %191 : vector<7x288xf32>
    %c0_249 = arith.constant 0 : index
    %c1_250 = arith.constant 1 : index
    %c0_251 = arith.constant 0 : index
    %193 = vector.load %arg2[%c0_249, %c1_250, %c0_251] : memref<1x8x32xf32, #tpu.memory_space<vmem>>, vector<1x7x32xf32>
    %194 = vector.shape_cast %193 : vector<1x7x32xf32> to vector<7x32xf32>
    %c1_252 = arith.constant 1 : index
    %c0_253 = arith.constant 0 : index
    %c0_254 = arith.constant 0 : index
    %c0_255 = arith.constant 0 : index
    %195 = vector.load %arg6[%c1_252, %c0_253, %c0_254, %c0_255] : memref<5x2x32x288xf32, #tpu.memory_space<vmem>>, vector<1x1x32x288xf32>
    %196 = vector.shape_cast %195 : vector<1x1x32x288xf32> to vector<32x288xf32>
    %cst_256 = arith.constant dense<0.000000e+00> : vector<7x288xf32>
    %197 = tpu.matmul %194, %196, %cst_256 {dimension_numbers = #tpu.dot_dimension_numbers<[1], [0], [0], [1], [0, 0, 1, 1], [], []>} : vector<7x32xf32>, vector<32x288xf32>, vector<7x288xf32> -> vector<7x288xf32>
    %198 = arith.addf %192, %197 : vector<7x288xf32>
    %c0_257 = arith.constant 0 : index
    %c1_258 = arith.constant 1 : index
    %c0_259 = arith.constant 0 : index
    %199 = vector.load %arg3[%c0_257, %c1_258, %c0_259] : memref<1x8x32xf32, #tpu.memory_space<vmem>>, vector<1x7x32xf32>
    %200 = vector.shape_cast %199 : vector<1x7x32xf32> to vector<7x32xf32>
    %c2_260 = arith.constant 2 : index
    %c0_261 = arith.constant 0 : index
    %c0_262 = arith.constant 0 : index
    %c0_263 = arith.constant 0 : index
    %201 = vector.load %arg6[%c2_260, %c0_261, %c0_262, %c0_263] : memref<5x2x32x288xf32, #tpu.memory_space<vmem>>, vector<1x1x32x288xf32>
    %202 = vector.shape_cast %201 : vector<1x1x32x288xf32> to vector<32x288xf32>
    %cst_264 = arith.constant dense<0.000000e+00> : vector<7x288xf32>
    %203 = tpu.matmul %200, %202, %cst_264 {dimension_numbers = #tpu.dot_dimension_numbers<[1], [0], [0], [1], [0, 0, 1, 1], [], []>} : vector<7x32xf32>, vector<32x288xf32>, vector<7x288xf32> -> vector<7x288xf32>
    %204 = arith.addf %198, %203 : vector<7x288xf32>
    %c0_265 = arith.constant 0 : index
    %c1_266 = arith.constant 1 : index
    %c0_267 = arith.constant 0 : index
    %205 = vector.load %arg4[%c0_265, %c1_266, %c0_267] : memref<1x8x32xf32, #tpu.memory_space<vmem>>, vector<1x7x32xf32>
    %206 = vector.shape_cast %205 : vector<1x7x32xf32> to vector<7x32xf32>
    %c3_268 = arith.constant 3 : index
    %c0_269 = arith.constant 0 : index
    %c0_270 = arith.constant 0 : index
    %c0_271 = arith.constant 0 : index
    %207 = vector.load %arg6[%c3_268, %c0_269, %c0_270, %c0_271] : memref<5x2x32x288xf32, #tpu.memory_space<vmem>>, vector<1x1x32x288xf32>
    %208 = vector.shape_cast %207 : vector<1x1x32x288xf32> to vector<32x288xf32>
    %cst_272 = arith.constant dense<0.000000e+00> : vector<7x288xf32>
    %209 = tpu.matmul %206, %208, %cst_272 {dimension_numbers = #tpu.dot_dimension_numbers<[1], [0], [0], [1], [0, 0, 1, 1], [], []>} : vector<7x32xf32>, vector<32x288xf32>, vector<7x288xf32> -> vector<7x288xf32>
    %210 = arith.addf %204, %209 : vector<7x288xf32>
    %c0_273 = arith.constant 0 : index
    %c1_274 = arith.constant 1 : index
    %c0_275 = arith.constant 0 : index
    %211 = vector.load %arg5[%c0_273, %c1_274, %c0_275] : memref<1x8x32xf32, #tpu.memory_space<vmem>>, vector<1x7x32xf32>
    %212 = vector.shape_cast %211 : vector<1x7x32xf32> to vector<7x32xf32>
    %c4_276 = arith.constant 4 : index
    %c0_277 = arith.constant 0 : index
    %c0_278 = arith.constant 0 : index
    %c0_279 = arith.constant 0 : index
    %213 = vector.load %arg6[%c4_276, %c0_277, %c0_278, %c0_279] : memref<5x2x32x288xf32, #tpu.memory_space<vmem>>, vector<1x1x32x288xf32>
    %214 = vector.shape_cast %213 : vector<1x1x32x288xf32> to vector<32x288xf32>
    %cst_280 = arith.constant dense<0.000000e+00> : vector<7x288xf32>
    %215 = tpu.matmul %212, %214, %cst_280 {dimension_numbers = #tpu.dot_dimension_numbers<[1], [0], [0], [1], [0, 0, 1, 1], [], []>} : vector<7x32xf32>, vector<32x288xf32>, vector<7x288xf32> -> vector<7x288xf32>
    %216 = arith.addf %210, %215 : vector<7x288xf32>
    %cst_281 = arith.constant 0.000000e+00 : f32
    %217 = vector.broadcast %cst_281 : f32 to vector<7x288xf32>
    %c0_282 = arith.constant 0 : index
    %c0_283 = arith.constant 0 : index
    %c0_284 = arith.constant 0 : index
    %218 = vector.load %arg5[%c0_282, %c0_283, %c0_284] : memref<1x8x32xf32, #tpu.memory_space<vmem>>, vector<1x7x32xf32>
    %219 = vector.shape_cast %218 : vector<1x7x32xf32> to vector<7x32xf32>
    %c0_285 = arith.constant 0 : index
    %c1_286 = arith.constant 1 : index
    %c0_287 = arith.constant 0 : index
    %c0_288 = arith.constant 0 : index
    %220 = vector.load %arg6[%c0_285, %c1_286, %c0_287, %c0_288] : memref<5x2x32x288xf32, #tpu.memory_space<vmem>>, vector<1x1x32x288xf32>
    %221 = vector.shape_cast %220 : vector<1x1x32x288xf32> to vector<32x288xf32>
    %cst_289 = arith.constant dense<0.000000e+00> : vector<7x288xf32>
    %222 = tpu.matmul %219, %221, %cst_289 {dimension_numbers = #tpu.dot_dimension_numbers<[1], [0], [0], [1], [0, 0, 1, 1], [], []>} : vector<7x32xf32>, vector<32x288xf32>, vector<7x288xf32> -> vector<7x288xf32>
    %223 = arith.addf %217, %222 : vector<7x288xf32>
    %c0_290 = arith.constant 0 : index
    %c1_291 = arith.constant 1 : index
    %c0_292 = arith.constant 0 : index
    %224 = vector.load %arg2[%c0_290, %c1_291, %c0_292] : memref<1x8x32xf32, #tpu.memory_space<vmem>>, vector<1x7x32xf32>
    %225 = vector.shape_cast %224 : vector<1x7x32xf32> to vector<7x32xf32>
    %c1_293 = arith.constant 1 : index
    %c1_294 = arith.constant 1 : index
    %c0_295 = arith.constant 0 : index
    %c0_296 = arith.constant 0 : index
    %226 = vector.load %arg6[%c1_293, %c1_294, %c0_295, %c0_296] : memref<5x2x32x288xf32, #tpu.memory_space<vmem>>, vector<1x1x32x288xf32>
    %227 = vector.shape_cast %226 : vector<1x1x32x288xf32> to vector<32x288xf32>
    %cst_297 = arith.constant dense<0.000000e+00> : vector<7x288xf32>
    %228 = tpu.matmul %225, %227, %cst_297 {dimension_numbers = #tpu.dot_dimension_numbers<[1], [0], [0], [1], [0, 0, 1, 1], [], []>} : vector<7x32xf32>, vector<32x288xf32>, vector<7x288xf32> -> vector<7x288xf32>
    %229 = arith.addf %223, %228 : vector<7x288xf32>
    %c0_298 = arith.constant 0 : index
    %c1_299 = arith.constant 1 : index
    %c0_300 = arith.constant 0 : index
    %230 = vector.load %arg3[%c0_298, %c1_299, %c0_300] : memref<1x8x32xf32, #tpu.memory_space<vmem>>, vector<1x7x32xf32>
    %231 = vector.shape_cast %230 : vector<1x7x32xf32> to vector<7x32xf32>
    %c2_301 = arith.constant 2 : index
    %c1_302 = arith.constant 1 : index
    %c0_303 = arith.constant 0 : index
    %c0_304 = arith.constant 0 : index
    %232 = vector.load %arg6[%c2_301, %c1_302, %c0_303, %c0_304] : memref<5x2x32x288xf32, #tpu.memory_space<vmem>>, vector<1x1x32x288xf32>
    %233 = vector.shape_cast %232 : vector<1x1x32x288xf32> to vector<32x288xf32>
    %cst_305 = arith.constant dense<0.000000e+00> : vector<7x288xf32>
    %234 = tpu.matmul %231, %233, %cst_305 {dimension_numbers = #tpu.dot_dimension_numbers<[1], [0], [0], [1], [0, 0, 1, 1], [], []>} : vector<7x32xf32>, vector<32x288xf32>, vector<7x288xf32> -> vector<7x288xf32>
    %235 = arith.addf %229, %234 : vector<7x288xf32>
    %c0_306 = arith.constant 0 : index
    %c1_307 = arith.constant 1 : index
    %c0_308 = arith.constant 0 : index
    %236 = vector.load %arg4[%c0_306, %c1_307, %c0_308] : memref<1x8x32xf32, #tpu.memory_space<vmem>>, vector<1x7x32xf32>
    %237 = vector.shape_cast %236 : vector<1x7x32xf32> to vector<7x32xf32>
    %c3_309 = arith.constant 3 : index
    %c1_310 = arith.constant 1 : index
    %c0_311 = arith.constant 0 : index
    %c0_312 = arith.constant 0 : index
    %238 = vector.load %arg6[%c3_309, %c1_310, %c0_311, %c0_312] : memref<5x2x32x288xf32, #tpu.memory_space<vmem>>, vector<1x1x32x288xf32>
    %239 = vector.shape_cast %238 : vector<1x1x32x288xf32> to vector<32x288xf32>
    %cst_313 = arith.constant dense<0.000000e+00> : vector<7x288xf32>
    %240 = tpu.matmul %237, %239, %cst_313 {dimension_numbers = #tpu.dot_dimension_numbers<[1], [0], [0], [1], [0, 0, 1, 1], [], []>} : vector<7x32xf32>, vector<32x288xf32>, vector<7x288xf32> -> vector<7x288xf32>
    %241 = arith.addf %235, %240 : vector<7x288xf32>
    %c0_314 = arith.constant 0 : index
    %c1_315 = arith.constant 1 : index
    %c0_316 = arith.constant 0 : index
    %242 = vector.load %arg5[%c0_314, %c1_315, %c0_316] : memref<1x8x32xf32, #tpu.memory_space<vmem>>, vector<1x7x32xf32>
    %243 = vector.shape_cast %242 : vector<1x7x32xf32> to vector<7x32xf32>
    %c4_317 = arith.constant 4 : index
    %c1_318 = arith.constant 1 : index
    %c0_319 = arith.constant 0 : index
    %c0_320 = arith.constant 0 : index
    %244 = vector.load %arg6[%c4_317, %c1_318, %c0_319, %c0_320] : memref<5x2x32x288xf32, #tpu.memory_space<vmem>>, vector<1x1x32x288xf32>
    %245 = vector.shape_cast %244 : vector<1x1x32x288xf32> to vector<32x288xf32>
    %cst_321 = arith.constant dense<0.000000e+00> : vector<7x288xf32>
    %246 = tpu.matmul %243, %245, %cst_321 {dimension_numbers = #tpu.dot_dimension_numbers<[1], [0], [0], [1], [0, 0, 1, 1], [], []>} : vector<7x32xf32>, vector<32x288xf32>, vector<7x288xf32> -> vector<7x288xf32>
    %247 = arith.addf %241, %246 : vector<7x288xf32>
    %c0_i32 = arith.constant 0 : i32
    %248 = arith.cmpi eq, %arg0, %c0_i32 : i32
    %c0_i32_322 = arith.constant 0 : i32
    %249 = arith.cmpi eq, %arg1, %c0_i32_322 : i32
    %250 = arith.andi %248, %249 : i1
    %251 = arith.extui %250 : i1 to i32
    %c0_i32_323 = arith.constant 0 : i32
    %252 = arith.cmpi ne, %251, %c0_i32_323 : i32
    scf.if %252 {
      %cst_330 = arith.constant 0.000000e+00 : f32
      %264 = vector.broadcast %cst_330 : f32 to vector<2x16xf32>
      %c0_331 = arith.constant 0 : index
      %c0_332 = arith.constant 0 : index
      %265 = vector.load %arg13[%c0_331, %c0_332] : memref<2x16xf32, #tpu.memory_space<vmem>>, vector<2x16xf32>
      tpu.vector_store %arg13[%c0_331, %c0_332], %264 {strides = array<i32>} : memref<2x16xf32, #tpu.memory_space<vmem>>, vector<2x16xf32>,
    } else {
    }
    %c0_i32_324 = arith.constant 0 : i32
    %253 = arith.cmpi eq, %arg0, %c0_i32_324 : i32
    %254 = arith.extui %253 : i1 to i32
    %c0_i32_325 = arith.constant 0 : i32
    %255 = arith.cmpi ne, %254, %c0_i32_325 : i32
    scf.if %255 {
      %264 = arith.mulf %30, %30 : vector<7x288xf32>
      %265 = arith.addf %30, %61 : vector<7x288xf32>
      %266 = arith.mulf %61, %61 : vector<7x288xf32>
      %267 = arith.addf %264, %266 : vector<7x288xf32>
      %268 = arith.addf %265, %92 : vector<7x288xf32>
      %269 = arith.mulf %92, %92 : vector<7x288xf32>
      %270 = arith.addf %267, %269 : vector<7x288xf32>
      %271 = arith.addf %268, %123 : vector<7x288xf32>
      %272 = arith.mulf %123, %123 : vector<7x288xf32>
      %273 = arith.addf %270, %272 : vector<7x288xf32>
      %274 = arith.addf %271, %154 : vector<7x288xf32>
      %275 = arith.mulf %154, %154 : vector<7x288xf32>
      %276 = arith.addf %273, %275 : vector<7x288xf32>
      %277 = arith.addf %274, %185 : vector<7x288xf32>
      %278 = arith.mulf %185, %185 : vector<7x288xf32>
      %279 = arith.addf %276, %278 : vector<7x288xf32>
      %280 = arith.addf %277, %216 : vector<7x288xf32>
      %281 = arith.mulf %216, %216 : vector<7x288xf32>
      %282 = arith.addf %279, %281 : vector<7x288xf32>
      %283 = arith.addf %280, %247 : vector<7x288xf32>
      %284 = arith.mulf %247, %247 : vector<7x288xf32>
      %285 = arith.addf %282, %284 : vector<7x288xf32>
      %cst_330 = arith.constant dense<0.000000e+00> : vector<288xf32>
      %286 = vector.multi_reduction <add>, %283, %cst_330 [0] : vector<7x288xf32> to vector<288xf32>
      %287 = vector.shape_cast %286 : vector<288xf32> to vector<1x288xf32>
      %cst_331 = arith.constant dense<0.000000e+00> : vector<288xf32>
      %288 = vector.multi_reduction <add>, %285, %cst_331 [0] : vector<7x288xf32> to vector<288xf32>
      %289 = vector.shape_cast %288 : vector<288xf32> to vector<1x288xf32>
      %c0_332 = arith.constant 0 : index
      %c0_333 = arith.constant 0 : index
      %290 = vector.load %arg13[%c0_332, %c0_333] : memref<2x16xf32, #tpu.memory_space<vmem>>, vector<1x16xf32>
      %c0_334 = arith.constant 0 : index
      %c0_335 = arith.constant 0 : index
      %291 = vector.load %arg7[%c0_334, %c0_335] : memref<288x16xf32, #tpu.memory_space<vmem>>, vector<288x16xf32>
      %cst_336 = arith.constant dense<0.000000e+00> : vector<1x16xf32>
      %292 = tpu.matmul %287, %291, %cst_336 {dimension_numbers = #tpu.dot_dimension_numbers<[1], [0], [0], [1], [0, 0, 1, 1], [], []>} : vector<1x288xf32>, vector<288x16xf32>, vector<1x16xf32> -> vector<1x16xf32>
      %293 = arith.addf %290, %292 : vector<1x16xf32>
      %c0_337 = arith.constant 0 : index
      %c0_338 = arith.constant 0 : index
      %294 = vector.load %arg13[%c0_337, %c0_338] : memref<2x16xf32, #tpu.memory_space<vmem>>, vector<1x16xf32>
      tpu.vector_store %arg13[%c0_337, %c0_338], %293 {strides = array<i32>} : memref<2x16xf32, #tpu.memory_space<vmem>>, vector<1x16xf32>,
      %c1_339 = arith.constant 1 : index
      %c0_340 = arith.constant 0 : index
      %295 = vector.load %arg13[%c1_339, %c0_340] : memref<2x16xf32, #tpu.memory_space<vmem>>, vector<1x16xf32>
      %c0_341 = arith.constant 0 : index
      %c0_342 = arith.constant 0 : index
      %296 = vector.load %arg7[%c0_341, %c0_342] : memref<288x16xf32, #tpu.memory_space<vmem>>, vector<288x16xf32>
      %cst_343 = arith.constant dense<0.000000e+00> : vector<1x16xf32>
      %297 = tpu.matmul %289, %296, %cst_343 {dimension_numbers = #tpu.dot_dimension_numbers<[1], [0], [0], [1], [0, 0, 1, 1], [], []>} : vector<1x288xf32>, vector<288x16xf32>, vector<1x16xf32> -> vector<1x16xf32>
      %298 = arith.addf %295, %297 : vector<1x16xf32>
      %c1_344 = arith.constant 1 : index
      %c0_345 = arith.constant 0 : index
      %299 = vector.load %arg13[%c1_344, %c0_345] : memref<2x16xf32, #tpu.memory_space<vmem>>, vector<1x16xf32>
      tpu.vector_store %arg13[%c1_344, %c0_345], %298 {strides = array<i32>} : memref<2x16xf32, #tpu.memory_space<vmem>>, vector<1x16xf32>,
    } else {
    }
    %c1_i32 = arith.constant 1 : i32
    %256 = arith.cmpi eq, %arg0, %c1_i32 : i32
    %c0_i32_326 = arith.constant 0 : i32
    %257 = arith.cmpi eq, %arg1, %c0_i32_326 : i32
    %258 = arith.andi %256, %257 : i1
    %259 = arith.extui %258 : i1 to i32
    %c0_i32_327 = arith.constant 0 : i32
    %260 = arith.cmpi ne, %259, %c0_i32_327 : i32
    scf.if %260 {
      %c0_330 = arith.constant 0 : index
      %c0_331 = arith.constant 0 : index
      %264 = vector.load %arg13[%c0_330, %c0_331] : memref<2x16xf32, #tpu.memory_space<vmem>>, vector<1x16xf32>
      %cst_332 = arith.constant 6.37755089E-4 : f32
      %265 = vector.broadcast %cst_332 : f32 to vector<1x16xf32>
      %266 = arith.mulf %264, %265 : vector<1x16xf32>
      %c1_333 = arith.constant 1 : index
      %c0_334 = arith.constant 0 : index
      %267 = vector.load %arg13[%c1_333, %c0_334] : memref<2x16xf32, #tpu.memory_space<vmem>>, vector<1x16xf32>
      %cst_335 = arith.constant 6.37755089E-4 : f32
      %268 = vector.broadcast %cst_335 : f32 to vector<1x16xf32>
      %269 = arith.mulf %267, %268 : vector<1x16xf32>
      %270 = arith.mulf %266, %266 : vector<1x16xf32>
      %271 = arith.subf %269, %270 : vector<1x16xf32>
      %c0_336 = arith.constant 0 : index
      %c0_337 = arith.constant 0 : index
      %272 = vector.load %arg9[%c0_336, %c0_337] : memref<1x16xf32, #tpu.memory_space<vmem>>, vector<1x16xf32>
      %cst_338 = arith.constant 9.99999974E-6 : f32
      %273 = vector.broadcast %cst_338 : f32 to vector<1x16xf32>
      %274 = arith.addf %271, %273 : vector<1x16xf32>
      %275 = math.rsqrt %274 : vector<1x16xf32>
      %276 = arith.mulf %272, %275 : vector<1x16xf32>
      %c0_339 = arith.constant 0 : index
      %c0_340 = arith.constant 0 : index
      %277 = vector.load %arg10[%c0_339, %c0_340] : memref<1x16xf32, #tpu.memory_space<vmem>>, vector<1x16xf32>
      %278 = arith.mulf %276, %266 : vector<1x16xf32>
      %279 = arith.subf %277, %278 : vector<1x16xf32>
      %c0_341 = arith.constant 0 : index
      %c0_342 = arith.constant 0 : index
      %280 = vector.load %arg8[%c0_341, %c0_342] : memref<16x288xf32, #tpu.memory_space<vmem>>, vector<16x288xf32>
      %cst_343 = arith.constant dense<0.000000e+00> : vector<1x288xf32>
      %281 = tpu.matmul %276, %280, %cst_343 {dimension_numbers = #tpu.dot_dimension_numbers<[1], [0], [0], [1], [0, 0, 1, 1], [], []>} : vector<1x16xf32>, vector<16x288xf32>, vector<1x288xf32> -> vector<1x288xf32>
      %c0_344 = arith.constant 0 : index
      %c0_345 = arith.constant 0 : index
      %282 = vector.load %arg14[%c0_344, %c0_345] : memref<2x288xf32, #tpu.memory_space<vmem>>, vector<1x288xf32>
      tpu.vector_store %arg14[%c0_344, %c0_345], %281 {strides = array<i32>} : memref<2x288xf32, #tpu.memory_space<vmem>>, vector<1x288xf32>,
      %c0_346 = arith.constant 0 : index
      %c0_347 = arith.constant 0 : index
      %283 = vector.load %arg8[%c0_346, %c0_347] : memref<16x288xf32, #tpu.memory_space<vmem>>, vector<16x288xf32>
      %cst_348 = arith.constant dense<0.000000e+00> : vector<1x288xf32>
      %284 = tpu.matmul %279, %283, %cst_348 {dimension_numbers = #tpu.dot_dimension_numbers<[1], [0], [0], [1], [0, 0, 1, 1], [], []>} : vector<1x16xf32>, vector<16x288xf32>, vector<1x288xf32> -> vector<1x288xf32>
      %c1_349 = arith.constant 1 : index
      %c0_350 = arith.constant 0 : index
      %285 = vector.load %arg14[%c1_349, %c0_350] : memref<2x288xf32, #tpu.memory_space<vmem>>, vector<1x288xf32>
      tpu.vector_store %arg14[%c1_349, %c0_350], %284 {strides = array<i32>} : memref<2x288xf32, #tpu.memory_space<vmem>>, vector<1x288xf32>,
    } else {
    }
    %c1_i32_328 = arith.constant 1 : i32
    %261 = arith.cmpi eq, %arg0, %c1_i32_328 : i32
    %262 = arith.extui %261 : i1 to i32
    %c0_i32_329 = arith.constant 0 : i32
    %263 = arith.cmpi ne, %262, %c0_i32_329 : i32
    scf.if %263 {
      %c0_330 = arith.constant 0 : index
      %c0_331 = arith.constant 0 : index
      %264 = vector.load %arg14[%c0_330, %c0_331] : memref<2x288xf32, #tpu.memory_space<vmem>>, vector<1x288xf32>
      %c1_332 = arith.constant 1 : index
      %c0_333 = arith.constant 0 : index
      %265 = vector.load %arg14[%c1_332, %c0_333] : memref<2x288xf32, #tpu.memory_space<vmem>>, vector<1x288xf32>
      %266 = vector.broadcast %264 : vector<1x288xf32> to vector<7x288xf32>
      %267 = arith.mulf %30, %266 : vector<7x288xf32>
      %268 = vector.broadcast %265 : vector<1x288xf32> to vector<7x288xf32>
      %269 = arith.addf %267, %268 : vector<7x288xf32>
      %270 = vector.broadcast %264 : vector<1x288xf32> to vector<7x288xf32>
      %271 = arith.mulf %61, %270 : vector<7x288xf32>
      %272 = vector.broadcast %265 : vector<1x288xf32> to vector<7x288xf32>
      %273 = arith.addf %271, %272 : vector<7x288xf32>
      %274 = vector.broadcast %264 : vector<1x288xf32> to vector<7x288xf32>
      %275 = arith.mulf %92, %274 : vector<7x288xf32>
      %276 = vector.broadcast %265 : vector<1x288xf32> to vector<7x288xf32>
      %277 = arith.addf %275, %276 : vector<7x288xf32>
      %278 = vector.broadcast %264 : vector<1x288xf32> to vector<7x288xf32>
      %279 = arith.mulf %123, %278 : vector<7x288xf32>
      %280 = vector.broadcast %265 : vector<1x288xf32> to vector<7x288xf32>
      %281 = arith.addf %279, %280 : vector<7x288xf32>
      %282 = arith.maximumf %269, %273 : vector<7x288xf32>
      %283 = arith.maximumf %277, %281 : vector<7x288xf32>
      %284 = arith.maximumf %282, %283 : vector<7x288xf32>
      %cst_334 = arith.constant 0.000000e+00 : f32
      %285 = vector.broadcast %cst_334 : f32 to vector<7x288xf32>
      %286 = arith.maximumf %284, %285 : vector<7x288xf32>
      %cst_335 = arith.constant 0.000000e+00 : f32
      %287 = vector.broadcast %cst_335 : f32 to vector<1x288xf32>
      %c0_336 = arith.constant 0 : index
      %c0_337 = arith.constant 0 : index
      %c0_338 = arith.constant 0 : index
      %288 = vector.load %arg11[%c0_336, %c0_337, %c0_338] : memref<1x9x288xf32, #tpu.memory_space<vmem>>, vector<1x1x288xf32>
      %289 = vector.shape_cast %288 : vector<1x1x288xf32> to vector<1x288xf32>
      %290 = vector.shape_cast %287 : vector<1x288xf32> to vector<1x1x288xf32>
      tpu.vector_store %arg11[%c0_336, %c0_337, %c0_338], %290 {strides = array<i32>} : memref<1x9x288xf32, #tpu.memory_space<vmem>>, vector<1x1x288xf32>,
      %cst_339 = arith.constant 0.000000e+00 : f32
      %291 = vector.broadcast %cst_339 : f32 to vector<1x288xf32>
      %c0_340 = arith.constant 0 : index
      %c8 = arith.constant 8 : index
      %c0_341 = arith.constant 0 : index
      %292 = vector.load %arg11[%c0_340, %c8, %c0_341] : memref<1x9x288xf32, #tpu.memory_space<vmem>>, vector<1x1x288xf32>
      %293 = vector.shape_cast %292 : vector<1x1x288xf32> to vector<1x288xf32>
      %294 = vector.shape_cast %291 : vector<1x288xf32> to vector<1x1x288xf32>
      tpu.vector_store %arg11[%c0_340, %c8, %c0_341], %294 {strides = array<i32>} : memref<1x9x288xf32, #tpu.memory_space<vmem>>, vector<1x1x288xf32>,
      %c0_342 = arith.constant 0 : index
      %c1_343 = arith.constant 1 : index
      %c0_344 = arith.constant 0 : index
      %295 = vector.load %arg11[%c0_342, %c1_343, %c0_344] : memref<1x9x288xf32, #tpu.memory_space<vmem>>, vector<1x7x288xf32>
      %296 = vector.shape_cast %295 : vector<1x7x288xf32> to vector<7x288xf32>
      %297 = vector.shape_cast %286 : vector<7x288xf32> to vector<1x7x288xf32>
      tpu.vector_store %arg11[%c0_342, %c1_343, %c0_344], %297 {strides = array<i32>} : memref<1x9x288xf32, #tpu.memory_space<vmem>>, vector<1x7x288xf32>,
      %298 = vector.broadcast %264 : vector<1x288xf32> to vector<7x288xf32>
      %299 = arith.mulf %154, %298 : vector<7x288xf32>
      %300 = vector.broadcast %265 : vector<1x288xf32> to vector<7x288xf32>
      %301 = arith.addf %299, %300 : vector<7x288xf32>
      %302 = vector.broadcast %264 : vector<1x288xf32> to vector<7x288xf32>
      %303 = arith.mulf %185, %302 : vector<7x288xf32>
      %304 = vector.broadcast %265 : vector<1x288xf32> to vector<7x288xf32>
      %305 = arith.addf %303, %304 : vector<7x288xf32>
      %306 = vector.broadcast %264 : vector<1x288xf32> to vector<7x288xf32>
      %307 = arith.mulf %216, %306 : vector<7x288xf32>
      %308 = vector.broadcast %265 : vector<1x288xf32> to vector<7x288xf32>
      %309 = arith.addf %307, %308 : vector<7x288xf32>
      %310 = vector.broadcast %264 : vector<1x288xf32> to vector<7x288xf32>
      %311 = arith.mulf %247, %310 : vector<7x288xf32>
      %312 = vector.broadcast %265 : vector<1x288xf32> to vector<7x288xf32>
      %313 = arith.addf %311, %312 : vector<7x288xf32>
      %314 = arith.maximumf %301, %305 : vector<7x288xf32>
      %315 = arith.maximumf %309, %313 : vector<7x288xf32>
      %316 = arith.maximumf %314, %315 : vector<7x288xf32>
      %cst_345 = arith.constant 0.000000e+00 : f32
      %317 = vector.broadcast %cst_345 : f32 to vector<7x288xf32>
      %318 = arith.maximumf %316, %317 : vector<7x288xf32>
      %cst_346 = arith.constant 0.000000e+00 : f32
      %319 = vector.broadcast %cst_346 : f32 to vector<1x288xf32>
      %c0_347 = arith.constant 0 : index
      %c0_348 = arith.constant 0 : index
      %c0_349 = arith.constant 0 : index
      %320 = vector.load %arg12[%c0_347, %c0_348, %c0_349] : memref<1x9x288xf32, #tpu.memory_space<vmem>>, vector<1x1x288xf32>
      %321 = vector.shape_cast %320 : vector<1x1x288xf32> to vector<1x288xf32>
      %322 = vector.shape_cast %319 : vector<1x288xf32> to vector<1x1x288xf32>
      tpu.vector_store %arg12[%c0_347, %c0_348, %c0_349], %322 {strides = array<i32>} : memref<1x9x288xf32, #tpu.memory_space<vmem>>, vector<1x1x288xf32>,
      %cst_350 = arith.constant 0.000000e+00 : f32
      %323 = vector.broadcast %cst_350 : f32 to vector<1x288xf32>
      %c0_351 = arith.constant 0 : index
      %c8_352 = arith.constant 8 : index
      %c0_353 = arith.constant 0 : index
      %324 = vector.load %arg12[%c0_351, %c8_352, %c0_353] : memref<1x9x288xf32, #tpu.memory_space<vmem>>, vector<1x1x288xf32>
      %325 = vector.shape_cast %324 : vector<1x1x288xf32> to vector<1x288xf32>
      %326 = vector.shape_cast %323 : vector<1x288xf32> to vector<1x1x288xf32>
      tpu.vector_store %arg12[%c0_351, %c8_352, %c0_353], %326 {strides = array<i32>} : memref<1x9x288xf32, #tpu.memory_space<vmem>>, vector<1x1x288xf32>,
      %c0_354 = arith.constant 0 : index
      %c1_355 = arith.constant 1 : index
      %c0_356 = arith.constant 0 : index
      %327 = vector.load %arg12[%c0_354, %c1_355, %c0_356] : memref<1x9x288xf32, #tpu.memory_space<vmem>>, vector<1x7x288xf32>
      %328 = vector.shape_cast %327 : vector<1x7x288xf32> to vector<7x288xf32>
      %329 = vector.shape_cast %318 : vector<7x288xf32> to vector<1x7x288xf32>
      tpu.vector_store %arg12[%c0_354, %c1_355, %c0_356], %329 {strides = array<i32>} : memref<1x9x288xf32, #tpu.memory_space<vmem>>, vector<1x7x288xf32>,
    } else {
    }
    return
  }
  func.func @transform_0(%arg0: i32, %arg1: i32) -> (i32, i32, i32) {
    %c0_i32 = arith.constant 0 : i32
    %c0_i32_0 = arith.constant 0 : i32
    %c0_i32_1 = arith.constant 0 : i32
    return %arg1, %c0_i32, %c0_i32_0 : i32, i32, i32
  }
  func.func @transform_1(%arg0: i32, %arg1: i32) -> (i32, i32, i32) {
    %c0_i32 = arith.constant 0 : i32
    %c0_i32_0 = arith.constant 0 : i32
    %c0_i32_1 = arith.constant 0 : i32
    return %arg1, %c0_i32, %c0_i32_0 : i32, i32, i32
  }
  func.func @transform_2(%arg0: i32, %arg1: i32) -> (i32, i32, i32) {
    %c0_i32 = arith.constant 0 : i32
    %c0_i32_0 = arith.constant 0 : i32
    %c0_i32_1 = arith.constant 0 : i32
    return %arg1, %c0_i32, %c0_i32_0 : i32, i32, i32
  }
  func.func @transform_3(%arg0: i32, %arg1: i32) -> (i32, i32, i32) {
    %c0_i32 = arith.constant 0 : i32
    %c0_i32_0 = arith.constant 0 : i32
    %c0_i32_1 = arith.constant 0 : i32
    return %arg1, %c0_i32, %c0_i32_0 : i32, i32, i32
  }
  func.func @transform_4(%arg0: i32, %arg1: i32) -> (i32, i32, i32, i32) {
    %c0_i32 = arith.constant 0 : i32
    %c0_i32_0 = arith.constant 0 : i32
    %c0_i32_1 = arith.constant 0 : i32
    %c0_i32_2 = arith.constant 0 : i32
    %c0_i32_3 = arith.constant 0 : i32
    return %c0_i32, %c0_i32_0, %c0_i32_1, %c0_i32_2 : i32, i32, i32, i32
  }
  func.func @transform_5(%arg0: i32, %arg1: i32) -> (i32, i32) {
    %c0_i32 = arith.constant 0 : i32
    %c0_i32_0 = arith.constant 0 : i32
    %c0_i32_1 = arith.constant 0 : i32
    return %c0_i32, %c0_i32_0 : i32, i32
  }
  func.func @transform_6(%arg0: i32, %arg1: i32) -> (i32, i32) {
    %c0_i32 = arith.constant 0 : i32
    %c0_i32_0 = arith.constant 0 : i32
    %c0_i32_1 = arith.constant 0 : i32
    return %c0_i32, %c0_i32_0 : i32, i32
  }
  func.func @transform_7(%arg0: i32, %arg1: i32) -> (i32, i32) {
    %c0_i32 = arith.constant 0 : i32
    %c0_i32_0 = arith.constant 0 : i32
    %c0_i32_1 = arith.constant 0 : i32
    return %c0_i32, %c0_i32_0 : i32, i32
  }
  func.func @transform_8(%arg0: i32, %arg1: i32) -> (i32, i32) {
    %c0_i32 = arith.constant 0 : i32
    %c0_i32_0 = arith.constant 0 : i32
    %c0_i32_1 = arith.constant 0 : i32
    return %c0_i32, %c0_i32_0 : i32, i32
  }
  func.func @transform_9(%arg0: i32, %arg1: i32) -> (i32, i32, i32) {
    %0 = arith.muli %arg0, %arg1 : i32
    %c0_i32 = arith.constant 0 : i32
    %c0_i32_0 = arith.constant 0 : i32
    %c0_i32_1 = arith.constant 0 : i32
    return %0, %c0_i32, %c0_i32_0 : i32, i32, i32
  }
  func.func @transform_10(%arg0: i32, %arg1: i32) -> (i32, i32, i32) {
    %0 = arith.muli %arg0, %arg1 : i32
    %c0_i32 = arith.constant 0 : i32
    %c0_i32_0 = arith.constant 0 : i32
    %c0_i32_1 = arith.constant 0 : i32
    return %0, %c0_i32, %c0_i32_0 : i32, i32, i32
  }
}

module attributes {stable_mosaic.version = 11 : i64} {
  func.func @_layer2_fc_kernel(%arg0: i32, %arg1: i32, %arg2: memref<1x9x288xf32, #tpu.memory_space<vmem>>, %arg3: memref<1x9x288xf32, #tpu.memory_space<vmem>>, %arg4: memref<5x2x288x224xf32, #tpu.memory_space<vmem>>, %arg5: memref<224x32xf32, #tpu.memory_space<vmem>>, %arg6: memref<32x224xf32, #tpu.memory_space<vmem>>, %arg7: memref<1x32xf32, #tpu.memory_space<vmem>>, %arg8: memref<1x32xf32, #tpu.memory_space<vmem>>, %arg9: memref<7x224x128xf32, #tpu.memory_space<vmem>>, %arg10: memref<1x128xf32, #tpu.memory_space<vmem>>, %arg11: memref<1x1x128xf32, #tpu.memory_space<vmem>>, %arg12: memref<2x32xf32, #tpu.memory_space<vmem>>, %arg13: memref<2x224xf32, #tpu.memory_space<vmem>>) attributes {dimension_semantics = [#tpu.dimension_semantics<arbitrary>, #tpu.dimension_semantics<arbitrary>], iteration_bounds = array<i64: 2, 2>, scalar_prefetch = 0 : i64, scratch_operands = 2 : i64, tpu.core_type = #tpu.core_type<tc>, window_params = [{transform_indices = @transform_0, window_bounds = array<i64: 1, 9, 288>}, {transform_indices = @transform_1, window_bounds = array<i64: 1, 9, 288>}, {pipeline_mode = #tpu.pipeline_mode<synchronous>, transform_indices = @transform_2, window_bounds = array<i64: 5, 2, 288, 224>}, {pipeline_mode = #tpu.pipeline_mode<synchronous>, transform_indices = @transform_3, window_bounds = array<i64: 224, 32>}, {pipeline_mode = #tpu.pipeline_mode<synchronous>, transform_indices = @transform_4, window_bounds = array<i64: 32, 224>}, {pipeline_mode = #tpu.pipeline_mode<synchronous>, transform_indices = @transform_5, window_bounds = array<i64: 1, 32>}, {pipeline_mode = #tpu.pipeline_mode<synchronous>, transform_indices = @transform_6, window_bounds = array<i64: 1, 32>}, {pipeline_mode = #tpu.pipeline_mode<synchronous>, transform_indices = @transform_7, window_bounds = array<i64: 7, 224, 128>}, {pipeline_mode = #tpu.pipeline_mode<synchronous>, transform_indices = @transform_8, window_bounds = array<i64: 1, 128>}, {transform_indices = @transform_9, window_bounds = array<i64: 1, 1, 128>}]} {
    %cst = arith.constant 0.000000e+00 : f32
    %0 = vector.broadcast %cst : f32 to vector<7x224xf32>
    %c0 = arith.constant 0 : index
    %c0_0 = arith.constant 0 : index
    %c0_1 = arith.constant 0 : index
    %1 = vector.load %arg2[%c0, %c0_0, %c0_1] : memref<1x9x288xf32, #tpu.memory_space<vmem>>, vector<1x7x288xf32>
    %2 = vector.shape_cast %1 : vector<1x7x288xf32> to vector<7x288xf32>
    %c0_2 = arith.constant 0 : index
    %c0_3 = arith.constant 0 : index
    %c0_4 = arith.constant 0 : index
    %c0_5 = arith.constant 0 : index
    %3 = vector.load %arg4[%c0_2, %c0_3, %c0_4, %c0_5] : memref<5x2x288x224xf32, #tpu.memory_space<vmem>>, vector<1x1x288x224xf32>
    %4 = vector.shape_cast %3 : vector<1x1x288x224xf32> to vector<288x224xf32>
    %cst_6 = arith.constant dense<0.000000e+00> : vector<7x224xf32>
    %5 = tpu.matmul %2, %4, %cst_6 {dimension_numbers = #tpu.dot_dimension_numbers<[1], [0], [0], [1], [0, 0, 1, 1], [], []>} : vector<7x288xf32>, vector<288x224xf32>, vector<7x224xf32> -> vector<7x224xf32>
    %6 = arith.addf %0, %5 : vector<7x224xf32>
    %c0_7 = arith.constant 0 : index
    %c0_8 = arith.constant 0 : index
    %c0_9 = arith.constant 0 : index
    %7 = vector.load %arg3[%c0_7, %c0_8, %c0_9] : memref<1x9x288xf32, #tpu.memory_space<vmem>>, vector<1x7x288xf32>
    %8 = vector.shape_cast %7 : vector<1x7x288xf32> to vector<7x288xf32>
    %c1 = arith.constant 1 : index
    %c0_10 = arith.constant 0 : index
    %c0_11 = arith.constant 0 : index
    %c0_12 = arith.constant 0 : index
    %9 = vector.load %arg4[%c1, %c0_10, %c0_11, %c0_12] : memref<5x2x288x224xf32, #tpu.memory_space<vmem>>, vector<1x1x288x224xf32>
    %10 = vector.shape_cast %9 : vector<1x1x288x224xf32> to vector<288x224xf32>
    %cst_13 = arith.constant dense<0.000000e+00> : vector<7x224xf32>
    %11 = tpu.matmul %8, %10, %cst_13 {dimension_numbers = #tpu.dot_dimension_numbers<[1], [0], [0], [1], [0, 0, 1, 1], [], []>} : vector<7x288xf32>, vector<288x224xf32>, vector<7x224xf32> -> vector<7x224xf32>
    %12 = arith.addf %6, %11 : vector<7x224xf32>
    %c0_14 = arith.constant 0 : index
    %c1_15 = arith.constant 1 : index
    %c0_16 = arith.constant 0 : index
    %13 = vector.load %arg2[%c0_14, %c1_15, %c0_16] : memref<1x9x288xf32, #tpu.memory_space<vmem>>, vector<1x7x288xf32>
    %14 = vector.shape_cast %13 : vector<1x7x288xf32> to vector<7x288xf32>
    %c2 = arith.constant 2 : index
    %c0_17 = arith.constant 0 : index
    %c0_18 = arith.constant 0 : index
    %c0_19 = arith.constant 0 : index
    %15 = vector.load %arg4[%c2, %c0_17, %c0_18, %c0_19] : memref<5x2x288x224xf32, #tpu.memory_space<vmem>>, vector<1x1x288x224xf32>
    %16 = vector.shape_cast %15 : vector<1x1x288x224xf32> to vector<288x224xf32>
    %cst_20 = arith.constant dense<0.000000e+00> : vector<7x224xf32>
    %17 = tpu.matmul %14, %16, %cst_20 {dimension_numbers = #tpu.dot_dimension_numbers<[1], [0], [0], [1], [0, 0, 1, 1], [], []>} : vector<7x288xf32>, vector<288x224xf32>, vector<7x224xf32> -> vector<7x224xf32>
    %18 = arith.addf %12, %17 : vector<7x224xf32>
    %c0_21 = arith.constant 0 : index
    %c1_22 = arith.constant 1 : index
    %c0_23 = arith.constant 0 : index
    %19 = vector.load %arg3[%c0_21, %c1_22, %c0_23] : memref<1x9x288xf32, #tpu.memory_space<vmem>>, vector<1x7x288xf32>
    %20 = vector.shape_cast %19 : vector<1x7x288xf32> to vector<7x288xf32>
    %c3 = arith.constant 3 : index
    %c0_24 = arith.constant 0 : index
    %c0_25 = arith.constant 0 : index
    %c0_26 = arith.constant 0 : index
    %21 = vector.load %arg4[%c3, %c0_24, %c0_25, %c0_26] : memref<5x2x288x224xf32, #tpu.memory_space<vmem>>, vector<1x1x288x224xf32>
    %22 = vector.shape_cast %21 : vector<1x1x288x224xf32> to vector<288x224xf32>
    %cst_27 = arith.constant dense<0.000000e+00> : vector<7x224xf32>
    %23 = tpu.matmul %20, %22, %cst_27 {dimension_numbers = #tpu.dot_dimension_numbers<[1], [0], [0], [1], [0, 0, 1, 1], [], []>} : vector<7x288xf32>, vector<288x224xf32>, vector<7x224xf32> -> vector<7x224xf32>
    %24 = arith.addf %18, %23 : vector<7x224xf32>
    %c0_28 = arith.constant 0 : index
    %c2_29 = arith.constant 2 : index
    %c0_30 = arith.constant 0 : index
    %25 = vector.load %arg2[%c0_28, %c2_29, %c0_30] : memref<1x9x288xf32, #tpu.memory_space<vmem>>, vector<1x7x288xf32>
    %26 = vector.shape_cast %25 : vector<1x7x288xf32> to vector<7x288xf32>
    %c4 = arith.constant 4 : index
    %c0_31 = arith.constant 0 : index
    %c0_32 = arith.constant 0 : index
    %c0_33 = arith.constant 0 : index
    %27 = vector.load %arg4[%c4, %c0_31, %c0_32, %c0_33] : memref<5x2x288x224xf32, #tpu.memory_space<vmem>>, vector<1x1x288x224xf32>
    %28 = vector.shape_cast %27 : vector<1x1x288x224xf32> to vector<288x224xf32>
    %cst_34 = arith.constant dense<0.000000e+00> : vector<7x224xf32>
    %29 = tpu.matmul %26, %28, %cst_34 {dimension_numbers = #tpu.dot_dimension_numbers<[1], [0], [0], [1], [0, 0, 1, 1], [], []>} : vector<7x288xf32>, vector<288x224xf32>, vector<7x224xf32> -> vector<7x224xf32>
    %30 = arith.addf %24, %29 : vector<7x224xf32>
    %cst_35 = arith.constant 0.000000e+00 : f32
    %31 = vector.broadcast %cst_35 : f32 to vector<7x224xf32>
    %c0_36 = arith.constant 0 : index
    %c0_37 = arith.constant 0 : index
    %c0_38 = arith.constant 0 : index
    %32 = vector.load %arg2[%c0_36, %c0_37, %c0_38] : memref<1x9x288xf32, #tpu.memory_space<vmem>>, vector<1x7x288xf32>
    %33 = vector.shape_cast %32 : vector<1x7x288xf32> to vector<7x288xf32>
    %c0_39 = arith.constant 0 : index
    %c1_40 = arith.constant 1 : index
    %c0_41 = arith.constant 0 : index
    %c0_42 = arith.constant 0 : index
    %34 = vector.load %arg4[%c0_39, %c1_40, %c0_41, %c0_42] : memref<5x2x288x224xf32, #tpu.memory_space<vmem>>, vector<1x1x288x224xf32>
    %35 = vector.shape_cast %34 : vector<1x1x288x224xf32> to vector<288x224xf32>
    %cst_43 = arith.constant dense<0.000000e+00> : vector<7x224xf32>
    %36 = tpu.matmul %33, %35, %cst_43 {dimension_numbers = #tpu.dot_dimension_numbers<[1], [0], [0], [1], [0, 0, 1, 1], [], []>} : vector<7x288xf32>, vector<288x224xf32>, vector<7x224xf32> -> vector<7x224xf32>
    %37 = arith.addf %31, %36 : vector<7x224xf32>
    %c0_44 = arith.constant 0 : index
    %c0_45 = arith.constant 0 : index
    %c0_46 = arith.constant 0 : index
    %38 = vector.load %arg3[%c0_44, %c0_45, %c0_46] : memref<1x9x288xf32, #tpu.memory_space<vmem>>, vector<1x7x288xf32>
    %39 = vector.shape_cast %38 : vector<1x7x288xf32> to vector<7x288xf32>
    %c1_47 = arith.constant 1 : index
    %c1_48 = arith.constant 1 : index
    %c0_49 = arith.constant 0 : index
    %c0_50 = arith.constant 0 : index
    %40 = vector.load %arg4[%c1_47, %c1_48, %c0_49, %c0_50] : memref<5x2x288x224xf32, #tpu.memory_space<vmem>>, vector<1x1x288x224xf32>
    %41 = vector.shape_cast %40 : vector<1x1x288x224xf32> to vector<288x224xf32>
    %cst_51 = arith.constant dense<0.000000e+00> : vector<7x224xf32>
    %42 = tpu.matmul %39, %41, %cst_51 {dimension_numbers = #tpu.dot_dimension_numbers<[1], [0], [0], [1], [0, 0, 1, 1], [], []>} : vector<7x288xf32>, vector<288x224xf32>, vector<7x224xf32> -> vector<7x224xf32>
    %43 = arith.addf %37, %42 : vector<7x224xf32>
    %c0_52 = arith.constant 0 : index
    %c1_53 = arith.constant 1 : index
    %c0_54 = arith.constant 0 : index
    %44 = vector.load %arg2[%c0_52, %c1_53, %c0_54] : memref<1x9x288xf32, #tpu.memory_space<vmem>>, vector<1x7x288xf32>
    %45 = vector.shape_cast %44 : vector<1x7x288xf32> to vector<7x288xf32>
    %c2_55 = arith.constant 2 : index
    %c1_56 = arith.constant 1 : index
    %c0_57 = arith.constant 0 : index
    %c0_58 = arith.constant 0 : index
    %46 = vector.load %arg4[%c2_55, %c1_56, %c0_57, %c0_58] : memref<5x2x288x224xf32, #tpu.memory_space<vmem>>, vector<1x1x288x224xf32>
    %47 = vector.shape_cast %46 : vector<1x1x288x224xf32> to vector<288x224xf32>
    %cst_59 = arith.constant dense<0.000000e+00> : vector<7x224xf32>
    %48 = tpu.matmul %45, %47, %cst_59 {dimension_numbers = #tpu.dot_dimension_numbers<[1], [0], [0], [1], [0, 0, 1, 1], [], []>} : vector<7x288xf32>, vector<288x224xf32>, vector<7x224xf32> -> vector<7x224xf32>
    %49 = arith.addf %43, %48 : vector<7x224xf32>
    %c0_60 = arith.constant 0 : index
    %c1_61 = arith.constant 1 : index
    %c0_62 = arith.constant 0 : index
    %50 = vector.load %arg3[%c0_60, %c1_61, %c0_62] : memref<1x9x288xf32, #tpu.memory_space<vmem>>, vector<1x7x288xf32>
    %51 = vector.shape_cast %50 : vector<1x7x288xf32> to vector<7x288xf32>
    %c3_63 = arith.constant 3 : index
    %c1_64 = arith.constant 1 : index
    %c0_65 = arith.constant 0 : index
    %c0_66 = arith.constant 0 : index
    %52 = vector.load %arg4[%c3_63, %c1_64, %c0_65, %c0_66] : memref<5x2x288x224xf32, #tpu.memory_space<vmem>>, vector<1x1x288x224xf32>
    %53 = vector.shape_cast %52 : vector<1x1x288x224xf32> to vector<288x224xf32>
    %cst_67 = arith.constant dense<0.000000e+00> : vector<7x224xf32>
    %54 = tpu.matmul %51, %53, %cst_67 {dimension_numbers = #tpu.dot_dimension_numbers<[1], [0], [0], [1], [0, 0, 1, 1], [], []>} : vector<7x288xf32>, vector<288x224xf32>, vector<7x224xf32> -> vector<7x224xf32>
    %55 = arith.addf %49, %54 : vector<7x224xf32>
    %c0_68 = arith.constant 0 : index
    %c2_69 = arith.constant 2 : index
    %c0_70 = arith.constant 0 : index
    %56 = vector.load %arg2[%c0_68, %c2_69, %c0_70] : memref<1x9x288xf32, #tpu.memory_space<vmem>>, vector<1x7x288xf32>
    %57 = vector.shape_cast %56 : vector<1x7x288xf32> to vector<7x288xf32>
    %c4_71 = arith.constant 4 : index
    %c1_72 = arith.constant 1 : index
    %c0_73 = arith.constant 0 : index
    %c0_74 = arith.constant 0 : index
    %58 = vector.load %arg4[%c4_71, %c1_72, %c0_73, %c0_74] : memref<5x2x288x224xf32, #tpu.memory_space<vmem>>, vector<1x1x288x224xf32>
    %59 = vector.shape_cast %58 : vector<1x1x288x224xf32> to vector<288x224xf32>
    %cst_75 = arith.constant dense<0.000000e+00> : vector<7x224xf32>
    %60 = tpu.matmul %57, %59, %cst_75 {dimension_numbers = #tpu.dot_dimension_numbers<[1], [0], [0], [1], [0, 0, 1, 1], [], []>} : vector<7x288xf32>, vector<288x224xf32>, vector<7x224xf32> -> vector<7x224xf32>
    %61 = arith.addf %55, %60 : vector<7x224xf32>
    %cst_76 = arith.constant 0.000000e+00 : f32
    %62 = vector.broadcast %cst_76 : f32 to vector<7x224xf32>
    %c0_77 = arith.constant 0 : index
    %c0_78 = arith.constant 0 : index
    %c0_79 = arith.constant 0 : index
    %63 = vector.load %arg3[%c0_77, %c0_78, %c0_79] : memref<1x9x288xf32, #tpu.memory_space<vmem>>, vector<1x7x288xf32>
    %64 = vector.shape_cast %63 : vector<1x7x288xf32> to vector<7x288xf32>
    %c0_80 = arith.constant 0 : index
    %c0_81 = arith.constant 0 : index
    %c0_82 = arith.constant 0 : index
    %c0_83 = arith.constant 0 : index
    %65 = vector.load %arg4[%c0_80, %c0_81, %c0_82, %c0_83] : memref<5x2x288x224xf32, #tpu.memory_space<vmem>>, vector<1x1x288x224xf32>
    %66 = vector.shape_cast %65 : vector<1x1x288x224xf32> to vector<288x224xf32>
    %cst_84 = arith.constant dense<0.000000e+00> : vector<7x224xf32>
    %67 = tpu.matmul %64, %66, %cst_84 {dimension_numbers = #tpu.dot_dimension_numbers<[1], [0], [0], [1], [0, 0, 1, 1], [], []>} : vector<7x288xf32>, vector<288x224xf32>, vector<7x224xf32> -> vector<7x224xf32>
    %68 = arith.addf %62, %67 : vector<7x224xf32>
    %c0_85 = arith.constant 0 : index
    %c1_86 = arith.constant 1 : index
    %c0_87 = arith.constant 0 : index
    %69 = vector.load %arg2[%c0_85, %c1_86, %c0_87] : memref<1x9x288xf32, #tpu.memory_space<vmem>>, vector<1x7x288xf32>
    %70 = vector.shape_cast %69 : vector<1x7x288xf32> to vector<7x288xf32>
    %c1_88 = arith.constant 1 : index
    %c0_89 = arith.constant 0 : index
    %c0_90 = arith.constant 0 : index
    %c0_91 = arith.constant 0 : index
    %71 = vector.load %arg4[%c1_88, %c0_89, %c0_90, %c0_91] : memref<5x2x288x224xf32, #tpu.memory_space<vmem>>, vector<1x1x288x224xf32>
    %72 = vector.shape_cast %71 : vector<1x1x288x224xf32> to vector<288x224xf32>
    %cst_92 = arith.constant dense<0.000000e+00> : vector<7x224xf32>
    %73 = tpu.matmul %70, %72, %cst_92 {dimension_numbers = #tpu.dot_dimension_numbers<[1], [0], [0], [1], [0, 0, 1, 1], [], []>} : vector<7x288xf32>, vector<288x224xf32>, vector<7x224xf32> -> vector<7x224xf32>
    %74 = arith.addf %68, %73 : vector<7x224xf32>
    %c0_93 = arith.constant 0 : index
    %c1_94 = arith.constant 1 : index
    %c0_95 = arith.constant 0 : index
    %75 = vector.load %arg3[%c0_93, %c1_94, %c0_95] : memref<1x9x288xf32, #tpu.memory_space<vmem>>, vector<1x7x288xf32>
    %76 = vector.shape_cast %75 : vector<1x7x288xf32> to vector<7x288xf32>
    %c2_96 = arith.constant 2 : index
    %c0_97 = arith.constant 0 : index
    %c0_98 = arith.constant 0 : index
    %c0_99 = arith.constant 0 : index
    %77 = vector.load %arg4[%c2_96, %c0_97, %c0_98, %c0_99] : memref<5x2x288x224xf32, #tpu.memory_space<vmem>>, vector<1x1x288x224xf32>
    %78 = vector.shape_cast %77 : vector<1x1x288x224xf32> to vector<288x224xf32>
    %cst_100 = arith.constant dense<0.000000e+00> : vector<7x224xf32>
    %79 = tpu.matmul %76, %78, %cst_100 {dimension_numbers = #tpu.dot_dimension_numbers<[1], [0], [0], [1], [0, 0, 1, 1], [], []>} : vector<7x288xf32>, vector<288x224xf32>, vector<7x224xf32> -> vector<7x224xf32>
    %80 = arith.addf %74, %79 : vector<7x224xf32>
    %c0_101 = arith.constant 0 : index
    %c2_102 = arith.constant 2 : index
    %c0_103 = arith.constant 0 : index
    %81 = vector.load %arg2[%c0_101, %c2_102, %c0_103] : memref<1x9x288xf32, #tpu.memory_space<vmem>>, vector<1x7x288xf32>
    %82 = vector.shape_cast %81 : vector<1x7x288xf32> to vector<7x288xf32>
    %c3_104 = arith.constant 3 : index
    %c0_105 = arith.constant 0 : index
    %c0_106 = arith.constant 0 : index
    %c0_107 = arith.constant 0 : index
    %83 = vector.load %arg4[%c3_104, %c0_105, %c0_106, %c0_107] : memref<5x2x288x224xf32, #tpu.memory_space<vmem>>, vector<1x1x288x224xf32>
    %84 = vector.shape_cast %83 : vector<1x1x288x224xf32> to vector<288x224xf32>
    %cst_108 = arith.constant dense<0.000000e+00> : vector<7x224xf32>
    %85 = tpu.matmul %82, %84, %cst_108 {dimension_numbers = #tpu.dot_dimension_numbers<[1], [0], [0], [1], [0, 0, 1, 1], [], []>} : vector<7x288xf32>, vector<288x224xf32>, vector<7x224xf32> -> vector<7x224xf32>
    %86 = arith.addf %80, %85 : vector<7x224xf32>
    %c0_109 = arith.constant 0 : index
    %c2_110 = arith.constant 2 : index
    %c0_111 = arith.constant 0 : index
    %87 = vector.load %arg3[%c0_109, %c2_110, %c0_111] : memref<1x9x288xf32, #tpu.memory_space<vmem>>, vector<1x7x288xf32>
    %88 = vector.shape_cast %87 : vector<1x7x288xf32> to vector<7x288xf32>
    %c4_112 = arith.constant 4 : index
    %c0_113 = arith.constant 0 : index
    %c0_114 = arith.constant 0 : index
    %c0_115 = arith.constant 0 : index
    %89 = vector.load %arg4[%c4_112, %c0_113, %c0_114, %c0_115] : memref<5x2x288x224xf32, #tpu.memory_space<vmem>>, vector<1x1x288x224xf32>
    %90 = vector.shape_cast %89 : vector<1x1x288x224xf32> to vector<288x224xf32>
    %cst_116 = arith.constant dense<0.000000e+00> : vector<7x224xf32>
    %91 = tpu.matmul %88, %90, %cst_116 {dimension_numbers = #tpu.dot_dimension_numbers<[1], [0], [0], [1], [0, 0, 1, 1], [], []>} : vector<7x288xf32>, vector<288x224xf32>, vector<7x224xf32> -> vector<7x224xf32>
    %92 = arith.addf %86, %91 : vector<7x224xf32>
    %cst_117 = arith.constant 0.000000e+00 : f32
    %93 = vector.broadcast %cst_117 : f32 to vector<7x224xf32>
    %c0_118 = arith.constant 0 : index
    %c0_119 = arith.constant 0 : index
    %c0_120 = arith.constant 0 : index
    %94 = vector.load %arg3[%c0_118, %c0_119, %c0_120] : memref<1x9x288xf32, #tpu.memory_space<vmem>>, vector<1x7x288xf32>
    %95 = vector.shape_cast %94 : vector<1x7x288xf32> to vector<7x288xf32>
    %c0_121 = arith.constant 0 : index
    %c1_122 = arith.constant 1 : index
    %c0_123 = arith.constant 0 : index
    %c0_124 = arith.constant 0 : index
    %96 = vector.load %arg4[%c0_121, %c1_122, %c0_123, %c0_124] : memref<5x2x288x224xf32, #tpu.memory_space<vmem>>, vector<1x1x288x224xf32>
    %97 = vector.shape_cast %96 : vector<1x1x288x224xf32> to vector<288x224xf32>
    %cst_125 = arith.constant dense<0.000000e+00> : vector<7x224xf32>
    %98 = tpu.matmul %95, %97, %cst_125 {dimension_numbers = #tpu.dot_dimension_numbers<[1], [0], [0], [1], [0, 0, 1, 1], [], []>} : vector<7x288xf32>, vector<288x224xf32>, vector<7x224xf32> -> vector<7x224xf32>
    %99 = arith.addf %93, %98 : vector<7x224xf32>
    %c0_126 = arith.constant 0 : index
    %c1_127 = arith.constant 1 : index
    %c0_128 = arith.constant 0 : index
    %100 = vector.load %arg2[%c0_126, %c1_127, %c0_128] : memref<1x9x288xf32, #tpu.memory_space<vmem>>, vector<1x7x288xf32>
    %101 = vector.shape_cast %100 : vector<1x7x288xf32> to vector<7x288xf32>
    %c1_129 = arith.constant 1 : index
    %c1_130 = arith.constant 1 : index
    %c0_131 = arith.constant 0 : index
    %c0_132 = arith.constant 0 : index
    %102 = vector.load %arg4[%c1_129, %c1_130, %c0_131, %c0_132] : memref<5x2x288x224xf32, #tpu.memory_space<vmem>>, vector<1x1x288x224xf32>
    %103 = vector.shape_cast %102 : vector<1x1x288x224xf32> to vector<288x224xf32>
    %cst_133 = arith.constant dense<0.000000e+00> : vector<7x224xf32>
    %104 = tpu.matmul %101, %103, %cst_133 {dimension_numbers = #tpu.dot_dimension_numbers<[1], [0], [0], [1], [0, 0, 1, 1], [], []>} : vector<7x288xf32>, vector<288x224xf32>, vector<7x224xf32> -> vector<7x224xf32>
    %105 = arith.addf %99, %104 : vector<7x224xf32>
    %c0_134 = arith.constant 0 : index
    %c1_135 = arith.constant 1 : index
    %c0_136 = arith.constant 0 : index
    %106 = vector.load %arg3[%c0_134, %c1_135, %c0_136] : memref<1x9x288xf32, #tpu.memory_space<vmem>>, vector<1x7x288xf32>
    %107 = vector.shape_cast %106 : vector<1x7x288xf32> to vector<7x288xf32>
    %c2_137 = arith.constant 2 : index
    %c1_138 = arith.constant 1 : index
    %c0_139 = arith.constant 0 : index
    %c0_140 = arith.constant 0 : index
    %108 = vector.load %arg4[%c2_137, %c1_138, %c0_139, %c0_140] : memref<5x2x288x224xf32, #tpu.memory_space<vmem>>, vector<1x1x288x224xf32>
    %109 = vector.shape_cast %108 : vector<1x1x288x224xf32> to vector<288x224xf32>
    %cst_141 = arith.constant dense<0.000000e+00> : vector<7x224xf32>
    %110 = tpu.matmul %107, %109, %cst_141 {dimension_numbers = #tpu.dot_dimension_numbers<[1], [0], [0], [1], [0, 0, 1, 1], [], []>} : vector<7x288xf32>, vector<288x224xf32>, vector<7x224xf32> -> vector<7x224xf32>
    %111 = arith.addf %105, %110 : vector<7x224xf32>
    %c0_142 = arith.constant 0 : index
    %c2_143 = arith.constant 2 : index
    %c0_144 = arith.constant 0 : index
    %112 = vector.load %arg2[%c0_142, %c2_143, %c0_144] : memref<1x9x288xf32, #tpu.memory_space<vmem>>, vector<1x7x288xf32>
    %113 = vector.shape_cast %112 : vector<1x7x288xf32> to vector<7x288xf32>
    %c3_145 = arith.constant 3 : index
    %c1_146 = arith.constant 1 : index
    %c0_147 = arith.constant 0 : index
    %c0_148 = arith.constant 0 : index
    %114 = vector.load %arg4[%c3_145, %c1_146, %c0_147, %c0_148] : memref<5x2x288x224xf32, #tpu.memory_space<vmem>>, vector<1x1x288x224xf32>
    %115 = vector.shape_cast %114 : vector<1x1x288x224xf32> to vector<288x224xf32>
    %cst_149 = arith.constant dense<0.000000e+00> : vector<7x224xf32>
    %116 = tpu.matmul %113, %115, %cst_149 {dimension_numbers = #tpu.dot_dimension_numbers<[1], [0], [0], [1], [0, 0, 1, 1], [], []>} : vector<7x288xf32>, vector<288x224xf32>, vector<7x224xf32> -> vector<7x224xf32>
    %117 = arith.addf %111, %116 : vector<7x224xf32>
    %c0_150 = arith.constant 0 : index
    %c2_151 = arith.constant 2 : index
    %c0_152 = arith.constant 0 : index
    %118 = vector.load %arg3[%c0_150, %c2_151, %c0_152] : memref<1x9x288xf32, #tpu.memory_space<vmem>>, vector<1x7x288xf32>
    %119 = vector.shape_cast %118 : vector<1x7x288xf32> to vector<7x288xf32>
    %c4_153 = arith.constant 4 : index
    %c1_154 = arith.constant 1 : index
    %c0_155 = arith.constant 0 : index
    %c0_156 = arith.constant 0 : index
    %120 = vector.load %arg4[%c4_153, %c1_154, %c0_155, %c0_156] : memref<5x2x288x224xf32, #tpu.memory_space<vmem>>, vector<1x1x288x224xf32>
    %121 = vector.shape_cast %120 : vector<1x1x288x224xf32> to vector<288x224xf32>
    %cst_157 = arith.constant dense<0.000000e+00> : vector<7x224xf32>
    %122 = tpu.matmul %119, %121, %cst_157 {dimension_numbers = #tpu.dot_dimension_numbers<[1], [0], [0], [1], [0, 0, 1, 1], [], []>} : vector<7x288xf32>, vector<288x224xf32>, vector<7x224xf32> -> vector<7x224xf32>
    %123 = arith.addf %117, %122 : vector<7x224xf32>
    %c0_i32 = arith.constant 0 : i32
    %124 = arith.cmpi eq, %arg0, %c0_i32 : i32
    %c0_i32_158 = arith.constant 0 : i32
    %125 = arith.cmpi eq, %arg1, %c0_i32_158 : i32
    %126 = arith.andi %124, %125 : i1
    %127 = arith.extui %126 : i1 to i32
    %c0_i32_159 = arith.constant 0 : i32
    %128 = arith.cmpi ne, %127, %c0_i32_159 : i32
    scf.if %128 {
      %cst_166 = arith.constant 0.000000e+00 : f32
      %140 = vector.broadcast %cst_166 : f32 to vector<2x32xf32>
      %c0_167 = arith.constant 0 : index
      %c0_168 = arith.constant 0 : index
      %141 = vector.load %arg12[%c0_167, %c0_168] : memref<2x32xf32, #tpu.memory_space<vmem>>, vector<2x32xf32>
      tpu.vector_store %arg12[%c0_167, %c0_168], %140 {strides = array<i32>} : memref<2x32xf32, #tpu.memory_space<vmem>>, vector<2x32xf32>,
    } else {
    }
    %c0_i32_160 = arith.constant 0 : i32
    %129 = arith.cmpi eq, %arg0, %c0_i32_160 : i32
    %130 = arith.extui %129 : i1 to i32
    %c0_i32_161 = arith.constant 0 : i32
    %131 = arith.cmpi ne, %130, %c0_i32_161 : i32
    scf.if %131 {
      %140 = arith.mulf %30, %30 : vector<7x224xf32>
      %141 = arith.addf %30, %61 : vector<7x224xf32>
      %142 = arith.mulf %61, %61 : vector<7x224xf32>
      %143 = arith.addf %140, %142 : vector<7x224xf32>
      %144 = arith.addf %141, %92 : vector<7x224xf32>
      %145 = arith.mulf %92, %92 : vector<7x224xf32>
      %146 = arith.addf %143, %145 : vector<7x224xf32>
      %147 = arith.addf %144, %123 : vector<7x224xf32>
      %148 = arith.mulf %123, %123 : vector<7x224xf32>
      %149 = arith.addf %146, %148 : vector<7x224xf32>
      %c0_166 = arith.constant 0 : index
      %c0_167 = arith.constant 0 : index
      %150 = vector.load %arg12[%c0_166, %c0_167] : memref<2x32xf32, #tpu.memory_space<vmem>>, vector<1x32xf32>
      %cst_168 = arith.constant dense<0.000000e+00> : vector<224xf32>
      %151 = vector.multi_reduction <add>, %147, %cst_168 [0] : vector<7x224xf32> to vector<224xf32>
      %152 = vector.shape_cast %151 : vector<224xf32> to vector<1x224xf32>
      %c0_169 = arith.constant 0 : index
      %c0_170 = arith.constant 0 : index
      %153 = vector.load %arg5[%c0_169, %c0_170] : memref<224x32xf32, #tpu.memory_space<vmem>>, vector<224x32xf32>
      %cst_171 = arith.constant dense<0.000000e+00> : vector<1x32xf32>
      %154 = tpu.matmul %152, %153, %cst_171 {dimension_numbers = #tpu.dot_dimension_numbers<[1], [0], [0], [1], [0, 0, 1, 1], [], []>} : vector<1x224xf32>, vector<224x32xf32>, vector<1x32xf32> -> vector<1x32xf32>
      %155 = arith.addf %150, %154 : vector<1x32xf32>
      %c0_172 = arith.constant 0 : index
      %c0_173 = arith.constant 0 : index
      %156 = vector.load %arg12[%c0_172, %c0_173] : memref<2x32xf32, #tpu.memory_space<vmem>>, vector<1x32xf32>
      tpu.vector_store %arg12[%c0_172, %c0_173], %155 {strides = array<i32>} : memref<2x32xf32, #tpu.memory_space<vmem>>, vector<1x32xf32>,
      %c1_174 = arith.constant 1 : index
      %c0_175 = arith.constant 0 : index
      %157 = vector.load %arg12[%c1_174, %c0_175] : memref<2x32xf32, #tpu.memory_space<vmem>>, vector<1x32xf32>
      %cst_176 = arith.constant dense<0.000000e+00> : vector<224xf32>
      %158 = vector.multi_reduction <add>, %149, %cst_176 [0] : vector<7x224xf32> to vector<224xf32>
      %159 = vector.shape_cast %158 : vector<224xf32> to vector<1x224xf32>
      %c0_177 = arith.constant 0 : index
      %c0_178 = arith.constant 0 : index
      %160 = vector.load %arg5[%c0_177, %c0_178] : memref<224x32xf32, #tpu.memory_space<vmem>>, vector<224x32xf32>
      %cst_179 = arith.constant dense<0.000000e+00> : vector<1x32xf32>
      %161 = tpu.matmul %159, %160, %cst_179 {dimension_numbers = #tpu.dot_dimension_numbers<[1], [0], [0], [1], [0, 0, 1, 1], [], []>} : vector<1x224xf32>, vector<224x32xf32>, vector<1x32xf32> -> vector<1x32xf32>
      %162 = arith.addf %157, %161 : vector<1x32xf32>
      %c1_180 = arith.constant 1 : index
      %c0_181 = arith.constant 0 : index
      %163 = vector.load %arg12[%c1_180, %c0_181] : memref<2x32xf32, #tpu.memory_space<vmem>>, vector<1x32xf32>
      tpu.vector_store %arg12[%c1_180, %c0_181], %162 {strides = array<i32>} : memref<2x32xf32, #tpu.memory_space<vmem>>, vector<1x32xf32>,
    } else {
    }
    %c1_i32 = arith.constant 1 : i32
    %132 = arith.cmpi eq, %arg0, %c1_i32 : i32
    %c0_i32_162 = arith.constant 0 : i32
    %133 = arith.cmpi eq, %arg1, %c0_i32_162 : i32
    %134 = arith.andi %132, %133 : i1
    %135 = arith.extui %134 : i1 to i32
    %c0_i32_163 = arith.constant 0 : i32
    %136 = arith.cmpi ne, %135, %c0_i32_163 : i32
    scf.if %136 {
      %c0_166 = arith.constant 0 : index
      %c0_167 = arith.constant 0 : index
      %140 = vector.load %arg12[%c0_166, %c0_167] : memref<2x32xf32, #tpu.memory_space<vmem>>, vector<1x32xf32>
      %cst_168 = arith.constant 0.00255102036 : f32
      %141 = vector.broadcast %cst_168 : f32 to vector<1x32xf32>
      %142 = arith.mulf %140, %141 : vector<1x32xf32>
      %c1_169 = arith.constant 1 : index
      %c0_170 = arith.constant 0 : index
      %143 = vector.load %arg12[%c1_169, %c0_170] : memref<2x32xf32, #tpu.memory_space<vmem>>, vector<1x32xf32>
      %cst_171 = arith.constant 0.00255102036 : f32
      %144 = vector.broadcast %cst_171 : f32 to vector<1x32xf32>
      %145 = arith.mulf %143, %144 : vector<1x32xf32>
      %146 = arith.mulf %142, %142 : vector<1x32xf32>
      %147 = arith.subf %145, %146 : vector<1x32xf32>
      %c0_172 = arith.constant 0 : index
      %c0_173 = arith.constant 0 : index
      %148 = vector.load %arg7[%c0_172, %c0_173] : memref<1x32xf32, #tpu.memory_space<vmem>>, vector<1x32xf32>
      %cst_174 = arith.constant 9.99999974E-6 : f32
      %149 = vector.broadcast %cst_174 : f32 to vector<1x32xf32>
      %150 = arith.addf %147, %149 : vector<1x32xf32>
      %151 = math.rsqrt %150 : vector<1x32xf32>
      %152 = arith.mulf %148, %151 : vector<1x32xf32>
      %c0_175 = arith.constant 0 : index
      %c0_176 = arith.constant 0 : index
      %153 = vector.load %arg8[%c0_175, %c0_176] : memref<1x32xf32, #tpu.memory_space<vmem>>, vector<1x32xf32>
      %154 = arith.mulf %152, %142 : vector<1x32xf32>
      %155 = arith.subf %153, %154 : vector<1x32xf32>
      %c0_177 = arith.constant 0 : index
      %c0_178 = arith.constant 0 : index
      %156 = vector.load %arg6[%c0_177, %c0_178] : memref<32x224xf32, #tpu.memory_space<vmem>>, vector<32x224xf32>
      %cst_179 = arith.constant dense<0.000000e+00> : vector<1x224xf32>
      %157 = tpu.matmul %152, %156, %cst_179 {dimension_numbers = #tpu.dot_dimension_numbers<[1], [0], [0], [1], [0, 0, 1, 1], [], []>} : vector<1x32xf32>, vector<32x224xf32>, vector<1x224xf32> -> vector<1x224xf32>
      %c0_180 = arith.constant 0 : index
      %c0_181 = arith.constant 0 : index
      %158 = vector.load %arg13[%c0_180, %c0_181] : memref<2x224xf32, #tpu.memory_space<vmem>>, vector<1x224xf32>
      tpu.vector_store %arg13[%c0_180, %c0_181], %157 {strides = array<i32>} : memref<2x224xf32, #tpu.memory_space<vmem>>, vector<1x224xf32>,
      %c0_182 = arith.constant 0 : index
      %c0_183 = arith.constant 0 : index
      %159 = vector.load %arg6[%c0_182, %c0_183] : memref<32x224xf32, #tpu.memory_space<vmem>>, vector<32x224xf32>
      %cst_184 = arith.constant dense<0.000000e+00> : vector<1x224xf32>
      %160 = tpu.matmul %155, %159, %cst_184 {dimension_numbers = #tpu.dot_dimension_numbers<[1], [0], [0], [1], [0, 0, 1, 1], [], []>} : vector<1x32xf32>, vector<32x224xf32>, vector<1x224xf32> -> vector<1x224xf32>
      %c1_185 = arith.constant 1 : index
      %c0_186 = arith.constant 0 : index
      %161 = vector.load %arg13[%c1_185, %c0_186] : memref<2x224xf32, #tpu.memory_space<vmem>>, vector<1x224xf32>
      tpu.vector_store %arg13[%c1_185, %c0_186], %160 {strides = array<i32>} : memref<2x224xf32, #tpu.memory_space<vmem>>, vector<1x224xf32>,
    } else {
    }
    %c1_i32_164 = arith.constant 1 : i32
    %137 = arith.cmpi eq, %arg0, %c1_i32_164 : i32
    %138 = arith.extui %137 : i1 to i32
    %c0_i32_165 = arith.constant 0 : i32
    %139 = arith.cmpi ne, %138, %c0_i32_165 : i32
    scf.if %139 {
      %c0_166 = arith.constant 0 : index
      %c0_167 = arith.constant 0 : index
      %140 = vector.load %arg13[%c0_166, %c0_167] : memref<2x224xf32, #tpu.memory_space<vmem>>, vector<1x224xf32>
      %c1_168 = arith.constant 1 : index
      %c0_169 = arith.constant 0 : index
      %141 = vector.load %arg13[%c1_168, %c0_169] : memref<2x224xf32, #tpu.memory_space<vmem>>, vector<1x224xf32>
      %142 = vector.broadcast %140 : vector<1x224xf32> to vector<7x224xf32>
      %143 = arith.mulf %30, %142 : vector<7x224xf32>
      %144 = vector.broadcast %141 : vector<1x224xf32> to vector<7x224xf32>
      %145 = arith.addf %143, %144 : vector<7x224xf32>
      %146 = vector.broadcast %140 : vector<1x224xf32> to vector<7x224xf32>
      %147 = arith.mulf %61, %146 : vector<7x224xf32>
      %148 = vector.broadcast %141 : vector<1x224xf32> to vector<7x224xf32>
      %149 = arith.addf %147, %148 : vector<7x224xf32>
      %150 = vector.broadcast %140 : vector<1x224xf32> to vector<7x224xf32>
      %151 = arith.mulf %92, %150 : vector<7x224xf32>
      %152 = vector.broadcast %141 : vector<1x224xf32> to vector<7x224xf32>
      %153 = arith.addf %151, %152 : vector<7x224xf32>
      %154 = vector.broadcast %140 : vector<1x224xf32> to vector<7x224xf32>
      %155 = arith.mulf %123, %154 : vector<7x224xf32>
      %156 = vector.broadcast %141 : vector<1x224xf32> to vector<7x224xf32>
      %157 = arith.addf %155, %156 : vector<7x224xf32>
      %158 = arith.maximumf %145, %149 : vector<7x224xf32>
      %159 = arith.maximumf %153, %157 : vector<7x224xf32>
      %160 = arith.maximumf %158, %159 : vector<7x224xf32>
      %cst_170 = arith.constant 0.000000e+00 : f32
      %161 = vector.broadcast %cst_170 : f32 to vector<7x224xf32>
      %162 = arith.maximumf %160, %161 : vector<7x224xf32>
      %c0_171 = arith.constant 0 : index
      %c0_172 = arith.constant 0 : index
      %163 = vector.load %arg10[%c0_171, %c0_172] : memref<1x128xf32, #tpu.memory_space<vmem>>, vector<1x128xf32>
      %164 = vector.extract_strided_slice %162 {offsets = [0, 0], sizes = [1, 224], strides = [1, 1]} : vector<7x224xf32> to vector<1x224xf32>
      %c0_173 = arith.constant 0 : index
      %c0_174 = arith.constant 0 : index
      %c0_175 = arith.constant 0 : index
      %165 = vector.load %arg9[%c0_173, %c0_174, %c0_175] : memref<7x224x128xf32, #tpu.memory_space<vmem>>, vector<1x224x128xf32>
      %166 = vector.shape_cast %165 : vector<1x224x128xf32> to vector<224x128xf32>
      %cst_176 = arith.constant dense<0.000000e+00> : vector<1x128xf32>
      %167 = tpu.matmul %164, %166, %cst_176 {dimension_numbers = #tpu.dot_dimension_numbers<[1], [0], [0], [1], [0, 0, 1, 1], [], []>} : vector<1x224xf32>, vector<224x128xf32>, vector<1x128xf32> -> vector<1x128xf32>
      %168 = arith.addf %163, %167 : vector<1x128xf32>
      %169 = vector.extract_strided_slice %162 {offsets = [1, 0], sizes = [1, 224], strides = [1, 1]} : vector<7x224xf32> to vector<1x224xf32>
      %c1_177 = arith.constant 1 : index
      %c0_178 = arith.constant 0 : index
      %c0_179 = arith.constant 0 : index
      %170 = vector.load %arg9[%c1_177, %c0_178, %c0_179] : memref<7x224x128xf32, #tpu.memory_space<vmem>>, vector<1x224x128xf32>
      %171 = vector.shape_cast %170 : vector<1x224x128xf32> to vector<224x128xf32>
      %cst_180 = arith.constant dense<0.000000e+00> : vector<1x128xf32>
      %172 = tpu.matmul %169, %171, %cst_180 {dimension_numbers = #tpu.dot_dimension_numbers<[1], [0], [0], [1], [0, 0, 1, 1], [], []>} : vector<1x224xf32>, vector<224x128xf32>, vector<1x128xf32> -> vector<1x128xf32>
      %173 = arith.addf %168, %172 : vector<1x128xf32>
      %174 = vector.extract_strided_slice %162 {offsets = [2, 0], sizes = [1, 224], strides = [1, 1]} : vector<7x224xf32> to vector<1x224xf32>
      %c2_181 = arith.constant 2 : index
      %c0_182 = arith.constant 0 : index
      %c0_183 = arith.constant 0 : index
      %175 = vector.load %arg9[%c2_181, %c0_182, %c0_183] : memref<7x224x128xf32, #tpu.memory_space<vmem>>, vector<1x224x128xf32>
      %176 = vector.shape_cast %175 : vector<1x224x128xf32> to vector<224x128xf32>
      %cst_184 = arith.constant dense<0.000000e+00> : vector<1x128xf32>
      %177 = tpu.matmul %174, %176, %cst_184 {dimension_numbers = #tpu.dot_dimension_numbers<[1], [0], [0], [1], [0, 0, 1, 1], [], []>} : vector<1x224xf32>, vector<224x128xf32>, vector<1x128xf32> -> vector<1x128xf32>
      %178 = arith.addf %173, %177 : vector<1x128xf32>
      %179 = vector.extract_strided_slice %162 {offsets = [3, 0], sizes = [1, 224], strides = [1, 1]} : vector<7x224xf32> to vector<1x224xf32>
      %c3_185 = arith.constant 3 : index
      %c0_186 = arith.constant 0 : index
      %c0_187 = arith.constant 0 : index
      %180 = vector.load %arg9[%c3_185, %c0_186, %c0_187] : memref<7x224x128xf32, #tpu.memory_space<vmem>>, vector<1x224x128xf32>
      %181 = vector.shape_cast %180 : vector<1x224x128xf32> to vector<224x128xf32>
      %cst_188 = arith.constant dense<0.000000e+00> : vector<1x128xf32>
      %182 = tpu.matmul %179, %181, %cst_188 {dimension_numbers = #tpu.dot_dimension_numbers<[1], [0], [0], [1], [0, 0, 1, 1], [], []>} : vector<1x224xf32>, vector<224x128xf32>, vector<1x128xf32> -> vector<1x128xf32>
      %183 = arith.addf %178, %182 : vector<1x128xf32>
      %184 = vector.extract_strided_slice %162 {offsets = [4, 0], sizes = [1, 224], strides = [1, 1]} : vector<7x224xf32> to vector<1x224xf32>
      %c4_189 = arith.constant 4 : index
      %c0_190 = arith.constant 0 : index
      %c0_191 = arith.constant 0 : index
      %185 = vector.load %arg9[%c4_189, %c0_190, %c0_191] : memref<7x224x128xf32, #tpu.memory_space<vmem>>, vector<1x224x128xf32>
      %186 = vector.shape_cast %185 : vector<1x224x128xf32> to vector<224x128xf32>
      %cst_192 = arith.constant dense<0.000000e+00> : vector<1x128xf32>
      %187 = tpu.matmul %184, %186, %cst_192 {dimension_numbers = #tpu.dot_dimension_numbers<[1], [0], [0], [1], [0, 0, 1, 1], [], []>} : vector<1x224xf32>, vector<224x128xf32>, vector<1x128xf32> -> vector<1x128xf32>
      %188 = arith.addf %183, %187 : vector<1x128xf32>
      %189 = vector.extract_strided_slice %162 {offsets = [5, 0], sizes = [1, 224], strides = [1, 1]} : vector<7x224xf32> to vector<1x224xf32>
      %c5 = arith.constant 5 : index
      %c0_193 = arith.constant 0 : index
      %c0_194 = arith.constant 0 : index
      %190 = vector.load %arg9[%c5, %c0_193, %c0_194] : memref<7x224x128xf32, #tpu.memory_space<vmem>>, vector<1x224x128xf32>
      %191 = vector.shape_cast %190 : vector<1x224x128xf32> to vector<224x128xf32>
      %cst_195 = arith.constant dense<0.000000e+00> : vector<1x128xf32>
      %192 = tpu.matmul %189, %191, %cst_195 {dimension_numbers = #tpu.dot_dimension_numbers<[1], [0], [0], [1], [0, 0, 1, 1], [], []>} : vector<1x224xf32>, vector<224x128xf32>, vector<1x128xf32> -> vector<1x128xf32>
      %193 = arith.addf %188, %192 : vector<1x128xf32>
      %194 = vector.extract_strided_slice %162 {offsets = [6, 0], sizes = [1, 224], strides = [1, 1]} : vector<7x224xf32> to vector<1x224xf32>
      %c6 = arith.constant 6 : index
      %c0_196 = arith.constant 0 : index
      %c0_197 = arith.constant 0 : index
      %195 = vector.load %arg9[%c6, %c0_196, %c0_197] : memref<7x224x128xf32, #tpu.memory_space<vmem>>, vector<1x224x128xf32>
      %196 = vector.shape_cast %195 : vector<1x224x128xf32> to vector<224x128xf32>
      %cst_198 = arith.constant dense<0.000000e+00> : vector<1x128xf32>
      %197 = tpu.matmul %194, %196, %cst_198 {dimension_numbers = #tpu.dot_dimension_numbers<[1], [0], [0], [1], [0, 0, 1, 1], [], []>} : vector<1x224xf32>, vector<224x128xf32>, vector<1x128xf32> -> vector<1x128xf32>
      %198 = arith.addf %193, %197 : vector<1x128xf32>
      %c0_199 = arith.constant 0 : index
      %c0_200 = arith.constant 0 : index
      %c0_201 = arith.constant 0 : index
      %199 = vector.load %arg11[%c0_199, %c0_200, %c0_201] : memref<1x1x128xf32, #tpu.memory_space<vmem>>, vector<1x1x128xf32>
      %200 = vector.shape_cast %199 : vector<1x1x128xf32> to vector<1x128xf32>
      %201 = vector.shape_cast %198 : vector<1x128xf32> to vector<1x1x128xf32>
      tpu.vector_store %arg11[%c0_199, %c0_200, %c0_201], %201 {strides = array<i32>} : memref<1x1x128xf32, #tpu.memory_space<vmem>>, vector<1x1x128xf32>,
    } else {
    }
    return
  }
  func.func @transform_0(%arg0: i32, %arg1: i32) -> (i32, i32, i32) {
    %c0_i32 = arith.constant 0 : i32
    %c0_i32_0 = arith.constant 0 : i32
    %c0_i32_1 = arith.constant 0 : i32
    return %arg1, %c0_i32, %c0_i32_0 : i32, i32, i32
  }
  func.func @transform_1(%arg0: i32, %arg1: i32) -> (i32, i32, i32) {
    %c0_i32 = arith.constant 0 : i32
    %c0_i32_0 = arith.constant 0 : i32
    %c0_i32_1 = arith.constant 0 : i32
    return %arg1, %c0_i32, %c0_i32_0 : i32, i32, i32
  }
  func.func @transform_2(%arg0: i32, %arg1: i32) -> (i32, i32, i32, i32) {
    %c0_i32 = arith.constant 0 : i32
    %c0_i32_0 = arith.constant 0 : i32
    %c0_i32_1 = arith.constant 0 : i32
    %c0_i32_2 = arith.constant 0 : i32
    %c0_i32_3 = arith.constant 0 : i32
    return %c0_i32, %c0_i32_0, %c0_i32_1, %c0_i32_2 : i32, i32, i32, i32
  }
  func.func @transform_3(%arg0: i32, %arg1: i32) -> (i32, i32) {
    %c0_i32 = arith.constant 0 : i32
    %c0_i32_0 = arith.constant 0 : i32
    %c0_i32_1 = arith.constant 0 : i32
    return %c0_i32, %c0_i32_0 : i32, i32
  }
  func.func @transform_4(%arg0: i32, %arg1: i32) -> (i32, i32) {
    %c0_i32 = arith.constant 0 : i32
    %c0_i32_0 = arith.constant 0 : i32
    %c0_i32_1 = arith.constant 0 : i32
    return %c0_i32, %c0_i32_0 : i32, i32
  }
  func.func @transform_5(%arg0: i32, %arg1: i32) -> (i32, i32) {
    %c0_i32 = arith.constant 0 : i32
    %c0_i32_0 = arith.constant 0 : i32
    %c0_i32_1 = arith.constant 0 : i32
    return %c0_i32, %c0_i32_0 : i32, i32
  }
  func.func @transform_6(%arg0: i32, %arg1: i32) -> (i32, i32) {
    %c0_i32 = arith.constant 0 : i32
    %c0_i32_0 = arith.constant 0 : i32
    %c0_i32_1 = arith.constant 0 : i32
    return %c0_i32, %c0_i32_0 : i32, i32
  }
  func.func @transform_7(%arg0: i32, %arg1: i32) -> (i32, i32, i32) {
    %c0_i32 = arith.constant 0 : i32
    %c0_i32_0 = arith.constant 0 : i32
    %c0_i32_1 = arith.constant 0 : i32
    %c0_i32_2 = arith.constant 0 : i32
    return %c0_i32, %c0_i32_0, %c0_i32_1 : i32, i32, i32
  }
  func.func @transform_8(%arg0: i32, %arg1: i32) -> (i32, i32) {
    %c0_i32 = arith.constant 0 : i32
    %c0_i32_0 = arith.constant 0 : i32
    %c0_i32_1 = arith.constant 0 : i32
    return %c0_i32, %c0_i32_0 : i32, i32
  }
  func.func @transform_9(%arg0: i32, %arg1: i32) -> (i32, i32, i32) {
    %0 = arith.muli %arg0, %arg1 : i32
    %c0_i32 = arith.constant 0 : i32
    %c0_i32_0 = arith.constant 0 : i32
    %c0_i32_1 = arith.constant 0 : i32
    return %0, %c0_i32, %c0_i32_0 : i32, i32, i32
  }
}

</mosaic_0001>

<bundles_post_ra>
// kernel: convnet_forward.2
= control target key start
LH: loop header
LB: loop body
LE: loop exit
PB: predicated region body
PF: predicated region fallthrough
CT: control target
= control target key end

     0   :  { %s5941_s0 = inlined_call_operand.vmem [shape: f32[2,8,32], index: 0, kind: input, shape index: {}]   ;;  %s5942_s1 = inlined_call_operand.vmem [shape: f32[2,8,32], index: 1, kind: input, shape index: {}]   ;;  %s5943_s2 = inlined_call_operand.vmem [shape: f32[2,8,32], index: 2, kind: input, shape index: {}]   ;;  %s5944_s3 = inlined_call_operand.vmem [shape: f32[2,8,32], index: 3, kind: input, shape index: {}]   ;;  %s5945_s4 = inlined_call_operand.hbm [shape: f32[5,2,32,288], index: 4, kind: input, shape index: {}]   ;;  %s5946_s5 = inlined_call_operand.vmem [shape: f32[288,16], index: 5, kind: input, shape index: {}]   ;;  %s5947_s6 = inlined_call_operand.hbm [shape: f32[16,288], index: 6, kind: input, shape index: {}]   ;;  %s5948_s7 = inlined_call_operand.hbm [shape: f32[1,16], index: 7, kind: input, shape index: {}]   ;;  %s5949_s8 = inlined_call_operand.hbm [shape: f32[1,16], index: 8, kind: input, shape index: {}]   ;;  %s5950_s9 = inlined_call_operand.vmem [shape: f32[2,9,288], index: 9, kind: output, shape index: {0}]   ;;  %s5951_s10 = inlined_call_operand.vmem [shape: f32[2,9,288], index: 10, kind: output, shape index: {1}]  }
   0x1   :  { %6097 = sst [smem:[#allocation101_spill]] %s5945_s4 }
   0x2   :  { %6098 = sst [smem:[#allocation102_spill]] %s5947_s6 }
   0x3   :  { %16 = vsyncpa [#allocation5], 0 }
   0x4   :  { %17 = vsyncpa [#allocation7], 0 }
   0x5   :  { %18 = vsyncpa [#allocation10], 0  ;;  %s4570_s13 = smov 0   ;;  %s4572_s14 = smov 0  }
   0x6   :  { %s4574_s15 = smov 0   ;;  %s4576_s16 = smov 0  }
   0x7   :  { %s4578_s17 = smov 0  }
   0x8 LB: > { %6099 = sst [smem:[#allocation14_spill]] %s4505_s17  ;;  %s3971_s18 = sadd.s32 4294967295, %s4505_s17   ;;  %s4505_s17 = sphi %s4578_s17, %s24_s17   ;;  %s4501_s16 = sphi %s4576_s16, %s6328_s16   ;;  %s4497_s15 = sphi %s4574_s15, %s6327_s15   ;;  %s4493_s14 = sphi %s4572_s14, %s6326_s14   ;;  %s4489_s13 = sphi %s4570_s13, %s6325_s13  }
   0x9   : > { %p3973_p0 = scmp.ge.s32.totalorder %s4505_s17, 1  ;;  %p306_p1 = scmp.lt.s32.totalorder %s4505_s17, 5 }
   0xa   : > { %p4598_p2 = scmp.eq.s32.totalorder %s3971_s18, 0  ;;  %s6101_s6 = sld [smem:[#allocation102_spill]] }
   0xb   : > { %p4605_p3 = pnand %p3973_p0, %p306_p1  ;;  %s4507_s24 = smov [#allocation6]  }
   0xc   : > { %s336_s25 = sshll.u32 %s4507_s24, 4  ;;  %s4508_s27 = smov 384   ;;  %s337_s25 = int_to_ptr.vmem [resolvable:$true] %s336_s25 }
   0xd   : > { %p4141_p4 = pneg %p4605_p3  ;;  %s4509_s28 = smov 24  }
   0xe   : > { %s33_s29 = sadd.s32 1, %s4497_s15  ;;  %s36_s30 = sadd.s32 1, %s4501_s16 }
   0xf   : > { %p4613_p5 = pnand %p4598_p2, %p4141_p4  ;;  %p34_p6 = scmp.ge.s32.totalorder %s33_s29, 2 }
  0x10   : > { %s334_s22 = sshll.u32 %s6101_s6, 4  ;;  %s6104_s4 = sld [smem:[#allocation101_spill]]  ;;  %s335_s22 = int_to_ptr.hbm [resolvable:$true] %s334_s22 }
  0x11   : > { %4147 = dma.hbm_to_vmem [thread:$0]  (!%p4613_p5), %s335_s22, 768, %s337_s25, [#allocation7], %s4508_s27, %s4508_s27, %s4509_s28  }
  0x12   : > { %s6330_s29 = smov (%p34_p6, %s33_s29), 0  ;;  %s6332_s30 = smov (!%p34_p6, %s36_s30), %s4501_s16 }
  0x13   : > { %s4510_s20 = smov [#allocation4]   ;;  %s349_s17 = sshll.u32 %s5948_s7, 4  ;;  %s350_s17 = int_to_ptr.hbm [resolvable:$true] %s349_s17 }
  0x14   : > { %s319_s21 = sshll.u32 %s4510_s20, 4  ;;  %p38_p7 = scmp.ge.s32.totalorder %s6332_s30, 2  ;;  %s320_s21 = int_to_ptr.vmem [resolvable:$true] %s319_s21 }
  0x15   : > { %s4511_s22 = smov [#allocation8]   ;;  %s4512_s6 = smov [#allocation9]  }
  0x16   : > { %s317_s18 = sshll.u32 %s6104_s4, 4  ;;  %s6334_s30 = smov (%p38_p7, %s6332_s30), 0  ;;  %s318_s18 = int_to_ptr.hbm [resolvable:$true] %s317_s18 }
  0x17   : > { %4144 = dma.hbm_to_vmem [thread:$0]  (!%p4613_p5), %s318_s18, 15360, %s320_s21, [#allocation5], %s4508_s27, %s4508_s27, %s4509_s28  }
  0x18   : > { %s351_s25 = sshll.u32 %s4511_s22, 4  ;;  %s361_s4 = sshll.u32 %s5949_s8, 4  ;;  %s352_s25 = int_to_ptr.vmem [resolvable:$true] %s351_s25  ;;  %s362_s4 = int_to_ptr.hbm [resolvable:$true] %s361_s4 }
  0x19   : > { %4150 = dma.hbm_to_vmem [thread:$0]  (!%p4613_p5), %s350_s17, 16, %s352_s25, [#allocation7]  }
  0x1a   : > { %s363_s20 = sshll.u32 %s4512_s6, 4  ;;  %404 = sbr.rel (%p4605_p3) target bundleno = 891 (0x37b), region = 56  ;;  %s364_s20 = int_to_ptr.vmem [resolvable:$true] %s363_s20 }
  0x1b   : > { %4153 = dma.hbm_to_vmem [thread:$0]  (!%p4613_p5), %s362_s4, 16, %s364_s20, [#allocation10]  }
  0x1f   : > { %4476 = dma.done.wait (%p4598_p2), [#allocation5], 15360  }
  0x20   : > { %4478 = vsyncadd (%p4598_p2), [#allocation5], 4294951936 }
  0x21   : > { %4480 = dma.done.wait (%p4598_p2), [#allocation7], 784  }
  0x22   : > { %4482 = vsyncadd (%p4598_p2), [#allocation7], 4294966512 }
  0x23   : > { %4484 = dma.done.wait (%p4598_p2), [#allocation10], 16  }
  0x24   : > { %4486 = vsyncadd (%p4598_p2), [#allocation10], 4294967280  ;;  %s492_s4 = smul.u32 %s4489_s13, %s4493_s14  ;;  %p476_p8 = scmp.lt.s32.totalorder %s4489_s13, 1  ;;  %v4659_v0 = vld [vmem:[#allocation4 + $0x108] sm:$0xff]  ;;  %v4661_v1 = vld [vmem:[#allocation4 + $0x110] sm:$0xff]  ;;  %vm533_vm0 = vcmask 261120  }
  0x25   : > { %6105 = vst [vmem:[#allocation15_spill] sm:$0xff] %v4659_v0  ;;  %v4663_v2 = vld [vmem:[#allocation4 + $0x118] sm:$0xff]  ;;  %549 = vmatpush.msra.mxu0 %v4659_v0  ;;  %569 = vmatpush.msra.mxu1 %v4661_v1  ;;  %v4679_v3 = vld [vmem:[#allocation4 + $0x48] sm:$0xff]  ;;  %v4681_v4 = vld [vmem:[#allocation4 + $0xf0] sm:$0xff]  ;;  %p3140_p10 = scmp.eq.s32.totalorder %s4493_s14, 0  ;;  %p3141_p11 = scmp.eq.s32.totalorder %s4489_s13, 0 }
  0x26   : > { %p493_p9 = scmp.lt.s32.totalorder %s492_s4, 1  ;;  %6106 = vst [vmem:[#allocation16_spill] sm:$0xff] %v4661_v1  ;;  %v4683_v5 = vld [vmem:[#allocation4 + $0xf8] sm:$0xff]  ;;  %589 = vmatpush.msra.mxu2 %v4663_v2  ;;  %612 = vmatpush.msra.mxu3 %v4679_v3  ;;  %v4687_v6 = vld [vmem:[#allocation4 + $0x100] sm:$0xff]  ;;  %v4689_v7 = vld [vmem:[#allocation4 + $0x30] sm:$0xff] }
  0x27   : > { %s477_s17 = scalar_select %p476_p8, %s4489_s13, 1  ;;  %v4691_v8 = vld [vmem:[#allocation4 + $0xd8] sm:$0xff]  ;;  %550 = vmatpush.msra.mxu0 %v4681_v4  ;;  %570 = vmatpush.msra.mxu1 %v4683_v5  ;;  %v4695_v9 = vld [vmem:[#allocation4 + $0xe0] sm:$0xff]  ;;  %v4697_v10 = vld [vmem:[#allocation4 + $0xe8] sm:$0xff] }
  0x28   : > { %s6336_s4 = smov (!%p493_p9, %s492_s4), 1  ;;  %v4699_v11 = vld [vmem:[#allocation4 + $0x18] sm:$0xff]  ;;  %590 = vmatpush.msra.mxu2 %v4687_v6  ;;  %613 = vmatpush.msra.mxu3 %v4689_v7  ;;  %v4709_v12 = vld [vmem:[#allocation4 + $0xc0] sm:$0xff]  ;;  %v4711_v13 = vld [vmem:[#allocation4 + $0xc8] sm:$0xff]  ;;  %p5596_p12 = pnand %p3141_p11, %p3140_p10 }
  0x29   : > { %s4124_s23 = smul.u32 48, %s6336_s4  ;;  %s4665_s26 = sshll.u32 %s477_s17, 3  ;;  %551 = vmatpush.msra.mxu0 %v4691_v8  ;;  %571 = vmatpush.msra.mxu1 %v4695_v9  ;;  %v4721_v14 = vld [vmem:[#allocation4 + $0xd0] sm:$0xff]  ;;  %v4723_v15 = vld [vmem:[#allocation4] sm:$0xff]  ;;  %v4737_v18 = vld [vmem:[#allocation4 + $0x1c8] sm:$0xff] }
  0x2a   : > { %s4705_s11 = scalar_lea.vmem %s5942_s1, %s4665_s26  ;;  %s4717_s20 = scalar_lea.vmem %s5941_s0, %s4665_s26  ;;  %591 = vmatpush.msra.mxu2 %v4697_v10  ;;  %614 = vmatpush.msra.mxu3 %v4699_v11  ;;  %v4739_v19 = vld [vmem:[#allocation4 + $0x1d0] sm:$0xff]  ;;  %v4747_v21 = vld [vmem:[#allocation4 + $0x58] sm:$0xff]  ;;  %v4761_v25 = vld [vmem:[#allocation4 + $0x40] sm:$0xff] }
  0x2b   : > { %s4670_s28 = scalar_lea.vmem %s5950_s9, %s4124_s23  ;;  %s4675_s24 = scalar_lea.vmem %s5951_s10, %s4124_s23  ;;  %v4728_v16 = vld [vmem:[%s4705_s11] sm:$0x7f]  ;;  %552 = vmatpush.msra.mxu0 %v4709_v12  ;;  %572 = vmatpush.msra.mxu1 %v4711_v13  ;;  %v4745_v20 = vld [vmem:[#allocation4 + $0x50] sm:$0xff]  ;;  %v4767_v27 = vld [vmem:[#allocation4 + $0x1a0] sm:$0xff] }
  0x2c   : > { %v4733_v17 = vld [vmem:[%s4717_s20] sm:$0x7f]  ;;  %592 = vmatpush.msra.mxu2 %v4721_v14  ;;  %615 = vmatpush.msra.mxu3 %v4723_v15  ;;  %v4753_v22 = vld [vmem:[#allocation4 + $0x1b0] sm:$0xff]  ;;  %v4771_v28 = vld [vmem:[#allocation4 + $0x20] sm:$0xff]  ;;  %s4779_s23 = scalar_lea.vmem %s5943_s2, %s4665_s26  ;;  %s4838_s18 = scalar_lea.vmem %s5944_s3, %s4665_s26 }
  0x2d   : > { %3990 = vmatmul.msk.f32.vlgmr.msra.gmra.mxu0 %vm533_vm0, %v4728_v16  ;;  %3991 = vmatmul.msk.f32.vlgmr.msra.gmra.mxu1 %vm533_vm0, %v4728_v16  ;;  %v4755_v23 = vld [vmem:[#allocation4 + $0x1b8] sm:$0xff]  ;;  %v4773_v29 = vld [vmem:[#allocation4 + $0x28] sm:$0xff]  ;;  %v4783_v30 = vld [vmem:[#allocation4 + $0x180] sm:$0xff] }
  0x2e   : > { %3992 = vmatmul.msk.f32.vlgmr.msra.gmra.mxu2 %vm533_vm0, %v4728_v16  ;;  %3993 = vmatmul.msk.f32.vlgmr.msra.gmra.mxu3 %vm533_vm0, %v4733_v17  ;;  %v4759_v24 = vld [vmem:[#allocation4 + $0x38] sm:$0xff]  ;;  %v4785_v31 = vld [vmem:[#allocation4 + $0x188] sm:$0xff]  ;;  %v4791_v33 = vld [vmem:[#allocation4 + $0x10] sm:$0xff] }
  0x2f   : > { %689 = vmatpush.msrb.mxu2 %v4737_v18  ;;  %709 = vmatpush.msrb.mxu3 %v4739_v19  ;;  %v4765_v26 = vld [vmem:[#allocation4 + $0x198] sm:$0xff]  ;;  %v4789_v32 = vld [vmem:[#allocation4 + $0x8] sm:$0xff]  ;;  %v4802_v35 = vld [vmem:[#allocation4 + $0x290] sm:$0xff] }
  0x30   : > { %632 = vmatpush.msrb.mxu0 %v4745_v20  ;;  %652 = vmatpush.msrb.mxu1 %v4747_v21  ;;  %v4796_v34 = vld [vmem:[%s4779_s23] sm:$0x7f]  ;;  %v4812_v38 = vld [vmem:[#allocation4 + $0x288] sm:$0xff]  ;;  %v4820_v40 = vld [vmem:[#allocation4 + $0x280] sm:$0xff] }
  0x31   : > { %690 = vmatpush.msrb.mxu2 %v4753_v22  ;;  %710 = vmatpush.msrb.mxu3 %v4755_v23  ;;  %v4804_v36 = vld [vmem:[#allocation4 + $0x298] sm:$0xff]  ;;  %6108 = vst [vmem:[#allocation18_spill] sm:$0xff] %v4820_v40  ;;  %v4824_v41 = vld [vmem:[#allocation4 + $0x1c0] sm:$0xff]  ;;  %v4826_v42 = vld [vmem:[#allocation4 + $0x270] sm:$0xff] }
  0x32   : > { %633 = vmatpush.msrb.mxu0 %v4759_v24  ;;  %653 = vmatpush.msrb.mxu1 %v4761_v25  ;;  %v4810_v37 = vld [vmem:[#allocation4 + $0x1d8] sm:$0xff]  ;;  %6109 = vst [vmem:[#allocation19_spill] sm:$0xff] %v4824_v41  ;;  %v4830_v43 = vld [vmem:[#allocation4 + $0x260] sm:$0xff]  ;;  %v4832_v44 = vld [vmem:[#allocation4 + $0x268] sm:$0xff] }
  0x33   : > { %691 = vmatpush.msrb.mxu2 %v4765_v26  ;;  %711 = vmatpush.msrb.mxu3 %v4767_v27  ;;  %v4818_v39 = vld [vmem:[#allocation4 + $0x278] sm:$0xff]  ;;  %6110 = vst [vmem:[#allocation20_spill] sm:$0xff] %v4826_v42  ;;  %v4842_v45 = vld [vmem:[#allocation4 + $0x1a8] sm:$0xff]  ;;  %v4850_v48 = vld [vmem:[#allocation4 + $0x250] sm:$0xff] }
  0x34   : > { %634 = vmatpush.msrb.mxu0 %v4771_v28  ;;  %654 = vmatpush.msrb.mxu1 %v4773_v29  ;;  %6107 = vst [vmem:[#allocation17_spill] sm:$0xff] %v4818_v39  ;;  %v4844_v46 = vld [vmem:[#allocation4 + $0x258] sm:$0xff]  ;;  %v4848_v47 = vld [vmem:[#allocation4 + $0x248] sm:$0xff]  ;;  %v4854_v49 = vld [vmem:[#allocation4 + $0x190] sm:$0xff] }
  0x35   : > { %692 = vmatpush.msrb.mxu2 %v4783_v30  ;;  %712 = vmatpush.msrb.mxu3 %v4785_v31  ;;  %6111 = vst [vmem:[#allocation21_spill] sm:$0xff] %v4830_v43  ;;  %v4856_v50 = vld [vmem:[#allocation4 + $0x240] sm:$0xff]  ;;  %v4859_v51 = vld [vmem:[%s4838_s18] sm:$0x7f]  ;;  %v4869_v53 = vld [vmem:[#allocation4 + $0x168] sm:$0xff] }
  0x36   : > { %635 = vmatpush.msrb.mxu0 %v4789_v32  ;;  %655 = vmatpush.msrb.mxu1 %v4791_v33  ;;  %6112 = vst [vmem:[#allocation22_spill] sm:$0xff] %v4832_v44  ;;  %v4867_v52 = vld [vmem:[#allocation4 + $0x358] sm:$0xff]  ;;  %v4875_v54 = vld [vmem:[#allocation4 + $0x348] sm:$0xff]  ;;  %v4877_v55 = vld [vmem:[#allocation4 + $0x350] sm:$0xff] }
  0x37   : > { %3994 = vmatmul.msk.f32.vlgmr.msrb.gmra.mxu0 %vm533_vm0, %v4733_v17  ;;  %3995 = vmatmul.msk.f32.vlgmr.msrb.gmra.mxu1 %vm533_vm0, %v4733_v17  ;;  %6113 = vst [vmem:[#allocation23_spill] sm:$0xff] %v4842_v45  ;;  %v4883_v56 = vld [vmem:[#allocation4 + $0x340] sm:$0xff]  ;;  %v4885_v57 = vld [vmem:[#allocation4 + $0x150] sm:$0xff]  ;;  %v4891_v59 = vld [vmem:[#allocation4 + $0x338] sm:$0xff] }
  0x38   : > { %3996 = vmatmul.msk.f32.vlgmr.msrb.gmra.mxu2 %vm533_vm0, %v4796_v34  ;;  %3997 = vmatmul.msk.f32.vlgmr.msrb.gmra.mxu3 %vm533_vm0, %v4796_v34  ;;  %6114 = vst [vmem:[#allocation24_spill] sm:$0xff] %v4844_v46  ;;  %v4889_v58 = vld [vmem:[#allocation4 + $0x330] sm:$0xff]  ;;  %v4895_v60 = vld [vmem:[#allocation4 + $0x328] sm:$0xff]  ;;  %v4897_v61 = vld [vmem:[#allocation4 + $0x138] sm:$0xff] }
  0x39   : > { %789 = vmatpush.msra.mxu2 %v4802_v35  ;;  %809 = vmatpush.msra.mxu3 %v4804_v36  ;;  %6115 = vst [vmem:[#allocation25_spill] sm:$0xff] %v4848_v47  ;;  %v4901_v62 = vld [vmem:[#allocation4 + $0x318] sm:$0xff]  ;;  %v4903_v63 = vld [vmem:[#allocation4 + $0x320] sm:$0xff] }
  0x3a   : > { %729 = vmatpush.msra.mxu0 %v4810_v37  ;;  %769 = vmatpush.msra.mxu1 %v4812_v38  ;;  %6116 = vst [vmem:[#allocation26_spill] sm:$0xff] %v4850_v48 }
  0x3b   : > { %790 = vmatpush.msra.mxu2 %v4818_v39  ;;  %810 = vmatpush.msra.mxu3 %v4820_v40  ;;  %6117 = vst [vmem:[#allocation27_spill] sm:$0xff] %v4854_v49 }
  0x3c   : > { %730 = vmatpush.msra.mxu0 %v4824_v41  ;;  %770 = vmatpush.msra.mxu1 %v4826_v42  ;;  %6118 = vst [vmem:[#allocation28_spill] sm:$0xff] %v4856_v50 }
  0x3d   : > { %791 = vmatpush.msra.mxu2 %v4830_v43  ;;  %811 = vmatpush.msra.mxu3 %v4832_v44  ;;  %6119 = vst [vmem:[#allocation29_spill] sm:$0xff] %v4867_v52  ;;  %v4936_v44 = vld [vmem:[#allocation4 + $0x178] sm:$0xff] }
  0x3e   : > { %731 = vmatpush.msra.mxu0 %v4842_v45  ;;  %771 = vmatpush.msra.mxu1 %v4844_v46  ;;  %6120 = vst [vmem:[#allocation30_spill] sm:$0xff] %v4869_v53  ;;  %v4954_v43 = vld [vmem:[#allocation4 + $0x78] sm:$0xff] }
  0x3f   : > { %792 = vmatpush.msra.mxu2 %v4848_v47  ;;  %812 = vmatpush.msra.mxu3 %v4850_v48  ;;  %6121 = vst [vmem:[#allocation31_spill] sm:$0xff] %v4875_v54  ;;  %v4913_v48 = vld [vmem:[#allocation4 + $0x300] sm:$0xff]  ;;  %v4934_v47 = vld [vmem:[#allocation4 + $0x170] sm:$0xff] }
  0x40   : > { %732 = vmatpush.msra.mxu0 %v4854_v49  ;;  %772 = vmatpush.msra.mxu1 %v4856_v50  ;;  %6122 = vst [vmem:[#allocation32_spill] sm:$0xff] %v4877_v55 }
  0x41   : > { %3998 = vmatmul.msk.f32.vlgmr.msra.gmra.mxu0 %vm533_vm0, %v4796_v34  ;;  %3999 = vmatmul.msk.f32.vlgmr.msra.gmra.mxu1 %vm533_vm0, %v4859_v51  ;;  %6123 = vst [vmem:[#allocation33_spill] sm:$0xff] %v4883_v56 }
  0x42   : > { %4000 = vmatmul.msk.f32.vlgmr.msra.gmra.mxu2 %vm533_vm0, %v4859_v51  ;;  %4001 = vmatmul.msk.f32.vlgmr.msra.gmra.mxu3 %vm533_vm0, %v4859_v51  ;;  %6124 = vst [vmem:[#allocation34_spill] sm:$0xff] %v4885_v57 }
  0x43   : > { %889 = vmatpush.msrb.mxu2 %v4867_v52  ;;  %938 = vmatpush.msrb.mxu3 %v4869_v53  ;;  %6125 = vst [vmem:[#allocation35_spill] sm:$0xff] %v4889_v58  ;;  %v4907_v53 = vld [vmem:[#allocation4 + $0x310] sm:$0xff]  ;;  %v4909_v52 = vld [vmem:[#allocation4 + $0x120] sm:$0xff] }
  0x44   : > { %6126 = vst [vmem:[#allocation36_spill] sm:$0xff] %v4891_v59  ;;  %849 = vmatpush.msrb.mxu0 %v4875_v54  ;;  %869 = vmatpush.msrb.mxu1 %v4877_v55 }
  0x45   : > { %6127 = vst [vmem:[#allocation37_spill] sm:$0xff] %v4895_v60  ;;  %890 = vmatpush.msrb.mxu2 %v4883_v56  ;;  %939 = vmatpush.msrb.mxu3 %v4885_v57  ;;  %v4915_v56 = vld [vmem:[#allocation4 + $0x308] sm:$0xff]  ;;  %v4918_v57 = vld [vmem:[%s4717_s20 + $0x1] sm:$0x7f] }
  0x46   : > { %6128 = vst [vmem:[#allocation38_spill] sm:$0xff] %v4897_v61  ;;  %850 = vmatpush.msrb.mxu0 %v4889_v58  ;;  %870 = vmatpush.msrb.mxu1 %v4891_v59 }
  0x47   : > { %6129 = vst [vmem:[#allocation39_spill] sm:$0xff] %v4901_v62  ;;  %891 = vmatpush.msrb.mxu2 %v4895_v60  ;;  %940 = vmatpush.msrb.mxu3 %v4897_v61  ;;  %v4926_v60 = vld [vmem:[#allocation4 + $0xa8] sm:$0xff]  ;;  %v4928_v61 = vld [vmem:[#allocation4 + $0xb0] sm:$0xff] }
  0x48   : > { %6130 = vst [vmem:[#allocation40_spill] sm:$0xff] %v4903_v63  ;;  %851 = vmatpush.msrb.mxu0 %v4901_v62  ;;  %871 = vmatpush.msrb.mxu1 %v4903_v63  ;;  %v4956_v63 = vld [vmem:[#allocation4 + $0x80] sm:$0xff] }
  0x49   : > { %6131 = vst [vmem:[#allocation41_spill] sm:$0xff] %v4907_v53  ;;  %892 = vmatpush.msrb.mxu2 %v4907_v53  ;;  %941 = vmatpush.msrb.mxu3 %v4909_v52  ;;  %v4944_v53 = vld [vmem:[#allocation4 + $0x98] sm:$0xff]  ;;  %v4960_v62 = vld [vmem:[#allocation4 + $0x140] sm:$0xff] }
  0x4a   : > { %6132 = vst [vmem:[#allocation42_spill] sm:$0xff] %v4909_v52  ;;  %852 = vmatpush.msrb.mxu0 %v4913_v48  ;;  %872 = vmatpush.msrb.mxu1 %v4915_v56  ;;  %v4942_v52 = vld [vmem:[#allocation4 + $0x90] sm:$0xff] }
  0x4b   : > { %6133 = vst [vmem:[#allocation43_spill] sm:$0xff] %v4913_v48  ;;  %4002 = vmatmul.msk.f32.vlgmr.msrb.gmra.mxu0 %vm533_vm0, %v4918_v57  ;;  %4003 = vmatmul.msk.f32.vlgmr.msrb.gmra.mxu1 %vm533_vm0, %v4918_v57  ;;  %v4950_v48 = vld [vmem:[#allocation4 + $0x160] sm:$0xff] }
  0x4c   : > { %6134 = vst [vmem:[#allocation44_spill] sm:$0xff] %v4915_v56  ;;  %4004 = vmatmul.msk.f32.vlgmr.msrb.gmra.mxu2 %vm533_vm0, %v4918_v57  ;;  %4005 = vmatmul.msk.f32.vlgmr.msrb.gmra.mxu3 %vm533_vm0, %v4728_v16  ;;  %v4948_v56 = vld [vmem:[#allocation4 + $0x158] sm:$0xff] }
  0x4d   : > { %6135 = vst [vmem:[#allocation45_spill] sm:$0xff] %v4926_v60  ;;  %998 = vmatpush.msra.mxu2 %v4926_v60  ;;  %1018 = vmatpush.msra.mxu3 %v4928_v61  ;;  %v4962_v60 = vld [vmem:[#allocation4 + $0x148] sm:$0xff] }
  0x4e   : > { %6136 = vst [vmem:[#allocation46_spill] sm:$0xff] %v4928_v61  ;;  %958 = vmatpush.msra.mxu0 %v4934_v47  ;;  %978 = vmatpush.msra.mxu1 %v4936_v44  ;;  %v4966_v61 = vld [vmem:[#allocation4 + $0x60] sm:$0xff] }
  0x4f   : > { %6137 = vst [vmem:[#allocation47_spill] sm:$0xff] %v4934_v47  ;;  %999 = vmatpush.msra.mxu2 %v4942_v52  ;;  %1019 = vmatpush.msra.mxu3 %v4944_v53  ;;  %v4968_v47 = vld [vmem:[#allocation4 + $0x68] sm:$0xff] }
  0x50   : > { %6138 = vst [vmem:[#allocation48_spill] sm:$0xff] %v4936_v44  ;;  %959 = vmatpush.msra.mxu0 %v4948_v56  ;;  %979 = vmatpush.msra.mxu1 %v4950_v48  ;;  %v4972_v44 = vld [vmem:[#allocation4 + $0x128] sm:$0xff] }
  0x51   : > { %6139 = vst [vmem:[#allocation49_spill] sm:$0xff] %v4942_v52  ;;  %1000 = vmatpush.msra.mxu2 %v4954_v43  ;;  %1020 = vmatpush.msra.mxu3 %v4956_v63  ;;  %v4974_v52 = vld [vmem:[#allocation4 + $0x130] sm:$0xff] }
  0x52   : > { %6140 = vst [vmem:[#allocation50_spill] sm:$0xff] %v4944_v53  ;;  %960 = vmatpush.msra.mxu0 %v4960_v62  ;;  %980 = vmatpush.msra.mxu1 %v4962_v60  ;;  %v4982_v53 = vld [vmem:[#allocation4 + $0x230] sm:$0xff] }
  0x53   : > { %6141 = vst [vmem:[#allocation51_spill] sm:$0xff] %v4948_v56  ;;  %1001 = vmatpush.msra.mxu2 %v4966_v61  ;;  %1021 = vmatpush.msra.mxu3 %v4968_v47  ;;  %v5016_v56 = vld [vmem:[#allocation4 + $0x88] sm:$0xff] }
  0x54   : > { %6142 = vst [vmem:[#allocation52_spill] sm:$0xff] %v4950_v48  ;;  %961 = vmatpush.msra.mxu0 %v4972_v44  ;;  %981 = vmatpush.msra.mxu1 %v4974_v52  ;;  %v5012_v48 = vld [vmem:[#allocation4 + $0x208] sm:$0xff] }
  0x55   : > { %6143 = vst [vmem:[#allocation53_spill] sm:$0xff] %v4954_v43  ;;  %v4984_v43 = vld [vmem:[#allocation4 + $0x238] sm:$0xff]  ;;  %4006 = vmatmul.msk.f32.vlgmr.msra.gmra.mxu0 %vm533_vm0, %v4728_v16  ;;  %4007 = vmatmul.msk.f32.vlgmr.msra.gmra.mxu1 %vm533_vm0, %v4728_v16 }
  0x56   : > { %6144 = vst [vmem:[#allocation54_spill] sm:$0xff] %v4956_v63  ;;  %v4990_v63 = vld [vmem:[#allocation4 + $0xb8] sm:$0xff]  ;;  %4008 = vmatmul.msk.f32.vlgmr.msra.gmra.mxu2 %vm533_vm0, %v4733_v17  ;;  %4009 = vmatmul.msk.f32.vlgmr.msra.gmra.mxu3 %vm533_vm0, %v4733_v17 }
  0x57   : > { %6145 = vst [vmem:[#allocation55_spill] sm:$0xff] %v4960_v62  ;;  %1091 = vmatpush.msrb.mxu2 %v4982_v53  ;;  %1111 = vmatpush.msrb.mxu3 %v4984_v43  ;;  %v5010_v62 = vld [vmem:[#allocation4 + $0x200] sm:$0xff] }
  0x58   : > { %6146 = vst [vmem:[#allocation56_spill] sm:$0xff] %v4962_v60  ;;  %v4992_v60 = vld [vmem:[#allocation4 + $0x228] sm:$0xff]  ;;  %1038 = vmatpush.msrb.mxu0 %v4990_v63 }
  0x59   : > { %6147 = vst [vmem:[#allocation57_spill] sm:$0xff] %v4966_v61  ;;  %v5000_v61 = vld [vmem:[#allocation4 + $0x220] sm:$0xff]  ;;  %1071 = vmatpush.msrb.mxu1 %v4992_v60 }
  0x5a   : > { %6148 = vst [vmem:[#allocation58_spill] sm:$0xff] %v4968_v47  ;;  %v4998_v47 = vld [vmem:[#allocation4 + $0x218] sm:$0xff]  ;;  %1112 = vmatpush.msrb.mxu3 %v5000_v61 }
  0x5b   : > { %6149 = vst [vmem:[#allocation59_spill] sm:$0xff] %v4972_v44  ;;  %v5006_v44 = vld [vmem:[#allocation4 + $0x210] sm:$0xff]  ;;  %1092 = vmatpush.msrb.mxu2 %v4998_v47 }
  0x5c   : > { %6150 = vst [vmem:[#allocation60_spill] sm:$0xff] %v4974_v52  ;;  %v5004_v52 = vld [vmem:[#allocation4 + $0xa0] sm:$0xff]  ;;  %1072 = vmatpush.msrb.mxu1 %v5006_v44  ;;  %1113 = vmatpush.msrb.mxu3 %v5012_v48 }
  0x5d   : > { %6151 = vst [vmem:[#allocation61_spill] sm:$0xff] %v4982_v53  ;;  %v5018_v53 = vld [vmem:[#allocation4 + $0x1f8] sm:$0xff]  ;;  %1039 = vmatpush.msrb.mxu0 %v5004_v52  ;;  %1093 = vmatpush.msrb.mxu2 %v5010_v62 }
  0x5e   : > { %6152 = vst [vmem:[#allocation62_spill] sm:$0xff] %v4984_v43  ;;  %v5022_v43 = vld [vmem:[#allocation4 + $0x1e8] sm:$0xff]  ;;  %1073 = vmatpush.msrb.mxu1 %v5018_v53 }
  0x5f   : > { %6153 = vst [vmem:[#allocation63_spill] sm:$0xff] %v4990_v63  ;;  %v5024_v63 = vld [vmem:[#allocation4 + $0x1f0] sm:$0xff]  ;;  %1040 = vmatpush.msrb.mxu0 %v5016_v56  ;;  %1094 = vmatpush.msrb.mxu2 %v5022_v43 }
  0x60   : > { %6154 = vst [vmem:[#allocation64_spill] sm:$0xff] %v4992_v60  ;;  %v5028_v60 = vld [vmem:[#allocation4 + $0x70] sm:$0xff]  ;;  %1114 = vmatpush.msrb.mxu3 %v5024_v63  ;;  %4012 = vmatmul.msk.f32.vlgmr.msrb.gmra.mxu2 %vm533_vm0, %v4796_v34 }
  0x61   : > { %6155 = vst [vmem:[#allocation65_spill] sm:$0xff] %v4998_v47  ;;  %v5030_v47 = vld [vmem:[#allocation4 + $0x1e0] sm:$0xff]  ;;  %1041 = vmatpush.msrb.mxu0 %v5028_v60  ;;  %4013 = vmatmul.msk.f32.vlgmr.msrb.gmra.mxu3 %vm533_vm0, %v4796_v34 }
  0x62   : > { %6156 = vst [vmem:[#allocation66_spill] sm:$0xff] %v5000_v61  ;;  %1074 = vmatpush.msrb.mxu1 %v5030_v47  ;;  %v5038_v61 = vld [vmem:[#allocation4 + $0x2f8] sm:$0xff]  ;;  %4010 = vmatmul.msk.f32.vlgmr.msrb.gmra.mxu0 %vm533_vm0, %v4733_v17  ;;  %v5060_v17 = vld [vmem:[#allocation4 + $0x2d0] sm:$0xff] }
  0x63   : > { %6157 = vst [vmem:[#allocation67_spill] sm:$0xff] %v5004_v52  ;;  %4011 = vmatmul.msk.f32.vlgmr.msrb.gmra.mxu1 %vm533_vm0, %v4796_v34  ;;  %1187 = vmatpush.msra.mxu2 %v5038_v61 }
  0x64   : > { %6158 = vst [vmem:[#allocation68_spill] sm:$0xff] %v5006_v44  ;;  %v5072_v44 = vld [vmem:[#allocation4 + $0x2b8] sm:$0xff] }
  0x65   : > { %6159 = vst [vmem:[#allocation69_spill] sm:$0xff] %v5010_v62  ;;  %v5040_v62 = vld [vmem:[#allocation4 + $0x3a8] sm:$0xff] }
  0x66   : > { %6160 = vst [vmem:[#allocation70_spill] sm:$0xff] %v5012_v48  ;;  %v5046_v48 = vld [vmem:[#allocation4 + $0x2e8] sm:$0xff]  ;;  %1223 = vmatpush.msra.mxu3 %v5040_v62 }
  0x67   : > { %6161 = vst [vmem:[#allocation71_spill] sm:$0xff] %v5016_v56  ;;  %1147 = vmatpush.msra.mxu0 %v5046_v48  ;;  %v5068_v56 = vld [vmem:[#allocation4 + $0x378] sm:$0xff] }
  0x68   : > { %6162 = vst [vmem:[#allocation72_spill] sm:$0xff] %v5018_v53  ;;  %v5048_v53 = vld [vmem:[#allocation4 + $0x2f0] sm:$0xff] }
  0x69   : > { %6163 = vst [vmem:[#allocation73_spill] sm:$0xff] %v5022_v43  ;;  %v5056_v43 = vld [vmem:[#allocation4 + $0x390] sm:$0xff]  ;;  %1167 = vmatpush.msra.mxu1 %v5048_v53  ;;  %1148 = vmatpush.msra.mxu0 %v5060_v17 }
  0x6a   : > { %6164 = vst [vmem:[#allocation74_spill] sm:$0xff] %v5024_v63  ;;  %v5054_v63 = vld [vmem:[#allocation4 + $0x2e0] sm:$0xff]  ;;  %1224 = vmatpush.msra.mxu3 %v5056_v43 }
  0x6b   : > { %6165 = vst [vmem:[#allocation75_spill] sm:$0xff] %v5028_v60  ;;  %v5066_v60 = vld [vmem:[#allocation4 + $0x2c8] sm:$0xff]  ;;  %1188 = vmatpush.msra.mxu2 %v5054_v63  ;;  %1149 = vmatpush.msra.mxu0 %v5072_v44 }
  0x6c   : > { %6166 = vst [vmem:[#allocation76_spill] sm:$0xff] %v5030_v47  ;;  %v5062_v47 = vld [vmem:[#allocation4 + $0x2d8] sm:$0xff]  ;;  %1225 = vmatpush.msra.mxu3 %v5068_v56 }
  0x6d   : > { %6167 = vst [vmem:[#allocation77_spill] sm:$0xff] %v5038_v61  ;;  %v5074_v61 = vld [vmem:[#allocation4 + $0x2c0] sm:$0xff]  ;;  %1168 = vmatpush.msra.mxu1 %v5062_v47  ;;  %1189 = vmatpush.msra.mxu2 %v5066_v60 }
  0x6e   : > { %6168 = vst [vmem:[#allocation78_spill] sm:$0xff] %v5040_v62  ;;  %v5078_v62 = vld [vmem:[#allocation4 + $0x2b0] sm:$0xff] }
  0x6f   : > { %6169 = vst [vmem:[#allocation79_spill] sm:$0xff] %v5046_v48  ;;  %v5080_v48 = vld [vmem:[#allocation4 + $0x360] sm:$0xff]  ;;  %1169 = vmatpush.msra.mxu1 %v5074_v61  ;;  %1190 = vmatpush.msra.mxu2 %v5078_v62 }
  0x70   : > { %6170 = vst [vmem:[#allocation80_spill] sm:$0xff] %v5048_v53  ;;  %v5084_v53 = vld [vmem:[#allocation4 + $0x2a0] sm:$0xff]  ;;  %1226 = vmatpush.msra.mxu3 %v5080_v48  ;;  %4016 = vmatmul.msk.f32.vlgmr.msra.gmra.mxu2 %vm533_vm0, %v4859_v51 }
  0x71   : > { %6171 = vst [vmem:[#allocation81_spill] sm:$0xff] %v5054_v63  ;;  %v5086_v63 = vld [vmem:[#allocation4 + $0x2a8] sm:$0xff]  ;;  %1150 = vmatpush.msra.mxu0 %v5084_v53  ;;  %4017 = vmatmul.msk.f32.vlgmr.msra.gmra.mxu3 %vm533_vm0, %v4918_v57 }
  0x72   : > { %6172 = vst [vmem:[#allocation82_spill] sm:$0xff] %v5056_v43  ;;  %1170 = vmatpush.msra.mxu1 %v5086_v63  ;;  %4014 = vmatmul.msk.f32.vlgmr.msra.gmra.mxu0 %vm533_vm0, %v4859_v51  ;;  %v5116_v43 = vld [vmem:[#allocation4 + $0x380] sm:$0xff] }
  0x73   : > { %6173 = vst [vmem:[#allocation83_spill] sm:$0xff] %v5060_v17  ;;  %4015 = vmatmul.msk.f32.vlgmr.msra.gmra.mxu1 %vm533_vm0, %v4859_v51  ;;  %1286 = vmatpush.msrb.mxu2 %v4659_v0  ;;  %v5126_v0 = vld [vmem:[#allocation4 + $0x370] sm:$0xff] }
  0x74   : > { %6174 = vst [vmem:[#allocation84_spill] sm:$0xff] %v5062_v47  ;;  %1306 = vmatpush.msrb.mxu3 %v4661_v1  ;;  %v5124_v1 = vld [vmem:[#allocation4 + $0x368] sm:$0xff] }
  0x75   : > { %6175 = vst [vmem:[#allocation85_spill] sm:$0xff] %v5066_v60  ;;  %v5100_v60 = vld [vmem:[#allocation4 + $0x3b8] sm:$0xff]  ;;  %1287 = vmatpush.msrb.mxu2 %v4681_v4 }
  0x76   : > { %6176 = vst [vmem:[#allocation86_spill] sm:$0xff] %v5068_v56  ;;  %v5098_v56 = vld [vmem:[#allocation4 + $0x3b0] sm:$0xff]  ;;  %1263 = vmatpush.msrb.mxu1 %v5100_v60  ;;  %1307 = vmatpush.msrb.mxu3 %v4683_v5 }
  0x77   : > { %6177 = vst [vmem:[#allocation87_spill] sm:$0xff] %v5072_v44  ;;  %1243 = vmatpush.msrb.mxu0 %v5098_v56  ;;  %1288 = vmatpush.msrb.mxu2 %v4691_v8 }
  0x78   : > { %6178 = vst [vmem:[#allocation88_spill] sm:$0xff] %v5074_v61  ;;  %1308 = vmatpush.msrb.mxu3 %v4695_v9 }
  0x79   : > { %6179 = vst [vmem:[#allocation89_spill] sm:$0xff] %v5078_v62  ;;  %v5110_v62 = vld [vmem:[#allocation4 + $0x3a0] sm:$0xff]  ;;  %1289 = vmatpush.msrb.mxu2 %v4709_v12 }
  0x7a   : > { %6180 = vst [vmem:[#allocation90_spill] sm:$0xff] %v5080_v48  ;;  %v5108_v48 = vld [vmem:[#allocation4 + $0x398] sm:$0xff]  ;;  %1264 = vmatpush.msrb.mxu1 %v5110_v62  ;;  %1309 = vmatpush.msrb.mxu3 %v4711_v13 }
  0x7b   : > { %6181 = vst [vmem:[#allocation91_spill] sm:$0xff] %v5084_v53  ;;  %1244 = vmatpush.msrb.mxu0 %v5108_v48  ;;  %4020 = vmatmul.msk.f32.vlgmr.msrb.gmra.mxu2 %vm533_vm0, %v4796_v34 }
  0x7c   : > { %6182 = vst [vmem:[#allocation92_spill] sm:$0xff] %v5086_v63  ;;  %v5118_v63 = vld [vmem:[#allocation4 + $0x388] sm:$0xff]  ;;  %4021 = vmatmul.msk.f32.vlgmr.msrb.gmra.mxu3 %vm533_vm0, %v4796_v34  ;;  %1366 = vmatpush.msra.mxu2 %v4745_v20 }
  0x7d   : > { %6183 = vst [vmem:[#allocation93_spill] sm:$0xff] %v5098_v56  ;;  %1245 = vmatpush.msrb.mxu0 %v5116_v43  ;;  %1265 = vmatpush.msrb.mxu1 %v5118_v63 }
  0x7e   : > { %6184 = vst [vmem:[#allocation94_spill] sm:$0xff] %v5100_v60  ;;  %1386 = vmatpush.msra.mxu3 %v4747_v21  ;;  %1367 = vmatpush.msra.mxu2 %v4759_v24 }
  0x7f   : > { %6185 = vst [vmem:[#allocation95_spill] sm:$0xff] %v5108_v48  ;;  %1246 = vmatpush.msrb.mxu0 %v5124_v1  ;;  %1266 = vmatpush.msrb.mxu1 %v5126_v0 }
  0x80   : > { %6186 = vst [vmem:[#allocation96_spill] sm:$0xff] %v5110_v62  ;;  %4018 = vmatmul.msk.f32.vlgmr.msrb.gmra.mxu0 %vm533_vm0, %v4918_v57  ;;  %4019 = vmatmul.msk.f32.vlgmr.msrb.gmra.mxu1 %vm533_vm0, %v4918_v57 }
  0x81   : > { %6187 = vst [vmem:[#allocation97_spill] sm:$0xff] %v5116_v43  ;;  %1326 = vmatpush.msra.mxu0 %v4663_v2  ;;  %1346 = vmatpush.msra.mxu1 %v4679_v3 }
  0x82   : > { %6188 = vst [vmem:[#allocation98_spill] sm:$0xff] %v5118_v63  ;;  %1387 = vmatpush.msra.mxu3 %v4761_v25  ;;  %1368 = vmatpush.msra.mxu2 %v4771_v28 }
  0x83   : > { %6189 = vst [vmem:[#allocation99_spill] sm:$0xff] %v5124_v1  ;;  %1327 = vmatpush.msra.mxu0 %v4687_v6  ;;  %1347 = vmatpush.msra.mxu1 %v4689_v7 }
  0x84   : > { %6190 = vst [vmem:[#allocation100_spill] sm:$0xff] %v5126_v0  ;;  %1388 = vmatpush.msra.mxu3 %v4773_v29  ;;  %1369 = vmatpush.msra.mxu2 %v4789_v32 }
  0x85   : > { %1328 = vmatpush.msra.mxu0 %v4697_v10  ;;  %1348 = vmatpush.msra.mxu1 %v4699_v11 }
  0x86   : > { %1389 = vmatpush.msra.mxu3 %v4791_v33  ;;  %4024 = vmatmul.msk.f32.vlgmr.msra.gmra.mxu2 %vm533_vm0, %v4728_v16 }
  0x87   : > { %1329 = vmatpush.msra.mxu0 %v4721_v14  ;;  %1349 = vmatpush.msra.mxu1 %v4723_v15 }
  0x88   : > { %4022 = vmatmul.msk.f32.vlgmr.msra.gmra.mxu0 %vm533_vm0, %v4796_v34  ;;  %4023 = vmatmul.msk.f32.vlgmr.msra.gmra.mxu1 %vm533_vm0, %v4728_v16 }
  0x89   : > { %4025 = vmatmul.msk.f32.vlgmr.msra.gmra.mxu3 %vm533_vm0, %v4728_v16  ;;  %1446 = vmatpush.msrb.mxu2 %v4810_v37 }
  0x8a   : > { %1469 = vmatpush.msrb.mxu3 %v4812_v38  ;;  %1406 = vmatpush.msrb.mxu0 %v4737_v18 }
  0x8b   : > { %1426 = vmatpush.msrb.mxu1 %v4739_v19  ;;  %1447 = vmatpush.msrb.mxu2 %v4824_v41  ;;  %v6207_v41 = vld [vmem:[#allocation55_spill] sm:$0xff] }
  0x8c   : > { %1470 = vmatpush.msrb.mxu3 %v4826_v42  ;;  %1407 = vmatpush.msrb.mxu0 %v4753_v22  ;;  %v6196_v42 = vld [vmem:[#allocation44_spill] sm:$0xff] }
  0x8d   : > { %1427 = vmatpush.msrb.mxu1 %v4755_v23  ;;  %1448 = vmatpush.msrb.mxu2 %v4842_v45  ;;  %v6195_v45 = vld [vmem:[#allocation43_spill] sm:$0xff] }
  0x8e   : > { %1471 = vmatpush.msrb.mxu3 %v4844_v46  ;;  %1408 = vmatpush.msrb.mxu0 %v4765_v26  ;;  %v6193_v46 = vld [vmem:[#allocation21_spill] sm:$0xff] }
  0x8f   : > { %1428 = vmatpush.msrb.mxu1 %v4767_v27  ;;  %1449 = vmatpush.msrb.mxu2 %v4854_v49  ;;  %v6192_v49 = vld [vmem:[#allocation40_spill] sm:$0xff] }
  0x90   : > { %1472 = vmatpush.msrb.mxu3 %v4856_v50  ;;  %1409 = vmatpush.msrb.mxu0 %v4783_v30  ;;  %v6191_v50 = vld [vmem:[#allocation39_spill] sm:$0xff] }
  0x91   : > { %1429 = vmatpush.msrb.mxu1 %v4785_v31  ;;  %4026 = vmatmul.msk.f32.vlgmr.msrb.gmra.mxu0 %vm533_vm0, %v4859_v51 }
  0x92   : > { %4027 = vmatmul.msk.f32.vlgmr.msrb.gmra.mxu1 %vm533_vm0, %v4859_v51  ;;  %4028 = vmatmul.msk.f32.vlgmr.msrb.gmra.mxu2 %vm533_vm0, %v4859_v51 }
  0x93   : > { %4029 = vmatmul.msk.f32.vlgmr.msrb.gmra.mxu3 %vm533_vm0, %v4918_v57  ;;  %1536 = vmatpush.msra.mxu2 %v4875_v54  ;;  %v6194_v54 = vld [vmem:[#allocation22_spill] sm:$0xff] }
  0x94   : > { %1556 = vmatpush.msra.mxu3 %v4877_v55  ;;  %1489 = vmatpush.msra.mxu0 %v4802_v35  ;;  %v5203_v55 = vld [vmem:[%s4705_s11 + $0x1] sm:$0x7f] }
  0x95   : > { %1509 = vmatpush.msra.mxu1 %v4804_v36  ;;  %1537 = vmatpush.msra.mxu2 %v4889_v58  ;;  %v6197_v58 = vld [vmem:[#allocation25_spill] sm:$0xff] }
  0x96   : > { %1557 = vmatpush.msra.mxu3 %v4891_v59  ;;  %1490 = vmatpush.msra.mxu0 %v4818_v39  ;;  %v6198_v59 = vld [vmem:[#allocation26_spill] sm:$0xff]  ;;  %v6209_v39 = vld [vmem:[#allocation37_spill] sm:$0xff] }
  0x97   : > { %1510 = vmatpush.msra.mxu1 %v4820_v40  ;;  %1538 = vmatpush.msra.mxu2 %v6191_v50  ;;  %v6202_v50 = vld [vmem:[#allocation30_spill] sm:$0xff]  ;;  %v6208_v40 = vld [vmem:[#allocation56_spill] sm:$0xff] }
  0x98   : > { %1558 = vmatpush.msra.mxu3 %v6192_v49  ;;  %1491 = vmatpush.msra.mxu0 %v6193_v46  ;;  %v6199_v49 = vld [vmem:[#allocation47_spill] sm:$0xff]  ;;  %v6206_v46 = vld [vmem:[#allocation34_spill] sm:$0xff] }
  0x99   : > { %1511 = vmatpush.msra.mxu1 %v6194_v54  ;;  %1539 = vmatpush.msra.mxu2 %v6195_v45  ;;  %v6200_v45 = vld [vmem:[#allocation48_spill] sm:$0xff]  ;;  %v6205_v54 = vld [vmem:[#allocation33_spill] sm:$0xff] }
  0x9a   : > { %1559 = vmatpush.msra.mxu3 %v6196_v42  ;;  %1492 = vmatpush.msra.mxu0 %v6197_v58  ;;  %v6201_v42 = vld [vmem:[#allocation29_spill] sm:$0xff]  ;;  %v6204_v58 = vld [vmem:[#allocation52_spill] sm:$0xff] }
  0x9b   : > { %1512 = vmatpush.msra.mxu1 %v6198_v59  ;;  %4030 = vmatmul.msk.f32.vlgmr.msra.gmra.mxu0 %vm533_vm0, %v4918_v57  ;;  %v6203_v59 = vld [vmem:[#allocation51_spill] sm:$0xff] }
  0x9c   : > { %4031 = vmatmul.msk.f32.vlgmr.msra.gmra.mxu1 %vm533_vm0, %v4918_v57  ;;  %4032 = vmatmul.msk.f32.vlgmr.msra.gmra.mxu2 %vm533_vm0, %v5203_v55 }
  0x9d   : > { %4033 = vmatmul.msk.f32.vlgmr.msra.gmra.mxu3 %vm533_vm0, %v5203_v55  ;;  %1619 = vmatpush.msrb.mxu2 %v6199_v49  ;;  %v6210_v49 = vld [vmem:[#allocation38_spill] sm:$0xff] }
  0x9e   : > { %1639 = vmatpush.msrb.mxu3 %v6200_v45  ;;  %1576 = vmatpush.msrb.mxu0 %v6201_v42  ;;  %v6211_v45 = vld [vmem:[#allocation59_spill] sm:$0xff]  ;;  %v6212_v42 = vld [vmem:[#allocation60_spill] sm:$0xff] }
  0x9f   : > { %1599 = vmatpush.msrb.mxu1 %v6202_v50  ;;  %1620 = vmatpush.msrb.mxu2 %v6203_v59  ;;  %v6213_v50 = vld [vmem:[#allocation41_spill] sm:$0xff]  ;;  %v6214_v59 = vld [vmem:[#allocation42_spill] sm:$0xff] }
  0xa0   : > { %1640 = vmatpush.msrb.mxu3 %v6204_v58  ;;  %1577 = vmatpush.msrb.mxu0 %v6205_v54  ;;  %v6219_v58 = vld [vmem:[#allocation68_spill] sm:$0xff] }
  0xa1   : > { %1600 = vmatpush.msrb.mxu1 %v6206_v46  ;;  %1621 = vmatpush.msrb.mxu2 %v6207_v41  ;;  %v6218_v41 = vld [vmem:[#allocation46_spill] sm:$0xff]  ;;  %v6224_v46 = vld [vmem:[#allocation53_spill] sm:$0xff] }
  0xa2   : > { %1641 = vmatpush.msrb.mxu3 %v6208_v40  ;;  %1578 = vmatpush.msrb.mxu0 %v6209_v39  ;;  %v6215_v40 = vld [vmem:[#allocation63_spill] sm:$0xff]  ;;  %v6223_v39 = vld [vmem:[#allocation72_spill] sm:$0xff] }
  0xa3   : > { %1601 = vmatpush.msrb.mxu1 %v6210_v49  ;;  %1622 = vmatpush.msrb.mxu2 %v6211_v45  ;;  %v6216_v45 = vld [vmem:[#allocation64_spill] sm:$0xff]  ;;  %v6222_v49 = vld [vmem:[#allocation71_spill] sm:$0xff] }
  0xa4   : > { %1642 = vmatpush.msrb.mxu3 %v6212_v42  ;;  %1579 = vmatpush.msrb.mxu0 %v6213_v50  ;;  %v6217_v42 = vld [vmem:[#allocation45_spill] sm:$0xff]  ;;  %v6221_v50 = vld [vmem:[#allocation50_spill] sm:$0xff] }
  0xa5   : > { %1602 = vmatpush.msrb.mxu1 %v6214_v59  ;;  %4034 = vmatmul.msk.f32.vlgmr.msrb.gmra.mxu0 %vm533_vm0, %v5203_v55  ;;  %v6220_v59 = vld [vmem:[#allocation49_spill] sm:$0xff] }
  0xa6   : > { %4035 = vmatmul.msk.f32.vlgmr.msrb.gmra.mxu1 %vm533_vm0, %v4796_v34  ;;  %4036 = vmatmul.msk.f32.vlgmr.msrb.gmra.mxu2 %vm533_vm0, %v4796_v34 }
  0xa7   : > { %4037 = vmatmul.msk.f32.vlgmr.msrb.gmra.mxu3 %vm533_vm0, %v4796_v34  ;;  %1699 = vmatpush.msra.mxu2 %v6215_v40  ;;  %v6225_v40 = vld [vmem:[#allocation54_spill] sm:$0xff] }
  0xa8   : > { %1719 = vmatpush.msra.mxu3 %v6216_v45  ;;  %1659 = vmatpush.msra.mxu0 %v6217_v42  ;;  %v6226_v45 = vld [vmem:[#allocation75_spill] sm:$0xff]  ;;  %v6227_v42 = vld [vmem:[#allocation76_spill] sm:$0xff] }
  0xa9   : > { %1679 = vmatpush.msra.mxu1 %v6218_v41  ;;  %1700 = vmatpush.msra.mxu2 %v5004_v52  ;;  %v6228_v41 = vld [vmem:[#allocation57_spill] sm:$0xff]  ;;  %v6229_v52 = vld [vmem:[#allocation58_spill] sm:$0xff] }
  0xaa   : > { %1720 = vmatpush.msra.mxu3 %v6219_v58  ;;  %1660 = vmatpush.msra.mxu0 %v6220_v59  ;;  %v6234_v58 = vld [vmem:[#allocation65_spill] sm:$0xff] }
  0xab   : > { %1680 = vmatpush.msra.mxu1 %v6221_v50  ;;  %1701 = vmatpush.msra.mxu2 %v6222_v49  ;;  %v6233_v49 = vld [vmem:[#allocation62_spill] sm:$0xff] }
  0xac   : > { %1721 = vmatpush.msra.mxu3 %v6223_v39  ;;  %1661 = vmatpush.msra.mxu0 %v6224_v46  ;;  %v6230_v39 = vld [vmem:[#allocation79_spill] sm:$0xff] }
  0xad   : > { %1681 = vmatpush.msra.mxu1 %v6225_v40  ;;  %1702 = vmatpush.msra.mxu2 %v6226_v45  ;;  %v6231_v45 = vld [vmem:[#allocation80_spill] sm:$0xff] }
  0xae   : > { %1722 = vmatpush.msra.mxu3 %v6227_v42  ;;  %1662 = vmatpush.msra.mxu0 %v6228_v41  ;;  %v6232_v42 = vld [vmem:[#allocation61_spill] sm:$0xff]  ;;  %v574_v41 = vpop.f32.mrf.mxu1 }
  0xaf   : > { %1682 = vmatpush.msra.mxu1 %v6229_v52  ;;  %4038 = vmatmul.msk.f32.vlgmr.msra.gmra.mxu0 %vm533_vm0, %v4728_v16  ;;  %v6235_v52 = vld [vmem:[#allocation66_spill] sm:$0xff] }
  0xb0   : > { %4039 = vmatmul.msk.f32.vlgmr.msra.gmra.mxu1 %vm533_vm0, %v4728_v16  ;;  %4040 = vmatmul.msk.f32.vlgmr.msra.gmra.mxu2 %vm533_vm0, %v4728_v16  ;;  %v554_v16 = vpop.f32.mrf.mxu0 }
  0xb1   : > { %4041 = vmatmul.msk.f32.vlgmr.msra.gmra.mxu3 %vm533_vm0, %v4859_v51  ;;  %1782 = vmatpush.msrb.mxu2 %v6230_v39  ;;  %v6236_v39 = vld [vmem:[#allocation69_spill] sm:$0xff] }
  0xb2   : > { %1802 = vmatpush.msrb.mxu3 %v6231_v45  ;;  %1739 = vmatpush.msrb.mxu0 %v6232_v42  ;;  %v6237_v45 = vld [vmem:[#allocation70_spill] sm:$0xff] }
  0xb3   : > { %1759 = vmatpush.msrb.mxu1 %v6233_v49  ;;  %1783 = vmatpush.msrb.mxu2 %v5060_v17  ;;  %v6238_v49 = vld [vmem:[#allocation92_spill] sm:$0xff]  ;;  %v6239_v17 = vld [vmem:[#allocation73_spill] sm:$0xff] }
  0xb4   : > { %1803 = vmatpush.msrb.mxu3 %v5062_v47  ;;  %1740 = vmatpush.msrb.mxu0 %v6234_v58  ;;  %v6240_v47 = vld [vmem:[#allocation74_spill] sm:$0xff] }
  0xb5   : > { %1760 = vmatpush.msrb.mxu1 %v6235_v52  ;;  %1784 = vmatpush.msrb.mxu2 %v5072_v44  ;;  %v6242_v44 = vld [vmem:[#allocation78_spill] sm:$0xff] }
  0xb6   : > { %1804 = vmatpush.msrb.mxu3 %v5074_v61  ;;  %1741 = vmatpush.msrb.mxu0 %v6236_v39  ;;  %v6241_v61 = vld [vmem:[#allocation77_spill] sm:$0xff]  ;;  %v657_v39 = vpop.f32.mrf.mxu1 }
  0xb7   : > { %1761 = vmatpush.msrb.mxu1 %v6237_v45  ;;  %1785 = vmatpush.msrb.mxu2 %v5084_v53  ;;  %v617_v53 = vpop.f32.mrf.mxu3 }
  0xb8   : > { %1805 = vmatpush.msrb.mxu3 %v6238_v49  ;;  %1742 = vmatpush.msrb.mxu0 %v6239_v17  ;;  %v5291_v49 = vpop.f32.mrf.mxu2  ;;  %v6244_v17 = vld [vmem:[#allocation82_spill] sm:$0xff]  ;;  %v637_v45 = vpop.f32.mrf.mxu0 }
  0xb9   : > { %1762 = vmatpush.msrb.mxu1 %v6240_v47  ;;  %4042 = vmatmul.msk.f32.vlgmr.msrb.gmra.mxu0 %vm533_vm0, %v4859_v51  ;;  %v6243_v47 = vld [vmem:[#allocation81_spill] sm:$0xff] }
  0xba   : > { %4043 = vmatmul.msk.f32.vlgmr.msrb.gmra.mxu1 %vm533_vm0, %v4859_v51  ;;  %4044 = vmatmul.msk.f32.vlgmr.msrb.gmra.mxu2 %vm533_vm0, %v4918_v57 }
  0xbb   : > { %4045 = vmatmul.msk.f32.vlgmr.msrb.gmra.mxu3 %vm533_vm0, %v4918_v57  ;;  %1865 = vmatpush.msra.mxu2 %v5098_v56  ;;  %v6246_v56 = vld [vmem:[#allocation86_spill] sm:$0xff] }
  0xbc   : > { %1885 = vmatpush.msra.mxu3 %v5100_v60  ;;  %1822 = vmatpush.msra.mxu0 %v6241_v61  ;;  %v6245_v60 = vld [vmem:[#allocation85_spill] sm:$0xff] }
  0xbd   : > { %1845 = vmatpush.msra.mxu1 %v6242_v44  ;;  %1866 = vmatpush.msra.mxu2 %v5108_v48  ;;  %v6247_v48 = vld [vmem:[#allocation89_spill] sm:$0xff] }
  0xbe   : > { %1886 = vmatpush.msra.mxu3 %v5110_v62  ;;  %1823 = vmatpush.msra.mxu0 %v6243_v47  ;;  %v6248_v62 = vld [vmem:[#allocation90_spill] sm:$0xff] }
  0xbf   : > { %1846 = vmatpush.msra.mxu1 %v6244_v17  ;;  %1867 = vmatpush.msra.mxu2 %v5116_v43  ;;  %v6250_v43 = vld [vmem:[#allocation16_spill] sm:$0xff] }
  0xc0   : > { %1887 = vmatpush.msra.mxu3 %v5118_v63  ;;  %1824 = vmatpush.msra.mxu0 %v6245_v60  ;;  %v6249_v63 = vld [vmem:[#allocation15_spill] sm:$0xff] }
  0xc1   : > { %1847 = vmatpush.msra.mxu1 %v6246_v56  ;;  %1868 = vmatpush.msra.mxu2 %v5124_v1  ;;  %v714_v1 = vpop.f32.mrf.mxu3 }
  0xc2   : > { %1888 = vmatpush.msra.mxu3 %v5126_v0  ;;  %1825 = vmatpush.msra.mxu0 %v6247_v48  ;;  %v694_v0 = vpop.f32.mrf.mxu2  ;;  %v774_v48 = vpop.f32.mrf.mxu1 }
  0xc3   : > { %1848 = vmatpush.msra.mxu1 %v6248_v62  ;;  %4046 = vmatmul.msk.f32.vlgmr.msra.gmra.mxu0 %vm533_vm0, %v4918_v57  ;;  %v734_v62 = vpop.f32.mrf.mxu0 }
  0xc4   : > { %4047 = vmatmul.msk.f32.vlgmr.msra.gmra.mxu1 %vm533_vm0, %v5203_v55  ;;  %4048 = vmatmul.msk.f32.vlgmr.msra.gmra.mxu2 %vm533_vm0, %v5203_v55 }
  0xc5   : > { %4049 = vmatmul.msk.f32.vlgmr.msra.gmra.mxu3 %vm533_vm0, %v5203_v55  ;;  %1948 = vmatpush.msrb.mxu2 %v4663_v2  ;;  %v618_v2 = vadd.f32 %v617_v53, %v554_v16  ;;  %v6272_v16 = vld [vmem:[#allocation39_spill] sm:$0xff] }
  0xc6   : > { %1968 = vmatpush.msrb.mxu3 %v4679_v3  ;;  %1908 = vmatpush.msrb.mxu0 %v6249_v63  ;;  %v638_v3 = vadd.f32 %v637_v45, %v574_v41  ;;  %v6266_v41 = vld [vmem:[#allocation32_spill] sm:$0xff]  ;;  %v6268_v45 = vld [vmem:[#allocation35_spill] sm:$0xff]  ;;  %v6271_v63 = vld [vmem:[#allocation38_spill] sm:$0xff] }
  0xc7   : > { %1928 = vmatpush.msrb.mxu1 %v6250_v43  ;;  %1949 = vmatpush.msrb.mxu2 %v4687_v6  ;;  %v6267_v43 = vld [vmem:[#allocation34_spill] sm:$0xff] }
  0xc8   : > { %1969 = vmatpush.msrb.mxu3 %v4689_v7  ;;  %1909 = vmatpush.msrb.mxu0 %v4681_v4  ;;  %v737_v4 = vadd.f32 %v694_v0, %v618_v2  ;;  %v6273_v2 = vld [vmem:[#allocation40_spill] sm:$0xff] }
  0xc9   : > { %1929 = vmatpush.msrb.mxu1 %v4683_v5  ;;  %1950 = vmatpush.msrb.mxu2 %v4697_v10  ;;  %v738_v5 = vadd.f32 %v714_v1, %v638_v3  ;;  %v814_v7 = vpop.f32.mrf.mxu3  ;;  %v5407_v3 = vld [vmem:[%s4779_s23 + $0x1] sm:$0x7f] }
  0xca   : > { %1970 = vmatpush.msrb.mxu3 %v4699_v11  ;;  %1910 = vmatpush.msrb.mxu0 %v4691_v8  ;;  %v794_v6 = vpop.f32.mrf.mxu2  ;;  %v817_v0 = vadd.f32 %v774_v48, %v737_v4  ;;  %v6269_v48 = vld [vmem:[#allocation36_spill] sm:$0xff]  ;;  %v6274_v4 = vld [vmem:[#allocation41_spill] sm:$0xff] }
  0xcb   : > { %1930 = vmatpush.msrb.mxu1 %v4695_v9  ;;  %1951 = vmatpush.msrb.mxu2 %v4721_v14  ;;  %v818_v8 = vadd.f32 %v794_v6, %v738_v5  ;;  %v854_v1 = vpop.f32.mrf.mxu0  ;;  %v874_v9 = vpop.f32.mrf.mxu1  ;;  %v6276_v5 = vld [vmem:[#allocation43_spill] sm:$0xff]  ;;  %v6277_v6 = vld [vmem:[#allocation44_spill] sm:$0xff] }
  0xcc   : > { %1971 = vmatpush.msrb.mxu3 %v4723_v15  ;;  %1911 = vmatpush.msrb.mxu0 %v4709_v12  ;;  %v5349_v10 = vadd.f32 %v854_v1, %v817_v0  ;;  %v658_v12 = vadd.f32 %v657_v39, %v5291_v49  ;;  %v6265_v39 = vld [vmem:[#allocation31_spill] sm:$0xff] }
  0xcd   : > { %1931 = vmatpush.msrb.mxu1 %v4711_v13  ;;  %4050 = vmatmul.msk.f32.vlgmr.msrb.gmra.mxu0 %vm533_vm0, %v4859_v51  ;;  %v5351_v11 = vadd.f32 %v874_v9, %v818_v8  ;;  %v6279_v8 = vld [vmem:[#allocation46_spill] sm:$0xff]  ;;  %v6280_v9 = vld [vmem:[#allocation47_spill] sm:$0xff] }
  0xce   : > { %4051 = vmatmul.msk.f32.vlgmr.msrb.gmra.mxu1 %vm533_vm0, %v4859_v51  ;;  %4052 = vmatmul.msk.f32.vlgmr.msrb.gmra.mxu2 %vm533_vm0, %v4859_v51  ;;  %v739_v13 = vadd.f32 %v734_v62, %v658_v12  ;;  %v6270_v62 = vld [vmem:[#allocation37_spill] sm:$0xff]  ;;  %v6281_v12 = vld [vmem:[#allocation48_spill] sm:$0xff] }
  0xcf   : > { %4053 = vmatmul.msk.f32.vlgmr.msrb.gmra.mxu3 %vm533_vm0, %v4796_v34  ;;  %2028 = vmatpush.msra.mxu2 %v4737_v18 }
  0xd0   : > { %2048 = vmatpush.msra.mxu3 %v4739_v19  ;;  %1988 = vmatpush.msra.mxu0 %v4745_v20  ;;  %v819_v14 = vadd.f32 %v814_v7, %v739_v13  ;;  %v6251_v20 = vld [vmem:[#allocation17_spill] sm:$0xff]  ;;  %v6282_v13 = vld [vmem:[#allocation51_spill] sm:$0xff] }
  0xd1   : > { %2008 = vmatpush.msra.mxu1 %v4747_v21  ;;  %2029 = vmatpush.msra.mxu2 %v4753_v22  ;;  %v943_v18 = vpop.f32.mrf.mxu3  ;;  %v6252_v21 = vld [vmem:[#allocation18_spill] sm:$0xff]  ;;  %v6253_v22 = vld [vmem:[#allocation19_spill] sm:$0xff]  ;;  %v6278_v7 = vld [vmem:[#allocation45_spill] sm:$0xff] }
  0xd2   : > { %2049 = vmatpush.msra.mxu3 %v4755_v23  ;;  %1989 = vmatpush.msra.mxu0 %v4759_v24  ;;  %v894_v15 = vpop.f32.mrf.mxu2  ;;  %v6254_v23 = vld [vmem:[#allocation20_spill] sm:$0xff] }
  0xd3   : > { %2009 = vmatpush.msra.mxu1 %v4761_v25  ;;  %2030 = vmatpush.msra.mxu2 %v4765_v26  ;;  %v5372_v19 = vadd.f32 %v894_v15, %v819_v14  ;;  %v963_v24 = vpop.f32.mrf.mxu0  ;;  %v983_v25 = vpop.f32.mrf.mxu1  ;;  %v6255_v26 = vld [vmem:[#allocation21_spill] sm:$0xff]  ;;  %v6283_v14 = vld [vmem:[#allocation52_spill] sm:$0xff] }
  0xd4   : > { %2050 = vmatpush.msra.mxu3 %v4767_v27  ;;  %1990 = vmatpush.msra.mxu0 %v4771_v28  ;;  %v6256_v27 = vld [vmem:[#allocation22_spill] sm:$0xff]  ;;  %v6257_v28 = vld [vmem:[#allocation23_spill] sm:$0xff] }
  0xd5   : > { %2010 = vmatpush.msra.mxu1 %v4773_v29  ;;  %2031 = vmatpush.msra.mxu2 %v4783_v30  ;;  %v6258_v29 = vld [vmem:[#allocation24_spill] sm:$0xff]  ;;  %v6259_v30 = vld [vmem:[#allocation25_spill] sm:$0xff] }
  0xd6   : > { %2051 = vmatpush.msra.mxu3 %v4785_v31  ;;  %1991 = vmatpush.msra.mxu0 %v4789_v32  ;;  %v6260_v31 = vld [vmem:[#allocation26_spill] sm:$0xff]  ;;  %v6261_v32 = vld [vmem:[#allocation27_spill] sm:$0xff] }
  0xd7   : > { %2011 = vmatpush.msra.mxu1 %v4791_v33  ;;  %4054 = vmatmul.msk.f32.vlgmr.msra.gmra.mxu0 %vm533_vm0, %v4796_v34  ;;  %v6262_v33 = vld [vmem:[#allocation28_spill] sm:$0xff] }
  0xd8   : > { %4055 = vmatmul.msk.f32.vlgmr.msra.gmra.mxu1 %vm533_vm0, %v4796_v34  ;;  %4056 = vmatmul.msk.f32.vlgmr.msra.gmra.mxu2 %vm533_vm0, %v4918_v57 }
  0xd9   : > { %4057 = vmatmul.msk.f32.vlgmr.msra.gmra.mxu3 %vm533_vm0, %v4918_v57  ;;  %2111 = vmatpush.msrb.mxu2 %v4802_v35  ;;  %v6263_v35 = vld [vmem:[#allocation29_spill] sm:$0xff] }
  0xda   : > { %2131 = vmatpush.msrb.mxu3 %v4804_v36  ;;  %2068 = vmatpush.msrb.mxu0 %v4810_v37  ;;  %v6264_v36 = vld [vmem:[#allocation30_spill] sm:$0xff]  ;;  %v1003_v37 = vpop.f32.mrf.mxu2 }
  0xdb   : > { %2091 = vmatpush.msrb.mxu1 %v4812_v38  ;;  %2112 = vmatpush.msrb.mxu2 %v6251_v20  ;;  %v1023_v38 = vpop.f32.mrf.mxu3  ;;  %v1004_v15 = vadd.f32 %v1003_v37, %v943_v18 }
  0xdc   : > { %2132 = vmatpush.msrb.mxu3 %v6252_v21  ;;  %2069 = vmatpush.msrb.mxu0 %v6253_v22  ;;  %v6284_v22 = vld [vmem:[#allocation55_spill] sm:$0xff] }
  0xdd   : > { %2092 = vmatpush.msrb.mxu1 %v6254_v23  ;;  %2113 = vmatpush.msrb.mxu2 %v6255_v26  ;;  %v6285_v23 = vld [vmem:[#allocation56_spill] sm:$0xff]  ;;  %v6286_v26 = vld [vmem:[#allocation57_spill] sm:$0xff] }
  0xde   : > { %2133 = vmatpush.msrb.mxu3 %v6256_v27  ;;  %2070 = vmatpush.msrb.mxu0 %v6257_v28  ;;  %v6288_v27 = vld [vmem:[#allocation59_spill] sm:$0xff]  ;;  %v6289_v28 = vld [vmem:[#allocation60_spill] sm:$0xff] }
  0xdf   : > { %2093 = vmatpush.msrb.mxu1 %v6258_v29  ;;  %2114 = vmatpush.msrb.mxu2 %v6259_v30  ;;  %v1043_v49 = vpop.f32.mrf.mxu0  ;;  %v6290_v30 = vld [vmem:[#allocation62_spill] sm:$0xff] }
  0xe0   : > { %2134 = vmatpush.msrb.mxu3 %v6260_v31  ;;  %2071 = vmatpush.msrb.mxu0 %v6261_v32  ;;  %v1076_v53 = vpop.f32.mrf.mxu1  ;;  %v1044_v18 = vadd.f32 %v1043_v49, %v983_v25  ;;  %v6291_v32 = vld [vmem:[#allocation63_spill] sm:$0xff]  ;;  %v6300_v49 = vld [vmem:[#allocation74_spill] sm:$0xff] }
  0xe1   : > { %2094 = vmatpush.msrb.mxu1 %v6262_v33  ;;  %4058 = vmatmul.msk.f32.vlgmr.msrb.gmra.mxu0 %vm533_vm0, %v4918_v57  ;;  %v1119_v29 = vadd.f32 %v1076_v53, %v1004_v15  ;;  %v6292_v33 = vld [vmem:[#allocation64_spill] sm:$0xff]  ;;  %v6301_v53 = vld [vmem:[#allocation75_spill] sm:$0xff] }
  0xe2   : > { %4059 = vmatmul.msk.f32.vlgmr.msrb.gmra.mxu1 %vm533_vm0, %v5203_v55  ;;  %4060 = vmatmul.msk.f32.vlgmr.msrb.gmra.mxu2 %vm533_vm0, %v5203_v55 }
  0xe3   : > { %4061 = vmatmul.msk.f32.vlgmr.msrb.gmra.mxu3 %vm533_vm0, %v5203_v55  ;;  %2198 = vmatpush.msra.mxu2 %v6263_v35  ;;  %v1096_v0 = vpop.f32.mrf.mxu2 }
  0xe4   : > { %2221 = vmatpush.msra.mxu3 %v6264_v36  ;;  %2158 = vmatpush.msra.mxu0 %v6265_v39  ;;  %v1116_v1 = vpop.f32.mrf.mxu3  ;;  %v6293_v36 = vld [vmem:[#allocation67_spill] sm:$0xff]  ;;  %v6295_v39 = vld [vmem:[#allocation69_spill] sm:$0xff] }
  0xe5   : > { %2178 = vmatpush.msra.mxu1 %v6266_v41  ;;  %2199 = vmatpush.msra.mxu2 %v6205_v54  ;;  %v6275_v54 = vld [vmem:[#allocation42_spill] sm:$0xff] }
  0xe6   : > { %2222 = vmatpush.msra.mxu3 %v6267_v43  ;;  %2159 = vmatpush.msra.mxu0 %v6268_v45  ;;  %v6296_v41 = vld [vmem:[#allocation70_spill] sm:$0xff] }
  0xe7   : > { %2179 = vmatpush.msra.mxu1 %v6269_v48  ;;  %2200 = vmatpush.msra.mxu2 %v6270_v62  ;;  %v6297_v48 = vld [vmem:[#allocation71_spill] sm:$0xff]  ;;  %v6302_v62 = vld [vmem:[#allocation76_spill] sm:$0xff] }
  0xe8   : > { %2223 = vmatpush.msra.mxu3 %v6271_v63  ;;  %2160 = vmatpush.msra.mxu0 %v6272_v16  ;;  %v4210_v63 = vld [vmem:[%s4779_s23] sm:$0x7f] }
  0xe9   : > { %2180 = vmatpush.msra.mxu1 %v6273_v2  ;;  %2201 = vmatpush.msra.mxu2 %v6274_v4  ;;  %v6303_v4 = vld [vmem:[#allocation79_spill] sm:$0xff] }
  0xea   : > { %2224 = vmatpush.msra.mxu3 %v6275_v54  ;;  %2161 = vmatpush.msra.mxu0 %v6276_v5  ;;  %v6304_v54 = vld [vmem:[#allocation80_spill] sm:$0xff]  ;;  %v6305_v5 = vld [vmem:[#allocation83_spill] sm:$0xff] }
  0xeb   : > { %2181 = vmatpush.msra.mxu1 %v6277_v6  ;;  %4062 = vmatmul.msk.f32.vlgmr.msra.gmra.mxu0 %vm533_vm0, %v5407_v3  ;;  %v6306_v6 = vld [vmem:[#allocation84_spill] sm:$0xff] }
  0xec   : > { %4063 = vmatmul.msk.f32.vlgmr.msra.gmra.mxu1 %vm533_vm0, %v5407_v3  ;;  %4064 = vmatmul.msk.f32.vlgmr.msra.gmra.mxu2 %vm533_vm0, %v5407_v3 }
  0xed   : > { %4065 = vmatmul.msk.f32.vlgmr.msra.gmra.mxu3 %vm533_vm0, %v4859_v51  ;;  %2281 = vmatpush.msrb.mxu2 %v6278_v7 }
  0xee   : > { %2301 = vmatpush.msrb.mxu3 %v6279_v8  ;;  %2241 = vmatpush.msrb.mxu0 %v6280_v9  ;;  %v6308_v8 = vld [vmem:[#allocation88_spill] sm:$0xff] }
  0xef   : > { %2261 = vmatpush.msrb.mxu1 %v6281_v12  ;;  %2282 = vmatpush.msrb.mxu2 %v6220_v59  ;;  %v1152_v20 = vpop.f32.mrf.mxu0  ;;  %v6287_v59 = vld [vmem:[#allocation58_spill] sm:$0xff] }
  0xf0   : > { %2302 = vmatpush.msrb.mxu3 %v6221_v50  ;;  %2242 = vmatpush.msrb.mxu0 %v6282_v13  ;;  %v1172_v21 = vpop.f32.mrf.mxu1  ;;  %v1024_v50 = vadd.f32 %v1023_v38, %v963_v24  ;;  %v1195_v24 = vadd.f32 %v1152_v20, %v1119_v29  ;;  %v6313_v13 = vld [vmem:[#allocation93_spill] sm:$0xff] }
  0xf1   : > { %2262 = vmatpush.msrb.mxu1 %v6283_v14  ;;  %2283 = vmatpush.msrb.mxu2 %v6224_v46  ;;  %v1121_v46 = vadd.f32 %v1116_v1, %v1044_v18  ;;  %v6312_v1 = vld [vmem:[#allocation92_spill] sm:$0xff]  ;;  %v6314_v14 = vld [vmem:[#allocation94_spill] sm:$0xff] }
  0xf2   : > { %2303 = vmatpush.msrb.mxu3 %v6225_v40  ;;  %2243 = vmatpush.msrb.mxu0 %v6284_v22  ;;  %v1120_v40 = vadd.f32 %v1096_v0, %v1024_v50  ;;  %v6309_v0 = vld [vmem:[#allocation89_spill] sm:$0xff]  ;;  %v4214_v22 = vld [vmem:[#allocation4 + $0xf8] sm:$0xff] }
  0xf3   : > { %2263 = vmatpush.msrb.mxu1 %v6285_v23  ;;  %2284 = vmatpush.msrb.mxu2 %v6286_v26  ;;  %v1192_v25 = vpop.f32.mrf.mxu2  ;;  %v6315_v23 = vld [vmem:[#allocation95_spill] sm:$0xff]  ;;  %v6316_v26 = vld [vmem:[#allocation96_spill] sm:$0xff] }
  0xf4   : > { %2304 = vmatpush.msrb.mxu3 %v6287_v59  ;;  %2244 = vmatpush.msrb.mxu0 %v6288_v27  ;;  %v1228_v31 = vpop.f32.mrf.mxu3  ;;  %v4215_v27 = vld [vmem:[#allocation4 + $0xd8] sm:$0xff] }
  0xf5   : > { %2264 = vmatpush.msrb.mxu1 %v6289_v28  ;;  %4066 = vmatmul.msk.f32.vlgmr.msrb.gmra.mxu0 %vm533_vm0, %v4859_v51  ;;  %v5449_v35 = vadd.f32 %v1228_v31, %v1195_v24  ;;  %v4216_v28 = vld [vmem:[#allocation4 + $0xe0] sm:$0xff] }
  0xf6   : > { %4067 = vmatmul.msk.f32.vlgmr.msrb.gmra.mxu1 %vm533_vm0, %v4859_v51  ;;  %4068 = vmatmul.msk.f32.vlgmr.msrb.gmra.mxu2 %vm533_vm0, %v4796_v34  ;;  %v1197_v51 = vadd.f32 %v1192_v25, %v1121_v46  ;;  %v6318_v46 = vld [vmem:[#allocation98_spill] sm:$0xff]  ;;  %v4217_v24 = vld [vmem:[#allocation4 + $0xc0] sm:$0xff]  ;;  %v6319_v25 = vld [vmem:[#allocation99_spill] sm:$0xff] }
  0xf7   : > { %4069 = vmatmul.msk.f32.vlgmr.msrb.gmra.mxu3 %vm533_vm0, %v4796_v34  ;;  %2361 = vmatpush.msra.mxu2 %v6232_v42  ;;  %v1196_v34 = vadd.f32 %v1172_v21, %v1120_v40  ;;  %v6294_v42 = vld [vmem:[#allocation68_spill] sm:$0xff]  ;;  %v4213_v21 = vld [vmem:[#allocation4 + $0xf0] sm:$0xff]  ;;  %v6317_v40 = vld [vmem:[#allocation97_spill] sm:$0xff] }
  0xf8   : > { %2381 = vmatpush.msra.mxu3 %v6290_v30  ;;  %2321 = vmatpush.msra.mxu0 %v6291_v32  ;;  %v4218_v30 = vld [vmem:[#allocation4 + $0xc8] sm:$0xff]  ;;  %v6320_v31 = vld [vmem:[#allocation100_spill] sm:$0xff] }
  0xf9   : > { %2341 = vmatpush.msra.mxu1 %v6292_v33  ;;  %2362 = vmatpush.msra.mxu2 %v6234_v58  ;;  %v6298_v58 = vld [vmem:[#allocation72_spill] sm:$0xff]  ;;  %v4220_v33 = vld [vmem:[#allocation4 + $0x50] sm:$0xff] }
  0xfa   : > { %2382 = vmatpush.msra.mxu3 %v6235_v52  ;;  %2322 = vmatpush.msra.mxu0 %v6293_v36  ;;  %v6299_v52 = vld [vmem:[#allocation73_spill] sm:$0xff]  ;;  %v5512_v32 = vld [vmem:[%s4717_s20 + $0x1] sm:$0x7f] }
  0xfb   : > { %2342 = vmatpush.msra.mxu1 %v6294_v42  ;;  %2363 = vmatpush.msra.mxu2 %v6295_v39  ;;  %v4222_v42 = vld [vmem:[#allocation4 + $0x118] sm:$0xff] }
  0xfc   : > { %2383 = vmatpush.msra.mxu3 %v6296_v41  ;;  %2323 = vmatpush.msra.mxu0 %v6297_v48  ;;  %v4224_v41 = vld [vmem:[#allocation4 + $0x38] sm:$0xff]  ;;  %v4225_v48 = vld [vmem:[#allocation4 + $0x40] sm:$0xff] }
  0xfd   : > { %v1248_v37 = vpop.f32.mrf.mxu0  ;;  %v1268_v38 = vpop.f32.mrf.mxu1  ;;  %2343 = vmatpush.msra.mxu1 %v6298_v58  ;;  %2364 = vmatpush.msra.mxu2 %v6299_v52  ;;  %v4226_v58 = vld [vmem:[#allocation4 + $0x100] sm:$0xff]  ;;  %v4227_v52 = vld [vmem:[#allocation4 + $0x30] sm:$0xff] }
  0xfe   : > { %v5457_v43 = vadd.f32 %v1248_v37, %v1196_v34  ;;  %v5459_v45 = vadd.f32 %v1268_v38, %v1197_v51  ;;  %2384 = vmatpush.msra.mxu3 %v6300_v49  ;;  %2324 = vmatpush.msra.mxu0 %v6301_v53  ;;  %v1291_v16 = vpop.f32.mrf.mxu2  ;;  %v4221_v51 = vld [vmem:[#allocation4 + $0x58] sm:$0xff]  ;;  %v4223_v37 = vld [vmem:[#allocation4 + $0x48] sm:$0xff] }
  0xff   : > { %2344 = vmatpush.msra.mxu1 %v6302_v62  ;;  %4070 = vmatmul.msk.f32.vlgmr.msra.gmra.mxu0 %vm533_vm0, %v4210_v63  ;;  %v1311_v2 = vpop.f32.mrf.mxu3  ;;  %v4228_v62 = vld [vmem:[#allocation4 + $0x20] sm:$0xff]  ;;  %v4229_v63 = vld [vmem:[#allocation4 + $0x28] sm:$0xff] }
 0x100   : > { %4071 = vmatmul.msk.f32.vlgmr.msra.gmra.mxu1 %vm533_vm0, %v4918_v57  ;;  %4072 = vmatmul.msk.f32.vlgmr.msra.gmra.mxu2 %vm533_vm0, %v4918_v57 }
 0x101   : > { %4073 = vmatmul.msk.f32.vlgmr.msra.gmra.mxu3 %vm533_vm0, %v4918_v57  ;;  %2444 = vmatpush.msrb.mxu2 %v6241_v61  ;;  %v6307_v61 = vld [vmem:[#allocation87_spill] sm:$0xff] }
 0x102   : > { %2467 = vmatpush.msrb.mxu3 %v6242_v44  ;;  %2404 = vmatpush.msrb.mxu0 %v6303_v4  ;;  %v4230_v4 = vld [vmem:[#allocation4 + $0xe8] sm:$0xff] }
 0x103   : > { %2424 = vmatpush.msrb.mxu1 %v6304_v54  ;;  %2445 = vmatpush.msrb.mxu2 %v6243_v47  ;;  %v6310_v47 = vld [vmem:[#allocation90_spill] sm:$0xff]  ;;  %v4231_v54 = vld [vmem:[#allocation4 + $0x18] sm:$0xff] }
 0x104   : > { %2468 = vmatpush.msrb.mxu3 %v6244_v17  ;;  %2405 = vmatpush.msrb.mxu0 %v6305_v5  ;;  %v6311_v17 = vld [vmem:[#allocation91_spill] sm:$0xff]  ;;  %v4232_v5 = vld [vmem:[#allocation4 + $0x8] sm:$0xff] }
 0x105   : > { %2425 = vmatpush.msrb.mxu1 %v6306_v6  ;;  %v1331_v7 = vpop.f32.mrf.mxu0  ;;  %v1351_v57 = vpop.f32.mrf.mxu1  ;;  %2446 = vmatpush.msrb.mxu2 %v6245_v60  ;;  %v4212_v60 = vld [vmem:[#allocation4 + $0x110] sm:$0xff] }
 0x106   : > { %2469 = vmatpush.msrb.mxu3 %v6246_v56  ;;  %v1352_v44 = vadd.f32 %v1351_v57, %v1291_v16  ;;  %2406 = vmatpush.msrb.mxu0 %v6307_v61  ;;  %v4211_v56 = vld [vmem:[#allocation4 + $0x108] sm:$0xff]  ;;  %v4233_v6 = vld [vmem:[#allocation4 + $0x10] sm:$0xff]  ;;  %v4235_v57 = vld [vmem:[#allocation4] sm:$0xff] }
 0x107   : > { %2426 = vmatpush.msrb.mxu1 %v6308_v8  ;;  %2447 = vmatpush.msrb.mxu2 %v6309_v0  ;;  %v4237_v61 = vld [vmem:[#allocation4 + $0x1d8] sm:$0xff]  ;;  %v4238_v8 = vld [vmem:[#allocation4 + $0x288] sm:$0xff] }
 0x108   : > { %2470 = vmatpush.msrb.mxu3 %v6310_v47  ;;  %2407 = vmatpush.msrb.mxu0 %v6311_v17  ;;  %v4239_v17 = vld [vmem:[#allocation4 + $0x1c8] sm:$0xff] }
 0x109   : > { %2427 = vmatpush.msrb.mxu1 %v6312_v1  ;;  %4074 = vmatmul.msk.f32.vlgmr.msrb.gmra.mxu0 %vm533_vm0, %v5203_v55  ;;  %v1371_v9 = vpop.f32.mrf.mxu2  ;;  %v4240_v1 = vld [vmem:[#allocation4 + $0x1d0] sm:$0xff] }
 0x10a   : > { %4075 = vmatmul.msk.f32.vlgmr.msrb.gmra.mxu1 %vm533_vm0, %v5203_v55  ;;  %4076 = vmatmul.msk.f32.vlgmr.msrb.gmra.mxu2 %vm533_vm0, %v5203_v55  ;;  %v1372_v15 = vadd.f32 %v1371_v9, %v1311_v2  ;;  %v4241_v9 = vld [vmem:[#allocation4 + $0x1c0] sm:$0xff] }
 0x10b   : > { %4077 = vmatmul.msk.f32.vlgmr.msrb.gmra.mxu3 %vm533_vm0, %v5407_v3  ;;  %2530 = vmatpush.msra.mxu2 %v4211_v56 }
 0x10c   : > { %2550 = vmatpush.msra.mxu3 %v4212_v60  ;;  %v1391_v12 = vpop.f32.mrf.mxu3  ;;  %2487 = vmatpush.msra.mxu0 %v6313_v13  ;;  %v4243_v13 = vld [vmem:[#allocation4 + $0x1b0] sm:$0xff] }
 0x10d   : > { %2507 = vmatpush.msra.mxu1 %v6314_v14  ;;  %v1392_v20 = vadd.f32 %v1391_v12, %v1331_v7  ;;  %2531 = vmatpush.msra.mxu2 %v4213_v21  ;;  %v4234_v7 = vld [vmem:[#allocation4 + $0xd0] sm:$0xff]  ;;  %v4244_v14 = vld [vmem:[#allocation4 + $0x1b8] sm:$0xff]  ;;  %v4245_v21 = vld [vmem:[#allocation4 + $0x1a8] sm:$0xff] }
 0x10e   : > { %2551 = vmatpush.msra.mxu3 %v4214_v22  ;;  %2488 = vmatpush.msra.mxu0 %v6315_v23  ;;  %v1411_v59 = vpop.f32.mrf.mxu0  ;;  %v4242_v12 = vld [vmem:[#allocation4 + $0x270] sm:$0xff]  ;;  %v4246_v22 = vld [vmem:[#allocation4 + $0x258] sm:$0xff] }
 0x10f   : > { %2508 = vmatpush.msra.mxu1 %v6316_v26  ;;  %v1431_v50 = vpop.f32.mrf.mxu1  ;;  %2532 = vmatpush.msra.mxu2 %v4215_v27  ;;  %v1454_v18 = vadd.f32 %v1411_v59, %v1352_v44  ;;  %v5521_v44 = vld [vmem:[%s4838_s18] sm:$0x7f]  ;;  %v4248_v59 = vld [vmem:[#allocation4 + $0x1a0] sm:$0xff] }
 0x110   : > { %2552 = vmatpush.msra.mxu3 %v4216_v28  ;;  %v1455_v29 = vadd.f32 %v1431_v50, %v1372_v15  ;;  %2489 = vmatpush.msra.mxu0 %v6317_v40  ;;  %v4247_v26 = vld [vmem:[#allocation4 + $0x198] sm:$0xff]  ;;  %v4249_v50 = vld [vmem:[#allocation4 + $0x190] sm:$0xff]  ;;  %v4250_v27 = vld [vmem:[#allocation4 + $0x240] sm:$0xff] }
 0x111   : > { %2509 = vmatpush.msra.mxu1 %v6318_v46  ;;  %2533 = vmatpush.msra.mxu2 %v4217_v24  ;;  %v4251_v28 = vld [vmem:[#allocation4 + $0x180] sm:$0xff]  ;;  %v4254_v40 = vld [vmem:[#allocation4 + $0x350] sm:$0xff] }
 0x112   : > { %2553 = vmatpush.msra.mxu3 %v4218_v30  ;;  %2490 = vmatpush.msra.mxu0 %v6319_v25  ;;  %v4255_v30 = vld [vmem:[#allocation4 + $0x290] sm:$0xff]  ;;  %v4256_v25 = vld [vmem:[#allocation4 + $0x298] sm:$0xff] }
 0x113   : > { %2510 = vmatpush.msra.mxu1 %v6320_v31  ;;  %4078 = vmatmul.msk.f32.vlgmr.msra.gmra.mxu0 %vm533_vm0, %v5407_v3  ;;  %v4257_v31 = vld [vmem:[#allocation4 + $0x330] sm:$0xff] }
 0x114   : > { %4079 = vmatmul.msk.f32.vlgmr.msra.gmra.mxu1 %vm533_vm0, %v5407_v3  ;;  %4080 = vmatmul.msk.f32.vlgmr.msra.gmra.mxu2 %vm533_vm0, %v5512_v32 }
 0x115   : > { %4081 = vmatmul.msk.f32.vlgmr.msra.gmra.mxu3 %vm533_vm0, %v5512_v32  ;;  %2610 = vmatpush.msrb.mxu2 %v4220_v33  ;;  %v1451_v34 = vpop.f32.mrf.mxu2  ;;  %v4258_v33 = vld [vmem:[#allocation4 + $0x338] sm:$0xff] }
 0x116   : > { %2630 = vmatpush.msrb.mxu3 %v4221_v51  ;;  %v1474_v36 = vpop.f32.mrf.mxu3  ;;  %2570 = vmatpush.msrb.mxu0 %v4222_v42  ;;  %v1456_v38 = vadd.f32 %v1451_v34, %v1392_v20  ;;  %v4259_v51 = vld [vmem:[#allocation4 + $0x278] sm:$0xff]  ;;  %v4260_v34 = vld [vmem:[#allocation4 + $0x280] sm:$0xff] }
 0x117   : > { %2590 = vmatpush.msrb.mxu1 %v4223_v37  ;;  %v1517_v39 = vadd.f32 %v1474_v36, %v1454_v18  ;;  %2611 = vmatpush.msrb.mxu2 %v4224_v41  ;;  %v4252_v18 = vld [vmem:[#allocation4 + $0x188] sm:$0xff]  ;;  %v4261_v37 = vld [vmem:[#allocation4 + $0x318] sm:$0xff] }
 0x118   : > { %2631 = vmatpush.msrb.mxu3 %v4225_v48  ;;  %2571 = vmatpush.msrb.mxu0 %v4226_v58  ;;  %v1494_v49 = vpop.f32.mrf.mxu0  ;;  %v4263_v48 = vld [vmem:[#allocation4 + $0x260] sm:$0xff]  ;;  %v4264_v58 = vld [vmem:[#allocation4 + $0x268] sm:$0xff] }
 0x119   : > { %2591 = vmatpush.msrb.mxu1 %v4227_v52  ;;  %v1514_v53 = vpop.f32.mrf.mxu1  ;;  %2612 = vmatpush.msrb.mxu2 %v4228_v62  ;;  %v1518_v16 = vadd.f32 %v1494_v49, %v1455_v29  ;;  %v4253_v29 = vld [vmem:[#allocation4 + $0x348] sm:$0xff]  ;;  %v4265_v52 = vld [vmem:[#allocation4 + $0x300] sm:$0xff] }
 0x11a   : > { %2632 = vmatpush.msrb.mxu3 %v4229_v63  ;;  %v1519_v2 = vadd.f32 %v1514_v53, %v1456_v38  ;;  %2572 = vmatpush.msrb.mxu0 %v4230_v4  ;;  %v4262_v38 = vld [vmem:[#allocation4 + $0x320] sm:$0xff]  ;;  %v4266_v49 = vld [vmem:[#allocation4 + $0x308] sm:$0xff]  ;;  %v5544_v53 = vld [vmem:[%s4838_s18 + $0x1] sm:$0x7f] }
 0x11b   : > { %2592 = vmatpush.msrb.mxu1 %v4231_v54  ;;  %2613 = vmatpush.msrb.mxu2 %v4232_v5  ;;  %v4267_v62 = vld [vmem:[#allocation4 + $0x248] sm:$0xff]  ;;  %v4268_v63 = vld [vmem:[#allocation4 + $0x250] sm:$0xff]  ;;  %v4271_v5 = vld [vmem:[#allocation4 + $0x358] sm:$0xff] }
 0x11c   : > { %2633 = vmatpush.msrb.mxu3 %v4233_v6  ;;  %2573 = vmatpush.msrb.mxu0 %v4234_v7  ;;  %v4272_v6 = vld [vmem:[#allocation4 + $0x168] sm:$0xff] }
 0x11d   : > { %2593 = vmatpush.msrb.mxu1 %v4235_v57  ;;  %4082 = vmatmul.msk.f32.vlgmr.msrb.gmra.mxu0 %vm533_vm0, %v5512_v32 }
 0x11e   : > { %4083 = vmatmul.msk.f32.vlgmr.msrb.gmra.mxu1 %vm533_vm0, %v5521_v44  ;;  %4084 = vmatmul.msk.f32.vlgmr.msrb.gmra.mxu2 %vm533_vm0, %v5521_v44 }
 0x11f   : > { %4085 = vmatmul.msk.f32.vlgmr.msrb.gmra.mxu3 %vm533_vm0, %v5521_v44  ;;  %2690 = vmatpush.msra.mxu2 %v4237_v61  ;;  %v1541_v0 = vpop.f32.mrf.mxu2  ;;  %v4273_v61 = vld [vmem:[#allocation4 + $0x158] sm:$0xff] }
 0x120   : > { %2713 = vmatpush.msra.mxu3 %v4238_v8  ;;  %v1561_v47 = vpop.f32.mrf.mxu3  ;;  %2650 = vmatpush.msra.mxu0 %v4239_v17  ;;  %v5529_v56 = vadd.f32 %v1541_v0, %v1517_v39  ;;  %v4274_v8 = vld [vmem:[#allocation4 + $0x160] sm:$0xff] }
 0x121   : > { %2670 = vmatpush.msra.mxu1 %v4240_v1  ;;  %v5531_v60 = vadd.f32 %v1561_v47, %v1518_v16  ;;  %2691 = vmatpush.msra.mxu2 %v4241_v9  ;;  %v4269_v16 = vld [vmem:[#allocation4 + $0x170] sm:$0xff]  ;;  %v4275_v0 = vld [vmem:[#allocation4 + $0x340] sm:$0xff] }
 0x122   : > { %2714 = vmatpush.msra.mxu3 %v4242_v12  ;;  %2651 = vmatpush.msra.mxu0 %v4243_v13  ;;  %v1581_v15 = vpop.f32.mrf.mxu0  ;;  %v4276_v47 = vld [vmem:[#allocation4 + $0x150] sm:$0xff]  ;;  %v4277_v9 = vld [vmem:[#allocation4 + $0x140] sm:$0xff]  ;;  %v4278_v12 = vld [vmem:[#allocation4 + $0x148] sm:$0xff] }
 0x123   : > { %2671 = vmatpush.msra.mxu1 %v4244_v14  ;;  %v1604_v20 = vpop.f32.mrf.mxu1  ;;  %2692 = vmatpush.msra.mxu2 %v4245_v21  ;;  %v5533_v23 = vadd.f32 %v1581_v15, %v1519_v2  ;;  %v4270_v2 = vld [vmem:[#allocation4 + $0x178] sm:$0xff]  ;;  %v4279_v15 = vld [vmem:[#allocation4 + $0x328] sm:$0xff] }
 0x124   : > { %2715 = vmatpush.msra.mxu3 %v4246_v22  ;;  %2652 = vmatpush.msra.mxu0 %v4247_v26  ;;  %v4281_v21 = vld [vmem:[#allocation4 + $0x128] sm:$0xff]  ;;  %v4282_v22 = vld [vmem:[#allocation4 + $0x130] sm:$0xff] }
 0x125   : > { %2672 = vmatpush.msra.mxu1 %v4248_v59  ;;  %2693 = vmatpush.msra.mxu2 %v4249_v50  ;;  %v4283_v26 = vld [vmem:[#allocation4 + $0x310] sm:$0xff]  ;;  %v4284_v59 = vld [vmem:[#allocation4 + $0x120] sm:$0xff]  ;;  %v4285_v50 = vld [vmem:[#allocation4 + $0xb8] sm:$0xff] }
 0x126   : > { %2716 = vmatpush.msra.mxu3 %v4250_v27  ;;  %2653 = vmatpush.msra.mxu0 %v4251_v28  ;;  %v4286_v27 = vld [vmem:[#allocation4 + $0x228] sm:$0xff] }
 0x127   : > { %2673 = vmatpush.msra.mxu1 %v4252_v18  ;;  %4086 = vmatmul.msk.f32.vlgmr.msra.gmra.mxu0 %vm533_vm0, %v5203_v55 }
 0x128   : > { %4087 = vmatmul.msk.f32.vlgmr.msra.gmra.mxu1 %vm533_vm0, %v5203_v55  ;;  %4088 = vmatmul.msk.f32.vlgmr.msra.gmra.mxu2 %vm533_vm0, %v5203_v55 }
 0x129   : > { %4089 = vmatmul.msk.f32.vlgmr.msra.gmra.mxu3 %vm533_vm0, %v5407_v3  ;;  %2780 = vmatpush.msrb.mxu2 %v4253_v29  ;;  %v1624_v46 = vpop.f32.mrf.mxu2  ;;  %v4287_v29 = vld [vmem:[#allocation4 + $0xa8] sm:$0xff] }
 0x12a   : > { %2800 = vmatpush.msrb.mxu3 %v4254_v40  ;;  %v1644_v24 = vpop.f32.mrf.mxu3  ;;  %2733 = vmatpush.msrb.mxu0 %v4255_v30  ;;  %v4288_v40 = vld [vmem:[#allocation4 + $0xb0] sm:$0xff]  ;;  %v4289_v30 = vld [vmem:[#allocation4 + $0xa0] sm:$0xff] }
 0x12b   : > { %2753 = vmatpush.msrb.mxu1 %v4256_v25  ;;  %2781 = vmatpush.msrb.mxu2 %v4257_v31  ;;  %v4290_v25 = vld [vmem:[#allocation4 + $0x210] sm:$0xff] }
 0x12c   : > { %2801 = vmatpush.msrb.mxu3 %v4258_v33  ;;  %2734 = vmatpush.msrb.mxu0 %v4259_v51  ;;  %v1664_v36 = vpop.f32.mrf.mxu0  ;;  %v4291_v31 = vld [vmem:[#allocation4 + $0x90] sm:$0xff]  ;;  %v4292_v33 = vld [vmem:[#allocation4 + $0x98] sm:$0xff] }
 0x12d   : > { %2754 = vmatpush.msrb.mxu1 %v4260_v34  ;;  %v1684_v42 = vpop.f32.mrf.mxu1  ;;  %2782 = vmatpush.msrb.mxu2 %v4261_v37  ;;  %v1665_v39 = vadd.f32 %v1664_v36, %v1604_v20  ;;  %v4280_v20 = vld [vmem:[#allocation4 + $0x138] sm:$0xff]  ;;  %v4293_v34 = vld [vmem:[#allocation4 + $0x88] sm:$0xff] }
 0x12e   : > { %2802 = vmatpush.msrb.mxu3 %v4262_v38  ;;  %v1685_v41 = vadd.f32 %v1684_v42, %v1624_v46  ;;  %2735 = vmatpush.msrb.mxu0 %v4263_v48  ;;  %v4294_v36 = vld [vmem:[#allocation4 + $0x1f8] sm:$0xff]  ;;  %v4298_v48 = vld [vmem:[#allocation4 + $0x1e0] sm:$0xff] }
 0x12f   : > { %2755 = vmatpush.msrb.mxu1 %v4264_v58  ;;  %2783 = vmatpush.msrb.mxu2 %v4265_v52  ;;  %v4295_v38 = vld [vmem:[#allocation4 + $0x78] sm:$0xff]  ;;  %v4299_v58 = vld [vmem:[#allocation4 + $0x60] sm:$0xff]  ;;  %v4300_v52 = vld [vmem:[#allocation4 + $0x68] sm:$0xff] }
 0x130   : > { %2803 = vmatpush.msrb.mxu3 %v4266_v49  ;;  %2736 = vmatpush.msrb.mxu0 %v4267_v62  ;;  %v4301_v49 = vld [vmem:[#allocation4 + $0x2e8] sm:$0xff]  ;;  %v4302_v62 = vld [vmem:[#allocation4 + $0x2f0] sm:$0xff] }
 0x131   : > { %2756 = vmatpush.msrb.mxu1 %v4268_v63  ;;  %4090 = vmatmul.msk.f32.vlgmr.msrb.gmra.mxu0 %vm533_vm0, %v5407_v3 }
 0x132   : > { %4091 = vmatmul.msk.f32.vlgmr.msrb.gmra.mxu1 %vm533_vm0, %v5407_v3  ;;  %4092 = vmatmul.msk.f32.vlgmr.msrb.gmra.mxu2 %vm533_vm0, %v5544_v53 }
 0x133   : > { %4093 = vmatmul.msk.f32.vlgmr.msrb.gmra.mxu3 %vm533_vm0, %v5544_v53  ;;  %2863 = vmatpush.msra.mxu2 %v4269_v16  ;;  %v1704_v4 = vpop.f32.mrf.mxu2 }
 0x134   : > { %2883 = vmatpush.msra.mxu3 %v4270_v2  ;;  %v1724_v54 = vpop.f32.mrf.mxu3  ;;  %2820 = vmatpush.msra.mxu0 %v4271_v5  ;;  %v1705_v7 = vadd.f32 %v1704_v4, %v1644_v24  ;;  %v4303_v2 = vld [vmem:[#allocation4 + $0x230] sm:$0xff]  ;;  %v4304_v4 = vld [vmem:[#allocation4 + $0x238] sm:$0xff] }
 0x135   : > { %2843 = vmatpush.msra.mxu1 %v4272_v6  ;;  %v1767_v57 = vadd.f32 %v1724_v54, %v1665_v39  ;;  %2864 = vmatpush.msra.mxu2 %v4273_v61  ;;  %v4296_v39 = vld [vmem:[#allocation4 + $0x80] sm:$0xff]  ;;  %v4305_v6 = vld [vmem:[#allocation4 + $0x2d0] sm:$0xff] }
 0x136   : > { %2884 = vmatpush.msra.mxu3 %v4274_v8  ;;  %2821 = vmatpush.msra.mxu0 %v4275_v0  ;;  %v1744_v17 = vpop.f32.mrf.mxu0  ;;  %v4309_v0 = vld [vmem:[#allocation4 + $0x2b8] sm:$0xff] }
 0x137   : > { %2844 = vmatpush.msra.mxu1 %v4276_v47  ;;  %v1764_v1 = vpop.f32.mrf.mxu1  ;;  %2865 = vmatpush.msra.mxu2 %v4277_v9  ;;  %v1768_v13 = vadd.f32 %v1744_v17, %v1685_v41  ;;  %v4297_v41 = vld [vmem:[#allocation4 + $0x70] sm:$0xff]  ;;  %v4310_v47 = vld [vmem:[#allocation4 + $0x2c0] sm:$0xff] }
 0x138   : > { %2885 = vmatpush.msra.mxu3 %v4278_v12  ;;  %v1769_v14 = vadd.f32 %v1764_v1, %v1705_v7  ;;  %2822 = vmatpush.msra.mxu0 %v4279_v15  ;;  %v4307_v7 = vld [vmem:[#allocation4 + $0x218] sm:$0xff]  ;;  %v4311_v17 = vld [vmem:[#allocation4 + $0x200] sm:$0xff]  ;;  %v4312_v1 = vld [vmem:[#allocation4 + $0x208] sm:$0xff] }
 0x139   : > { %2845 = vmatpush.msra.mxu1 %v4280_v20  ;;  %2866 = vmatpush.msra.mxu2 %v4281_v21  ;;  %v4313_v9 = vld [vmem:[#allocation4 + $0x2a0] sm:$0xff]  ;;  %v4314_v12 = vld [vmem:[#allocation4 + $0x2a8] sm:$0xff]  ;;  %v4317_v15 = vld [vmem:[#allocation4 + $0x3b0] sm:$0xff] }
 0x13a   : > { %2886 = vmatpush.msra.mxu3 %v4282_v22  ;;  %2823 = vmatpush.msra.mxu0 %v4283_v26  ;;  %v4318_v20 = vld [vmem:[#allocation4 + $0x3b8] sm:$0xff] }
 0x13b   : > { %2846 = vmatpush.msra.mxu1 %v4284_v59  ;;  %4094 = vmatmul.msk.f32.vlgmr.msra.gmra.mxu0 %vm533_vm0, %v5544_v53  ;;  %v4319_v26 = vld [vmem:[#allocation4 + $0x2f8] sm:$0xff]  ;;  %v4320_v59 = vld [vmem:[#allocation4 + $0x3a8] sm:$0xff] }
 0x13c   : > { %4095 = vmatmul.msk.f32.vlgmr.msra.gmra.mxu1 %vm533_vm0, %v5512_v32  ;;  %4096 = vmatmul.msk.f32.vlgmr.msra.gmra.mxu2 %vm533_vm0, %v5512_v32 }
 0x13d   : > { %4097 = vmatmul.msk.f32.vlgmr.msra.gmra.mxu3 %vm533_vm0, %v5512_v32  ;;  %2943 = vmatpush.msrb.mxu2 %v4285_v50  ;;  %v1787_v28 = vpop.f32.mrf.mxu2 }
 0x13e   : > { %2963 = vmatpush.msrb.mxu3 %v4286_v27  ;;  %v1807_v18 = vpop.f32.mrf.mxu3  ;;  %2903 = vmatpush.msrb.mxu0 %v4287_v29  ;;  %v1830_v46 = vadd.f32 %v1787_v28, %v1767_v57  ;;  %v4308_v57 = vld [vmem:[#allocation4 + $0x220] sm:$0xff]  ;;  %v4321_v27 = vld [vmem:[#allocation4 + $0x398] sm:$0xff] }
 0x13f   : > { %2923 = vmatpush.msrb.mxu1 %v4288_v40  ;;  %v1831_v24 = vadd.f32 %v1807_v18, %v1768_v13  ;;  %2944 = vmatpush.msrb.mxu2 %v4289_v30  ;;  %v4315_v13 = vld [vmem:[#allocation4 + $0x1e8] sm:$0xff]  ;;  %v4323_v28 = vld [vmem:[#allocation4 + $0x2e0] sm:$0xff]  ;;  %v4324_v18 = vld [vmem:[#allocation4 + $0x390] sm:$0xff] }
 0x140   : > { %2964 = vmatpush.msrb.mxu3 %v4290_v25  ;;  %2904 = vmatpush.msrb.mxu0 %v4291_v31  ;;  %v1827_v32 = vpop.f32.mrf.mxu0  ;;  %v4327_v31 = vld [vmem:[#allocation4 + $0x2c8] sm:$0xff] }
 0x141   : > { %2924 = vmatpush.msrb.mxu1 %v4292_v33  ;;  %v1850_v51 = vpop.f32.mrf.mxu1  ;;  %2945 = vmatpush.msrb.mxu2 %v4293_v34  ;;  %v1832_v42 = vadd.f32 %v1827_v32, %v1769_v14  ;;  %v4316_v14 = vld [vmem:[#allocation4 + $0x1f0] sm:$0xff]  ;;  %v4328_v33 = vld [vmem:[#allocation4 + $0x378] sm:$0xff]  ;;  %v4329_v32 = vld [vmem:[#allocation4 + $0x368] sm:$0xff] }
 0x142   : > { %2965 = vmatpush.msrb.mxu3 %v4294_v36  ;;  %v5562_v37 = vadd.f32 %v1850_v51, %v1830_v46  ;;  %2905 = vmatpush.msrb.mxu0 %v4295_v38  ;;  %v4325_v46 = vld [vmem:[#allocation4 + $0x380] sm:$0xff]  ;;  %v4330_v51 = vld [vmem:[#allocation4 + $0x370] sm:$0xff] }
 0x143   : > { %2925 = vmatpush.msrb.mxu1 %v4296_v39  ;;  %2946 = vmatpush.msrb.mxu2 %v4297_v41  ;;  %v4331_v34 = vld [vmem:[#allocation4 + $0x2b0] sm:$0xff]  ;;  %v4332_v36 = vld [vmem:[#allocation4 + $0x360] sm:$0xff] }
 0x144   : > { %2966 = vmatpush.msrb.mxu3 %v4298_v48  ;;  %2906 = vmatpush.msrb.mxu0 %v4299_v58 }
 0x145   : > { %2926 = vmatpush.msrb.mxu1 %v4300_v52  ;;  %4098 = vmatmul.msk.f32.vlgmr.msrb.gmra.mxu0 %vm533_vm0, %v5521_v44 }
 0x146   : > { %4099 = vmatmul.msk.f32.vlgmr.msrb.gmra.mxu1 %vm533_vm0, %v5521_v44  ;;  %4100 = vmatmul.msk.f32.vlgmr.msrb.gmra.mxu2 %vm533_vm0, %v5521_v44  ;;  %v4306_v44 = vld [vmem:[#allocation4 + $0x2d8] sm:$0xff] }
 0x147   : > { %4101 = vmatmul.msk.f32.vlgmr.msrb.gmra.mxu3 %vm533_vm0, %v5203_v55  ;;  %3026 = vmatpush.msra.mxu2 %v4301_v49  ;;  %v1870_v63 = vpop.f32.mrf.mxu2 }
 0x148   : > { %3046 = vmatpush.msra.mxu3 %v4302_v62  ;;  %v1890_v16 = vpop.f32.mrf.mxu3  ;;  %2983 = vmatpush.msra.mxu0 %v4303_v2  ;;  %v5572_v54 = vadd.f32 %v1870_v63, %v1831_v24  ;;  %v4326_v24 = vld [vmem:[#allocation4 + $0x388] sm:$0xff] }
 0x149   : > { %3003 = vmatpush.msra.mxu1 %v4304_v4  ;;  %v5574_v5 = vadd.f32 %v1890_v16, %v1832_v42  ;;  %3027 = vmatpush.msra.mxu2 %v4305_v6 }
 0x14a   : > { %3047 = vmatpush.msra.mxu3 %v4306_v44  ;;  %2984 = vmatpush.msra.mxu0 %v4307_v7  ;;  %v1913_v61 = vpop.f32.mrf.mxu0 }
 0x14b   : > { %3004 = vmatpush.msra.mxu1 %v4308_v57  ;;  %v1933_v8 = vpop.f32.mrf.mxu1  ;;  %3028 = vmatpush.msra.mxu2 %v4309_v0 }
 0x14c   : > { %3048 = vmatpush.msra.mxu3 %v4310_v47  ;;  %2985 = vmatpush.msra.mxu0 %v4311_v17 }
 0x14d   : > { %3005 = vmatpush.msra.mxu1 %v4312_v1  ;;  %3029 = vmatpush.msra.mxu2 %v4313_v9 }
 0x14e   : > { %3049 = vmatpush.msra.mxu3 %v4314_v12  ;;  %2986 = vmatpush.msra.mxu0 %v4315_v13 }
 0x14f   : > { %3006 = vmatpush.msra.mxu1 %v4316_v14  ;;  %4102 = vmatmul.msk.f32.vlgmr.msra.gmra.mxu0 %vm533_vm0, %v5203_v55 }
 0x150   : > { %4103 = vmatmul.msk.f32.vlgmr.msra.gmra.mxu1 %vm533_vm0, %v5203_v55  ;;  %4104 = vmatmul.msk.f32.vlgmr.msra.gmra.mxu2 %vm533_vm0, %v5407_v3  ;;  %v4322_v55 = vld [vmem:[#allocation4 + $0x3a0] sm:$0xff] }
 0x151   : > { %4105 = vmatmul.msk.f32.vlgmr.msra.gmra.mxu3 %vm533_vm0, %v5407_v3  ;;  %3109 = vmatpush.msrb.mxu2 %v4317_v15  ;;  %v1953_v21 = vpop.f32.mrf.mxu2 }
 0x152   : > { %3129 = vmatpush.msrb.mxu3 %v4318_v20  ;;  %v1973_v22 = vpop.f32.mrf.mxu3  ;;  %3066 = vmatpush.msrb.mxu0 %v4319_v26 }
 0x153   : > { %3089 = vmatpush.msrb.mxu1 %v4320_v59  ;;  %v1974_v50 = vadd.f32 %v1973_v22, %v1913_v61  ;;  %3110 = vmatpush.msrb.mxu2 %v4321_v27 }
 0x154   : > { %3130 = vmatpush.msrb.mxu3 %v4322_v55  ;;  %3067 = vmatpush.msrb.mxu0 %v4323_v28  ;;  %v1993_v29 = vpop.f32.mrf.mxu0 }
 0x155   : > { %3090 = vmatpush.msrb.mxu1 %v4324_v18  ;;  %v2013_v40 = vpop.f32.mrf.mxu1  ;;  %3111 = vmatpush.msrb.mxu2 %v4325_v46  ;;  %v1994_v30 = vadd.f32 %v1993_v29, %v1933_v8 }
 0x156   : > { %3131 = vmatpush.msrb.mxu3 %v4326_v24  ;;  %v2014_v25 = vadd.f32 %v2013_v40, %v1953_v21  ;;  %3068 = vmatpush.msrb.mxu0 %v4327_v31 }
 0x157   : > { %3091 = vmatpush.msrb.mxu1 %v4328_v33  ;;  %3112 = vmatpush.msrb.mxu2 %v4329_v32 }
 0x158   : > { %3132 = vmatpush.msrb.mxu3 %v4330_v51  ;;  %3069 = vmatpush.msrb.mxu0 %v4331_v34 }
 0x159   : > { %3092 = vmatpush.msrb.mxu1 %v4332_v36  ;;  %4106 = vmatmul.msk.f32.vlgmr.msrb.gmra.mxu0 %vm533_vm0, %v5407_v3 }
 0x15a   : > { %4107 = vmatmul.msk.f32.vlgmr.msrb.gmra.mxu1 %vm533_vm0, %v5544_v53  ;;  %4108 = vmatmul.msk.f32.vlgmr.msrb.gmra.mxu2 %vm533_vm0, %v5544_v53 }
 0x15b   : > { %4109 = vmatmul.msk.f32.vlgmr.msrb.gmra.mxu3 %vm533_vm0, %v5544_v53  ;;  %v2033_v42 = vpop.f32.mrf.mxu2 }
 0x15c   : > { %v2053_v38 = vpop.f32.mrf.mxu3  ;;  %v2076_v39 = vadd.f32 %v2033_v42, %v1974_v50 }
 0x15d   : > { %v2077_v41 = vadd.f32 %v2053_v38, %v1994_v30 }
 0x15e   : > { %v2073_v48 = vpop.f32.mrf.mxu0 }
 0x15f   : > { %v2096_v58 = vpop.f32.mrf.mxu1  ;;  %v2078_v3 = vadd.f32 %v2073_v48, %v2014_v25 }
 0x160   : > { %v2139_v52 = vadd.f32 %v2096_v58, %v2076_v39 }
 0x165   : > { %v2116_v49 = vpop.f32.mrf.mxu2 }
 0x166   : > { %v2136_v62 = vpop.f32.mrf.mxu3  ;;  %v2140_v63 = vadd.f32 %v2116_v49, %v2077_v41 }
 0x167   : > { %v2141_v16 = vadd.f32 %v2136_v62, %v2078_v3 }
 0x168   : > { %v2163_v53 = vpop.f32.mrf.mxu0 }
 0x169   : > { %v2183_v2 = vpop.f32.mrf.mxu1  ;;  %v5600_v4 = vadd.f32 %v2163_v53, %v2139_v52 }
 0x16a   : > { %v5602_v6 = vadd.f32 %v2183_v2, %v2140_v63 }
 0x16f   : > { %v2203_v44 = vpop.f32.mrf.mxu2 }
 0x170   : > { %v2226_v7 = vpop.f32.mrf.mxu3  ;;  %v5604_v57 = vadd.f32 %v2203_v44, %v2141_v16 }
 0x172   : > { %v2246_v61 = vpop.f32.mrf.mxu0 }
 0x173   : > { %v2266_v8 = vpop.f32.mrf.mxu1 }
 0x179   : > { %v2286_v0 = vpop.f32.mrf.mxu2 }
 0x17a   : > { %v2306_v47 = vpop.f32.mrf.mxu3  ;;  %v2287_v17 = vadd.f32 %v2286_v0, %v2226_v7 }
 0x17b   : > { %v2307_v1 = vadd.f32 %v2306_v47, %v2246_v61 }
 0x17c   : > { %v2326_v9 = vpop.f32.mrf.mxu0 }
 0x17d   : > { %v2346_v12 = vpop.f32.mrf.mxu1  ;;  %v2327_v13 = vadd.f32 %v2326_v9, %v2266_v8 }
 0x17e   : > { %v2389_v14 = vadd.f32 %v2346_v12, %v2287_v17 }
 0x183   : > { %v2366_v15 = vpop.f32.mrf.mxu2 }
 0x184   : > { %v2386_v20 = vpop.f32.mrf.mxu3  ;;  %v2390_v21 = vadd.f32 %v2366_v15, %v2307_v1 }
 0x185   : > { %v2391_v22 = vadd.f32 %v2386_v20, %v2327_v13 }
 0x186   : > { %v2409_v26 = vpop.f32.mrf.mxu0 }
 0x187   : > { %v2429_v59 = vpop.f32.mrf.mxu1  ;;  %v2452_v50 = vadd.f32 %v2409_v26, %v2389_v14 }
 0x188   : > { %v2453_v29 = vadd.f32 %v2429_v59, %v2390_v21 }
 0x18d   : > { %v2449_v27 = vpop.f32.mrf.mxu2 }
 0x18e   : > { %v2472_v55 = vpop.f32.mrf.mxu3  ;;  %v2454_v28 = vadd.f32 %v2449_v27, %v2391_v22 }
 0x18f   : > { %v5606_v18 = vadd.f32 %v2472_v55, %v2452_v50 }
 0x190   : > { %v2492_v40 = vpop.f32.mrf.mxu0 }
 0x191   : > { %v2512_v46 = vpop.f32.mrf.mxu1  ;;  %v5608_v24 = vadd.f32 %v2492_v40, %v2453_v29 }
 0x192   : > { %v5610_v30 = vadd.f32 %v2512_v46, %v2454_v28 }
 0x197   : > { %v2535_v25 = vpop.f32.mrf.mxu2 }
 0x198   : > { %v2555_v31 = vpop.f32.mrf.mxu3 }
 0x19a   : > { %v2575_v33 = vpop.f32.mrf.mxu0 }
 0x19b   : > { %v2595_v32 = vpop.f32.mrf.mxu1 }
 0x19c   : > { %v2596_v3 = vadd.f32 %v2595_v32, %v2535_v25 }
 0x1a1   : > { %v2615_v51 = vpop.f32.mrf.mxu2 }
 0x1a2   : > { %v2635_v34 = vpop.f32.mrf.mxu3  ;;  %v2616_v41 = vadd.f32 %v2615_v51, %v2555_v31 }
 0x1a3   : > { %v2636_v52 = vadd.f32 %v2635_v34, %v2575_v33 }
 0x1a4   : > { %v2655_v36 = vpop.f32.mrf.mxu0 }
 0x1a5   : > { %v2675_v42 = vpop.f32.mrf.mxu1  ;;  %v2698_v49 = vadd.f32 %v2655_v36, %v2596_v3 }
 0x1a6   : > { %v2699_v62 = vadd.f32 %v2675_v42, %v2616_v41 }
 0x1ab   : > { %v2695_v38 = vpop.f32.mrf.mxu2 }
 0x1ac   : > { %v2718_v39 = vpop.f32.mrf.mxu3  ;;  %v2700_v63 = vadd.f32 %v2695_v38, %v2636_v52 }
 0x1ad   : > { %v2761_v16 = vadd.f32 %v2718_v39, %v2698_v49 }
 0x1ae   : > { %v2738_v48 = vpop.f32.mrf.mxu0 }
 0x1af   : > { %v2758_v58 = vpop.f32.mrf.mxu1  ;;  %v2762_v53 = vadd.f32 %v2738_v48, %v2699_v62 }
 0x1b0   : > { %v2763_v8 = vadd.f32 %v2758_v58, %v2700_v63 }
 0x1b5   : > { %v2785_v2 = vpop.f32.mrf.mxu2 }
 0x1b6   : > { %v2805_v44 = vpop.f32.mrf.mxu3  ;;  %v5612_v7 = vadd.f32 %v2785_v2, %v2761_v16 }
 0x1b7   : > { %v5614_v61 = vadd.f32 %v2805_v44, %v2762_v53 }
 0x1b8   : > { %v2825_v0 = vpop.f32.mrf.mxu0 }
 0x1b9   : > { %v2848_v47 = vpop.f32.mrf.mxu1  ;;  %v5616_v17 = vadd.f32 %v2825_v0, %v2763_v8 }
 0x1bf   : > { %v2868_v1 = vpop.f32.mrf.mxu2 }
 0x1c0   : > { %v2888_v9 = vpop.f32.mrf.mxu3 }
 0x1c2   : > { %v2908_v13 = vpop.f32.mrf.mxu0 }
 0x1c3   : > { %v2928_v12 = vpop.f32.mrf.mxu1  ;;  %v2909_v22 = vadd.f32 %v2908_v13, %v2848_v47 }
 0x1c4   : > { %v2929_v40 = vadd.f32 %v2928_v12, %v2868_v1 }
 0x1c9   : > { %v2948_v14 = vpop.f32.mrf.mxu2 }
 0x1ca   : > { %v2968_v15 = vpop.f32.mrf.mxu3  ;;  %v2949_v55 = vadd.f32 %v2948_v14, %v2888_v9 }
 0x1cb   : > { %v3011_v26 = vadd.f32 %v2968_v15, %v2909_v22 }
 0x1cc   : > { %v2988_v21 = vpop.f32.mrf.mxu0 }
 0x1cd   : > { %v3008_v20 = vpop.f32.mrf.mxu1  ;;  %v3012_v25 = vadd.f32 %v2988_v21, %v2929_v40 }
 0x1ce   : > { %v3013_v31 = vadd.f32 %v3008_v20, %v2949_v55 }
 0x1d3   : > { %v3031_v59 = vpop.f32.mrf.mxu2 }
 0x1d4   : > { %v3051_v50 = vpop.f32.mrf.mxu3  ;;  %v3074_v27 = vadd.f32 %v3031_v59, %v3011_v26 }
 0x1d5   : > { %v3075_v33 = vadd.f32 %v3051_v50, %v3012_v25 }
 0x1d6   : > { %v3071_v46 = vpop.f32.mrf.mxu0 }
 0x1d7   : > { %v3094_v28 = vpop.f32.mrf.mxu1  ;;  %v3076_v32 = vadd.f32 %v3071_v46, %v3013_v31 }
 0x1d8   : > { %v5618_v29 = vadd.f32 %v3094_v28, %v3074_v27 }
 0x1db   : > { %3145 = sbr.rel (%p5596_p12) target bundleno = 482 (0x1e2), region = 76 }
 0x1dd   : > { %v3114_v51 = vpop.f32.mrf.mxu2 }
 0x1de   : > { %v3134_v34 = vpop.f32.mrf.mxu3  ;;  %v5620_v36 = vadd.f32 %v3114_v51, %v3075_v33 }
 0x1df   : > { %v5622_v42 = vadd.f32 %v3134_v34, %v3076_v32 }
 0x1e0   : > { %vm3146_vm1 = vcmask 123904   ;;  %v4513_v38 = vmov 0.0  }
 0x1e1   : > { %3147 = vst.msk [vmem:[#allocation2] sm:$0x3] %vm3146_vm1, %v4513_v38 }
 0x1e2 PF: > { %p4110_p13 = scmp.ne.s32.totalorder %s4493_s14, 0 }
 0x1e4   : > { %3150 = sbr.rel (%p4110_p13) target bundleno = 673 (0x2a1), region = 80 }
 0x1e9   : > { %v5630_v39 = vld [vmem:[%s5946_s5 + $0x118] sm:$0xff]  ;;  %v5635_v41 = vld [vmem:[%s5946_s5 + $0x110] sm:$0xff]  ;;  %v3153_v58 = vmul.f32 %v5372_v19, %v5372_v19  ;;  %v3156_v3 = vadd.f32 %v5459_v45, %v5372_v19  ;;  %v3159_v52 = vmul.f32 %v5459_v45, %v5459_v45  ;;  %v3168_v49 = vmul.f32 %v5533_v23, %v5533_v23  ;;  %v5664_v44 = vld [vmem:[%s5946_s5 + $0x108] sm:$0xff] }
 0x1ea   : > { %v3277_v48 = vld [vmem:[%s5946_s5 + $0x78] sm:$0xff]  ;;  %3353 = vmatpush.msra.mxu2 %v5630_v39  ;;  %v3276_v63 = vld [vmem:[%s5946_s5 + $0x70] sm:$0xff]  ;;  %v3177_v16 = vmul.f32 %v5574_v5, %v5574_v5  ;;  %v3186_v53 = vmul.f32 %v5604_v57, %v5604_v57  ;;  %v3195_v2 = vmul.f32 %v5610_v30, %v5610_v30  ;;  %v3275_v0 = vld [vmem:[%s5946_s5 + $0x68] sm:$0xff]  ;;  %v3204_v9 = vmul.f32 %v5616_v17, %v5616_v17 }
 0x1eb   : > { %3301 = vmatpush.msra.mxu0 %v3277_v48  ;;  %v3293_v62 = vld [vmem:[%s5946_s5 + $0xf8] sm:$0xff]  ;;  %v3292_v8 = vld [vmem:[%s5946_s5 + $0xf0] sm:$0xff]  ;;  %3404 = vmatpush.msra.mxu3 %v3277_v48  ;;  %v3162_v47 = vadd.f32 %v3159_v52, %v3153_v58  ;;  %v3165_v1 = vadd.f32 %v3156_v3, %v5533_v23  ;;  %v3291_v12 = vld [vmem:[%s5946_s5 + $0xe8] sm:$0xff]  ;;  %v5681_v13 = vmul.f32 %v5622_v42, %v5622_v42  ;;  %vm3232_vm2 = vcmask 260096  }
 0x1ec   : > { %3321 = vmatpush.msra.mxu1 %v3293_v62  ;;  %3354 = vmatpush.msra.mxu2 %v5635_v41  ;;  %v3154_v14 = vadd.f32 %v5449_v35, %v5349_v10  ;;  %v3155_v15 = vadd.f32 %v5457_v43, %v5351_v11  ;;  %v5690_v20 = vld [vmem:[%s5946_s5 + $0x100] sm:$0xff]  ;;  %v3151_v59 = vmul.f32 %v5349_v10, %v5349_v10  ;;  %v3273_v40 = vld [vmem:[%s5946_s5 + $0x58] sm:$0xff]  ;;  %v3272_v38 = vld [vmem:[%s5946_s5 + $0x50] sm:$0xff]  ;;  %vm3217_vm3 = vcmask 1046528  }
 0x1ed   : > { %3302 = vmatpush.msra.mxu0 %v3276_v63  ;;  %v3274_v21 = vld [vmem:[%s5946_s5 + $0x60] sm:$0xff]  ;;  %3405 = vmatpush.msra.mxu3 %v3276_v63  ;;  %v3171_v22 = vadd.f32 %v3168_v49, %v3162_v47  ;;  %v3174_v26 = vadd.f32 %v3165_v1, %v5574_v5  ;;  %v3157_v28 = vmul.f32 %v5449_v35, %v5449_v35  ;;  %v3289_v33 = vld [vmem:[%s5946_s5 + $0xd8] sm:$0xff]  ;;  %v3288_v52 = vld [vmem:[%s5946_s5 + $0xd0] sm:$0xff]  ;;  %vm3362_vm4 = vcmask 122880  }
 0x1ee   : > { %3322 = vmatpush.msra.mxu1 %v3292_v8  ;;  %3355 = vmatpush.msra.mxu2 %v5664_v44  ;;  %v3290_v50 = vld [vmem:[%s5946_s5 + $0xe0] sm:$0xff]  ;;  %v3163_v27 = vadd.f32 %v3154_v14, %v5529_v56  ;;  %v3164_v55 = vadd.f32 %v3155_v15, %v5531_v60  ;;  %v3166_v31 = vmul.f32 %v5529_v56, %v5529_v56  ;;  %v3287_v1 = vld [vmem:[%s5946_s5 + $0xc8] sm:$0xff] }
 0x1ef   : > { %3303 = vmatpush.msra.mxu0 %v3275_v0  ;;  %3406 = vmatpush.msra.mxu3 %v3275_v0  ;;  %v3180_v46 = vadd.f32 %v3177_v16, %v3171_v22  ;;  %v3183_v25 = vadd.f32 %v3174_v26, %v5604_v57  ;;  %v3160_v34 = vadd.f32 %v3157_v28, %v3151_v59  ;;  %v3271_v16 = vld [vmem:[%s5946_s5 + $0x48] sm:$0xff]  ;;  %v3286_v59 = vld [vmem:[%s5946_s5 + $0xc0] sm:$0xff] }
 0x1f0   : > { %3323 = vmatpush.msra.mxu1 %v3291_v12  ;;  %3356 = vmatpush.msra.mxu2 %v5690_v20  ;;  %v3172_v32 = vadd.f32 %v3163_v27, %v5562_v37  ;;  %v3173_v51 = vadd.f32 %v3164_v55, %v5572_v54  ;;  %v3175_v3 = vmul.f32 %v5562_v37, %v5562_v37 }
 0x1f1   : > { %3304 = vmatpush.msra.mxu0 %v3274_v21  ;;  %v3189_v48 = vadd.f32 %v3186_v53, %v3180_v46  ;;  %v3192_v58 = vadd.f32 %v3183_v25, %v5610_v30  ;;  %3407 = vmatpush.msra.mxu3 %v3274_v21  ;;  %v3169_v63 = vadd.f32 %v3166_v31, %v3160_v34  ;;  %v3285_v25 = vld [vmem:[%s5946_s5 + $0xb8] sm:$0xff] }
 0x1f2   : > { %3424 = vmatpush.msrb.mxu2 %v3293_v62  ;;  %3324 = vmatpush.msra.mxu1 %v3290_v50  ;;  %v3181_v49 = vadd.f32 %v3172_v32, %v5600_v4  ;;  %v3182_v62 = vadd.f32 %v3173_v51, %v5602_v6  ;;  %v3184_v47 = vmul.f32 %v5600_v4, %v5600_v4 }
 0x1f3   : > { %3305 = vmatpush.msra.mxu0 %v3273_v40  ;;  %v3198_v53 = vadd.f32 %v3195_v2, %v3189_v48  ;;  %v3201_v0 = vadd.f32 %v3192_v58, %v5616_v17  ;;  %3408 = vmatpush.msra.mxu3 %v3273_v40  ;;  %v3178_v15 = vadd.f32 %v3175_v3, %v3169_v63  ;;  %v3270_v2 = vld [vmem:[%s5946_s5 + $0x40] sm:$0xff] }
 0x1f4   : > { %3425 = vmatpush.msrb.mxu2 %v3292_v8  ;;  %3325 = vmatpush.msra.mxu1 %v3289_v33  ;;  %v3190_v8 = vadd.f32 %v3181_v49, %v5606_v18  ;;  %v3191_v14 = vadd.f32 %v3182_v62, %v5608_v24  ;;  %v3193_v26 = vmul.f32 %v5606_v18, %v5606_v18 }
 0x1f5   : > { %3306 = vmatpush.msra.mxu0 %v3272_v38  ;;  %v3207_v21 = vadd.f32 %v3204_v9, %v3198_v53  ;;  %v3210_v22 = vadd.f32 %v3201_v0, %v5622_v42  ;;  %3409 = vmatpush.msra.mxu3 %v3272_v38  ;;  %v3187_v55 = vadd.f32 %v3184_v47, %v3178_v15  ;;  %v3269_v9 = vld [vmem:[%s5946_s5 + $0x38] sm:$0xff] }
 0x1f6   : > { %3426 = vmatpush.msrb.mxu2 %v3291_v12  ;;  %3326 = vmatpush.msra.mxu1 %v3288_v52  ;;  %v3199_v27 = vadd.f32 %v3190_v8, %v5612_v7  ;;  %v3200_v12 = vadd.f32 %v3191_v14, %v5614_v61  ;;  %v3202_v46 = vmul.f32 %v5612_v7, %v5612_v7  ;;  %v3283_v14 = vld [vmem:[%s5946_s5 + $0xa8] sm:$0xff] }
 0x1f7   : > { %3307 = vmatpush.msra.mxu0 %v3271_v16  ;;  %v3216_v28 = vadd.f32 %v5681_v13, %v3207_v21  ;;  %v3233_v40 = vsel %vm3232_vm2, %v3210_v22, 0.0  ;;  %3410 = vmatpush.msra.mxu3 %v3271_v16  ;;  %v3196_v51 = vadd.f32 %v3193_v26, %v3187_v55  ;;  %v3268_v13 = vld [vmem:[%s5946_s5 + $0x30] sm:$0xff]  ;;  %v3211_v38 = vmul.f32 %v5618_v29, %v5618_v29  ;;  %v3267_v16 = vld [vmem:[%s5946_s5 + $0x28] sm:$0xff]  ;;  %v3266_v21 = vld [vmem:[%s5946_s5 + $0x20] sm:$0xff] }
 0x1f8   : > { %3427 = vmatpush.msrb.mxu2 %v3290_v50  ;;  %3327 = vmatpush.msra.mxu1 %v3287_v1  ;;  %v3234_v50 = vrot.slane %v3233_v40, 4  ;;  %v3208_v31 = vadd.f32 %v3199_v27, %v5618_v29  ;;  %v3209_v32 = vadd.f32 %v3200_v12, %v5620_v36  ;;  %v3152_v48 = vmul.f32 %v5351_v11, %v5351_v11  ;;  %v3282_v12 = vld [vmem:[%s5946_s5 + $0xa0] sm:$0xff] }
 0x1f9   : > { %3308 = vmatpush.msra.mxu0 %v3270_v2  ;;  %v3254_v34 = vsel %vm3232_vm2, %v3216_v28, 0.0  ;;  %v3158_v58 = vmul.f32 %v5457_v43, %v5457_v43  ;;  %3411 = vmatpush.msra.mxu3 %v3270_v2  ;;  %v3167_v63 = vmul.f32 %v5531_v60, %v5531_v60  ;;  %v3205_v47 = vadd.f32 %v3202_v46, %v3196_v51 }
 0x1fa   : > { %3428 = vmatpush.msrb.mxu2 %v3289_v33  ;;  %3328 = vmatpush.msra.mxu1 %v3286_v59  ;;  %v3284_v33 = vld [vmem:[%s5946_s5 + $0xb0] sm:$0xff]  ;;  %v3235_v3 = vadd.f32 %v3234_v50, %v3233_v40  ;;  %v3218_v49 = vsel %vm3217_vm3, %v3208_v31, 0.0  ;;  %v3225_v62 = vsel %vm3217_vm3, %v3209_v32, 0.0  ;;  %v3255_v2 = vrot.slane %v3254_v34, 4  ;;  %v3281_v32 = vld [vmem:[%s5946_s5 + $0x98] sm:$0xff] }
 0x1fb   : > { %3309 = vmatpush.msra.mxu0 %v3269_v9  ;;  %v3219_v53 = vrot.slane %v3218_v49, 4  ;;  %v3226_v0 = vrot.slane %v3225_v62, 4  ;;  %v3161_v8 = vadd.f32 %v3158_v58, %v3152_v48  ;;  %3412 = vmatpush.msra.mxu3 %v3269_v9  ;;  %v3214_v27 = vadd.f32 %v3211_v38, %v3205_v47  ;;  %v3264_v48 = vld [vmem:[%s5946_s5 + $0x10] sm:$0xff] }
 0x1fc   : > { %3429 = vmatpush.msrb.mxu2 %v3288_v52  ;;  %3329 = vmatpush.msra.mxu1 %v3285_v25  ;;  %v3236_v15 = vrot.slane %v3235_v3, 2  ;;  %v3176_v52 = vmul.f32 %v5572_v54, %v5572_v54  ;;  %v3185_v28 = vmul.f32 %v5602_v6, %v5602_v6  ;;  %v3194_v31 = vmul.f32 %v5608_v24, %v5608_v24 }
 0x1fd   : > { %3310 = vmatpush.msra.mxu0 %v3268_v13  ;;  %v3220_v22 = vadd.f32 %v3219_v53, %v3218_v49  ;;  %v3227_v26 = vadd.f32 %v3226_v0, %v3225_v62  ;;  %3413 = vmatpush.msra.mxu3 %v3268_v13  ;;  %v3170_v9 = vadd.f32 %v3167_v63, %v3161_v8  ;;  %v3240_v50 = vsel %vm3217_vm3, %v3214_v27, 0.0  ;;  %v3280_v62 = vld [vmem:[%s5946_s5 + $0x90] sm:$0xff]  ;;  %v3279_v8 = vld [vmem:[%s5946_s5 + $0x88] sm:$0xff] }
 0x1fe   : > { %3430 = vmatpush.msrb.mxu2 %v3287_v1  ;;  %3330 = vmatpush.msra.mxu1 %v3284_v33  ;;  %v3237_v55 = vadd.f32 %v3236_v15, %v3235_v3  ;;  %v3265_v1 = vld [vmem:[%s5946_s5 + $0x18] sm:$0xff]  ;;  %v3256_v38 = vadd.f32 %v3255_v2, %v3254_v34  ;;  %v3203_v49 = vmul.f32 %v5614_v61, %v5614_v61 }
 0x1ff   : > { %3311 = vmatpush.msra.mxu0 %v3267_v16  ;;  %v3221_v40 = vrot.slane %v3220_v22, 2  ;;  %v3228_v46 = vrot.slane %v3227_v26, 2  ;;  %3414 = vmatpush.msra.mxu3 %v3267_v16  ;;  %v3179_v13 = vadd.f32 %v3176_v52, %v3170_v9  ;;  %v3262_v52 = vld [vmem:[%s5946_s5] sm:$0xff] }
 0x200   : > { %3431 = vmatpush.msrb.mxu2 %v3286_v59  ;;  %3331 = vmatpush.msra.mxu1 %v3283_v14  ;;  %v3238_v51 = vrot.slane %v3237_v55, 1  ;;  %v3241_v59 = vrot.slane %v3240_v50, 4  ;;  %v3257_v47 = vrot.slane %v3256_v38, 2 }
 0x201   : > { %3312 = vmatpush.msra.mxu0 %v3266_v21  ;;  %v3222_v58 = vadd.f32 %v3221_v40, %v3220_v22  ;;  %v3229_v3 = vadd.f32 %v3228_v46, %v3227_v26  ;;  %3415 = vmatpush.msra.mxu3 %v3266_v21  ;;  %v3188_v34 = vadd.f32 %v3185_v28, %v3179_v13  ;;  %v3278_v22 = vld [vmem:[%s5946_s5 + $0x80] sm:$0xff] }
 0x202   : > { %3432 = vmatpush.msrb.mxu2 %v3285_v25  ;;  %3332 = vmatpush.msra.mxu1 %v3282_v12  ;;  %v3239_v63 = vadd.f32 %v3238_v51, %v3237_v55  ;;  %v3242_v16 = vadd.f32 %v3241_v59, %v3240_v50  ;;  %v3263_v25 = vld [vmem:[%s5946_s5 + $0x8] sm:$0xff]  ;;  %v3258_v9 = vadd.f32 %v3257_v47, %v3256_v38 }
 0x203   : > { %3313 = vmatpush.msra.mxu0 %v3265_v1  ;;  %v3223_v53 = vrot.slane %v3222_v58, 1  ;;  %v3230_v0 = vrot.slane %v3229_v3, 1  ;;  %v3197_v2 = vadd.f32 %v3194_v31, %v3188_v34  ;;  %3416 = vmatpush.msra.mxu3 %v3265_v1  ;;  %v3364_v34 = vld [vmem:[#allocation2 + $0x1] sm:$0x1] }
 0x204   : > { %3433 = vmatpush.msrb.mxu2 %v3284_v33  ;;  %3333 = vmatpush.msra.mxu1 %v3281_v32  ;;  %v3243_v15 = vrot.slane %v3242_v16, 2  ;;  %v3212_v33 = vmul.f32 %v5620_v36, %v5620_v36  ;;  %v3259_v50 = vrot.slane %v3258_v9, 1 }
 0x205   : > { %3314 = vmatpush.msra.mxu0 %v3264_v48  ;;  %4111 = vmatmul.msk.f32.vlgmr.msra.gmra.mxu2 %vm533_vm0, %v3239_v63  ;;  %v3224_v21 = vadd.f32 %v3223_v53, %v3222_v58  ;;  %v3231_v26 = vadd.f32 %v3230_v0, %v3229_v3  ;;  %v3206_v55 = vadd.f32 %v3203_v49, %v3197_v2  ;;  %v3261_v3 = vld [vmem:[#allocation2] sm:$0x1] }
 0x206   : > { %3434 = vmatpush.msrb.mxu2 %v3283_v14  ;;  %3334 = vmatpush.msra.mxu1 %v3280_v62  ;;  %v3244_v27 = vadd.f32 %v3243_v15, %v3242_v16 }
 0x207   : > { %3315 = vmatpush.msra.mxu0 %v3263_v25  ;;  %3417 = vmatpush.msra.mxu3 %v3264_v48  ;;  %v3215_v28 = vadd.f32 %v3212_v33, %v3206_v55 }
 0x208   : > { %3435 = vmatpush.msrb.mxu2 %v3282_v12  ;;  %3335 = vmatpush.msra.mxu1 %v3279_v8  ;;  %v3245_v14 = vrot.slane %v3244_v27, 1 }
 0x209   : > { %3316 = vmatpush.msra.mxu0 %v3262_v52  ;;  %v3247_v1 = vsel %vm3217_vm3, %v3215_v28, 0.0  ;;  %3418 = vmatpush.msra.mxu3 %v3263_v25 }
 0x20a   : > { %3436 = vmatpush.msrb.mxu2 %v3281_v32  ;;  %3336 = vmatpush.msra.mxu1 %v3278_v22  ;;  %v3246_v40 = vadd.f32 %v3245_v14, %v3244_v27  ;;  %v3248_v46 = vrot.slane %v3247_v1, 4  ;;  %v3260_v32 = vadd.f32 %v3259_v50, %v3258_v9 }
 0x20b   : > { %3317 = vmatmul.f32.vlgmr.msra.gmra.mxu0 %v3224_v21  ;;  %3337 = vmatmul.f32.vlgmr.msra.gmra.mxu1 %v3231_v26 }
 0x20c   : > { %3437 = vmatpush.msrb.mxu2 %v3280_v62  ;;  %3456 = vmatpush.msrb.mxu0 %v5630_v39  ;;  %v3249_v12 = vadd.f32 %v3248_v46, %v3247_v1 }
 0x20d   : > { %3419 = vmatpush.msra.mxu3 %v3262_v52 }
 0x20e   : > { %3438 = vmatpush.msrb.mxu2 %v3279_v8  ;;  %3420 = vmatmul.f32.vlgmr.msra.gmra.mxu3 %v3246_v40  ;;  %v3250_v31 = vrot.slane %v3249_v12, 2 }
 0x20f   : > { %3457 = vmatpush.msrb.mxu0 %v5635_v41 }
 0x210   : > { %3439 = vmatpush.msrb.mxu2 %v3278_v22  ;;  %v3251_v51 = vadd.f32 %v3250_v31, %v3249_v12 }
 0x211   : > { %3458 = vmatpush.msrb.mxu0 %v5664_v44 }
 0x212   : > { %v3252_v59 = vrot.slane %v3251_v51, 1 }
 0x213   : > { %3459 = vmatpush.msrb.mxu0 %v5690_v20 }
 0x214   : > { %4112 = vmatmul.msk.f32.vlgmr.msrb.gmra.mxu0 %vm533_vm0, %v3260_v32  ;;  %v3253_v13 = vadd.f32 %v3252_v59, %v3251_v51 }
 0x216   : > { %3440 = vmatmul.f32.vlgmr.msrb.gmra.mxu2 %v3253_v13 }
 0x288   : > { %v3318_v39 = vpop.f32.mrf.mxu0  ;;  %v3338_v38 = vpop.f32.mrf.mxu1 }
 0x289   : > { %v3339_v48 = vadd.f32 %v3338_v38, %v3318_v39  ;;  %v3358_v58 = vpop.f32.mrf.mxu2 }
 0x28b   : > { %v3359_v49 = vadd.f32 %v3358_v58, %v3339_v48 }
 0x28d   : > { %v3361_v41 = vadd.f32 %v3359_v49, %v3261_v3 }
 0x28f   : > { %3363 = vst.msk [vmem:[#allocation2] sm:$0x1] %vm3362_vm4, %v3361_v41 }
 0x291   : > { %v3421_v62 = vpop.f32.mrf.mxu3  ;;  %v3461_v44 = vpop.f32.mrf.mxu0 }
 0x299   : > { %v3441_v63 = vpop.f32.mrf.mxu2 }
 0x29a   : > { %v3442_v16 = vadd.f32 %v3441_v63, %v3421_v62 }
 0x29c   : > { %v3462_v20 = vadd.f32 %v3461_v44, %v3442_v16 }
 0x29e   : > { %v3464_v25 = vadd.f32 %v3462_v20, %v3364_v34 }
 0x2a0   : > { %3465 = vst.msk [vmem:[#allocation2 + $0x1] sm:$0x1] %vm3362_vm4, %v3464_v25 }
 0x2a1 PF: > { %p3466_p0 = scmp.eq.s32.totalorder %s4493_s14, 1 }
 0x2a3   : > { %p3467_p1 = pnand %p3466_p0, %p3141_p11 }
 0x2a5   : > { %3470 = sbr.rel (%p3467_p1) target bundleno = 852 (0x354), region = 84 }
 0x2aa   : > { %v3496_v53 = vld [vmem:[#allocation6 + $0x18] sm:$0xff]  ;;  %v3497_v0 = vld [vmem:[#allocation6 + $0x20] sm:$0xff]  ;;  %v3498_v47 = vld [vmem:[#allocation6 + $0x28] sm:$0xff]  ;;  %vm3499_vm8 = vcmask 130048   ;;  %v3573_v38 = vlaneseq  ;;  %vm3568_vm9 = vcmask 1040384   ;;  %vm3570_vm10 = vcmask 1041408  }
 0x2ab   : > { %3517 = vmatpush.msra.mxu0 %v3496_v53  ;;  %3537 = vmatpush.msra.mxu1 %v3497_v0  ;;  %v3493_v8 = vld [vmem:[#allocation6] sm:$0xff]  ;;  %v3494_v15 = vld [vmem:[#allocation6 + $0x8] sm:$0xff]  ;;  %v3495_v2 = vld [vmem:[#allocation6 + $0x10] sm:$0xff] }
 0x2ac   : > { %3557 = vmatpush.msra.mxu2 %v3498_v47  ;;  %v3471_v33 = vld [vmem:[#allocation2] sm:$0x1]  ;;  %v3473_v52 = vld [vmem:[#allocation2 + $0x1] sm:$0x1]  ;;  %3601 = vmatpush.msra.mxu3 %v3496_v53  ;;  %v3477_v46 = vld [vmem:[#allocation8] sm:$0x1] }
 0x2ad   : > { %3518 = vmatpush.msra.mxu0 %v3493_v8  ;;  %3538 = vmatpush.msra.mxu1 %v3494_v15  ;;  %v3472_v21 = vmul.f32 0.0006377551, %v3471_v33  ;;  %v3474_v22 = vmul.f32 0.0006377551, %v3473_v52  ;;  %v3490_v32 = vld [vmem:[#allocation9] sm:$0x1] }
 0x2ae   : > { %3558 = vmatpush.msra.mxu2 %v3495_v2  ;;  %3602 = vmatpush.msra.mxu3 %v3493_v8  ;;  %vm3575_vm11 = vcmp.lt.s32.totalorder %v3573_v38, 288 }
 0x2af   : > { %3621 = vmatpush.msrb.mxu0 %v3497_v0  ;;  %v3475_v26 = vmul.f32 %v3472_v21, %v3472_v21  ;;  %3641 = vmatpush.msrb.mxu1 %v3498_v47 }
 0x2b1   : > { %3622 = vmatpush.msrb.mxu0 %v3494_v15  ;;  %v3476_v27 = vsub.f32 %v3474_v22, %v3475_v26  ;;  %3642 = vmatpush.msrb.mxu1 %v3495_v2 }
 0x2b3   : > { %v3478_v55 = vadd.f32 1e-05, %v3476_v27 }
 0x2b5   : > { %4333 = vrsqrt.f32 %v3478_v55  ;;  %vm3485_vm5 = vweird.f32 %v3478_v55 }
 0x2bb   : > { %v4334_v9 = vpop.eup %4333 }
 0x2bc   : > { %v3480_v14 = vmul.f32 %v4334_v9, %v3478_v55  ;;  %vm3486_vm6 = vweird.f32 %v4334_v9 }
 0x2bd   : > { %vm3487_vm7 = vmor %vm3485_vm5, %vm3486_vm6 }
 0x2be   : > { %v3481_v28 = vmul.f32 %v4334_v9, %v3480_v14 }
 0x2c0   : > { %v3482_v40 = vmul.f32 0.5, %v3481_v28 }
 0x2c2   : > { %v3483_v1 = vsub.f32 1.5, %v3482_v40 }
 0x2c4   : > { %v3484_v50 = vmul.f32 %v4334_v9, %v3483_v1 }
 0x2c6   : > { %v3488_v12 = vsel %vm3487_vm7, %v4334_v9, %v3484_v50 }
 0x2c7   : > { %v3489_v31 = vmul.f32 %v3488_v12, %v3477_v46 }
 0x2c9   : > { %4113 = vmatmul.msk.f32.vlgmr.msra.gmra.mxu0 %vm3499_vm8, %v3489_v31  ;;  %4114 = vmatmul.msk.f32.vlgmr.msra.gmra.mxu1 %vm3499_vm8, %v3489_v31  ;;  %v3491_v51 = vmul.f32 %v3489_v31, %v3472_v21 }
 0x2ca   : > { %4115 = vmatmul.msk.f32.vlgmr.msra.gmra.mxu2 %vm3499_vm8, %v3489_v31 }
 0x2cb   : > { %v3492_v59 = vsub.f32 %v3490_v32, %v3491_v51 }
 0x2cd   : > { %4116 = vmatmul.msk.f32.vlgmr.msra.gmra.mxu3 %vm3499_vm8, %v3492_v59 }
 0x2d1   : > { %4117 = vmatmul.msk.f32.vlgmr.msrb.gmra.mxu0 %vm3499_vm8, %v3492_v59  ;;  %4118 = vmatmul.msk.f32.vlgmr.msrb.gmra.mxu1 %vm3499_vm8, %v3492_v59 }
 0x346   : > { %v3520_v13 = vpop.f32.mrf.mxu0  ;;  %v3540_v39 = vpop.f32.mrf.mxu1 }
 0x347   : > { %v3566_v48 = vrot.slane %v3540_v39, 7 }
 0x349   : > { %v3569_v44 = vsel %vm3568_vm9, %v3520_v13, %v3566_v48 }
 0x34d   : > { %v3560_v58 = vpop.f32.mrf.mxu2 }
 0x34e   : > { %v3567_v3 = vrot.slane %v3560_v58, 6  ;;  %v3624_v49 = vpop.f32.mrf.mxu0  ;;  %v3644_v41 = vpop.f32.mrf.mxu1 }
 0x34f   : > { %v3650_v62 = vrot.slane %v3624_v49, 7  ;;  %v3651_v63 = vrot.slane %v3644_v41, 6 }
 0x350   : > { %v3571_v16 = vsel %vm3570_vm10, %v3569_v44, %v3567_v3  ;;  %v3604_v34 = vpop.f32.mrf.mxu3 }
 0x351   : > { %3577 = vst.msk [vmem:[#allocation3] ss:$2 sm:$0x7] %vm3575_vm11, %v3571_v16  ;;  %v3652_v20 = vsel %vm3568_vm9, %v3604_v34, %v3650_v62 }
 0x352   : > { %v3653_v25 = vsel %vm3570_vm10, %v3652_v20, %v3651_v63 }
 0x353   : > { %3656 = vst.msk [vmem:[#allocation3 + $0x1] ss:$2 sm:$0x7] %vm3575_vm11, %v3653_v25 }
 0x354 PF: > { %p4119_p2 = scmp.ne.s32.totalorder %s4493_s14, 1 }
 0x356   : > { %3659 = sbr.rel (%p4119_p2) target bundleno = 891 (0x37b), region = 88 }
 0x35b   : > { %v3713_v53 = vlaneseq  ;;  %v3660_v0 = vld [vmem:[#allocation3] ss:$2 sm:$0x7]  ;;  %v3662_v47 = vld [vmem:[#allocation3 + $0x1] ss:$2 sm:$0x7] }
 0x35c   : > { %v3664_v8 = vperm.slane %v3660_v0, 0  ;;  %v5838_v15 = vperm.slane %v3660_v0, 1  ;;  %v5840_v2 = vperm.slane %v3660_v0, 2  ;;  %v3674_v52 = vperm.slane %v3662_v47, 0 }
 0x35d   : > { %vm5842_vm12 = vcmp.lt.s32.totalorder %v3713_v53, 288  ;;  %v5846_v21 = vperm.slane %v3662_v47, 1  ;;  %v5848_v22 = vperm.slane %v3662_v47, 2  ;;  %v4514_v26 = vmov 0.0  }
 0x35e   : > { %3717 = vst.msk [vmem:[%s4670_s28] ss:$8 sm:$0x7] %vm5842_vm12, %v4514_v26  ;;  %v3670_v27 = vmul.f32 %v3664_v8, %v5349_v10  ;;  %v3683_v55 = vmul.f32 %v3664_v8, %v5449_v35  ;;  %v3689_v9 = vmul.f32 %v3664_v8, %v5529_v56  ;;  %v3695_v14 = vmul.f32 %v3664_v8, %v5562_v37 }
 0x35f   : > { %4120 = vst.msk [vmem:[%s4670_s28 + $0x18] ss:$8 sm:$0x7] %vm5842_vm12, %v4514_v26  ;;  %v3671_v28 = vmul.f32 %v5838_v15, %v5351_v11  ;;  %v3684_v40 = vmul.f32 %v5838_v15, %v5457_v43  ;;  %v3690_v1 = vmul.f32 %v5838_v15, %v5531_v60  ;;  %v3696_v10 = vmul.f32 %v5838_v15, %v5572_v54 }
 0x360   : > { %3771 = vst.msk [vmem:[%s4675_s24] ss:$8 sm:$0x7] %vm5842_vm12, %v4514_v26  ;;  %v3680_v35 = vadd.f32 %v3674_v52, %v3670_v27  ;;  %v3686_v56 = vadd.f32 %v3683_v55, %v3674_v52  ;;  %v3692_v37 = vadd.f32 %v3689_v9, %v3674_v52  ;;  %v3698_v46 = vadd.f32 %v3695_v14, %v3674_v52 }
 0x361   : > { %4121 = vst.msk [vmem:[%s4675_s24 + $0x18] ss:$8 sm:$0x7] %vm5842_vm12, %v4514_v26  ;;  %v3681_v11 = vadd.f32 %v5846_v21, %v3671_v28  ;;  %v3687_v43 = vadd.f32 %v3684_v40, %v5846_v21  ;;  %v3693_v50 = vadd.f32 %v3690_v1, %v5846_v21  ;;  %v3699_v60 = vadd.f32 %v3696_v10, %v5846_v21 }
 0x362   : > { %v3701_v12 = vmax.f32 %v3680_v35, %v3686_v56  ;;  %v3704_v54 = vmax.f32 %v3692_v37, %v3698_v46  ;;  %v3672_v31 = vmul.f32 %v5840_v2, %v5372_v19  ;;  %v3685_v32 = vmul.f32 %v5840_v2, %v5459_v45 }
 0x363   : > { %v3702_v51 = vmax.f32 %v3681_v11, %v3687_v43  ;;  %v3705_v59 = vmax.f32 %v3693_v50, %v3699_v60  ;;  %v3691_v13 = vmul.f32 %v5840_v2, %v5533_v23  ;;  %v3697_v39 = vmul.f32 %v5840_v2, %v5574_v5 }
 0x364   : > { %v3707_v38 = vmax.f32 %v3701_v12, %v3704_v54  ;;  %v3682_v48 = vadd.f32 %v5848_v22, %v3672_v31  ;;  %v3688_v58 = vadd.f32 %v3685_v32, %v5848_v22  ;;  %vm3733_vm13 = vcmask 261121  }
 0x365   : > { %v3735_v3 = vmul.f32 %v3664_v8, %v5600_v4  ;;  %v3708_v19 = vmax.f32 %v3702_v51, %v3705_v59  ;;  %v3694_v49 = vadd.f32 %v3691_v13, %v5848_v22  ;;  %v3700_v45 = vadd.f32 %v3697_v39, %v5848_v22 }
 0x366   : > { %v3741_v41 = vmul.f32 %v3664_v8, %v5606_v18  ;;  %v3710_v62 = vmax.f32 %v3707_v38, 0.0  ;;  %v3703_v23 = vmax.f32 %v3682_v48, %v3688_v58  ;;  %v3747_v5 = vmul.f32 %v3664_v8, %v5612_v7 }
 0x367   : > { %v3738_v63 = vadd.f32 %v3735_v3, %v3674_v52  ;;  %v3711_v44 = vmax.f32 %v3708_v19, 0.0  ;;  %v3706_v16 = vmax.f32 %v3694_v49, %v3700_v45  ;;  %v3753_v20 = vmul.f32 %v3664_v8, %v5618_v29 }
 0x368   : > { %v3744_v34 = vadd.f32 %v3741_v41, %v3674_v52  ;;  %v3725_v4 = vrot.slane %v3710_v62, 7  ;;  %v3750_v25 = vadd.f32 %v3747_v5, %v3674_v52  ;;  %v3736_v53 = vmul.f32 %v5838_v15, %v5602_v6 }
 0x369   : > { %v3742_v18 = vmul.f32 %v5838_v15, %v5608_v24  ;;  %v3726_v0 = vrot.slane %v3711_v44, 7  ;;  %v3709_v47 = vmax.f32 %v3703_v23, %v3706_v16  ;;  %v3756_v33 = vadd.f32 %v3753_v20, %v3674_v52 }
 0x36a   : > { %v3759_v26 = vmax.f32 %v3738_v63, %v3744_v34  ;;  %3731 = vst [vmem:[%s4670_s28] sm:$0xfe] %v3725_v4  ;;  %v3739_v7 = vadd.f32 %v3736_v53, %v5846_v21  ;;  %v3748_v29 = vmul.f32 %v5838_v15, %v5614_v61  ;;  %v3754_v8 = vmul.f32 %v5838_v15, %v5620_v36 }
 0x36b   : > { %v3745_v27 = vadd.f32 %v3742_v18, %v5846_v21  ;;  %3732 = vst [vmem:[%s4670_s28 + $0x8] sm:$0xfe] %v3726_v0  ;;  %v3712_v6 = vmax.f32 %v3709_v47, 0.0  ;;  %v3762_v55 = vmax.f32 %v3750_v25, %v3756_v33  ;;  %v3737_v24 = vmul.f32 %v5840_v2, %v5604_v57 }
 0x36c   : > { %v3743_v52 = vmul.f32 %v5840_v2, %v5610_v30  ;;  %v3751_v9 = vadd.f32 %v3748_v29, %v5846_v21  ;;  %v3757_v14 = vadd.f32 %v3754_v8, %v5846_v21  ;;  %v3749_v61 = vmul.f32 %v5840_v2, %v5616_v17 }
 0x36d   : > { %v3760_v28 = vmax.f32 %v3739_v7, %v3745_v27  ;;  %v3727_v36 = vrot.slane %v3712_v6, 7  ;;  %v3765_v15 = vmax.f32 %v3759_v26, %v3762_v55  ;;  %v3740_v40 = vadd.f32 %v3737_v24, %v5848_v22 }
 0x36e   : > { %v3746_v1 = vadd.f32 %v3743_v52, %v5848_v22  ;;  %v3763_v57 = vmax.f32 %v3751_v9, %v3757_v14  ;;  %v3752_v10 = vadd.f32 %v3749_v61, %v5848_v22  ;;  %v3755_v30 = vmul.f32 %v5840_v2, %v5622_v42 }
 0x36f   : > { %3734 = vst.msk [vmem:[%s4670_s28 + $0x10] sm:$0xfe] %vm3733_vm13, %v3727_v36  ;;  %v3768_v21 = vmax.f32 %v3765_v15, 0.0 }
 0x370   : > { %v3766_v35 = vmax.f32 %v3760_v28, %v3763_v57  ;;  %v3758_v17 = vadd.f32 %v3755_v30, %v5848_v22  ;;  %v3761_v56 = vmax.f32 %v3740_v40, %v3746_v1 }
 0x371   : > { %v3779_v37 = vrot.slane %v3768_v21, 7 }
 0x372   : > { %v3769_v46 = vmax.f32 %v3766_v35, 0.0  ;;  %v3764_v11 = vmax.f32 %v3752_v10, %v3758_v17 }
 0x373   : > { %3785 = vst [vmem:[%s4675_s24] sm:$0xfe] %v3779_v37 }
 0x374   : > { %v3780_v43 = vrot.slane %v3769_v46, 7  ;;  %v3767_v50 = vmax.f32 %v3761_v56, %v3764_v11 }
 0x376   : > { %3786 = vst [vmem:[%s4675_s24 + $0x8] sm:$0xfe] %v3780_v43  ;;  %v3770_v60 = vmax.f32 %v3767_v50, 0.0 }
 0x378   : > { %v3781_v12 = vrot.slane %v3770_v60, 7 }
 0x37a   : > { %3787 = vst.msk [vmem:[%s4675_s24 + $0x10] sm:$0xfe] %vm3733_vm13, %v3781_v12 }
 0x37b PF: > { %s6324_s13 = sld [smem:[#allocation14_spill]]  ;;  %s6326_s14 = smov %s4501_s16 }
 0x37c   : > { %s6328_s16 = smov %s6334_s30 }
 0x381   : > { %s24_s17 = sadd.s32 1, %s6324_s13   ;;  %s6325_s13 = smov %s4497_s15 }
 0x382   : > { %p21_p3 = scmp.ge.s32.totalorder %s24_s17, 6   ;;  %s6327_s15 = smov %s6330_s29 }
 0x384   :  { %23 = sbr.rel (!%p21_p3) target bundleno = 8 (0x8), region = 153 }
 0x389   :  { %3831 = vsyncpa [#allocation5], 1 }
 0x38a   :  { %3833 = vsyncpa [#allocation5 + $0x1], 1 }
 0x38b   :  { %3834 = vsyncpa [#allocation7], 1 }
 0x38c   :  { %3835 = vsyncpa [#allocation10], 1 }

// kernel: convnet_forward.3
= control target key start
LH: loop header
LB: loop body
LE: loop exit
PB: predicated region body
PF: predicated region fallthrough
CT: control target
= control target key end

     0   :  { %s6781_s0 = inlined_call_operand.vmem [shape: f32[2,9,288], index: 0, kind: input, shape index: {}]   ;;  %s6782_s1 = inlined_call_operand.vmem [shape: f32[2,9,288], index: 1, kind: input, shape index: {}]   ;;  %s6783_s2 = inlined_call_operand.hbm [shape: f32[5,2,288,224], index: 2, kind: input, shape index: {}]   ;;  %s6784_s3 = inlined_call_operand.vmem [shape: f32[224,32], index: 3, kind: input, shape index: {}]   ;;  %s6785_s4 = inlined_call_operand.hbm [shape: f32[32,224], index: 4, kind: input, shape index: {}]   ;;  %s6786_s5 = inlined_call_operand.hbm [shape: f32[1,32], index: 5, kind: input, shape index: {}]   ;;  %s6787_s6 = inlined_call_operand.hbm [shape: f32[1,32], index: 6, kind: input, shape index: {}]   ;;  %s6788_s7 = inlined_call_operand.hbm [shape: f32[7,224,128], index: 7, kind: input, shape index: {}]   ;;  %s6789_s8 = inlined_call_operand.hbm [shape: f32[1,128], index: 8, kind: input, shape index: {}]   ;;  %s6790_s9 = inlined_call_operand.hbm [shape: f32[2,1,128], index: 9, kind: output, shape index: {}]  }
   0x1   :  { %6798 = sst [smem:[#allocation29_spill]] %s6785_s4 }
   0x2   :  { %6799 = sst [smem:[#allocation30_spill]] %s6787_s6 }
   0x3   :  { %14 = vsyncpa [#allocation5], 0 }
   0x4   :  { %15 = vsyncpa [#allocation8], 0 }
   0x5   :  { %16 = vsyncpa [#allocation11], 0 }
   0x6   :  { %17 = vsyncpa [#allocation14], 0 }
   0x7   :  { %18 = vsyncpa [#allocation6], 0 }
   0x8   :  { %20 = vsyncpa [#allocation6 + $0x1], 0  ;;  %s6076_s30 = smov 0   ;;  %s6078_s10 = smov 0  }
   0x9   :  { %s6080_s11 = smov 0   ;;  %s6082_s12 = smov 0  }
   0xa   :  { %s6084_s13 = smov 0   ;;  %s6086_s14 = smov 0  }
   0xb   :  { %s6088_s15 = smov 0   ;;  %s6090_s16 = smov 0  }
   0xc LB: > { %6800 = sst [smem:[#allocation21_spill]] %s5985_s30  ;;  %s4778_s17 = sadd.s32 4294967295, %s6013_s16   ;;  %s6013_s16 = sphi %s6090_s16, %s26_s16   ;;  %s6009_s15 = sphi %s6088_s15, %s6823_s15   ;;  %s6005_s14 = sphi %s6086_s14, %s6822_s14   ;;  %s6001_s13 = sphi %s6084_s13, %s6821_s13   ;;  %s5997_s12 = sphi %s6082_s12, %s6820_s12   ;;  %s5993_s11 = sphi %s6080_s11, %s6819_s11   ;;  %s5989_s10 = sphi %s6078_s10, %s6825_s10   ;;  %s5985_s30 = sphi %s6076_s30, %s6824_s30  }
   0xd   : > { %6801 = sst [smem:[#allocation22_spill]] %s5993_s11  ;;  %s4779_s18 = sadd.s32 4294967294, %s6013_s16  }
   0xe   : > { %6802 = sst [smem:[#allocation23_spill]] %s6005_s14  ;;  %s35_s19 = sadd.s32 1, %s6005_s14 }
   0xf   : > { %6803 = sst [smem:[#allocation24_spill]] %s6009_s15  ;;  %s38_s20 = sadd.s32 1, %s6009_s15 }
  0x10   : > { %p36_p0 = scmp.ge.s32.totalorder %s35_s19, 2  ;;  %s241_s21 = smul.u32 %s6005_s14, %s6009_s15 }
  0x11   : > { %s246_s22 = sadd.s32 1, %s5993_s11  ;;  %p256_p1 = scmp.ne.s32.totalorder %s5993_s11, %s5989_s10 }
  0x12   : > { %s6827_s19 = smov (%p36_p0, %s35_s19), 0  ;;  %s6829_s20 = smov (!%p36_p0, %s38_s20), %s6009_s15 }
  0x13   : > { %6804 = sst [smem:[#allocation25_spill]] %s6827_s19  ;;  %p257_p2 = scmp.eq.s32.totalorder %s4778_s17, 3 }
  0x14   : > { %p262_p3 = scmp.ne.s32.totalorder %s5989_s10, %s5985_s30  ;;  %p40_p4 = scmp.ge.s32.totalorder %s6829_s20, 2 }
  0x15   : > { %p263_p5 = scmp.eq.s32.totalorder %s4779_s18, 3  ;;  %p6130_p6 = por %p257_p2, %p256_p1 }
  0x16   : > { %p4780_p7 = scmp.ge.s32.totalorder %s6013_s16, 1  ;;  %s6831_s20 = smov (%p40_p4, %s6829_s20), 0 }
  0x17   : > { %6806 = sst [smem:[#allocation26_spill]] %s6831_s20  ;;  %p6137_p8 = por %p263_p5, %p262_p3 }
  0x18   : > { %p270_p9 = scmp.lt.s32.totalorder %s6013_s16, 5  ;;  %s242_s25 = smul.u32 %s6831_s20, %s6827_s19 }
  0x19   : > { %s6807_s24 = scalar_select %p6137_p8, 1, 0 }
  0x1a   : > { %p6144_p10 = pnand %p4780_p7, %p270_p9  ;;  %p6148_p11 = scmp.eq.s32.totalorder %s4778_s17, 0 }
  0x1b   : > { %6808 = sst [smem:[#allocation27_spill]] %s6807_s24  ;;  %s243_s28 = ssub.s32 %s241_s21, %s242_s25 }
  0x1c   : > { %p244_p12 = scmp.eq.s32.totalorder %s243_s28, 0  ;;  %p4881_p13 = pneg %p6144_p10 }
  0x1d   : > { %s6811_s4 = sld [smem:[#allocation29_spill]]  ;;  %s6015_s25 = smov [#allocation7]  }
  0x1e   : > { %s6158_s14 = scalar_select %p244_p12, %s5993_s11, %s246_s22  }
  0x1f   : > { %p6162_p0 = pnand %p6148_p11, %p4881_p13  ;;  %s6814_s6 = sld [smem:[#allocation30_spill]] }
  0x20   : > { %6812 = sst [smem:[#allocation28_spill]] %s6158_s14  ;;  %s300_s28 = sshll.u32 %s6015_s25, 4  ;;  %s301_s28 = int_to_ptr.vmem [resolvable:$true] %s300_s28 }
  0x21   : > { %s6016_s29 = smov 256   ;;  %s6017_s22 = smov 16  }
  0x22   : > { %s6018_s18 = smov [#allocation10]   ;;  %s281_s19 = sshll.u32 %s6783_s2, 4  ;;  %s282_s19 = int_to_ptr.hbm [resolvable:$true] %s281_s19 }
  0x23   : > { %s298_s15 = sshll.u32 %s6811_s4, 4  ;;  %s327_s4 = sshll.u32 %s6018_s18, 4  ;;  %s299_s15 = int_to_ptr.hbm [resolvable:$true] %s298_s15  ;;  %s328_s4 = int_to_ptr.vmem [resolvable:$true] %s327_s4 }
  0x24   : > { %4887 = dma.hbm_to_vmem [thread:$0]  (!%p6162_p0), %s299_s15, 1024, %s301_s28, [#allocation8], %s6016_s29, %s6016_s29, %s6017_s22  }
  0x25   : > { %s325_s21 = sshll.u32 %s6814_s6, 4  ;;  %s6019_s17 = smov [#allocation4]   ;;  %s326_s21 = int_to_ptr.hbm [resolvable:$true] %s325_s21 }
  0x26   : > { %4893 = dma.hbm_to_vmem [thread:$0]  (!%p6162_p0), %s326_s21, 16, %s328_s4, [#allocation11]  }
  0x27   : > { %s283_s25 = sshll.u32 %s6019_s17, 4  ;;  %s313_s30 = sshll.u32 %s6786_s5, 4  ;;  %s284_s25 = int_to_ptr.vmem [resolvable:$true] %s283_s25  ;;  %s314_s30 = int_to_ptr.hbm [resolvable:$true] %s313_s30 }
  0x28   : > { %4884 = dma.hbm_to_vmem [thread:$0]  (!%p6162_p0), %s282_s19, 92160, %s284_s25, [#allocation5], %s6016_s29, %s6016_s29, %s6017_s22  }
  0x29   : > { %s336_s4 = sshll.u32 %s6788_s7, 4  ;;  %s6020_s21 = smov [#allocation9]   ;;  %s337_s4 = int_to_ptr.hbm [resolvable:$true] %s336_s4 }
  0x2a   : > { %s315_s11 = sshll.u32 %s6020_s21, 4  ;;  %s6021_s14 = smov [#allocation12]   ;;  %s316_s11 = int_to_ptr.vmem [resolvable:$true] %s315_s11 }
  0x2b   : > { %4890 = dma.hbm_to_vmem [thread:$0]  (!%p6162_p0), %s314_s30, 16, %s316_s11, [#allocation8]  }
  0x2c   : > { %s338_s18 = sshll.u32 %s6021_s14, 4  ;;  %s6022_s6 = smov 128   ;;  %s339_s18 = int_to_ptr.vmem [resolvable:$true] %s338_s18 }
  0x2d   : > { %s6023_s24 = smov 8   ;;  %s351_s22 = sshll.u32 %s6789_s8, 4  ;;  %s352_s22 = int_to_ptr.hbm [resolvable:$true] %s351_s22 }
  0x2e   : > { %4896 = dma.hbm_to_vmem [thread:$0]  (!%p6162_p0), %s337_s4, 25088, %s339_s18, [#allocation11], %s6022_s6, %s6022_s6, %s6023_s24  }
  0x2f   : > { %s6024_s19 = smov [#allocation13]   ;;  %382 = sbr.rel (%p6144_p10) target bundleno = 1602 (0x642), region = 56 }
  0x30   : > { %s353_s25 = sshll.u32 %s6024_s19, 4  ;;  %s354_s25 = int_to_ptr.vmem [resolvable:$true] %s353_s25 }
  0x31   : > { %4899 = dma.hbm_to_vmem [thread:$0]  (!%p6162_p0), %s352_s22, 16, %s354_s25, [#allocation14]  }
  0x34   : > { %5964 = dma.done.wait (%p6148_p11), [#allocation5], 92160  }
  0x35   : > { %5966 = vsyncadd (%p6148_p11), [#allocation5], 4294875136 }
  0x36   : > { %5968 = dma.done.wait (%p6148_p11), [#allocation8], 1040  }
  0x37   : > { %5970 = vsyncadd (%p6148_p11), [#allocation8], 4294966256 }
  0x38   : > { %5972 = dma.done.wait (%p6148_p11), [#allocation11], 25104  }
  0x39   : > { %5974 = vsyncadd (%p6148_p11), [#allocation11], 4294942192 }
  0x3a   : > { %5976 = dma.done.wait (%p6148_p11), [#allocation14], 16  }
  0x3b   : > { %5978 = vsyncadd (%p6148_p11), [#allocation14], 4294967280  ;;  %s446_s30 = sand.u32 1, %s5989_s10   ;;  %v568_v0 = vld [vmem:[#allocation4 + $0x570] sm:$0xff]  ;;  %v569_v3 = vld [vmem:[#allocation4 + $0x578] sm:$0xff]  ;;  %p448_p1 = scmp.lt.s32.totalorder %s5997_s12, 1 }
  0x3c   : > { %v600_v1 = vld [vmem:[#allocation4 + $0x670] sm:$0xff]  ;;  %614 = vmatpush.msra.mxu0 %v568_v0  ;;  %v566_v4 = vld [vmem:[#allocation4 + $0x560] sm:$0xff]  ;;  %674 = vmatpush.msra.mxu3 %v569_v3  ;;  %v567_v7 = vld [vmem:[#allocation4 + $0x568] sm:$0xff]  ;;  %vm610_vm0 = vcmask 261120   ;;  %vm1358_vm1 = vcmask 1045504   ;;  %p3702_p2 = scmp.eq.s32.totalorder %s6001_s13, 0 }
  0x3d   : > { %v608_v2 = vld [vmem:[#allocation4 + $0x6b0] sm:$0xff]  ;;  %634 = vmatpush.msra.mxu1 %v600_v1  ;;  %v598_v5 = vld [vmem:[#allocation4 + $0x660] sm:$0xff]  ;;  %v565_v11 = vld [vmem:[#allocation4 + $0x558] sm:$0xff]  ;;  %s6216_s20 = scalar_select %p448_p1, %s5997_s12, 1 }
  0x3e   : > { %666 = vmatpush.msra.mxu2 %v608_v2  ;;  %v606_v6 = vld [vmem:[#allocation4 + $0x6a0] sm:$0xff]  ;;  %v564_v8 = vld [vmem:[#allocation4 + $0x550] sm:$0xff]  ;;  %615 = vmatpush.msra.mxu0 %v566_v4  ;;  %v563_v15 = vld [vmem:[#allocation4 + $0x548] sm:$0xff]  ;;  %p3703_p3 = scmp.eq.s32.totalorder %s5997_s12, 0  ;;  %s6576_s18 = scalar_lea.vmem [#allocation15], %s446_s30 }
  0x3f   : > { %635 = vmatpush.msra.mxu1 %v598_v5  ;;  %v596_v9 = vld [vmem:[#allocation4 + $0x650] sm:$0xff]  ;;  %675 = vmatpush.msra.mxu3 %v567_v7  ;;  %v562_v12 = vld [vmem:[#allocation4 + $0x540] sm:$0xff]  ;;  %v601_v16 = vld [vmem:[#allocation4 + $0x678] sm:$0xff]  ;;  %s4854_s26 = smul.u32 48, %s6216_s20 }
  0x40   : > { %v604_v10 = vld [vmem:[#allocation4 + $0x690] sm:$0xff]  ;;  %667 = vmatpush.msra.mxu2 %v606_v6  ;;  %v594_v13 = vld [vmem:[#allocation4 + $0x640] sm:$0xff]  ;;  %616 = vmatpush.msra.mxu0 %v564_v8  ;;  %v561_v19 = vld [vmem:[#allocation4 + $0x538] sm:$0xff]  ;;  %p6566_p4 = pnand %p3703_p3, %p3702_p2 }
  0x41   : > { %636 = vmatpush.msra.mxu1 %v596_v9  ;;  %v602_v14 = vld [vmem:[#allocation4 + $0x680] sm:$0xff]  ;;  %676 = vmatpush.msra.mxu3 %v565_v11  ;;  %v560_v17 = vld [vmem:[#allocation4 + $0x530] sm:$0xff]  ;;  %v599_v20 = vld [vmem:[#allocation4 + $0x668] sm:$0xff]  ;;  %s6224_s28 = scalar_lea.vmem %s6782_s1, %s4854_s26  ;;  %s6236_s11 = scalar_lea.vmem %s6781_s0, %s4854_s26 }
  0x42   : > { %668 = vmatpush.msra.mxu2 %v604_v10  ;;  %617 = vmatpush.msra.mxu0 %v562_v12  ;;  %v592_v18 = vld [vmem:[#allocation4 + $0x630] sm:$0xff]  ;;  %v558_v21 = vld [vmem:[#allocation4 + $0x520] sm:$0xff]  ;;  %v559_v23 = vld [vmem:[#allocation4 + $0x528] sm:$0xff] }
  0x43   : > { %637 = vmatpush.msra.mxu1 %v594_v13  ;;  %677 = vmatpush.msra.mxu3 %v563_v15  ;;  %v590_v22 = vld [vmem:[#allocation4 + $0x620] sm:$0xff]  ;;  %v597_v24 = vld [vmem:[#allocation4 + $0x658] sm:$0xff]  ;;  %v556_v25 = vld [vmem:[#allocation4 + $0x510] sm:$0xff] }
  0x44   : > { %669 = vmatpush.msra.mxu2 %v602_v14  ;;  %618 = vmatpush.msra.mxu0 %v560_v17  ;;  %v588_v26 = vld [vmem:[#allocation4 + $0x610] sm:$0xff]  ;;  %v557_v27 = vld [vmem:[#allocation4 + $0x518] sm:$0xff]  ;;  %v595_v28 = vld [vmem:[#allocation4 + $0x648] sm:$0xff] }
  0x45   : > { %638 = vmatpush.msra.mxu1 %v592_v18  ;;  %678 = vmatpush.msra.mxu3 %v561_v19  ;;  %v554_v29 = vld [vmem:[#allocation4 + $0x500] sm:$0xff]  ;;  %v555_v31 = vld [vmem:[#allocation4 + $0x508] sm:$0xff]  ;;  %v593_v32 = vld [vmem:[#allocation4 + $0x638] sm:$0xff] }
  0x46   : > { %694 = vmatpush.msrb.mxu2 %v601_v16  ;;  %619 = vmatpush.msra.mxu0 %v558_v21  ;;  %v586_v30 = vld [vmem:[#allocation4 + $0x600] sm:$0xff]  ;;  %v552_v33 = vld [vmem:[#allocation4 + $0x4f0] sm:$0xff]  ;;  %v553_v35 = vld [vmem:[#allocation4 + $0x4f8] sm:$0xff] }
  0x47   : > { %639 = vmatpush.msra.mxu1 %v590_v22  ;;  %679 = vmatpush.msra.mxu3 %v559_v23  ;;  %v584_v34 = vld [vmem:[#allocation4 + $0x5f0] sm:$0xff]  ;;  %v591_v36 = vld [vmem:[#allocation4 + $0x628] sm:$0xff]  ;;  %v550_v37 = vld [vmem:[#allocation4 + $0x4e0] sm:$0xff] }
  0x48   : > { %695 = vmatpush.msrb.mxu2 %v599_v20  ;;  %620 = vmatpush.msra.mxu0 %v556_v25  ;;  %v582_v38 = vld [vmem:[#allocation4 + $0x5e0] sm:$0xff]  ;;  %v551_v39 = vld [vmem:[#allocation4 + $0x4e8] sm:$0xff]  ;;  %v589_v40 = vld [vmem:[#allocation4 + $0x618] sm:$0xff] }
  0x49   : > { %640 = vmatpush.msra.mxu1 %v588_v26  ;;  %680 = vmatpush.msra.mxu3 %v557_v27  ;;  %v548_v41 = vld [vmem:[#allocation4 + $0x4d0] sm:$0xff]  ;;  %v549_v43 = vld [vmem:[#allocation4 + $0x4d8] sm:$0xff]  ;;  %v587_v44 = vld [vmem:[#allocation4 + $0x608] sm:$0xff] }
  0x4a   : > { %696 = vmatpush.msrb.mxu2 %v597_v24  ;;  %621 = vmatpush.msra.mxu0 %v554_v29  ;;  %v580_v42 = vld [vmem:[#allocation4 + $0x5d0] sm:$0xff]  ;;  %v546_v45 = vld [vmem:[#allocation4 + $0x4c0] sm:$0xff]  ;;  %v547_v47 = vld [vmem:[#allocation4 + $0x4c8] sm:$0xff] }
  0x4b   : > { %641 = vmatpush.msra.mxu1 %v586_v30  ;;  %681 = vmatpush.msra.mxu3 %v555_v31  ;;  %v578_v46 = vld [vmem:[#allocation4 + $0x5c0] sm:$0xff]  ;;  %v585_v48 = vld [vmem:[#allocation4 + $0x5f8] sm:$0xff]  ;;  %v544_v49 = vld [vmem:[#allocation4 + $0x4b0] sm:$0xff] }
  0x4c   : > { %697 = vmatpush.msrb.mxu2 %v595_v28  ;;  %622 = vmatpush.msra.mxu0 %v552_v33  ;;  %v576_v50 = vld [vmem:[#allocation4 + $0x5b0] sm:$0xff]  ;;  %v545_v51 = vld [vmem:[#allocation4 + $0x4b8] sm:$0xff]  ;;  %v583_v52 = vld [vmem:[#allocation4 + $0x5e8] sm:$0xff] }
  0x4d   : > { %642 = vmatpush.msra.mxu1 %v584_v34  ;;  %682 = vmatpush.msra.mxu3 %v553_v35  ;;  %v542_v53 = vld [vmem:[#allocation4 + $0x4a0] sm:$0xff]  ;;  %v543_v55 = vld [vmem:[#allocation4 + $0x4a8] sm:$0xff]  ;;  %v581_v56 = vld [vmem:[#allocation4 + $0x5d8] sm:$0xff] }
  0x4e   : > { %698 = vmatpush.msrb.mxu2 %v593_v32  ;;  %623 = vmatpush.msra.mxu0 %v550_v37  ;;  %v574_v54 = vld [vmem:[#allocation4 + $0x5a0] sm:$0xff]  ;;  %v540_v57 = vld [vmem:[#allocation4 + $0x490] sm:$0xff]  ;;  %v541_v59 = vld [vmem:[#allocation4 + $0x498] sm:$0xff] }
  0x4f   : > { %643 = vmatpush.msra.mxu1 %v582_v38  ;;  %683 = vmatpush.msra.mxu3 %v551_v39  ;;  %v572_v58 = vld [vmem:[#allocation4 + $0x590] sm:$0xff]  ;;  %v579_v60 = vld [vmem:[#allocation4 + $0x5c8] sm:$0xff]  ;;  %v538_v61 = vld [vmem:[#allocation4 + $0x480] sm:$0xff] }
  0x50   : > { %699 = vmatpush.msrb.mxu2 %v591_v36  ;;  %624 = vmatpush.msra.mxu0 %v548_v41  ;;  %v570_v62 = vld [vmem:[#allocation4 + $0x580] sm:$0xff]  ;;  %v536_v63 = vld [vmem:[%s6224_s28 + $0x10] sm:$0x7f]  ;;  %v577_v1 = vld [vmem:[#allocation4 + $0x5b8] sm:$0xff] }
  0x51   : > { %644 = vmatpush.msra.mxu1 %v580_v42  ;;  %684 = vmatpush.msra.mxu3 %v549_v43  ;;  %v539_v0 = vld [vmem:[#allocation4 + $0x488] sm:$0xff]  ;;  %v609_v2 = vld [vmem:[#allocation4 + $0x6b8] sm:$0xff]  ;;  %v492_v3 = vld [vmem:[#allocation4 + $0xf0] sm:$0xff] }
  0x52   : > { %700 = vmatpush.msrb.mxu2 %v589_v40  ;;  %625 = vmatpush.msra.mxu0 %v546_v45  ;;  %v532_v4 = vld [vmem:[#allocation4 + $0x230] sm:$0xff]  ;;  %v534_v5 = vld [vmem:[%s6224_s28] sm:$0x7f]  ;;  %v575_v6 = vld [vmem:[#allocation4 + $0x5a8] sm:$0xff] }
  0x53   : > { %645 = vmatpush.msra.mxu1 %v578_v46  ;;  %685 = vmatpush.msra.mxu3 %v547_v47  ;;  %v607_v7 = vld [vmem:[#allocation4 + $0x6a8] sm:$0xff]  ;;  %v490_v8 = vld [vmem:[#allocation4 + $0xe0] sm:$0xff]  ;;  %v573_v10 = vld [vmem:[#allocation4 + $0x598] sm:$0xff] }
  0x54   : > { %701 = vmatpush.msrb.mxu2 %v587_v44  ;;  %626 = vmatpush.msra.mxu0 %v544_v49  ;;  %v530_v9 = vld [vmem:[#allocation4 + $0x220] sm:$0xff]  ;;  %v605_v11 = vld [vmem:[#allocation4 + $0x698] sm:$0xff]  ;;  %v488_v12 = vld [vmem:[#allocation4 + $0xd0] sm:$0xff] }
  0x55   : > { %646 = vmatpush.msra.mxu1 %v576_v50  ;;  %686 = vmatpush.msra.mxu3 %v545_v51  ;;  %v528_v13 = vld [vmem:[#allocation4 + $0x210] sm:$0xff]  ;;  %v571_v14 = vld [vmem:[#allocation4 + $0x588] sm:$0xff]  ;;  %v486_v16 = vld [vmem:[#allocation4 + $0xc0] sm:$0xff] }
  0x56   : > { %702 = vmatpush.msrb.mxu2 %v585_v48  ;;  %627 = vmatpush.msra.mxu0 %v542_v53  ;;  %v603_v15 = vld [vmem:[#allocation4 + $0x688] sm:$0xff]  ;;  %v526_v17 = vld [vmem:[#allocation4 + $0x200] sm:$0xff]  ;;  %v524_v19 = vld [vmem:[#allocation4 + $0x1f0] sm:$0xff] }
  0x57   : > { %647 = vmatpush.msra.mxu1 %v574_v54  ;;  %687 = vmatpush.msra.mxu3 %v543_v55  ;;  %v535_v18 = vld [vmem:[%s6224_s28 + $0x8] sm:$0x7f]  ;;  %v493_v20 = vld [vmem:[#allocation4 + $0xf8] sm:$0xff]  ;;  %v484_v22 = vld [vmem:[#allocation4 + $0xb0] sm:$0xff] }
  0x58   : > { %703 = vmatpush.msrb.mxu2 %v583_v52  ;;  %628 = vmatpush.msra.mxu0 %v540_v57  ;;  %v525_v21 = vld [vmem:[#allocation4 + $0x1f8] sm:$0xff]  ;;  %v491_v23 = vld [vmem:[#allocation4 + $0xe8] sm:$0xff]  ;;  %v522_v24 = vld [vmem:[#allocation4 + $0x1e0] sm:$0xff] }
  0x59   : > { %648 = vmatpush.msra.mxu1 %v572_v58  ;;  %688 = vmatpush.msra.mxu3 %v541_v59  ;;  %v523_v25 = vld [vmem:[#allocation4 + $0x1e8] sm:$0xff]  ;;  %v482_v26 = vld [vmem:[#allocation4 + $0xa0] sm:$0xff]  ;;  %v489_v27 = vld [vmem:[#allocation4 + $0xd8] sm:$0xff] }
  0x5a   : > { %704 = vmatpush.msrb.mxu2 %v581_v56  ;;  %629 = vmatpush.msra.mxu0 %v538_v61  ;;  %v520_v28 = vld [vmem:[#allocation4 + $0x1d0] sm:$0xff]  ;;  %v521_v29 = vld [vmem:[#allocation4 + $0x1d8] sm:$0xff]  ;;  %v518_v31 = vld [vmem:[#allocation4 + $0x1c0] sm:$0xff] }
  0x5b   : > { %649 = vmatpush.msra.mxu1 %v570_v62  ;;  %4797 = vmatmul.msk.f32.vlgmr.msra.gmra.mxu2 %vm610_vm0, %v536_v63  ;;  %v480_v30 = vld [vmem:[#allocation4 + $0x90] sm:$0xff]  ;;  %v487_v32 = vld [vmem:[#allocation4 + $0xc8] sm:$0xff]  ;;  %v478_v34 = vld [vmem:[#allocation4 + $0x80] sm:$0xff] }
  0x5c   : > { %705 = vmatpush.msrb.mxu2 %v579_v60  ;;  %689 = vmatpush.msra.mxu3 %v539_v0  ;;  %v519_v33 = vld [vmem:[#allocation4 + $0x1c8] sm:$0xff]  ;;  %v516_v35 = vld [vmem:[#allocation4 + $0x1b0] sm:$0xff]  ;;  %v485_v36 = vld [vmem:[#allocation4 + $0xb8] sm:$0xff] }
  0x5d   : > { %737 = vmatpush.msrb.mxu1 %v492_v3  ;;  %789 = vmatpush.msrb.mxu0 %v532_v4  ;;  %v517_v37 = vld [vmem:[#allocation4 + $0x1b8] sm:$0xff]  ;;  %v476_v38 = vld [vmem:[#allocation4 + $0x70] sm:$0xff]  ;;  %v514_v39 = vld [vmem:[#allocation4 + $0x1a0] sm:$0xff] }
  0x5e   : > { %706 = vmatpush.msrb.mxu2 %v577_v1  ;;  %726 = vmatpush.msrb.mxu3 %v609_v2  ;;  %v483_v40 = vld [vmem:[#allocation4 + $0xa8] sm:$0xff]  ;;  %v474_v42 = vld [vmem:[#allocation4 + $0x60] sm:$0xff]  ;;  %v512_v43 = vld [vmem:[#allocation4 + $0x190] sm:$0xff] }
  0x5f   : > { %690 = vmatmul.f32.vlgmr.msra.gmra.mxu3 %v534_v5  ;;  %738 = vmatpush.msrb.mxu1 %v490_v8  ;;  %v515_v41 = vld [vmem:[#allocation4 + $0x1a8] sm:$0xff]  ;;  %v481_v44 = vld [vmem:[#allocation4 + $0x98] sm:$0xff]  ;;  %v472_v46 = vld [vmem:[#allocation4 + $0x50] sm:$0xff] }
  0x60   : > { %707 = vmatpush.msrb.mxu2 %v575_v6  ;;  %727 = vmatpush.msrb.mxu3 %v607_v7  ;;  %v513_v45 = vld [vmem:[#allocation4 + $0x198] sm:$0xff]  ;;  %v510_v47 = vld [vmem:[#allocation4 + $0x180] sm:$0xff]  ;;  %v479_v48 = vld [vmem:[#allocation4 + $0x88] sm:$0xff] }
  0x61   : > { %790 = vmatpush.msrb.mxu0 %v530_v9  ;;  %739 = vmatpush.msrb.mxu1 %v488_v12  ;;  %v511_v49 = vld [vmem:[#allocation4 + $0x188] sm:$0xff]  ;;  %v470_v50 = vld [vmem:[#allocation4 + $0x40] sm:$0xff]  ;;  %v508_v51 = vld [vmem:[#allocation4 + $0x170] sm:$0xff] }
  0x62   : > { %708 = vmatpush.msrb.mxu2 %v573_v10  ;;  %728 = vmatpush.msrb.mxu3 %v605_v11  ;;  %v477_v52 = vld [vmem:[#allocation4 + $0x78] sm:$0xff]  ;;  %v468_v54 = vld [vmem:[#allocation4 + $0x30] sm:$0xff]  ;;  %v506_v55 = vld [vmem:[#allocation4 + $0x160] sm:$0xff] }
  0x63   : > { %791 = vmatpush.msrb.mxu0 %v528_v13  ;;  %740 = vmatpush.msrb.mxu1 %v486_v16  ;;  %v509_v53 = vld [vmem:[#allocation4 + $0x178] sm:$0xff]  ;;  %v475_v56 = vld [vmem:[#allocation4 + $0x68] sm:$0xff]  ;;  %v466_v58 = vld [vmem:[#allocation4 + $0x20] sm:$0xff] }
  0x64   : > { %709 = vmatpush.msrb.mxu2 %v571_v14  ;;  %729 = vmatpush.msrb.mxu3 %v603_v15  ;;  %v507_v57 = vld [vmem:[#allocation4 + $0x168] sm:$0xff]  ;;  %v504_v59 = vld [vmem:[#allocation4 + $0x150] sm:$0xff]  ;;  %v473_v60 = vld [vmem:[#allocation4 + $0x58] sm:$0xff] }
  0x65   : > { %792 = vmatpush.msrb.mxu0 %v526_v17  ;;  %710 = vmatmul.f32.vlgmr.msrb.gmra.mxu2 %v535_v18  ;;  %v505_v61 = vld [vmem:[#allocation4 + $0x158] sm:$0xff]  ;;  %v464_v62 = vld [vmem:[#allocation4 + $0x10] sm:$0xff]  ;;  %v471_v0 = vld [vmem:[#allocation4 + $0x48] sm:$0xff] }
  0x66   : > { %630 = vmatmul.f32.vlgmr.msra.gmra.mxu0 %v534_v5  ;;  %757 = vmatpush.msra.mxu3 %v524_v19  ;;  %v503_v1 = vld [vmem:[#allocation4 + $0x148] sm:$0xff]  ;;  %v462_v2 = vld [vmem:[#allocation4] sm:$0xff]  ;;  %v500_v4 = vld [vmem:[#allocation4 + $0x130] sm:$0xff] }
  0x67   : > { %797 = vmatpush.msra.mxu2 %v493_v20  ;;  %817 = vmatpush.msra.mxu0 %v525_v21  ;;  %v459_v3 = vld [vmem:[%s6236_s11] sm:$0x7f]  ;;  %v467_v9 = vld [vmem:[#allocation4 + $0x28] sm:$0xff]  ;;  %v496_v12 = vld [vmem:[#allocation4 + $0x110] sm:$0xff] }
  0x68   : > { %741 = vmatpush.msrb.mxu1 %v484_v22  ;;  %4798 = vmatmul.msk.f32.vlgmr.msrb.gmra.mxu3 %vm610_vm0, %v536_v63  ;;  %v502_v63 = vld [vmem:[#allocation4 + $0x140] sm:$0xff]  ;;  %v469_v5 = vld [vmem:[#allocation4 + $0x38] sm:$0xff]  ;;  %v499_v10 = vld [vmem:[#allocation4 + $0x128] sm:$0xff] }
  0x69   : > { %798 = vmatpush.msra.mxu2 %v491_v23  ;;  %758 = vmatpush.msra.mxu3 %v522_v24  ;;  %v501_v6 = vld [vmem:[#allocation4 + $0x138] sm:$0xff]  ;;  %v498_v8 = vld [vmem:[#allocation4 + $0x120] sm:$0xff]  ;;  %v531_v11 = vld [vmem:[#allocation4 + $0x228] sm:$0xff] }
  0x6a   : > { %818 = vmatpush.msra.mxu0 %v523_v25  ;;  %742 = vmatpush.msrb.mxu1 %v482_v26  ;;  %v533_v7 = vld [vmem:[#allocation4 + $0x238] sm:$0xff]  ;;  %v494_v16 = vld [vmem:[#allocation4 + $0x100] sm:$0xff]  ;;  %v463_v17 = vld [vmem:[#allocation4 + $0x8] sm:$0xff] }
  0x6b   : > { %799 = vmatpush.msra.mxu2 %v489_v27  ;;  %650 = vmatmul.f32.vlgmr.msra.gmra.mxu1 %v535_v18  ;;  %v465_v13 = vld [vmem:[#allocation4 + $0x18] sm:$0xff]  ;;  %v495_v18 = vld [vmem:[#allocation4 + $0x108] sm:$0xff]  ;;  %v891_v22 = vld [vmem:[#allocation4 + $0x9f0] sm:$0xff] }
  0x6c   : > { %759 = vmatpush.msra.mxu3 %v520_v28  ;;  %819 = vmatpush.msra.mxu0 %v521_v29  ;;  %v497_v14 = vld [vmem:[#allocation4 + $0x118] sm:$0xff]  ;;  %v527_v19 = vld [vmem:[#allocation4 + $0x208] sm:$0xff]  ;;  %v923_v23 = vld [vmem:[#allocation4 + $0xaf0] sm:$0xff] }
  0x6d   : > { %743 = vmatpush.msrb.mxu1 %v480_v30  ;;  %800 = vmatpush.msra.mxu2 %v487_v32  ;;  %v529_v15 = vld [vmem:[#allocation4 + $0x218] sm:$0xff]  ;;  %v460_v20 = vld [vmem:[%s6236_s11 + $0x8] sm:$0x7f]  ;;  %v461_v21 = vld [vmem:[%s6236_s11 + $0x10] sm:$0x7f] }
  0x6e   : > { %760 = vmatpush.msra.mxu3 %v518_v31  ;;  %820 = vmatpush.msra.mxu0 %v519_v33  ;;  %v931_v24 = vld [vmem:[#allocation4 + $0xb30] sm:$0xff]  ;;  %v892_v25 = vld [vmem:[#allocation4 + $0x9f8] sm:$0xff]  ;;  %v889_v26 = vld [vmem:[#allocation4 + $0x9e0] sm:$0xff] }
  0x6f   : > { %744 = vmatpush.msrb.mxu1 %v478_v34  ;;  %801 = vmatpush.msra.mxu2 %v485_v36  ;;  %v921_v27 = vld [vmem:[#allocation4 + $0xae0] sm:$0xff]  ;;  %v890_v29 = vld [vmem:[#allocation4 + $0x9e8] sm:$0xff]  ;;  %v887_v30 = vld [vmem:[#allocation4 + $0x9d0] sm:$0xff] }
  0x70   : > { %761 = vmatpush.msra.mxu3 %v516_v35  ;;  %821 = vmatpush.msra.mxu0 %v517_v37  ;;  %v929_v28 = vld [vmem:[#allocation4 + $0xb20] sm:$0xff]  ;;  %v919_v31 = vld [vmem:[#allocation4 + $0xad0] sm:$0xff]  ;;  %v888_v33 = vld [vmem:[#allocation4 + $0x9d8] sm:$0xff] }
  0x71   : > { %745 = vmatpush.msrb.mxu1 %v476_v38  ;;  %802 = vmatpush.msra.mxu2 %v483_v40  ;;  %v927_v32 = vld [vmem:[#allocation4 + $0xb10] sm:$0xff]  ;;  %v885_v34 = vld [vmem:[#allocation4 + $0x9c0] sm:$0xff]  ;;  %v886_v37 = vld [vmem:[#allocation4 + $0x9c8] sm:$0xff] }
  0x72   : > { %762 = vmatpush.msra.mxu3 %v514_v39  ;;  %822 = vmatpush.msra.mxu0 %v515_v41  ;;  %v917_v35 = vld [vmem:[#allocation4 + $0xac0] sm:$0xff]  ;;  %v924_v38 = vld [vmem:[#allocation4 + $0xaf8] sm:$0xff]  ;;  %v883_v39 = vld [vmem:[#allocation4 + $0x9b0] sm:$0xff] }
  0x73   : > { %746 = vmatpush.msrb.mxu1 %v474_v42  ;;  %803 = vmatpush.msra.mxu2 %v481_v44  ;;  %v925_v36 = vld [vmem:[#allocation4 + $0xb00] sm:$0xff]  ;;  %v915_v40 = vld [vmem:[#allocation4 + $0xab0] sm:$0xff]  ;;  %v884_v41 = vld [vmem:[#allocation4 + $0x9b8] sm:$0xff] }
  0x74   : > { %763 = vmatpush.msra.mxu3 %v512_v43  ;;  %823 = vmatpush.msra.mxu0 %v513_v45  ;;  %v922_v42 = vld [vmem:[#allocation4 + $0xae8] sm:$0xff]  ;;  %v881_v43 = vld [vmem:[#allocation4 + $0x9a0] sm:$0xff] }
  0x75   : > { %747 = vmatpush.msrb.mxu1 %v472_v46  ;;  %804 = vmatpush.msra.mxu2 %v479_v48  ;;  %v913_v44 = vld [vmem:[#allocation4 + $0xaa0] sm:$0xff]  ;;  %v882_v45 = vld [vmem:[#allocation4 + $0x9a8] sm:$0xff]  ;;  %v920_v46 = vld [vmem:[#allocation4 + $0xad8] sm:$0xff] }
  0x76   : > { %764 = vmatpush.msra.mxu3 %v510_v47  ;;  %824 = vmatpush.msra.mxu0 %v511_v49  ;;  %v879_v47 = vld [vmem:[#allocation4 + $0x990] sm:$0xff]  ;;  %v880_v49 = vld [vmem:[#allocation4 + $0x998] sm:$0xff] }
  0x77   : > { %748 = vmatpush.msrb.mxu1 %v470_v50  ;;  %805 = vmatpush.msra.mxu2 %v477_v52  ;;  %v911_v48 = vld [vmem:[#allocation4 + $0xa90] sm:$0xff]  ;;  %v918_v50 = vld [vmem:[#allocation4 + $0xac8] sm:$0xff]  ;;  %v909_v52 = vld [vmem:[#allocation4 + $0xa80] sm:$0xff] }
  0x78   : > { %765 = vmatpush.msra.mxu3 %v508_v51  ;;  %825 = vmatpush.msra.mxu0 %v509_v53  ;;  %v877_v51 = vld [vmem:[#allocation4 + $0x980] sm:$0xff]  ;;  %v878_v53 = vld [vmem:[#allocation4 + $0x988] sm:$0xff] }
  0x79   : > { %749 = vmatpush.msrb.mxu1 %v468_v54  ;;  %806 = vmatpush.msra.mxu2 %v475_v56  ;;  %v916_v54 = vld [vmem:[#allocation4 + $0xab8] sm:$0xff]  ;;  %v907_v56 = vld [vmem:[#allocation4 + $0xa70] sm:$0xff] }
  0x7a   : > { %766 = vmatpush.msra.mxu3 %v506_v55  ;;  %826 = vmatpush.msra.mxu0 %v507_v57  ;;  %v875_v55 = vld [vmem:[#allocation4 + $0x970] sm:$0xff]  ;;  %v876_v57 = vld [vmem:[#allocation4 + $0x978] sm:$0xff] }
  0x7b   : > { %750 = vmatpush.msrb.mxu1 %v466_v58  ;;  %807 = vmatpush.msra.mxu2 %v473_v60  ;;  %v914_v58 = vld [vmem:[#allocation4 + $0xaa8] sm:$0xff]  ;;  %v905_v60 = vld [vmem:[#allocation4 + $0xa60] sm:$0xff] }
  0x7c   : > { %767 = vmatpush.msra.mxu3 %v504_v59  ;;  %827 = vmatpush.msra.mxu0 %v505_v61  ;;  %v873_v59 = vld [vmem:[#allocation4 + $0x960] sm:$0xff]  ;;  %v874_v61 = vld [vmem:[#allocation4 + $0x968] sm:$0xff] }
  0x7d   : > { %751 = vmatpush.msrb.mxu1 %v464_v62  ;;  %808 = vmatpush.msra.mxu2 %v471_v0  ;;  %v912_v62 = vld [vmem:[#allocation4 + $0xa98] sm:$0xff]  ;;  %v903_v0 = vld [vmem:[#allocation4 + $0xa50] sm:$0xff] }
  0x7e   : > { %768 = vmatpush.msra.mxu3 %v502_v63  ;;  %828 = vmatpush.msra.mxu0 %v503_v1  ;;  %v871_v63 = vld [vmem:[#allocation4 + $0x950] sm:$0xff]  ;;  %v872_v1 = vld [vmem:[#allocation4 + $0x958] sm:$0xff] }
  0x7f   : > { %752 = vmatpush.msrb.mxu1 %v462_v2  ;;  %809 = vmatpush.msra.mxu2 %v469_v5  ;;  %v910_v2 = vld [vmem:[#allocation4 + $0xa88] sm:$0xff] }
  0x80   : > { %753 = vmatmul.f32.vlgmr.msrb.gmra.mxu1 %v459_v3  ;;  %769 = vmatpush.msra.mxu3 %v500_v4  ;;  %v901_v4 = vld [vmem:[#allocation4 + $0xa40] sm:$0xff]  ;;  %v870_v5 = vld [vmem:[#allocation4 + $0x948] sm:$0xff] }
  0x81   : > { %829 = vmatpush.msra.mxu0 %v501_v6  ;;  %849 = vmatpush.msra.mxu1 %v533_v7  ;;  %v908_v6 = vld [vmem:[#allocation4 + $0xa78] sm:$0xff]  ;;  %v867_v7 = vld [vmem:[#allocation4 + $0x930] sm:$0xff] }
  0x82   : > { %770 = vmatpush.msra.mxu3 %v498_v8  ;;  %810 = vmatpush.msra.mxu2 %v467_v9  ;;  %v899_v8 = vld [vmem:[#allocation4 + $0xa30] sm:$0xff]  ;;  %v868_v9 = vld [vmem:[#allocation4 + $0x938] sm:$0xff] }
  0x83   : > { %830 = vmatpush.msra.mxu0 %v499_v10  ;;  %850 = vmatpush.msra.mxu1 %v531_v11  ;;  %v906_v10 = vld [vmem:[#allocation4 + $0xa68] sm:$0xff]  ;;  %v865_v11 = vld [vmem:[#allocation4 + $0x920] sm:$0xff] }
  0x84   : > { %771 = vmatpush.msra.mxu3 %v496_v12  ;;  %811 = vmatpush.msra.mxu2 %v465_v13  ;;  %v897_v12 = vld [vmem:[#allocation4 + $0xa20] sm:$0xff]  ;;  %v866_v13 = vld [vmem:[#allocation4 + $0x928] sm:$0xff] }
  0x85   : > { %831 = vmatpush.msra.mxu0 %v497_v14  ;;  %851 = vmatpush.msra.mxu1 %v529_v15  ;;  %v859_v14 = vld [vmem:[%s6236_s11 + $0x10] sm:$0xfe]  ;;  %v904_v15 = vld [vmem:[#allocation4 + $0xa58] sm:$0xff] }
  0x86   : > { %772 = vmatpush.msra.mxu3 %v494_v16  ;;  %812 = vmatpush.msra.mxu2 %v463_v17  ;;  %v863_v16 = vld [vmem:[#allocation4 + $0x910] sm:$0xff]  ;;  %v857_v17 = vld [vmem:[%s6236_s11] sm:$0xfe] }
  0x87   : > { %832 = vmatpush.msra.mxu0 %v495_v18  ;;  %852 = vmatpush.msra.mxu1 %v527_v19  ;;  %v895_v18 = vld [vmem:[#allocation4 + $0xa10] sm:$0xff]  ;;  %v864_v19 = vld [vmem:[#allocation4 + $0x918] sm:$0xff] }
  0x88   : > { %773 = vmatmul.f32.vlgmr.msra.gmra.mxu3 %v460_v20  ;;  %4799 = vmatmul.msk.f32.vlgmr.msrb.gmra.mxu0 %vm610_vm0, %v461_v21 }
  0x89   : > { %813 = vmatmul.f32.vlgmr.msra.gmra.mxu2 %v459_v3  ;;  %943 = vmatpush.msrb.mxu3 %v891_v22  ;;  %v869_v3 = vld [vmem:[#allocation4 + $0x940] sm:$0xff]  ;;  %v6245_v22 = vrot.slane %v859_v14, 1  ;;  %v1116_v14 = vld [vmem:[#allocation4 + $0xef8] sm:$0xff] }
  0x8a   : > { %963 = vmatpush.msrb.mxu1 %v923_v23  ;;  %995 = vmatpush.msrb.mxu2 %v931_v24  ;;  %v893_v23 = vld [vmem:[#allocation4 + $0xa00] sm:$0xff]  ;;  %v6247_v24 = vrot.slane %v857_v17, 1  ;;  %v1082_v17 = vld [vmem:[#allocation4 + $0xde8] sm:$0xff] }
  0x8b   : > { %1003 = vmatpush.msrb.mxu0 %v892_v25  ;;  %944 = vmatpush.msrb.mxu3 %v889_v26  ;;  %v862_v25 = vld [vmem:[#allocation4 + $0x908] sm:$0xff]  ;;  %v900_v26 = vld [vmem:[#allocation4 + $0xa38] sm:$0xff] }
  0x8c   : > { %964 = vmatpush.msrb.mxu1 %v921_v27  ;;  %996 = vmatpush.msrb.mxu2 %v929_v28  ;;  %v932_v27 = vld [vmem:[#allocation4 + $0xb38] sm:$0xff]  ;;  %v1099_v28 = vld [vmem:[#allocation4 + $0xe70] sm:$0xff] }
  0x8d   : > { %1004 = vmatpush.msrb.mxu0 %v890_v29  ;;  %945 = vmatpush.msrb.mxu3 %v887_v30  ;;  %v1139_v29 = vld [vmem:[#allocation4 + $0xfb0] sm:$0xff]  ;;  %v898_v30 = vld [vmem:[#allocation4 + $0xa28] sm:$0xff] }
  0x8e   : > { %965 = vmatpush.msrb.mxu1 %v919_v31  ;;  %997 = vmatpush.msrb.mxu2 %v927_v32  ;;  %v930_v31 = vld [vmem:[#allocation4 + $0xb28] sm:$0xff] }
  0x8f   : > { %1005 = vmatpush.msrb.mxu0 %v888_v33  ;;  %946 = vmatpush.msrb.mxu3 %v885_v34  ;;  %v858_v32 = vld [vmem:[%s6236_s11 + $0x8] sm:$0xfe] }
  0x90   : > { %966 = vmatpush.msrb.mxu1 %v917_v35  ;;  %998 = vmatpush.msrb.mxu2 %v925_v36  ;;  %v1097_v33 = vld [vmem:[#allocation4 + $0xe60] sm:$0xff]  ;;  %v896_v35 = vld [vmem:[#allocation4 + $0xa18] sm:$0xff] }
  0x91   : > { %1006 = vmatpush.msrb.mxu0 %v886_v37  ;;  %947 = vmatpush.msrb.mxu3 %v883_v39  ;;  %v1137_v34 = vld [vmem:[#allocation4 + $0xfa0] sm:$0xff]  ;;  %v928_v36 = vld [vmem:[#allocation4 + $0xb18] sm:$0xff]  ;;  %v1095_v37 = vld [vmem:[#allocation4 + $0xe50] sm:$0xff]  ;;  %v6253_v39 = vrot.slane %v858_v32, 1 }
  0x92   : > { %1023 = vmatpush.msra.mxu2 %v924_v38  ;;  %833 = vmatmul.f32.vlgmr.msra.gmra.mxu0 %v460_v20  ;;  %v902_v20 = vld [vmem:[#allocation4 + $0xa48] sm:$0xff]  ;;  %v1135_v38 = vld [vmem:[#allocation4 + $0xf90] sm:$0xff]  ;;  %v1108_v32 = vld [vmem:[#allocation4 + $0xeb8] sm:$0xff] }
  0x93   : > { %967 = vmatpush.msrb.mxu1 %v915_v40  ;;  %1007 = vmatpush.msrb.mxu0 %v884_v41  ;;  %v894_v40 = vld [vmem:[#allocation4 + $0xa08] sm:$0xff] }
  0x94   : > { %1024 = vmatpush.msra.mxu2 %v922_v42  ;;  %4800 = vmatmul.msk.f32.vlgmr.msra.gmra.mxu1 %vm610_vm0, %v461_v21  ;;  %v861_v21 = vld [vmem:[#allocation4 + $0x900] sm:$0xff]  ;;  %v926_v41 = vld [vmem:[#allocation4 + $0xb08] sm:$0xff] }
  0x95   : > { %948 = vmatpush.msrb.mxu3 %v881_v43  ;;  %968 = vmatpush.msrb.mxu1 %v913_v44  ;;  %v1093_v42 = vld [vmem:[#allocation4 + $0xe40] sm:$0xff]  ;;  %v1131_v44 = vld [vmem:[#allocation4 + $0xf70] sm:$0xff] }
  0x96   : > { %1008 = vmatpush.msrb.mxu0 %v882_v45  ;;  %1025 = vmatpush.msra.mxu2 %v920_v46  ;;  %v1133_v43 = vld [vmem:[#allocation4 + $0xf80] sm:$0xff]  ;;  %v1100_v45 = vld [vmem:[#allocation4 + $0xe78] sm:$0xff] }
  0x97   : > { %949 = vmatpush.msrb.mxu3 %v879_v47  ;;  %969 = vmatpush.msrb.mxu1 %v911_v48  ;;  %v1132_v46 = vld [vmem:[#allocation4 + $0xf78] sm:$0xff]  ;;  %v1091_v47 = vld [vmem:[#allocation4 + $0xe30] sm:$0xff]  ;;  %v1129_v48 = vld [vmem:[#allocation4 + $0xf60] sm:$0xff] }
  0x98   : > { %1009 = vmatpush.msrb.mxu0 %v880_v49  ;;  %1026 = vmatpush.msra.mxu2 %v918_v50  ;;  %v1098_v49 = vld [vmem:[#allocation4 + $0xe68] sm:$0xff] }
  0x99   : > { %950 = vmatpush.msrb.mxu3 %v877_v51  ;;  %970 = vmatpush.msrb.mxu1 %v909_v52  ;;  %v1130_v50 = vld [vmem:[#allocation4 + $0xf68] sm:$0xff]  ;;  %v1089_v51 = vld [vmem:[#allocation4 + $0xe20] sm:$0xff]  ;;  %v1127_v52 = vld [vmem:[#allocation4 + $0xf50] sm:$0xff] }
  0x9a   : > { %1010 = vmatpush.msrb.mxu0 %v878_v53  ;;  %1027 = vmatpush.msra.mxu2 %v916_v54  ;;  %v1096_v53 = vld [vmem:[#allocation4 + $0xe58] sm:$0xff] }
  0x9b   : > { %951 = vmatpush.msrb.mxu3 %v875_v55  ;;  %971 = vmatpush.msrb.mxu1 %v907_v56  ;;  %v1128_v54 = vld [vmem:[#allocation4 + $0xf58] sm:$0xff]  ;;  %v1087_v55 = vld [vmem:[#allocation4 + $0xe10] sm:$0xff]  ;;  %v1125_v56 = vld [vmem:[#allocation4 + $0xf40] sm:$0xff] }
  0x9c   : > { %1011 = vmatpush.msrb.mxu0 %v876_v57  ;;  %1028 = vmatpush.msra.mxu2 %v914_v58  ;;  %v1094_v57 = vld [vmem:[#allocation4 + $0xe48] sm:$0xff] }
  0x9d   : > { %952 = vmatpush.msrb.mxu3 %v873_v59  ;;  %972 = vmatpush.msrb.mxu1 %v905_v60  ;;  %v1126_v58 = vld [vmem:[#allocation4 + $0xf48] sm:$0xff]  ;;  %v1085_v59 = vld [vmem:[#allocation4 + $0xe00] sm:$0xff]  ;;  %v1123_v60 = vld [vmem:[#allocation4 + $0xf30] sm:$0xff] }
  0x9e   : > { %1012 = vmatpush.msrb.mxu0 %v874_v61  ;;  %1029 = vmatpush.msra.mxu2 %v912_v62  ;;  %v1092_v61 = vld [vmem:[#allocation4 + $0xe38] sm:$0xff] }
  0x9f   : > { %953 = vmatpush.msrb.mxu3 %v871_v63  ;;  %973 = vmatpush.msrb.mxu1 %v903_v0  ;;  %v1124_v62 = vld [vmem:[#allocation4 + $0xf38] sm:$0xff]  ;;  %v1083_v63 = vld [vmem:[#allocation4 + $0xdf0] sm:$0xff]  ;;  %v1121_v0 = vld [vmem:[#allocation4 + $0xf20] sm:$0xff] }
  0xa0   : > { %1013 = vmatpush.msrb.mxu0 %v872_v1  ;;  %1030 = vmatpush.msra.mxu2 %v910_v2  ;;  %v1090_v1 = vld [vmem:[#allocation4 + $0xe28] sm:$0xff] }
  0xa1   : > { %954 = vmatpush.msrb.mxu3 %v869_v3  ;;  %974 = vmatpush.msrb.mxu1 %v901_v4  ;;  %v1122_v2 = vld [vmem:[#allocation4 + $0xf28] sm:$0xff]  ;;  %v1081_v3 = vld [vmem:[#allocation4 + $0xde0] sm:$0xff]  ;;  %v1119_v4 = vld [vmem:[#allocation4 + $0xf10] sm:$0xff] }
  0xa2   : > { %1014 = vmatpush.msrb.mxu0 %v870_v5  ;;  %1031 = vmatpush.msra.mxu2 %v908_v6  ;;  %v1088_v5 = vld [vmem:[#allocation4 + $0xe18] sm:$0xff] }
  0xa3   : > { %955 = vmatpush.msrb.mxu3 %v867_v7  ;;  %975 = vmatpush.msrb.mxu1 %v899_v8  ;;  %v1120_v6 = vld [vmem:[#allocation4 + $0xf18] sm:$0xff]  ;;  %v1079_v7 = vld [vmem:[#allocation4 + $0xdd0] sm:$0xff]  ;;  %v1117_v8 = vld [vmem:[#allocation4 + $0xf00] sm:$0xff] }
  0xa4   : > { %1015 = vmatpush.msrb.mxu0 %v868_v9  ;;  %1032 = vmatpush.msra.mxu2 %v906_v10  ;;  %v1086_v9 = vld [vmem:[#allocation4 + $0xe08] sm:$0xff] }
  0xa5   : > { %956 = vmatpush.msrb.mxu3 %v865_v11  ;;  %976 = vmatpush.msrb.mxu1 %v897_v12  ;;  %v1118_v10 = vld [vmem:[#allocation4 + $0xf08] sm:$0xff]  ;;  %v1077_v11 = vld [vmem:[#allocation4 + $0xdc0] sm:$0xff]  ;;  %v1115_v12 = vld [vmem:[#allocation4 + $0xef0] sm:$0xff] }
  0xa6   : > { %1016 = vmatpush.msrb.mxu0 %v866_v13  ;;  %1033 = vmatpush.msra.mxu2 %v904_v15  ;;  %v1084_v13 = vld [vmem:[#allocation4 + $0xdf8] sm:$0xff]  ;;  %v1075_v15 = vld [vmem:[#allocation4 + $0xdb0] sm:$0xff] }
  0xa7   : > { %957 = vmatpush.msrb.mxu3 %v863_v16  ;;  %977 = vmatpush.msrb.mxu1 %v895_v18  ;;  %v1113_v16 = vld [vmem:[#allocation4 + $0xee0] sm:$0xff]  ;;  %v1114_v18 = vld [vmem:[#allocation4 + $0xee8] sm:$0xff] }
  0xa8   : > { %1017 = vmatpush.msrb.mxu0 %v864_v19  ;;  %1034 = vmatpush.msra.mxu2 %v902_v20  ;;  %v1073_v19 = vld [vmem:[#allocation4 + $0xda0] sm:$0xff]  ;;  %v1111_v20 = vld [vmem:[#allocation4 + $0xed0] sm:$0xff] }
  0xa9   : > { %958 = vmatpush.msrb.mxu3 %v861_v21  ;;  %978 = vmatpush.msrb.mxu1 %v893_v23  ;;  %v1080_v21 = vld [vmem:[#allocation4 + $0xdd8] sm:$0xff] }
  0xaa   : > { %4801 = vmatmul.msk.f32.vlgmr.msrb.gmra.mxu2 %vm610_vm0, %v6245_v22  ;;  %1018 = vmatpush.msrb.mxu0 %v862_v25  ;;  %v1112_v23 = vld [vmem:[#allocation4 + $0xed8] sm:$0xff]  ;;  %v1071_v25 = vld [vmem:[#allocation4 + $0xd90] sm:$0xff] }
  0xab   : > { %959 = vmatmul.f32.vlgmr.msrb.gmra.mxu3 %v6247_v24  ;;  %1035 = vmatpush.msra.mxu2 %v900_v26  ;;  %v1109_v26 = vld [vmem:[#allocation4 + $0xec0] sm:$0xff] }
  0xac   : > { %1055 = vmatpush.msra.mxu3 %v932_v27  ;;  %1151 = vmatpush.msra.mxu1 %v1099_v28  ;;  %v1078_v27 = vld [vmem:[#allocation4 + $0xdc8] sm:$0xff] }
  0xad   : > { %1203 = vmatpush.msra.mxu0 %v1139_v29  ;;  %1036 = vmatpush.msra.mxu2 %v898_v30  ;;  %v1110_v28 = vld [vmem:[#allocation4 + $0xec8] sm:$0xff]  ;;  %v1069_v29 = vld [vmem:[#allocation4 + $0xd80] sm:$0xff]  ;;  %v1107_v30 = vld [vmem:[#allocation4 + $0xeb0] sm:$0xff] }
  0xae   : > { %1056 = vmatpush.msra.mxu3 %v930_v31  ;;  %1152 = vmatpush.msra.mxu1 %v1097_v33  ;;  %v1076_v31 = vld [vmem:[#allocation4 + $0xdb8] sm:$0xff] }
  0xaf   : > { %1204 = vmatpush.msra.mxu0 %v1137_v34  ;;  %1037 = vmatpush.msra.mxu2 %v896_v35  ;;  %v1140_v33 = vld [vmem:[#allocation4 + $0xfb8] sm:$0xff]  ;;  %v1105_v34 = vld [vmem:[#allocation4 + $0xea0] sm:$0xff]  ;;  %v1074_v35 = vld [vmem:[#allocation4 + $0xda8] sm:$0xff] }
  0xb0   : > { %1057 = vmatpush.msra.mxu3 %v928_v36  ;;  %1153 = vmatpush.msra.mxu1 %v1095_v37  ;;  %v1067_v36 = vld [vmem:[%s6224_s28 + $0x10] sm:$0xfe] }
  0xb1   : > { %1205 = vmatpush.msra.mxu0 %v1135_v38  ;;  %979 = vmatmul.f32.vlgmr.msrb.gmra.mxu1 %v6253_v39  ;;  %v1106_v37 = vld [vmem:[#allocation4 + $0xea8] sm:$0xff] }
  0xb2   : > { %1038 = vmatpush.msra.mxu2 %v894_v40  ;;  %1058 = vmatpush.msra.mxu3 %v926_v41  ;;  %v1138_v38 = vld [vmem:[#allocation4 + $0xfa8] sm:$0xff]  ;;  %v1103_v40 = vld [vmem:[#allocation4 + $0xe90] sm:$0xff]  ;;  %v1072_v41 = vld [vmem:[#allocation4 + $0xd98] sm:$0xff] }
  0xb3   : > { %1154 = vmatpush.msra.mxu1 %v1093_v42  ;;  %1206 = vmatpush.msra.mxu0 %v1133_v43  ;;  %v1066_v42 = vld [vmem:[%s6224_s28 + $0x8] sm:$0xfe]  ;;  %v1104_v43 = vld [vmem:[#allocation4 + $0xe98] sm:$0xff] }
  0xb4   : > { %1039 = vmatmul.f32.vlgmr.msra.gmra.mxu2 %v6253_v39  ;;  %1019 = vmatmul.f32.vlgmr.msrb.gmra.mxu0 %v6247_v24 }
  0xb5   : > { %1171 = vmatpush.msrb.mxu3 %v1131_v44  ;;  %1211 = vmatpush.msrb.mxu2 %v1100_v45  ;;  %v1136_v44 = vld [vmem:[#allocation4 + $0xf98] sm:$0xff]  ;;  %v6262_v45 = vrot.slane %v1067_v36, 1  ;;  %v1288_v36 = vld [vmem:[#allocation4 + $0x1240] sm:$0xff] }
  0xb6   : > { %1231 = vmatpush.msrb.mxu0 %v1132_v46  ;;  %1155 = vmatpush.msra.mxu1 %v1091_v47  ;;  %v1065_v46 = vld [vmem:[%s6224_s28] sm:$0xfe] }
  0xb7   : > { %4802 = vmatmul.msk.f32.vlgmr.msra.gmra.mxu3 %vm610_vm0, %v6245_v22  ;;  %1212 = vmatpush.msrb.mxu2 %v1098_v49  ;;  %v1101_v47 = vld [vmem:[#allocation4 + $0xe80] sm:$0xff]  ;;  %v1102_v49 = vld [vmem:[#allocation4 + $0xe88] sm:$0xff] }
  0xb8   : > { %1172 = vmatpush.msrb.mxu3 %v1129_v48  ;;  %1232 = vmatpush.msrb.mxu0 %v1130_v50  ;;  %v1070_v48 = vld [vmem:[#allocation4 + $0xd88] sm:$0xff]  ;;  %v6265_v50 = vrot.slane %v1066_v42, 1  ;;  %v1318_v42 = vld [vmem:[#allocation4 + $0x1330] sm:$0xff] }
  0xb9   : > { %1156 = vmatpush.msra.mxu1 %v1089_v51  ;;  %1213 = vmatpush.msrb.mxu2 %v1096_v53  ;;  %v1134_v51 = vld [vmem:[#allocation4 + $0xf88] sm:$0xff]  ;;  %v1310_v53 = vld [vmem:[#allocation4 + $0x12f0] sm:$0xff] }
  0xba   : > { %1173 = vmatpush.msrb.mxu3 %v1127_v52  ;;  %1233 = vmatpush.msrb.mxu0 %v1128_v54  ;;  %v6267_v52 = vrot.slane %v1065_v46, 1  ;;  %v1342_v54 = vld [vmem:[#allocation4 + $0x13f0] sm:$0xff]  ;;  %v1287_v46 = vld [vmem:[#allocation4 + $0x1238] sm:$0xff] }
  0xbb   : > { %1157 = vmatpush.msra.mxu1 %v1087_v55  ;;  %1214 = vmatpush.msrb.mxu2 %v1094_v57  ;;  %v1350_v55 = vld [vmem:[#allocation4 + $0x1430] sm:$0xff]  ;;  %v1308_v57 = vld [vmem:[#allocation4 + $0x12e0] sm:$0xff] }
  0xbc   : > { %1174 = vmatpush.msrb.mxu3 %v1125_v56  ;;  %1234 = vmatpush.msrb.mxu0 %v1126_v58  ;;  %v1311_v56 = vld [vmem:[#allocation4 + $0x12f8] sm:$0xff]  ;;  %v1340_v58 = vld [vmem:[#allocation4 + $0x13e0] sm:$0xff] }
  0xbd   : > { %1158 = vmatpush.msra.mxu1 %v1085_v59  ;;  %1215 = vmatpush.msrb.mxu2 %v1092_v61  ;;  %v1348_v59 = vld [vmem:[#allocation4 + $0x1420] sm:$0xff]  ;;  %v1306_v61 = vld [vmem:[#allocation4 + $0x12d0] sm:$0xff] }
  0xbe   : > { %1175 = vmatpush.msrb.mxu3 %v1123_v60  ;;  %1235 = vmatpush.msrb.mxu0 %v1124_v62  ;;  %v1309_v60 = vld [vmem:[#allocation4 + $0x12e8] sm:$0xff]  ;;  %v1338_v62 = vld [vmem:[#allocation4 + $0x13d0] sm:$0xff] }
  0xbf   : > { %1159 = vmatpush.msra.mxu1 %v1083_v63  ;;  %1216 = vmatpush.msrb.mxu2 %v1090_v1  ;;  %v1346_v63 = vld [vmem:[#allocation4 + $0x1410] sm:$0xff]  ;;  %v1304_v1 = vld [vmem:[#allocation4 + $0x12c0] sm:$0xff] }
  0xc0   : > { %1176 = vmatpush.msrb.mxu3 %v1121_v0  ;;  %1236 = vmatpush.msrb.mxu0 %v1122_v2  ;;  %v1307_v0 = vld [vmem:[#allocation4 + $0x12d8] sm:$0xff]  ;;  %v1336_v2 = vld [vmem:[#allocation4 + $0x13c0] sm:$0xff] }
  0xc1   : > { %1160 = vmatpush.msra.mxu1 %v1081_v3  ;;  %1217 = vmatpush.msrb.mxu2 %v1088_v5  ;;  %v1344_v3 = vld [vmem:[#allocation4 + $0x1400] sm:$0xff]  ;;  %v1343_v5 = vld [vmem:[#allocation4 + $0x13f8] sm:$0xff] }
  0xc2   : > { %1177 = vmatpush.msrb.mxu3 %v1119_v4  ;;  %1237 = vmatpush.msrb.mxu0 %v1120_v6  ;;  %v1305_v4 = vld [vmem:[#allocation4 + $0x12c8] sm:$0xff]  ;;  %v1302_v6 = vld [vmem:[#allocation4 + $0x12b0] sm:$0xff] }
  0xc3   : > { %1161 = vmatpush.msra.mxu1 %v1079_v7  ;;  %1218 = vmatpush.msrb.mxu2 %v1086_v9  ;;  %v1334_v7 = vld [vmem:[#allocation4 + $0x13b0] sm:$0xff]  ;;  %v1341_v9 = vld [vmem:[#allocation4 + $0x13e8] sm:$0xff] }
  0xc4   : > { %1178 = vmatpush.msrb.mxu3 %v1117_v8  ;;  %1238 = vmatpush.msrb.mxu0 %v1118_v10  ;;  %v1303_v8 = vld [vmem:[#allocation4 + $0x12b8] sm:$0xff]  ;;  %v1300_v10 = vld [vmem:[#allocation4 + $0x12a0] sm:$0xff] }
  0xc5   : > { %1162 = vmatpush.msra.mxu1 %v1077_v11  ;;  %1219 = vmatpush.msrb.mxu2 %v1084_v13  ;;  %v1332_v11 = vld [vmem:[#allocation4 + $0x13a0] sm:$0xff]  ;;  %v1339_v13 = vld [vmem:[#allocation4 + $0x13d8] sm:$0xff] }
  0xc6   : > { %1179 = vmatpush.msrb.mxu3 %v1115_v12  ;;  %1239 = vmatpush.msrb.mxu0 %v1116_v14  ;;  %v1301_v12 = vld [vmem:[#allocation4 + $0x12a8] sm:$0xff]  ;;  %v1298_v14 = vld [vmem:[#allocation4 + $0x1290] sm:$0xff] }
  0xc7   : > { %1163 = vmatpush.msra.mxu1 %v1075_v15  ;;  %1220 = vmatpush.msrb.mxu2 %v1082_v17  ;;  %v1330_v15 = vld [vmem:[#allocation4 + $0x1390] sm:$0xff]  ;;  %v1337_v17 = vld [vmem:[#allocation4 + $0x13c8] sm:$0xff] }
  0xc8   : > { %1180 = vmatpush.msrb.mxu3 %v1113_v16  ;;  %1240 = vmatpush.msrb.mxu0 %v1114_v18  ;;  %v1299_v16 = vld [vmem:[#allocation4 + $0x1298] sm:$0xff]  ;;  %v1296_v18 = vld [vmem:[#allocation4 + $0x1280] sm:$0xff] }
  0xc9   : > { %1164 = vmatpush.msra.mxu1 %v1073_v19  ;;  %1221 = vmatpush.msrb.mxu2 %v1080_v21  ;;  %v1328_v19 = vld [vmem:[#allocation4 + $0x1380] sm:$0xff]  ;;  %v1335_v21 = vld [vmem:[#allocation4 + $0x13b8] sm:$0xff] }
  0xca   : > { %1181 = vmatpush.msrb.mxu3 %v1111_v20  ;;  %1241 = vmatpush.msrb.mxu0 %v1112_v23  ;;  %v1297_v20 = vld [vmem:[#allocation4 + $0x1288] sm:$0xff]  ;;  %v1294_v23 = vld [vmem:[#allocation4 + $0x1270] sm:$0xff] }
  0xcb   : > { %1165 = vmatpush.msra.mxu1 %v1071_v25  ;;  %1222 = vmatpush.msrb.mxu2 %v1078_v27  ;;  %v1326_v25 = vld [vmem:[#allocation4 + $0x1370] sm:$0xff]  ;;  %v1333_v27 = vld [vmem:[#allocation4 + $0x13a8] sm:$0xff] }
  0xcc   : > { %1182 = vmatpush.msrb.mxu3 %v1109_v26  ;;  %1242 = vmatpush.msrb.mxu0 %v1110_v28  ;;  %v1295_v26 = vld [vmem:[#allocation4 + $0x1278] sm:$0xff]  ;;  %v1292_v28 = vld [vmem:[#allocation4 + $0x1260] sm:$0xff] }
  0xcd   : > { %1166 = vmatpush.msra.mxu1 %v1069_v29  ;;  %1223 = vmatpush.msrb.mxu2 %v1076_v31  ;;  %v1324_v29 = vld [vmem:[#allocation4 + $0x1360] sm:$0xff]  ;;  %v1331_v31 = vld [vmem:[#allocation4 + $0x1398] sm:$0xff] }
  0xce   : > { %1183 = vmatpush.msrb.mxu3 %v1107_v30  ;;  %1243 = vmatpush.msrb.mxu0 %v1108_v32  ;;  %v1293_v30 = vld [vmem:[#allocation4 + $0x1268] sm:$0xff]  ;;  %v1290_v32 = vld [vmem:[#allocation4 + $0x1250] sm:$0xff] }
  0xcf   : > { %1263 = vmatpush.msrb.mxu1 %v1140_v33  ;;  %1224 = vmatpush.msrb.mxu2 %v1074_v35  ;;  %v1322_v33 = vld [vmem:[#allocation4 + $0x1350] sm:$0xff]  ;;  %v1329_v35 = vld [vmem:[#allocation4 + $0x1388] sm:$0xff] }
  0xd0   : > { %1184 = vmatpush.msrb.mxu3 %v1105_v34  ;;  %1244 = vmatpush.msrb.mxu0 %v1106_v37  ;;  %v1291_v34 = vld [vmem:[#allocation4 + $0x1258] sm:$0xff]  ;;  %v1320_v37 = vld [vmem:[#allocation4 + $0x1340] sm:$0xff] }
  0xd1   : > { %1264 = vmatpush.msrb.mxu1 %v1138_v38  ;;  %1225 = vmatpush.msrb.mxu2 %v1072_v41  ;;  %v1289_v38 = vld [vmem:[#allocation4 + $0x1248] sm:$0xff]  ;;  %v1286_v41 = vld [vmem:[#allocation4 + $0x1230] sm:$0xff] }
  0xd2   : > { %1185 = vmatpush.msrb.mxu3 %v1103_v40  ;;  %1245 = vmatpush.msrb.mxu0 %v1104_v43  ;;  %v1327_v40 = vld [vmem:[#allocation4 + $0x1378] sm:$0xff]  ;;  %v1275_v43 = vld [vmem:[%s6236_s11 + $0x10] sm:$0xfc] }
  0xd3   : > { %1265 = vmatpush.msrb.mxu1 %v1136_v44  ;;  %4803 = vmatmul.msk.f32.vlgmr.msra.gmra.mxu0 %vm610_vm0, %v6262_v45  ;;  %v1278_v44 = vld [vmem:[%s6236_s11 + $0x28] sm:$0x1] }
  0xd4   : > { %1186 = vmatpush.msrb.mxu3 %v1101_v47  ;;  %1226 = vmatpush.msrb.mxu2 %v1070_v48  ;;  %v1273_v47 = vld [vmem:[%s6236_s11] sm:$0xfc]  ;;  %v1276_v48 = vld [vmem:[%s6236_s11 + $0x18] sm:$0x1] }
  0xd5   : > { %1246 = vmatpush.msrb.mxu0 %v1102_v49  ;;  %1266 = vmatpush.msrb.mxu1 %v1134_v51  ;;  %v1325_v49 = vld [vmem:[#allocation4 + $0x1368] sm:$0xff]  ;;  %v1284_v51 = vld [vmem:[#allocation4 + $0x1220] sm:$0xff] }
  0xd6   : > { %1187 = vmatmul.f32.vlgmr.msrb.gmra.mxu3 %v6265_v50  ;;  %1167 = vmatmul.f32.vlgmr.msra.gmra.mxu1 %v6267_v52 }
  0xd7   : > { %1227 = vmatmul.f32.vlgmr.msrb.gmra.mxu2 %v6267_v52  ;;  %1372 = vmatpush.msra.mxu3 %v1310_v53  ;;  %v1316_v53 = vld [vmem:[#allocation4 + $0x1320] sm:$0xff] }
  0xd8   : > { %1392 = vmatpush.msra.mxu1 %v1342_v54  ;;  %1424 = vmatpush.msra.mxu2 %v1350_v55  ;;  %v1285_v54 = vld [vmem:[#allocation4 + $0x1228] sm:$0xff]  ;;  %v1365_v55 = vrot.slane %v1275_v43, 2 }
  0xd9   : > { %1432 = vmatpush.msra.mxu0 %v1311_v56  ;;  %1373 = vmatpush.msra.mxu3 %v1308_v57  ;;  %v1366_v56 = vrot.slane %v1278_v44, 2  ;;  %v1323_v57 = vld [vmem:[#allocation4 + $0x1358] sm:$0xff]  ;;  %v1625_v43 = vld [vmem:[#allocation4 + $0x888] sm:$0xff]  ;;  %v1584_v44 = vld [vmem:[#allocation4 + $0x740] sm:$0xff] }
  0xda   : > { %1393 = vmatpush.msra.mxu1 %v1340_v58  ;;  %1425 = vmatpush.msra.mxu2 %v1348_v59  ;;  %v1282_v58 = vld [vmem:[#allocation4 + $0x1210] sm:$0xff]  ;;  %v1359_v59 = vrot.slane %v1273_v47, 2  ;;  %v1591_v47 = vld [vmem:[#allocation4 + $0x778] sm:$0xff] }
  0xdb   : > { %1433 = vmatpush.msra.mxu0 %v1309_v60  ;;  %1374 = vmatpush.msra.mxu3 %v1306_v61  ;;  %v1360_v60 = vrot.slane %v1276_v48, 2  ;;  %v1314_v61 = vld [vmem:[#allocation4 + $0x1310] sm:$0xff]  ;;  %v1623_v48 = vld [vmem:[#allocation4 + $0x878] sm:$0xff] }
  0xdc   : > { %1394 = vmatpush.msra.mxu1 %v1338_v62  ;;  %1426 = vmatpush.msra.mxu2 %v1346_v63  ;;  %v1283_v62 = vld [vmem:[#allocation4 + $0x1218] sm:$0xff]  ;;  %v1321_v63 = vld [vmem:[#allocation4 + $0x1348] sm:$0xff] }
  0xdd   : > { %1434 = vmatpush.msra.mxu0 %v1307_v0  ;;  %1375 = vmatpush.msra.mxu3 %v1304_v1  ;;  %v1280_v0 = vld [vmem:[#allocation4 + $0x1200] sm:$0xff] }
  0xde   : > { %1247 = vmatmul.f32.vlgmr.msrb.gmra.mxu0 %v6265_v50  ;;  %1395 = vmatpush.msra.mxu1 %v1336_v2  ;;  %v1312_v1 = vld [vmem:[#allocation4 + $0x1300] sm:$0xff]  ;;  %v6282_v2 = vsel %vm1358_vm1, %v1365_v55, %v1366_v56  ;;  %v1618_v56 = vld [vmem:[#allocation4 + $0x850] sm:$0xff] }
  0xdf   : > { %1427 = vmatpush.msra.mxu2 %v1344_v3  ;;  %1435 = vmatpush.msra.mxu0 %v1305_v4  ;;  %v1281_v3 = vld [vmem:[#allocation4 + $0x1208] sm:$0xff]  ;;  %v6285_v4 = vsel %vm1358_vm1, %v1359_v59, %v1360_v60  ;;  %v1580_v55 = vld [vmem:[#allocation4 + $0x720] sm:$0xff]  ;;  %v1578_v59 = vld [vmem:[#allocation4 + $0x710] sm:$0xff] }
  0xe0   : > { %4804 = vmatmul.msk.f32.vlgmr.msrb.gmra.mxu1 %vm610_vm0, %v6262_v45  ;;  %1376 = vmatpush.msra.mxu3 %v1302_v6  ;;  %v1277_v6 = vld [vmem:[%s6236_s11 + $0x20] sm:$0x1]  ;;  %v1616_v60 = vld [vmem:[#allocation4 + $0x840] sm:$0xff] }
  0xe1   : > { %1452 = vmatpush.msrb.mxu2 %v1343_v5  ;;  %1396 = vmatpush.msra.mxu1 %v1334_v7  ;;  %v1274_v5 = vld [vmem:[%s6236_s11 + $0x8] sm:$0xfc]  ;;  %v1319_v7 = vld [vmem:[#allocation4 + $0x1338] sm:$0xff] }
  0xe2   : > { %1436 = vmatpush.msra.mxu0 %v1303_v8  ;;  %1377 = vmatpush.msra.mxu3 %v1300_v10  ;;  %v1351_v8 = vld [vmem:[#allocation4 + $0x1438] sm:$0xff]  ;;  %v1638_v10 = vld [vmem:[#allocation4 + $0x8f0] sm:$0xff] }
  0xe3   : > { %1453 = vmatpush.msrb.mxu2 %v1341_v9  ;;  %1397 = vmatpush.msra.mxu1 %v1332_v11  ;;  %v1598_v9 = vld [vmem:[#allocation4 + $0x7b0] sm:$0xff]  ;;  %v1317_v11 = vld [vmem:[#allocation4 + $0x1328] sm:$0xff] }
  0xe4   : > { %1437 = vmatpush.msra.mxu0 %v1301_v12  ;;  %1378 = vmatpush.msra.mxu3 %v1298_v14  ;;  %v1349_v12 = vld [vmem:[#allocation4 + $0x1428] sm:$0xff]  ;;  %v1363_v14 = vrot.slane %v1277_v6, 2  ;;  %v1612_v6 = vld [vmem:[#allocation4 + $0x820] sm:$0xff] }
  0xe5   : > { %1454 = vmatpush.msrb.mxu2 %v1339_v13  ;;  %1398 = vmatpush.msra.mxu1 %v1330_v15  ;;  %v1362_v13 = vrot.slane %v1274_v5, 2  ;;  %v1596_v15 = vld [vmem:[#allocation4 + $0x7a0] sm:$0xff]  ;;  %v1574_v5 = vld [vmem:[#allocation4 + $0x6f0] sm:$0xff] }
  0xe6   : > { %1438 = vmatpush.msra.mxu0 %v1299_v16  ;;  %1379 = vmatpush.msra.mxu3 %v1296_v18  ;;  %v1636_v16 = vld [vmem:[#allocation4 + $0x8e0] sm:$0xff]  ;;  %v1347_v18 = vld [vmem:[#allocation4 + $0x1418] sm:$0xff] }
  0xe7   : > { %1455 = vmatpush.msrb.mxu2 %v1337_v17  ;;  %1399 = vmatpush.msra.mxu1 %v1328_v19  ;;  %v1315_v17 = vld [vmem:[#allocation4 + $0x1318] sm:$0xff]  ;;  %v1594_v19 = vld [vmem:[#allocation4 + $0x790] sm:$0xff] }
  0xe8   : > { %1439 = vmatpush.msra.mxu0 %v1297_v20  ;;  %1380 = vmatpush.msra.mxu3 %v1294_v23  ;;  %v1634_v20 = vld [vmem:[#allocation4 + $0x8d0] sm:$0xff]  ;;  %v1313_v23 = vld [vmem:[#allocation4 + $0x1308] sm:$0xff] }
  0xe9   : > { %1456 = vmatpush.msrb.mxu2 %v1335_v21  ;;  %1400 = vmatpush.msra.mxu1 %v1326_v25  ;;  %v6293_v21 = vsel %vm1358_vm1, %v1362_v13, %v1363_v14  ;;  %v1345_v25 = vld [vmem:[#allocation4 + $0x1408] sm:$0xff]  ;;  %v1570_v13 = vld [vmem:[#allocation4 + $0x6d0] sm:$0xff]  ;;  %v1608_v14 = vld [vmem:[#allocation4 + $0x800] sm:$0xff] }
  0xea   : > { %1440 = vmatpush.msra.mxu0 %v1295_v26  ;;  %1381 = vmatpush.msra.mxu3 %v1292_v28  ;;  %v1592_v26 = vld [vmem:[#allocation4 + $0x780] sm:$0xff]  ;;  %v1630_v28 = vld [vmem:[#allocation4 + $0x8b0] sm:$0xff] }
  0xeb   : > { %1457 = vmatpush.msrb.mxu2 %v1333_v27  ;;  %1401 = vmatpush.msra.mxu1 %v1324_v29  ;;  %v1632_v27 = vld [vmem:[#allocation4 + $0x8c0] sm:$0xff]  ;;  %v1599_v29 = vld [vmem:[#allocation4 + $0x7b8] sm:$0xff] }
  0xec   : > { %1441 = vmatpush.msra.mxu0 %v1293_v30  ;;  %1382 = vmatpush.msra.mxu3 %v1290_v32  ;;  %v1631_v30 = vld [vmem:[#allocation4 + $0x8b8] sm:$0xff]  ;;  %v1628_v32 = vld [vmem:[#allocation4 + $0x8a0] sm:$0xff] }
  0xed   : > { %1458 = vmatpush.msrb.mxu2 %v1331_v31  ;;  %1402 = vmatpush.msra.mxu1 %v1322_v33  ;;  %v1590_v31 = vld [vmem:[#allocation4 + $0x770] sm:$0xff]  ;;  %v1597_v33 = vld [vmem:[#allocation4 + $0x7a8] sm:$0xff] }
  0xee   : > { %1442 = vmatpush.msra.mxu0 %v1291_v34  ;;  %1383 = vmatpush.msra.mxu3 %v1288_v36  ;;  %v1629_v34 = vld [vmem:[#allocation4 + $0x8a8] sm:$0xff]  ;;  %v1626_v36 = vld [vmem:[#allocation4 + $0x890] sm:$0xff] }
  0xef   : > { %1459 = vmatpush.msrb.mxu2 %v1329_v35  ;;  %1403 = vmatpush.msra.mxu1 %v1320_v37  ;;  %v1588_v35 = vld [vmem:[#allocation4 + $0x760] sm:$0xff]  ;;  %v1595_v37 = vld [vmem:[#allocation4 + $0x798] sm:$0xff] }
  0xf0   : > { %1443 = vmatpush.msra.mxu0 %v1289_v38  ;;  %1384 = vmatpush.msra.mxu3 %v1286_v41  ;;  %v1627_v38 = vld [vmem:[#allocation4 + $0x898] sm:$0xff]  ;;  %v1624_v41 = vld [vmem:[#allocation4 + $0x880] sm:$0xff] }
  0xf1   : > { %1460 = vmatpush.msrb.mxu2 %v1327_v40  ;;  %1404 = vmatpush.msra.mxu1 %v1318_v42  ;;  %v1586_v40 = vld [vmem:[#allocation4 + $0x750] sm:$0xff]  ;;  %v1593_v42 = vld [vmem:[#allocation4 + $0x788] sm:$0xff] }
  0xf2   : > { %1444 = vmatpush.msra.mxu0 %v1287_v46  ;;  %1385 = vmatpush.msra.mxu3 %v1284_v51  ;;  %v1622_v46 = vld [vmem:[#allocation4 + $0x870] sm:$0xff]  ;;  %v1620_v51 = vld [vmem:[#allocation4 + $0x860] sm:$0xff] }
  0xf3   : > { %1461 = vmatpush.msrb.mxu2 %v1325_v49  ;;  %1405 = vmatpush.msra.mxu1 %v1316_v53  ;;  %v1582_v49 = vld [vmem:[#allocation4 + $0x730] sm:$0xff]  ;;  %v1589_v53 = vld [vmem:[#allocation4 + $0x768] sm:$0xff] }
  0xf4   : > { %1445 = vmatpush.msra.mxu0 %v1285_v54  ;;  %1386 = vmatpush.msra.mxu3 %v1282_v58  ;;  %v1621_v54 = vld [vmem:[#allocation4 + $0x868] sm:$0xff]  ;;  %v1619_v58 = vld [vmem:[#allocation4 + $0x858] sm:$0xff] }
  0xf5   : > { %1462 = vmatpush.msrb.mxu2 %v1323_v57  ;;  %1406 = vmatpush.msra.mxu1 %v1314_v61  ;;  %v1587_v57 = vld [vmem:[#allocation4 + $0x758] sm:$0xff]  ;;  %v1585_v61 = vld [vmem:[#allocation4 + $0x748] sm:$0xff] }
  0xf6   : > { %1446 = vmatpush.msra.mxu0 %v1283_v62  ;;  %1387 = vmatpush.msra.mxu3 %v1280_v0  ;;  %v1617_v62 = vld [vmem:[#allocation4 + $0x848] sm:$0xff]  ;;  %v1614_v0 = vld [vmem:[#allocation4 + $0x830] sm:$0xff] }
  0xf7   : > { %1463 = vmatpush.msrb.mxu2 %v1321_v63  ;;  %1407 = vmatpush.msra.mxu1 %v1312_v1  ;;  %v1576_v63 = vld [vmem:[#allocation4 + $0x700] sm:$0xff]  ;;  %v1583_v1 = vld [vmem:[#allocation4 + $0x738] sm:$0xff] }
  0xf8   : > { %4805 = vmatmul.msk.f32.vlgmr.msra.gmra.mxu2 %vm610_vm0, %v6282_v2  ;;  %1447 = vmatpush.msra.mxu0 %v1281_v3  ;;  %v1615_v3 = vld [vmem:[#allocation4 + $0x838] sm:$0xff] }
  0xf9   : > { %1388 = vmatmul.f32.vlgmr.msra.gmra.mxu3 %v6285_v4  ;;  %1464 = vmatpush.msrb.mxu2 %v1319_v7  ;;  %v1581_v7 = vld [vmem:[#allocation4 + $0x728] sm:$0xff] }
  0xfa   : > { %1484 = vmatpush.msrb.mxu3 %v1351_v8  ;;  %1640 = vmatpush.msrb.mxu1 %v1598_v9  ;;  %v1613_v8 = vld [vmem:[#allocation4 + $0x828] sm:$0xff]  ;;  %v1572_v9 = vld [vmem:[#allocation4 + $0x6e0] sm:$0xff] }
  0xfb   : > { %1692 = vmatpush.msrb.mxu0 %v1638_v10  ;;  %1465 = vmatpush.msrb.mxu2 %v1317_v11  ;;  %v1610_v10 = vld [vmem:[#allocation4 + $0x810] sm:$0xff]  ;;  %v1579_v11 = vld [vmem:[#allocation4 + $0x718] sm:$0xff] }
  0xfc   : > { %1485 = vmatpush.msrb.mxu3 %v1349_v12  ;;  %1641 = vmatpush.msrb.mxu1 %v1596_v15  ;;  %v1611_v12 = vld [vmem:[#allocation4 + $0x818] sm:$0xff]  ;;  %v1577_v15 = vld [vmem:[#allocation4 + $0x708] sm:$0xff] }
  0xfd   : > { %1693 = vmatpush.msrb.mxu0 %v1636_v16  ;;  %1466 = vmatpush.msrb.mxu2 %v1315_v17  ;;  %v1609_v16 = vld [vmem:[#allocation4 + $0x808] sm:$0xff]  ;;  %v1568_v17 = vld [vmem:[#allocation4 + $0x6c0] sm:$0xff] }
  0xfe   : > { %1486 = vmatpush.msrb.mxu3 %v1347_v18  ;;  %1642 = vmatpush.msrb.mxu1 %v1594_v19  ;;  %v1606_v18 = vld [vmem:[#allocation4 + $0x7f0] sm:$0xff]  ;;  %v1575_v19 = vld [vmem:[#allocation4 + $0x6f8] sm:$0xff] }
  0xff   : > { %1694 = vmatpush.msrb.mxu0 %v1634_v20  ;;  %1408 = vmatmul.f32.vlgmr.msra.gmra.mxu1 %v6293_v21  ;;  %v1607_v20 = vld [vmem:[#allocation4 + $0x7f8] sm:$0xff] }
 0x100   : > { %1467 = vmatpush.msrb.mxu2 %v1313_v23  ;;  %1487 = vmatpush.msrb.mxu3 %v1345_v25  ;;  %v1639_v23 = vld [vmem:[#allocation4 + $0x8f8] sm:$0xff]  ;;  %v1604_v25 = vld [vmem:[#allocation4 + $0x7e0] sm:$0xff] }
 0x101   : > { %1643 = vmatpush.msrb.mxu1 %v1592_v26  ;;  %1695 = vmatpush.msrb.mxu0 %v1632_v27  ;;  %v1573_v26 = vld [vmem:[#allocation4 + $0x6e8] sm:$0xff] }
 0x102   : > { %1468 = vmatmul.f32.vlgmr.msrb.gmra.mxu2 %v6293_v21  ;;  %1448 = vmatmul.f32.vlgmr.msra.gmra.mxu0 %v6285_v4  ;;  %v1605_v27 = vld [vmem:[#allocation4 + $0x7e8] sm:$0xff] }
 0x103   : > { %1660 = vmatpush.msra.mxu3 %v1630_v28  ;;  %1700 = vmatpush.msra.mxu2 %v1599_v29  ;;  %v1637_v28 = vld [vmem:[#allocation4 + $0x8e8] sm:$0xff]  ;;  %v1602_v29 = vld [vmem:[#allocation4 + $0x7d0] sm:$0xff] }
 0x104   : > { %1720 = vmatpush.msra.mxu0 %v1631_v30  ;;  %1644 = vmatpush.msrb.mxu1 %v1590_v31  ;;  %v1571_v30 = vld [vmem:[#allocation4 + $0x6d8] sm:$0xff] }
 0x105   : > { %4806 = vmatmul.msk.f32.vlgmr.msrb.gmra.mxu3 %vm610_vm0, %v6282_v2  ;;  %1701 = vmatpush.msra.mxu2 %v1597_v33  ;;  %v1603_v31 = vld [vmem:[#allocation4 + $0x7d8] sm:$0xff]  ;;  %v1600_v33 = vld [vmem:[#allocation4 + $0x7c0] sm:$0xff] }
 0x106   : > { %1661 = vmatpush.msra.mxu3 %v1628_v32  ;;  %1721 = vmatpush.msra.mxu0 %v1629_v34  ;;  %v1635_v32 = vld [vmem:[#allocation4 + $0x8d8] sm:$0xff]  ;;  %v1569_v34 = vld [vmem:[#allocation4 + $0x6c8] sm:$0xff] }
 0x107   : > { %1645 = vmatpush.msrb.mxu1 %v1588_v35  ;;  %1702 = vmatpush.msra.mxu2 %v1595_v37  ;;  %v1601_v35 = vld [vmem:[#allocation4 + $0x7c8] sm:$0xff]  ;;  %v1525_v37 = vld [vmem:[#allocation4 + $0x330] sm:$0xff] }
 0x108   : > { %1662 = vmatpush.msra.mxu3 %v1626_v36  ;;  %1722 = vmatpush.msra.mxu0 %v1627_v38  ;;  %v1633_v36 = vld [vmem:[#allocation4 + $0x8c8] sm:$0xff]  ;;  %v1557_v38 = vld [vmem:[#allocation4 + $0x430] sm:$0xff] }
 0x109   : > { %1646 = vmatpush.msrb.mxu1 %v1586_v40  ;;  %1703 = vmatpush.msra.mxu2 %v1593_v42  ;;  %v1565_v40 = vld [vmem:[#allocation4 + $0x470] sm:$0xff]  ;;  %v4993_v42 = vld [vmem:[%s6224_s28 + $0x8] sm:$0x7f] }
 0x10a   : > { %1663 = vmatpush.msra.mxu3 %v1624_v41  ;;  %1723 = vmatpush.msra.mxu0 %v1625_v43  ;;  %v4992_v41 = vld [vmem:[%s6224_s28] sm:$0x7f] }
 0x10b   : > { %1647 = vmatpush.msrb.mxu1 %v1584_v44  ;;  %1704 = vmatpush.msra.mxu2 %v1591_v47  ;;  %v1526_v43 = vld [vmem:[#allocation4 + $0x338] sm:$0xff]  ;;  %v1523_v44 = vld [vmem:[#allocation4 + $0x320] sm:$0xff] }
 0x10c   : > { %1664 = vmatpush.msra.mxu3 %v1622_v46  ;;  %1724 = vmatpush.msra.mxu0 %v1623_v48  ;;  %v6303_v46 = vld [vmem:[%s6224_s28 + $0x10] sm:$0x7f]  ;;  %v1555_v47 = vld [vmem:[#allocation4 + $0x420] sm:$0xff] }
 0x10d   : > { %1648 = vmatpush.msrb.mxu1 %v1582_v49  ;;  %1705 = vmatpush.msra.mxu2 %v1589_v53  ;;  %v1563_v48 = vld [vmem:[#allocation4 + $0x460] sm:$0xff]  ;;  %v1524_v49 = vld [vmem:[#allocation4 + $0x328] sm:$0xff]  ;;  %v1553_v53 = vld [vmem:[#allocation4 + $0x410] sm:$0xff] }
 0x10e   : > { %1665 = vmatpush.msra.mxu3 %v1620_v51  ;;  %1725 = vmatpush.msra.mxu0 %v1621_v54  ;;  %v1521_v51 = vld [vmem:[#allocation4 + $0x310] sm:$0xff] }
 0x10f   : > { %1649 = vmatpush.msrb.mxu1 %v1580_v55  ;;  %1706 = vmatpush.msra.mxu2 %v1587_v57  ;;  %v1561_v54 = vld [vmem:[#allocation4 + $0x450] sm:$0xff]  ;;  %v1522_v55 = vld [vmem:[#allocation4 + $0x318] sm:$0xff]  ;;  %v1551_v57 = vld [vmem:[#allocation4 + $0x400] sm:$0xff] }
 0x110   : > { %1666 = vmatpush.msra.mxu3 %v1618_v56  ;;  %1726 = vmatpush.msra.mxu0 %v1619_v58  ;;  %v1519_v56 = vld [vmem:[#allocation4 + $0x300] sm:$0xff] }
 0x111   : > { %1650 = vmatpush.msrb.mxu1 %v1578_v59  ;;  %1707 = vmatpush.msra.mxu2 %v1585_v61  ;;  %v1559_v58 = vld [vmem:[#allocation4 + $0x440] sm:$0xff]  ;;  %v1520_v59 = vld [vmem:[#allocation4 + $0x308] sm:$0xff]  ;;  %v1517_v61 = vld [vmem:[#allocation4 + $0x2f0] sm:$0xff] }
 0x112   : > { %1667 = vmatpush.msra.mxu3 %v1616_v60  ;;  %1727 = vmatpush.msra.mxu0 %v1617_v62  ;;  %v1558_v60 = vld [vmem:[#allocation4 + $0x438] sm:$0xff]  ;;  %v1549_v62 = vld [vmem:[#allocation4 + $0x3f0] sm:$0xff] }
 0x113   : > { %1651 = vmatpush.msrb.mxu1 %v1576_v63  ;;  %1708 = vmatpush.msra.mxu2 %v1583_v1  ;;  %v1518_v63 = vld [vmem:[#allocation4 + $0x2f8] sm:$0xff]  ;;  %v1515_v1 = vld [vmem:[#allocation4 + $0x2e0] sm:$0xff] }
 0x114   : > { %1668 = vmatpush.msra.mxu3 %v1614_v0  ;;  %1728 = vmatpush.msra.mxu0 %v1615_v3  ;;  %v1556_v0 = vld [vmem:[#allocation4 + $0x428] sm:$0xff]  ;;  %v1547_v3 = vld [vmem:[#allocation4 + $0x3e0] sm:$0xff] }
 0x115   : > { %1652 = vmatpush.msrb.mxu1 %v1574_v5  ;;  %1709 = vmatpush.msra.mxu2 %v1581_v7  ;;  %v1516_v5 = vld [vmem:[#allocation4 + $0x2e8] sm:$0xff]  ;;  %v1513_v7 = vld [vmem:[#allocation4 + $0x2d0] sm:$0xff] }
 0x116   : > { %1669 = vmatpush.msra.mxu3 %v1612_v6  ;;  %1729 = vmatpush.msra.mxu0 %v1613_v8  ;;  %v1554_v6 = vld [vmem:[#allocation4 + $0x418] sm:$0xff]  ;;  %v1545_v8 = vld [vmem:[#allocation4 + $0x3d0] sm:$0xff] }
 0x117   : > { %1653 = vmatpush.msrb.mxu1 %v1572_v9  ;;  %1710 = vmatpush.msra.mxu2 %v1579_v11  ;;  %v1514_v9 = vld [vmem:[#allocation4 + $0x2d8] sm:$0xff]  ;;  %v1511_v11 = vld [vmem:[#allocation4 + $0x2c0] sm:$0xff] }
 0x118   : > { %1670 = vmatpush.msra.mxu3 %v1610_v10  ;;  %1730 = vmatpush.msra.mxu0 %v1611_v12  ;;  %v1552_v10 = vld [vmem:[#allocation4 + $0x408] sm:$0xff]  ;;  %v1543_v12 = vld [vmem:[#allocation4 + $0x3c0] sm:$0xff] }
 0x119   : > { %1654 = vmatpush.msrb.mxu1 %v1570_v13  ;;  %1711 = vmatpush.msra.mxu2 %v1577_v15  ;;  %v1512_v13 = vld [vmem:[#allocation4 + $0x2c8] sm:$0xff]  ;;  %v1509_v15 = vld [vmem:[#allocation4 + $0x2b0] sm:$0xff] }
 0x11a   : > { %1671 = vmatpush.msra.mxu3 %v1608_v14  ;;  %1731 = vmatpush.msra.mxu0 %v1609_v16  ;;  %v1550_v14 = vld [vmem:[#allocation4 + $0x3f8] sm:$0xff]  ;;  %v1541_v16 = vld [vmem:[#allocation4 + $0x3b0] sm:$0xff] }
 0x11b   : > { %1655 = vmatpush.msrb.mxu1 %v1568_v17  ;;  %1712 = vmatpush.msra.mxu2 %v1575_v19  ;;  %v1510_v17 = vld [vmem:[#allocation4 + $0x2b8] sm:$0xff]  ;;  %v1507_v19 = vld [vmem:[#allocation4 + $0x2a0] sm:$0xff] }
 0x11c   : > { %1672 = vmatpush.msra.mxu3 %v1606_v18  ;;  %1732 = vmatpush.msra.mxu0 %v1607_v20  ;;  %v1548_v18 = vld [vmem:[#allocation4 + $0x3e8] sm:$0xff]  ;;  %v1539_v20 = vld [vmem:[#allocation4 + $0x3a0] sm:$0xff] }
 0x11d   : > { %1752 = vmatpush.msra.mxu1 %v1639_v23  ;;  %1713 = vmatpush.msra.mxu2 %v1573_v26  ;;  %v1508_v23 = vld [vmem:[#allocation4 + $0x2a8] sm:$0xff]  ;;  %v1505_v26 = vld [vmem:[#allocation4 + $0x290] sm:$0xff] }
 0x11e   : > { %1673 = vmatpush.msra.mxu3 %v1604_v25  ;;  %1733 = vmatpush.msra.mxu0 %v1605_v27  ;;  %v1546_v25 = vld [vmem:[#allocation4 + $0x3d8] sm:$0xff]  ;;  %v1537_v27 = vld [vmem:[#allocation4 + $0x390] sm:$0xff] }
 0x11f   : > { %1753 = vmatpush.msra.mxu1 %v1637_v28  ;;  %1714 = vmatpush.msra.mxu2 %v1571_v30  ;;  %v1506_v28 = vld [vmem:[#allocation4 + $0x298] sm:$0xff]  ;;  %v1503_v30 = vld [vmem:[#allocation4 + $0x280] sm:$0xff] }
 0x120   : > { %1674 = vmatpush.msra.mxu3 %v1602_v29  ;;  %1734 = vmatpush.msra.mxu0 %v1603_v31  ;;  %v1544_v29 = vld [vmem:[#allocation4 + $0x3c8] sm:$0xff]  ;;  %v1535_v31 = vld [vmem:[#allocation4 + $0x380] sm:$0xff] }
 0x121   : > { %1754 = vmatpush.msra.mxu1 %v1635_v32  ;;  %1715 = vmatpush.msra.mxu2 %v1569_v34  ;;  %v1504_v32 = vld [vmem:[#allocation4 + $0x288] sm:$0xff]  ;;  %v1501_v34 = vld [vmem:[#allocation4 + $0x270] sm:$0xff] }
 0x122   : > { %1675 = vmatpush.msra.mxu3 %v1600_v33  ;;  %1735 = vmatpush.msra.mxu0 %v1601_v35  ;;  %v1542_v33 = vld [vmem:[#allocation4 + $0x3b8] sm:$0xff]  ;;  %v1533_v35 = vld [vmem:[#allocation4 + $0x370] sm:$0xff] }
 0x123   : > { %1755 = vmatpush.msra.mxu1 %v1633_v36  ;;  %1676 = vmatmul.f32.vlgmr.msra.gmra.mxu3 %v4993_v42  ;;  %v1502_v36 = vld [vmem:[#allocation4 + $0x278] sm:$0xff] }
 0x124   : > { %1656 = vmatmul.f32.vlgmr.msrb.gmra.mxu1 %v4992_v41  ;;  %4807 = vmatmul.msk.f32.vlgmr.msrb.gmra.mxu0 %vm610_vm0, %v6303_v46 }
 0x125   : > { %1760 = vmatpush.msrb.mxu3 %v1525_v37  ;;  %1780 = vmatpush.msrb.mxu1 %v1557_v38  ;;  %v1540_v37 = vld [vmem:[#allocation4 + $0x3a8] sm:$0xff]  ;;  %v1499_v38 = vld [vmem:[#allocation4 + $0x260] sm:$0xff] }
 0x126   : > { %1812 = vmatpush.msrb.mxu2 %v1565_v40  ;;  %1820 = vmatpush.msrb.mxu0 %v1526_v43  ;;  %v1531_v40 = vld [vmem:[#allocation4 + $0x360] sm:$0xff]  ;;  %v1497_v43 = vld [vmem:[#allocation4 + $0x250] sm:$0xff] }
 0x127   : > { %1761 = vmatpush.msrb.mxu3 %v1523_v44  ;;  %1781 = vmatpush.msrb.mxu1 %v1555_v47  ;;  %v1529_v44 = vld [vmem:[#allocation4 + $0x350] sm:$0xff]  ;;  %v1536_v47 = vld [vmem:[#allocation4 + $0x388] sm:$0xff] }
 0x128   : > { %1813 = vmatpush.msrb.mxu2 %v1563_v48  ;;  %1821 = vmatpush.msrb.mxu0 %v1524_v49  ;;  %v1495_v48 = vld [vmem:[#allocation4 + $0x240] sm:$0xff] }
 0x129   : > { %1762 = vmatpush.msrb.mxu3 %v1521_v51  ;;  %1782 = vmatpush.msrb.mxu1 %v1553_v53  ;;  %v1527_v49 = vld [vmem:[#allocation4 + $0x340] sm:$0xff]  ;;  %v1496_v51 = vld [vmem:[#allocation4 + $0x248] sm:$0xff]  ;;  %v1534_v53 = vld [vmem:[#allocation4 + $0x378] sm:$0xff] }
 0x12a   : > { %1814 = vmatpush.msrb.mxu2 %v1561_v54  ;;  %1822 = vmatpush.msrb.mxu0 %v1522_v55  ;;  %v4995_v54 = vld [vmem:[%s6236_s11 + $0x10] sm:$0x7f]  ;;  %v1566_v55 = vld [vmem:[#allocation4 + $0x478] sm:$0xff] }
 0x12b   : > { %1763 = vmatpush.msrb.mxu3 %v1519_v56  ;;  %1783 = vmatpush.msrb.mxu1 %v1551_v57  ;;  %v1911_v56 = vld [vmem:[#allocation4 + $0xc30] sm:$0xff]  ;;  %v6311_v57 = vpop.f32.mrf.mxu2 }
 0x12c   : > { %1815 = vmatpush.msrb.mxu2 %v1559_v58  ;;  %1823 = vmatpush.msrb.mxu0 %v1520_v59  ;;  %v4996_v58 = vld [vmem:[%s6236_s11] sm:$0x7f]  ;;  %v1951_v59 = vld [vmem:[#allocation4 + $0xd70] sm:$0xff] }
 0x12d   : > { %1716 = vmatmul.f32.vlgmr.msra.gmra.mxu2 %v4992_v41  ;;  %1764 = vmatpush.msrb.mxu3 %v1517_v61  ;;  %v1500_v41 = vld [vmem:[#allocation4 + $0x268] sm:$0xff]  ;;  %v6314_v61 = vpop.f32.mrf.mxu3 }
 0x12e   : > { %1840 = vmatpush.msra.mxu2 %v1558_v60  ;;  %1784 = vmatpush.msrb.mxu1 %v1549_v62  ;;  %v1532_v60 = vld [vmem:[#allocation4 + $0x368] sm:$0xff] }
 0x12f   : > { %1824 = vmatpush.msrb.mxu0 %v1518_v63  ;;  %1765 = vmatpush.msrb.mxu3 %v1515_v1  ;;  %v1564_v62 = vld [vmem:[#allocation4 + $0x468] sm:$0xff]  ;;  %v1909_v63 = vld [vmem:[#allocation4 + $0xc20] sm:$0xff]  ;;  %v1530_v1 = vld [vmem:[#allocation4 + $0x358] sm:$0xff] }
 0x130   : > { %1841 = vmatpush.msra.mxu2 %v1556_v0  ;;  %1785 = vmatpush.msrb.mxu1 %v1547_v3  ;;  %v1949_v0 = vld [vmem:[#allocation4 + $0xd60] sm:$0xff]  ;;  %v1562_v3 = vld [vmem:[#allocation4 + $0x458] sm:$0xff] }
 0x131   : > { %1825 = vmatpush.msrb.mxu0 %v1516_v5  ;;  %1766 = vmatpush.msrb.mxu3 %v1513_v7  ;;  %v1907_v5 = vld [vmem:[#allocation4 + $0xc10] sm:$0xff] }
 0x132   : > { %1842 = vmatpush.msra.mxu2 %v1554_v6  ;;  %1786 = vmatpush.msrb.mxu1 %v1545_v8  ;;  %v6316_v6 = vpop.f32.mrf.mxu1  ;;  %v1947_v7 = vld [vmem:[#allocation4 + $0xd50] sm:$0xff]  ;;  %v1528_v8 = vld [vmem:[#allocation4 + $0x348] sm:$0xff] }
 0x133   : > { %1826 = vmatpush.msrb.mxu0 %v1514_v9  ;;  %1767 = vmatpush.msrb.mxu3 %v1511_v11  ;;  %v1560_v9 = vld [vmem:[#allocation4 + $0x448] sm:$0xff]  ;;  %v1945_v11 = vld [vmem:[#allocation4 + $0xd40] sm:$0xff] }
 0x134   : > { %1736 = vmatmul.f32.vlgmr.msra.gmra.mxu0 %v4993_v42  ;;  %1843 = vmatpush.msra.mxu2 %v1552_v10  ;;  %v1538_v42 = vld [vmem:[#allocation4 + $0x398] sm:$0xff]  ;;  %v1905_v10 = vld [vmem:[#allocation4 + $0xc00] sm:$0xff] }
 0x135   : > { %1787 = vmatpush.msrb.mxu1 %v1543_v12  ;;  %1827 = vmatpush.msrb.mxu0 %v1512_v13  ;;  %v1943_v12 = vld [vmem:[#allocation4 + $0xd30] sm:$0xff]  ;;  %v1912_v13 = vld [vmem:[#allocation4 + $0xc38] sm:$0xff] }
 0x136   : > { %4808 = vmatmul.msk.f32.vlgmr.msra.gmra.mxu1 %vm610_vm0, %v6303_v46  ;;  %1844 = vmatpush.msra.mxu2 %v1550_v14  ;;  %v1498_v46 = vld [vmem:[#allocation4 + $0x258] sm:$0xff]  ;;  %v6318_v14 = vpop.f32.mrf.mxu0 }
 0x137   : > { %1768 = vmatpush.msrb.mxu3 %v1509_v15  ;;  %1788 = vmatpush.msrb.mxu1 %v1541_v16  ;;  %v1944_v15 = vld [vmem:[#allocation4 + $0xd38] sm:$0xff]  ;;  %v4997_v16 = vld [vmem:[%s6236_s11 + $0x8] sm:$0x7f] }
 0x138   : > { %1828 = vmatpush.msrb.mxu0 %v1510_v17  ;;  %1845 = vmatpush.msra.mxu2 %v1548_v18  ;;  %v1903_v17 = vld [vmem:[#allocation4 + $0xbf0] sm:$0xff]  ;;  %v6321_v18 = vpop.f32.mrf.mxu2 }
 0x139   : > { %1769 = vmatpush.msrb.mxu3 %v1507_v19  ;;  %1789 = vmatpush.msrb.mxu1 %v1539_v20  ;;  %v1941_v19 = vld [vmem:[#allocation4 + $0xd20] sm:$0xff]  ;;  %v1910_v20 = vld [vmem:[#allocation4 + $0xc28] sm:$0xff] }
 0x13a   : > { %1829 = vmatpush.msrb.mxu0 %v1508_v23  ;;  %1846 = vmatpush.msra.mxu2 %v1546_v25  ;;  %v6323_v23 = vpop.f32.mrf.mxu3  ;;  %v1942_v25 = vld [vmem:[#allocation4 + $0xd28] sm:$0xff] }
 0x13b   : > { %1770 = vmatpush.msrb.mxu3 %v1505_v26  ;;  %1790 = vmatpush.msrb.mxu1 %v1537_v27  ;;  %v1901_v26 = vld [vmem:[#allocation4 + $0xbe0] sm:$0xff]  ;;  %v6325_v27 = vpop.f32.mrf.mxu1 }
 0x13c   : > { %1830 = vmatpush.msrb.mxu0 %v1506_v28  ;;  %1847 = vmatpush.msra.mxu2 %v1544_v29  ;;  %v1939_v28 = vld [vmem:[#allocation4 + $0xd10] sm:$0xff]  ;;  %v1908_v29 = vld [vmem:[#allocation4 + $0xc18] sm:$0xff] }
 0x13d   : > { %1771 = vmatpush.msrb.mxu3 %v1503_v30  ;;  %1791 = vmatpush.msrb.mxu1 %v1535_v31  ;;  %v1940_v30 = vld [vmem:[#allocation4 + $0xd18] sm:$0xff]  ;;  %v1899_v31 = vld [vmem:[#allocation4 + $0xbd0] sm:$0xff] }
 0x13e   : > { %1831 = vmatpush.msrb.mxu0 %v1504_v32  ;;  %1848 = vmatpush.msra.mxu2 %v1542_v33  ;;  %v1937_v32 = vld [vmem:[#allocation4 + $0xd00] sm:$0xff]  ;;  %v1906_v33 = vld [vmem:[#allocation4 + $0xc08] sm:$0xff] }
 0x13f   : > { %1772 = vmatpush.msrb.mxu3 %v1501_v34  ;;  %1792 = vmatpush.msrb.mxu1 %v1533_v35  ;;  %v1938_v34 = vld [vmem:[#allocation4 + $0xd08] sm:$0xff]  ;;  %v1897_v35 = vld [vmem:[#allocation4 + $0xbc0] sm:$0xff] }
 0x140   : > { %1832 = vmatpush.msrb.mxu0 %v1502_v36  ;;  %1849 = vmatpush.msra.mxu2 %v1540_v37  ;;  %v6328_v36 = vpop.f32.mrf.mxu0  ;;  %v1935_v37 = vld [vmem:[#allocation4 + $0xcf0] sm:$0xff] }
 0x141   : > { %1773 = vmatpush.msrb.mxu3 %v1499_v38  ;;  %1793 = vmatpush.msrb.mxu1 %v1531_v40  ;;  %v1904_v38 = vld [vmem:[#allocation4 + $0xbf8] sm:$0xff] }
 0x142   : > { %1833 = vmatpush.msrb.mxu0 %v1500_v41  ;;  %1850 = vmatpush.msra.mxu2 %v1538_v42  ;;  %v1936_v40 = vld [vmem:[#allocation4 + $0xcf8] sm:$0xff]  ;;  %v1895_v41 = vld [vmem:[#allocation4 + $0xbb0] sm:$0xff]  ;;  %v6330_v42 = vpop.f32.mrf.mxu2 }
 0x143   : > { %1774 = vmatpush.msrb.mxu3 %v1497_v43  ;;  %1794 = vmatpush.msrb.mxu1 %v1529_v44  ;;  %v1933_v43 = vld [vmem:[#allocation4 + $0xce0] sm:$0xff]  ;;  %v1902_v44 = vld [vmem:[#allocation4 + $0xbe8] sm:$0xff] }
 0x144   : > { %1834 = vmatpush.msrb.mxu0 %v1498_v46  ;;  %1851 = vmatpush.msra.mxu2 %v1536_v47  ;;  %v6332_v46 = vpop.f32.mrf.mxu3  ;;  %v1934_v47 = vld [vmem:[#allocation4 + $0xce8] sm:$0xff] }
 0x145   : > { %1775 = vmatpush.msrb.mxu3 %v1495_v48  ;;  %1795 = vmatpush.msrb.mxu1 %v1527_v49  ;;  %v1893_v48 = vld [vmem:[#allocation4 + $0xba0] sm:$0xff]  ;;  %v6334_v49 = vpop.f32.mrf.mxu1 }
 0x146   : > { %4809 = vmatmul.msk.f32.vlgmr.msrb.gmra.mxu2 %vm610_vm0, %v4995_v54  ;;  %1835 = vmatpush.msrb.mxu0 %v1496_v51  ;;  %v1931_v51 = vld [vmem:[#allocation4 + $0xcd0] sm:$0xff] }
 0x147   : > { %1776 = vmatmul.f32.vlgmr.msrb.gmra.mxu3 %v4996_v58  ;;  %1836 = vmatmul.f32.vlgmr.msrb.gmra.mxu0 %v4996_v58  ;;  %v1898_v58 = vld [vmem:[#allocation4 + $0xbc8] sm:$0xff] }
 0x148   : > { %1852 = vmatpush.msra.mxu2 %v1534_v53  ;;  %1872 = vmatpush.msra.mxu3 %v1566_v55  ;;  %v1900_v53 = vld [vmem:[#allocation4 + $0xbd8] sm:$0xff]  ;;  %v1891_v55 = vld [vmem:[#allocation4 + $0xb90] sm:$0xff] }
 0x149   : > { %1953 = vmatpush.msra.mxu1 %v1911_v56  ;;  %2005 = vmatpush.msra.mxu0 %v1951_v59  ;;  %v1929_v56 = vld [vmem:[#allocation4 + $0xcc0] sm:$0xff]  ;;  %v1930_v59 = vld [vmem:[#allocation4 + $0xcc8] sm:$0xff] }
 0x14a   : > { %1853 = vmatpush.msra.mxu2 %v1532_v60  ;;  %1873 = vmatpush.msra.mxu3 %v1564_v62  ;;  %v1889_v60 = vld [vmem:[#allocation4 + $0xb80] sm:$0xff]  ;;  %v1927_v62 = vld [vmem:[#allocation4 + $0xcb0] sm:$0xff] }
 0x14b   : > { %1954 = vmatpush.msra.mxu1 %v1909_v63  ;;  %2006 = vmatpush.msra.mxu0 %v1949_v0  ;;  %v1896_v63 = vld [vmem:[#allocation4 + $0xbb8] sm:$0xff] }
 0x14c   : > { %1854 = vmatpush.msra.mxu2 %v1530_v1  ;;  %1874 = vmatpush.msra.mxu3 %v1562_v3  ;;  %v1928_v0 = vld [vmem:[#allocation4 + $0xcb8] sm:$0xff]  ;;  %v1887_v1 = vld [vmem:[#allocation4 + $0xb70] sm:$0xff]  ;;  %v6336_v3 = vpop.f32.mrf.mxu0 }
 0x14d   : > { %1955 = vmatpush.msra.mxu1 %v1907_v5  ;;  %2007 = vmatpush.msra.mxu0 %v1947_v7  ;;  %v6338_v5 = vpop.f32.mrf.mxu2  ;;  %v1925_v7 = vld [vmem:[#allocation4 + $0xca0] sm:$0xff] }
 0x14e   : > { %1855 = vmatpush.msra.mxu2 %v1528_v8  ;;  %1875 = vmatpush.msra.mxu3 %v1560_v9  ;;  %v1894_v8 = vld [vmem:[#allocation4 + $0xba8] sm:$0xff]  ;;  %v6340_v9 = vpop.f32.mrf.mxu3 }
 0x14f   : > { %1956 = vmatpush.msra.mxu1 %v1905_v10  ;;  %2008 = vmatpush.msra.mxu0 %v1945_v11  ;;  %v1926_v10 = vld [vmem:[#allocation4 + $0xca8] sm:$0xff]  ;;  %v1885_v11 = vld [vmem:[#allocation4 + $0xb60] sm:$0xff] }
 0x150   : > { %1856 = vmatmul.f32.vlgmr.msra.gmra.mxu2 %v4997_v16  ;;  %1973 = vmatpush.msrb.mxu3 %v1943_v12  ;;  %v6342_v12 = vpop.f32.mrf.mxu1 }
 0x151   : > { %2013 = vmatpush.msrb.mxu2 %v1912_v13  ;;  %2033 = vmatpush.msrb.mxu0 %v1944_v15  ;;  %v1923_v13 = vld [vmem:[#allocation4 + $0xc90] sm:$0xff]  ;;  %v1892_v15 = vld [vmem:[#allocation4 + $0xb98] sm:$0xff] }
 0x152   : > { %1796 = vmatmul.f32.vlgmr.msrb.gmra.mxu1 %v4997_v16  ;;  %4810 = vmatmul.msk.f32.vlgmr.msra.gmra.mxu3 %vm610_vm0, %v4995_v54  ;;  %v1932_v54 = vld [vmem:[#allocation4 + $0xcd8] sm:$0xff] }
 0x153   : > { %1957 = vmatpush.msra.mxu1 %v1903_v17  ;;  %1974 = vmatpush.msrb.mxu3 %v1941_v19  ;;  %v1924_v16 = vld [vmem:[#allocation4 + $0xc98] sm:$0xff]  ;;  %v1883_v17 = vld [vmem:[#allocation4 + $0xb50] sm:$0xff]  ;;  %v1921_v19 = vld [vmem:[#allocation4 + $0xc80] sm:$0xff] }
 0x154   : > { %2014 = vmatpush.msrb.mxu2 %v1910_v20  ;;  %2034 = vmatpush.msrb.mxu0 %v1942_v25  ;;  %v1890_v20 = vld [vmem:[#allocation4 + $0xb88] sm:$0xff] }
 0x155   : > { %1958 = vmatpush.msra.mxu1 %v1901_v26  ;;  %1975 = vmatpush.msrb.mxu3 %v1939_v28  ;;  %v1922_v25 = vld [vmem:[#allocation4 + $0xc88] sm:$0xff]  ;;  %v1881_v26 = vld [vmem:[#allocation4 + $0xb40] sm:$0xff]  ;;  %v1919_v28 = vld [vmem:[#allocation4 + $0xc70] sm:$0xff] }
 0x156   : > { %2015 = vmatpush.msrb.mxu2 %v1908_v29  ;;  %2035 = vmatpush.msrb.mxu0 %v1940_v30  ;;  %v1888_v29 = vld [vmem:[#allocation4 + $0xb78] sm:$0xff] }
 0x157   : > { %1959 = vmatpush.msra.mxu1 %v1899_v31  ;;  %1976 = vmatpush.msrb.mxu3 %v1937_v32  ;;  %v1920_v30 = vld [vmem:[#allocation4 + $0xc78] sm:$0xff]  ;;  %v6344_v32 = vpop.f32.mrf.mxu0 }
 0x158   : > { %2016 = vmatpush.msrb.mxu2 %v1906_v33  ;;  %2036 = vmatpush.msrb.mxu0 %v1938_v34  ;;  %v1952_v31 = vld [vmem:[#allocation4 + $0xd78] sm:$0xff]  ;;  %v1917_v33 = vld [vmem:[#allocation4 + $0xc60] sm:$0xff]  ;;  %v1886_v34 = vld [vmem:[#allocation4 + $0xb68] sm:$0xff] }
 0x159   : > { %1960 = vmatpush.msra.mxu1 %v1897_v35  ;;  %1977 = vmatpush.msrb.mxu3 %v1935_v37  ;;  %v1918_v35 = vld [vmem:[#allocation4 + $0xc68] sm:$0xff] }
 0x15a   : > { %2017 = vmatpush.msrb.mxu2 %v1904_v38  ;;  %2037 = vmatpush.msrb.mxu0 %v1936_v40  ;;  %v1950_v37 = vld [vmem:[#allocation4 + $0xd68] sm:$0xff]  ;;  %v6346_v38 = vpop.f32.mrf.mxu2  ;;  %v1168_v40 = vpop.f32.mrf.mxu1 }
 0x15b   : > { %1961 = vmatpush.msra.mxu1 %v1895_v41  ;;  %1978 = vmatpush.msrb.mxu3 %v1933_v43  ;;  %v1915_v41 = vld [vmem:[#allocation4 + $0xc50] sm:$0xff]  ;;  %v1884_v43 = vld [vmem:[#allocation4 + $0xb58] sm:$0xff] }
 0x15c   : > { %2018 = vmatpush.msrb.mxu2 %v1902_v44  ;;  %2038 = vmatpush.msrb.mxu0 %v1934_v47  ;;  %v6348_v44 = vpop.f32.mrf.mxu3  ;;  %v1916_v47 = vld [vmem:[#allocation4 + $0xc58] sm:$0xff] }
 0x15d   : > { %1962 = vmatpush.msra.mxu1 %v1893_v48  ;;  %1979 = vmatpush.msrb.mxu3 %v1931_v51  ;;  %v1948_v48 = vld [vmem:[#allocation4 + $0xd58] sm:$0xff]  ;;  %v1913_v51 = vld [vmem:[#allocation4 + $0xc40] sm:$0xff] }
 0x15e   : > { %2019 = vmatpush.msrb.mxu2 %v1900_v53  ;;  %2039 = vmatpush.msrb.mxu0 %v1932_v54  ;;  %v1882_v53 = vld [vmem:[#allocation4 + $0xb48] sm:$0xff] }
 0x15f   : > { %1963 = vmatpush.msra.mxu1 %v1891_v55  ;;  %1980 = vmatpush.msrb.mxu3 %v1929_v56  ;;  %v1914_v54 = vld [vmem:[#allocation4 + $0xc48] sm:$0xff]  ;;  %v652_v56 = vadd.f32 %v6316_v6, %v6318_v14  ;;  %v2104_v6 = vld [vmem:[#allocation4 + $0x10a0] sm:$0xff] }
 0x160   : > { %2020 = vmatpush.msrb.mxu2 %v1898_v58  ;;  %2040 = vmatpush.msrb.mxu0 %v1930_v59  ;;  %v1946_v55 = vld [vmem:[#allocation4 + $0xd48] sm:$0xff]  ;;  %v1208_v58 = vpop.f32.mrf.mxu0  ;;  %v2106_v59 = vld [vmem:[#allocation4 + $0x10b0] sm:$0xff]  ;;  %v2136_v14 = vld [vmem:[#allocation4 + $0x11a0] sm:$0xff] }
 0x161   : > { %1964 = vmatpush.msra.mxu1 %v1889_v60  ;;  %1981 = vmatpush.msrb.mxu3 %v1927_v62  ;;  %v2138_v60 = vld [vmem:[#allocation4 + $0x11b0] sm:$0xff] }
 0x162   : > { %2021 = vmatpush.msrb.mxu2 %v1896_v63  ;;  %2041 = vmatpush.msrb.mxu0 %v1928_v0  ;;  %v2146_v62 = vld [vmem:[#allocation4 + $0x11f0] sm:$0xff]  ;;  %v2107_v63 = vld [vmem:[#allocation4 + $0x10b8] sm:$0xff]  ;;  %v6355_v0 = vpop.f32.mrf.mxu2 }
 0x163   : > { %1965 = vmatpush.msra.mxu1 %v1887_v1  ;;  %1982 = vmatpush.msrb.mxu3 %v1925_v7  ;;  %v672_v1 = vadd.f32 %v6311_v57, %v652_v56  ;;  %v2103_v57 = vld [vmem:[#allocation4 + $0x1098] sm:$0xff]  ;;  %v2126_v56 = vld [vmem:[#allocation4 + $0x1150] sm:$0xff] }
 0x164   : > { %2022 = vmatpush.msrb.mxu2 %v1894_v8  ;;  %2042 = vmatpush.msrb.mxu0 %v1926_v10  ;;  %v1188_v7 = vpop.f32.mrf.mxu3  ;;  %v2144_v8 = vld [vmem:[#allocation4 + $0x11e0] sm:$0xff]  ;;  %v2105_v10 = vld [vmem:[#allocation4 + $0x10a8] sm:$0xff] }
 0x165   : > { %1966 = vmatpush.msra.mxu1 %v1885_v11  ;;  %1983 = vmatpush.msrb.mxu3 %v1923_v13  ;;  %v6360_v11 = vpop.f32.mrf.mxu1  ;;  %v2102_v13 = vld [vmem:[#allocation4 + $0x1090] sm:$0xff] }
 0x166   : > { %2023 = vmatpush.msrb.mxu2 %v1892_v15  ;;  %2043 = vmatpush.msrb.mxu0 %v1924_v16  ;;  %v2134_v15 = vld [vmem:[#allocation4 + $0x1190] sm:$0xff]  ;;  %v755_v16 = vadd.f32 %v6325_v27, %v672_v1  ;;  %v2140_v27 = vld [vmem:[#allocation4 + $0x11c0] sm:$0xff]  ;;  %v2093_v1 = vld [vmem:[#allocation4 + $0x1048] sm:$0xff] }
 0x167   : > { %1967 = vmatpush.msra.mxu1 %v1883_v17  ;;  %1984 = vmatpush.msrb.mxu3 %v1921_v19  ;;  %v981_v17 = vadd.f32 %v6342_v12, %v6340_v9  ;;  %v2142_v19 = vld [vmem:[#allocation4 + $0x11d0] sm:$0xff]  ;;  %v2101_v9 = vld [vmem:[#allocation4 + $0x1088] sm:$0xff]  ;;  %v2139_v12 = vld [vmem:[#allocation4 + $0x11b8] sm:$0xff] }
 0x168   : > { %2024 = vmatpush.msrb.mxu2 %v1890_v20  ;;  %2044 = vmatpush.msrb.mxu0 %v1922_v25  ;;  %v712_v20 = vadd.f32 %v6321_v18, %v6314_v61  ;;  %v2100_v25 = vld [vmem:[#allocation4 + $0x1080] sm:$0xff]  ;;  %v2098_v61 = vld [vmem:[#allocation4 + $0x1070] sm:$0xff] }
 0x169   : > { %1968 = vmatpush.msra.mxu1 %v1881_v26  ;;  %1985 = vmatpush.msrb.mxu3 %v1919_v28  ;;  %v775_v26 = vadd.f32 %v6332_v46, %v755_v16  ;;  %v1189_v28 = vadd.f32 %v1188_v7, %v1168_v40  ;;  %v2130_v46 = vld [vmem:[#allocation4 + $0x1170] sm:$0xff]  ;;  %v2137_v40 = vld [vmem:[#allocation4 + $0x11a8] sm:$0xff] }
 0x16a   : > { %2025 = vmatpush.msrb.mxu2 %v1888_v29  ;;  %2045 = vmatpush.msrb.mxu0 %v1920_v30  ;;  %v2132_v29 = vld [vmem:[#allocation4 + $0x1180] sm:$0xff]  ;;  %v1001_v30 = vadd.f32 %v6338_v5, %v981_v17  ;;  %v732_v18 = vadd.f32 %v6323_v23, %v712_v20 }
 0x16b   : > { %2065 = vmatpush.msrb.mxu1 %v1952_v31  ;;  %1986 = vmatpush.msrb.mxu3 %v1917_v33  ;;  %v1248_v31 = vpop.f32.mrf.mxu0  ;;  %v2099_v33 = vld [vmem:[#allocation4 + $0x1078] sm:$0xff]  ;;  %v2128_v23 = vld [vmem:[#allocation4 + $0x1160] sm:$0xff] }
 0x16c   : > { %2026 = vmatpush.msrb.mxu2 %v1886_v34  ;;  %2046 = vmatpush.msrb.mxu0 %v1918_v35  ;;  %v795_v35 = vadd.f32 %v6328_v36, %v775_v26  ;;  %v2094_v36 = vld [vmem:[#allocation4 + $0x1050] sm:$0xff] }
 0x16d   : > { %2066 = vmatpush.msrb.mxu1 %v1950_v37  ;;  %1987 = vmatpush.msrb.mxu3 %v1915_v41  ;;  %v1209_v37 = vadd.f32 %v1208_v58, %v1189_v28  ;;  %v2096_v41 = vld [vmem:[#allocation4 + $0x1060] sm:$0xff] }
 0x16e   : > { %2027 = vmatpush.msrb.mxu2 %v1884_v43  ;;  %2047 = vmatpush.msrb.mxu0 %v1916_v47  ;;  %v815_v43 = vadd.f32 %v6330_v42, %v732_v18  ;;  %v2097_v47 = vld [vmem:[#allocation4 + $0x1068] sm:$0xff]  ;;  %v2095_v42 = vld [vmem:[#allocation4 + $0x1058] sm:$0xff] }
 0x16f   : > { %2067 = vmatpush.msrb.mxu1 %v1948_v48  ;;  %4811 = vmatmul.msk.f32.vlgmr.msra.gmra.mxu0 %vm610_vm0, %v6245_v22 }
 0x170   : > { %1988 = vmatpush.msrb.mxu3 %v1913_v51  ;;  %2028 = vmatpush.msrb.mxu2 %v1882_v53  ;;  %v1063_v51 = vadd.f32 %v1001_v30, %v795_v35  ;;  %v2135_v53 = vld [vmem:[#allocation4 + $0x1198] sm:$0xff]  ;;  %v2116_v30 = vld [vmem:[#allocation4 + $0x1100] sm:$0xff] }
 0x171   : > { %2048 = vmatpush.msrb.mxu0 %v1914_v54  ;;  %2068 = vmatpush.msrb.mxu1 %v1946_v55  ;;  %v1041_v55 = vadd.f32 %v6346_v38, %v6344_v32  ;;  %v2131_v32 = vld [vmem:[#allocation4 + $0x1178] sm:$0xff]  ;;  %v2090_v38 = vld [vmem:[#allocation4 + $0x1030] sm:$0xff] }
 0x172   : > { %1989 = vmatmul.f32.vlgmr.msrb.gmra.mxu3 %v6253_v39  ;;  %1969 = vmatmul.f32.vlgmr.msra.gmra.mxu1 %v6247_v24  ;;  %v1271_v58 = vadd.f32 %v1209_v37, %v1063_v51  ;;  %v2121_v37 = vld [vmem:[#allocation4 + $0x1128] sm:$0xff] }
 0x173   : > { %2029 = vmatmul.f32.vlgmr.msrb.gmra.mxu2 %v6247_v24  ;;  %2148 = vmatpush.msra.mxu3 %v2106_v59  ;;  %v2133_v59 = vld [vmem:[#allocation4 + $0x1188] sm:$0xff] }
 0x174   : > { %2168 = vmatpush.msra.mxu1 %v2138_v60  ;;  %2200 = vmatpush.msra.mxu2 %v2146_v62  ;;  %v2092_v60 = vld [vmem:[#allocation4 + $0x1040] sm:$0xff]  ;;  %v2117_v51 = vld [vmem:[#allocation4 + $0x1108] sm:$0xff] }
 0x175   : > { %2208 = vmatpush.msra.mxu0 %v2107_v63  ;;  %2149 = vmatpush.msra.mxu3 %v2104_v6  ;;  %v835_v63 = vadd.f32 %v6336_v3, %v815_v43  ;;  %v1249_v6 = vadd.f32 %v1248_v31, %v6355_v0  ;;  %v2129_v3 = vld [vmem:[#allocation4 + $0x1168] sm:$0xff]  ;;  %v2088_v0 = vld [vmem:[#allocation4 + $0x1020] sm:$0xff]  ;;  %v2123_v31 = vld [vmem:[#allocation4 + $0x1138] sm:$0xff] }
 0x176   : > { %2169 = vmatpush.msra.mxu1 %v2136_v14  ;;  %2201 = vmatpush.msra.mxu2 %v2144_v8  ;;  %v2124_v14 = vld [vmem:[#allocation4 + $0x1140] sm:$0xff]  ;;  %v1061_v8 = vadd.f32 %v6348_v44, %v1041_v55  ;;  %v2127_v44 = vld [vmem:[#allocation4 + $0x1158] sm:$0xff] }
 0x177   : > { %2209 = vmatpush.msra.mxu0 %v2105_v10  ;;  %2150 = vmatpush.msra.mxu3 %v2102_v13  ;;  %v2122_v10 = vld [vmem:[#allocation4 + $0x1130] sm:$0xff]  ;;  %v2091_v13 = vld [vmem:[#allocation4 + $0x1038] sm:$0xff]  ;;  %v855_v16 = vadd.f32 %v6334_v49, %v835_v63  ;;  %v1269_v17 = vadd.f32 %v6360_v11, %v1249_v6  ;;  %v2125_v49 = vld [vmem:[#allocation4 + $0x1148] sm:$0xff] }
 0x178   : > { %2170 = vmatpush.msra.mxu1 %v2134_v15  ;;  %2202 = vmatpush.msra.mxu2 %v2142_v19  ;;  %v2120_v19 = vld [vmem:[#allocation4 + $0x1120] sm:$0xff]  ;;  %v2119_v43 = vld [vmem:[#allocation4 + $0x1118] sm:$0xff] }
 0x179   : > { %2210 = vmatpush.msra.mxu0 %v2103_v57  ;;  %2151 = vmatpush.msra.mxu3 %v2100_v25  ;;  %v2089_v57 = vld [vmem:[#allocation4 + $0x1028] sm:$0xff]  ;;  %v2086_v25 = vld [vmem:[#allocation4 + $0x1010] sm:$0xff]  ;;  %v1064_v28 = vadd.f32 %v1061_v8, %v855_v16  ;;  %v2115_v55 = vld [vmem:[#allocation4 + $0x10f8] sm:$0xff] }
 0x17a   : > { %2049 = vmatmul.f32.vlgmr.msrb.gmra.mxu0 %v6253_v39  ;;  %2171 = vmatpush.msra.mxu1 %v2132_v29  ;;  %v2118_v29 = vld [vmem:[#allocation4 + $0x1110] sm:$0xff]  ;;  %v2339_v63 = vld [vmem:[#allocation4 + $0x1660] sm:$0xff]  ;;  %v2111_v6 = vld [vmem:[#allocation4 + $0x10d8] sm:$0xff] }
 0x17b   : > { %2203 = vmatpush.msra.mxu2 %v2140_v27  ;;  %v1429_v34 = vpop.f32.mrf.mxu2  ;;  %2211 = vmatpush.msra.mxu0 %v2101_v9  ;;  %v2087_v27 = vld [vmem:[#allocation4 + $0x1018] sm:$0xff]  ;;  %v2084_v9 = vld [vmem:[#allocation4 + $0x1000] sm:$0xff]  ;;  %v2141_v8 = vld [vmem:[#allocation4 + $0x11c8] sm:$0xff] }
 0x17c   : > { %v1389_v5 = vpop.f32.mrf.mxu3  ;;  %4812 = vmatmul.msk.f32.vlgmr.msrb.gmra.mxu1 %vm610_vm0, %v6245_v22  ;;  %2152 = vmatpush.msra.mxu3 %v2098_v61  ;;  %v1409_v48 = vpop.f32.mrf.mxu1  ;;  %v2085_v61 = vld [vmem:[#allocation4 + $0x1008] sm:$0xff]  ;;  %v2293_v16 = vld [vmem:[#allocation4 + $0x14f0] sm:$0xff] }
 0x17d   : > { %2228 = vmatpush.msrb.mxu2 %v2139_v12  ;;  %2172 = vmatpush.msra.mxu1 %v2130_v46  ;;  %v1410_v54 = vadd.f32 %v1409_v48, %v1389_v5  ;;  %v1272_v12 = vadd.f32 %v1269_v17, %v1064_v28  ;;  %v2082_v46 = vld [vmem:[#allocation4 + $0xff0] sm:$0xff]  ;;  %v2081_v5 = vld [vmem:[#allocation4 + $0xfe8] sm:$0xff]  ;;  %v2079_v48 = vld [vmem:[#allocation4 + $0xfd8] sm:$0xff] }
 0x17e   : > { %2212 = vmatpush.msra.mxu0 %v2099_v33  ;;  %2153 = vmatpush.msra.mxu3 %v2096_v41  ;;  %v2114_v33 = vld [vmem:[#allocation4 + $0x10f0] sm:$0xff]  ;;  %v2112_v41 = vld [vmem:[#allocation4 + $0x10e0] sm:$0xff] }
 0x17f   : > { %2229 = vmatpush.msrb.mxu2 %v2137_v40  ;;  %2173 = vmatpush.msra.mxu1 %v2128_v23  ;;  %v1430_v62 = vadd.f32 %v1429_v34, %v1410_v54  ;;  %v1449_v15 = vpop.f32.mrf.mxu0  ;;  %v2083_v34 = vld [vmem:[#allocation4 + $0xff8] sm:$0xff]  ;;  %v2080_v40 = vld [vmem:[#allocation4 + $0xfe0] sm:$0xff]  ;;  %v2078_v23 = vld [vmem:[#allocation4 + $0xfd0] sm:$0xff] }
 0x180   : > { %2213 = vmatpush.msra.mxu0 %v2097_v47  ;;  %2154 = vmatpush.msra.mxu3 %v2094_v36  ;;  %v2110_v47 = vld [vmem:[#allocation4 + $0x10d0] sm:$0xff]  ;;  %v2108_v36 = vld [vmem:[#allocation4 + $0x10c0] sm:$0xff]  ;;  %v2077_v54 = vld [vmem:[#allocation4 + $0xfc8] sm:$0xff] }
 0x181   : > { %2230 = vmatpush.msrb.mxu2 %v2135_v53  ;;  %2174 = vmatpush.msra.mxu1 %v2126_v56  ;;  %v6379_v7 = vadd.f32 %v1430_v62, %v1271_v58  ;;  %v2076_v53 = vld [vmem:[#allocation4 + $0xfc0] sm:$0xff]  ;;  %v2147_v56 = vld [vmem:[#allocation4 + $0x11f8] sm:$0xff]  ;;  %v2341_v58 = vld [vmem:[#allocation4 + $0x1670] sm:$0xff] }
 0x182   : > { %2214 = vmatpush.msra.mxu0 %v2095_v42  ;;  %2155 = vmatpush.msra.mxu3 %v2092_v60  ;;  %v2301_v42 = vld [vmem:[#allocation4 + $0x1530] sm:$0xff]  ;;  %v2145_v60 = vld [vmem:[#allocation4 + $0x11e8] sm:$0xff]  ;;  %v2299_v62 = vld [vmem:[#allocation4 + $0x1520] sm:$0xff] }
 0x183   : > { %2231 = vmatpush.msrb.mxu2 %v2133_v59  ;;  %2175 = vmatpush.msra.mxu1 %v2124_v14  ;;  %v2113_v59 = vld [vmem:[#allocation4 + $0x10e8] sm:$0xff]  ;;  %v2143_v14 = vld [vmem:[#allocation4 + $0x11d8] sm:$0xff]  ;;  %v2331_v17 = vld [vmem:[#allocation4 + $0x1620] sm:$0xff] }
 0x184   : > { %2215 = vmatpush.msra.mxu0 %v2093_v1  ;;  %2156 = vmatpush.msra.mxu3 %v2090_v38  ;;  %v2297_v1 = vld [vmem:[#allocation4 + $0x1510] sm:$0xff]  ;;  %v2109_v38 = vld [vmem:[#allocation4 + $0x10c8] sm:$0xff] }
 0x185   : > { %2232 = vmatpush.msrb.mxu2 %v2131_v32  ;;  %v1469_v20 = vpop.f32.mrf.mxu2  ;;  %2176 = vmatpush.msra.mxu1 %v2122_v10  ;;  %v2337_v32 = vld [vmem:[#allocation4 + $0x1650] sm:$0xff]  ;;  %v2295_v10 = vld [vmem:[#allocation4 + $0x1500] sm:$0xff] }
 0x186   : > { %2216 = vmatpush.msra.mxu0 %v2091_v13  ;;  %v1470_v26 = vadd.f32 %v1469_v20, %v1449_v15  ;;  %2157 = vmatpush.msra.mxu3 %v2088_v0  ;;  %v2335_v13 = vld [vmem:[#allocation4 + $0x1640] sm:$0xff]  ;;  %v2333_v15 = vld [vmem:[#allocation4 + $0x1630] sm:$0xff]  ;;  %v2334_v0 = vld [vmem:[#allocation4 + $0x1638] sm:$0xff] }
 0x187   : > { %2233 = vmatpush.msrb.mxu2 %v2129_v3  ;;  %2177 = vmatpush.msra.mxu1 %v2120_v19  ;;  %v2302_v3 = vld [vmem:[#allocation4 + $0x1538] sm:$0xff]  ;;  %v2300_v19 = vld [vmem:[#allocation4 + $0x1528] sm:$0xff]  ;;  %v2291_v20 = vld [vmem:[#allocation4 + $0x14e0] sm:$0xff] }
 0x188   : > { %2217 = vmatpush.msra.mxu0 %v2089_v57  ;;  %v1489_v11 = vpop.f32.mrf.mxu3  ;;  %2158 = vmatpush.msra.mxu3 %v2086_v25  ;;  %v2332_v57 = vld [vmem:[#allocation4 + $0x1628] sm:$0xff]  ;;  %v2298_v25 = vld [vmem:[#allocation4 + $0x1518] sm:$0xff]  ;;  %v2289_v28 = vld [vmem:[#allocation4 + $0x14d0] sm:$0xff] }
 0x189   : > { %2234 = vmatpush.msrb.mxu2 %v2127_v44  ;;  %v1490_v18 = vadd.f32 %v1489_v11, %v1470_v26  ;;  %2178 = vmatpush.msra.mxu1 %v2118_v29  ;;  %v2329_v44 = vld [vmem:[#allocation4 + $0x1610] sm:$0xff]  ;;  %v2330_v26 = vld [vmem:[#allocation4 + $0x1618] sm:$0xff]  ;;  %v2327_v29 = vld [vmem:[#allocation4 + $0x1600] sm:$0xff] }
 0x18a   : > { %2218 = vmatpush.msra.mxu0 %v2087_v27  ;;  %2159 = vmatpush.msra.mxu3 %v2084_v9  ;;  %v2296_v27 = vld [vmem:[#allocation4 + $0x1508] sm:$0xff]  ;;  %v2287_v9 = vld [vmem:[#allocation4 + $0x14c0] sm:$0xff]  ;;  %v2325_v11 = vld [vmem:[#allocation4 + $0x15f0] sm:$0xff] }
 0x18b   : > { %2235 = vmatpush.msrb.mxu2 %v2125_v49  ;;  %v6384_v35 = vadd.f32 %v1490_v18, %v1272_v12  ;;  %2179 = vmatpush.msra.mxu1 %v2116_v30  ;;  %v2328_v49 = vld [vmem:[#allocation4 + $0x1608] sm:$0xff]  ;;  %v2294_v12 = vld [vmem:[#allocation4 + $0x14f8] sm:$0xff]  ;;  %v2285_v18 = vld [vmem:[#allocation4 + $0x14b0] sm:$0xff] }
 0x18c   : > { %2219 = vmatpush.msra.mxu0 %v2085_v61  ;;  %2160 = vmatpush.msra.mxu3 %v2082_v46  ;;  %v2326_v61 = vld [vmem:[#allocation4 + $0x15f8] sm:$0xff]  ;;  %v2292_v46 = vld [vmem:[#allocation4 + $0x14e8] sm:$0xff] }
 0x18d   : > { %2236 = vmatpush.msrb.mxu2 %v2123_v31  ;;  %2180 = vmatpush.msra.mxu1 %v2114_v33  ;;  %v2323_v31 = vld [vmem:[#allocation4 + $0x15e0] sm:$0xff] }
 0x18e   : > { %2220 = vmatpush.msra.mxu0 %v2083_v34  ;;  %2161 = vmatpush.msra.mxu3 %v2080_v40  ;;  %v2283_v40 = vld [vmem:[#allocation4 + $0x14a0] sm:$0xff] }
 0x18f   : > { %2237 = vmatpush.msrb.mxu2 %v2121_v37  ;;  %2181 = vmatpush.msra.mxu1 %v2112_v41  ;;  %v2324_v37 = vld [vmem:[#allocation4 + $0x15e8] sm:$0xff] }
 0x190   : > { %2221 = vmatpush.msra.mxu0 %v2081_v5  ;;  %2162 = vmatpush.msra.mxu3 %v2078_v23  ;;  %v2321_v5 = vld [vmem:[#allocation4 + $0x15d0] sm:$0xff]  ;;  %v2322_v23 = vld [vmem:[#allocation4 + $0x15d8] sm:$0xff] }
 0x191   : > { %2238 = vmatpush.msrb.mxu2 %v2119_v43  ;;  %2182 = vmatpush.msra.mxu1 %v2110_v47  ;;  %v2290_v43 = vld [vmem:[#allocation4 + $0x14d8] sm:$0xff]  ;;  %v2281_v47 = vld [vmem:[#allocation4 + $0x1490] sm:$0xff] }
 0x192   : > { %2222 = vmatpush.msra.mxu0 %v2079_v48  ;;  %2163 = vmatpush.msra.mxu3 %v2076_v53  ;;  %v2288_v53 = vld [vmem:[#allocation4 + $0x14c8] sm:$0xff] }
 0x193   : > { %2239 = vmatpush.msrb.mxu2 %v2117_v51  ;;  %2183 = vmatpush.msra.mxu1 %v2108_v36  ;;  %v2319_v51 = vld [vmem:[#allocation4 + $0x15c0] sm:$0xff]  ;;  %v2320_v36 = vld [vmem:[#allocation4 + $0x15c8] sm:$0xff] }
 0x194   : > { %4813 = vmatmul.msk.f32.vlgmr.msra.gmra.mxu2 %vm610_vm0, %v6262_v45  ;;  %2223 = vmatpush.msra.mxu0 %v2077_v54  ;;  %v2279_v54 = vld [vmem:[#allocation4 + $0x1480] sm:$0xff] }
 0x195   : > { %2164 = vmatmul.f32.vlgmr.msra.gmra.mxu3 %v6267_v52  ;;  %2240 = vmatpush.msrb.mxu2 %v2115_v55  ;;  %v2317_v55 = vld [vmem:[#allocation4 + $0x15b0] sm:$0xff] }
 0x196   : > { %2260 = vmatpush.msrb.mxu3 %v2147_v56  ;;  %2343 = vmatpush.msrb.mxu1 %v2301_v42  ;;  %v2286_v56 = vld [vmem:[#allocation4 + $0x14b8] sm:$0xff] }
 0x197   : > { %2395 = vmatpush.msrb.mxu0 %v2341_v58  ;;  %2241 = vmatpush.msrb.mxu2 %v2113_v59  ;;  %v2318_v42 = vld [vmem:[#allocation4 + $0x15b8] sm:$0xff]  ;;  %v2277_v58 = vld [vmem:[#allocation4 + $0x1470] sm:$0xff]  ;;  %v2315_v59 = vld [vmem:[#allocation4 + $0x15a0] sm:$0xff] }
 0x198   : > { %2261 = vmatpush.msrb.mxu3 %v2145_v60  ;;  %2344 = vmatpush.msrb.mxu1 %v2299_v62  ;;  %v2284_v60 = vld [vmem:[#allocation4 + $0x14a8] sm:$0xff] }
 0x199   : > { %2396 = vmatpush.msrb.mxu0 %v2339_v63  ;;  %2242 = vmatpush.msrb.mxu2 %v2111_v6  ;;  %v2316_v62 = vld [vmem:[#allocation4 + $0x15a8] sm:$0xff]  ;;  %v2275_v63 = vld [vmem:[#allocation4 + $0x1460] sm:$0xff] }
 0x19a   : > { %2262 = vmatpush.msrb.mxu3 %v2143_v14  ;;  %2345 = vmatpush.msrb.mxu1 %v2297_v1  ;;  %v2313_v14 = vld [vmem:[#allocation4 + $0x1590] sm:$0xff]  ;;  %v2282_v1 = vld [vmem:[#allocation4 + $0x1498] sm:$0xff] }
 0x19b   : > { %2397 = vmatpush.msrb.mxu0 %v2337_v32  ;;  %2184 = vmatmul.f32.vlgmr.msra.gmra.mxu1 %v6265_v50 }
 0x19c   : > { %2243 = vmatpush.msrb.mxu2 %v2109_v38  ;;  %2263 = vmatpush.msrb.mxu3 %v2141_v8  ;;  %v2314_v38 = vld [vmem:[#allocation4 + $0x1598] sm:$0xff]  ;;  %v2273_v8 = vld [vmem:[#allocation4 + $0x1450] sm:$0xff] }
 0x19d   : > { %2346 = vmatpush.msrb.mxu1 %v2295_v10  ;;  %2398 = vmatpush.msrb.mxu0 %v2335_v13  ;;  %v2311_v13 = vld [vmem:[#allocation4 + $0x1580] sm:$0xff] }
 0x19e   : > { %2244 = vmatmul.f32.vlgmr.msrb.gmra.mxu2 %v6265_v50  ;;  %2224 = vmatmul.f32.vlgmr.msra.gmra.mxu0 %v6267_v52 }
 0x19f   : > { %2363 = vmatpush.msra.mxu3 %v2333_v15  ;;  %2403 = vmatpush.msra.mxu2 %v2302_v3  ;;  %v2280_v15 = vld [vmem:[#allocation4 + $0x1488] sm:$0xff] }
 0x1a0   : > { %2423 = vmatpush.msra.mxu0 %v2334_v0  ;;  %2347 = vmatpush.msrb.mxu1 %v2293_v16  ;;  %v2312_v0 = vld [vmem:[#allocation4 + $0x1588] sm:$0xff]  ;;  %v2271_v16 = vld [vmem:[#allocation4 + $0x1440] sm:$0xff] }
 0x1a1   : > { %4814 = vmatmul.msk.f32.vlgmr.msrb.gmra.mxu3 %vm610_vm0, %v6262_v45  ;;  %2404 = vmatpush.msra.mxu2 %v2300_v19  ;;  %v1657_v30 = vpop.f32.mrf.mxu1  ;;  %v1697_v33 = vpop.f32.mrf.mxu0  ;;  %v2309_v19 = vld [vmem:[#allocation4 + $0x1570] sm:$0xff] }
 0x1a2   : > { %2364 = vmatpush.msra.mxu3 %v2331_v17  ;;  %2424 = vmatpush.msra.mxu0 %v2332_v57  ;;  %v2278_v57 = vld [vmem:[#allocation4 + $0x1478] sm:$0xff] }
 0x1a3   : > { %2348 = vmatpush.msrb.mxu1 %v2291_v20  ;;  %2405 = vmatpush.msra.mxu2 %v2298_v25  ;;  %v2310_v20 = vld [vmem:[#allocation4 + $0x1578] sm:$0xff]  ;;  %v2307_v25 = vld [vmem:[#allocation4 + $0x1560] sm:$0xff] }
 0x1a4   : > { %2365 = vmatpush.msra.mxu3 %v2329_v44  ;;  %2425 = vmatpush.msra.mxu0 %v2330_v26  ;;  %v2342_v44 = vld [vmem:[#allocation4 + $0x1678] sm:$0xff]  ;;  %v2276_v26 = vld [vmem:[#allocation4 + $0x1468] sm:$0xff] }
 0x1a5   : > { %2349 = vmatpush.msrb.mxu1 %v2289_v28  ;;  %2406 = vmatpush.msra.mxu2 %v2296_v27  ;;  %v2308_v28 = vld [vmem:[#allocation4 + $0x1568] sm:$0xff]  ;;  %v2305_v27 = vld [vmem:[#allocation4 + $0x1550] sm:$0xff] }
 0x1a6   : > { %2366 = vmatpush.msra.mxu3 %v2327_v29  ;;  %2426 = vmatpush.msra.mxu0 %v2328_v49  ;;  %v1677_v34 = vpop.f32.mrf.mxu3  ;;  %v2340_v29 = vld [vmem:[#allocation4 + $0x1668] sm:$0xff]  ;;  %v2274_v49 = vld [vmem:[#allocation4 + $0x1458] sm:$0xff] }
 0x1a7   : > { %2350 = vmatpush.msrb.mxu1 %v2287_v9  ;;  %2407 = vmatpush.msra.mxu2 %v2294_v12  ;;  %v1678_v41 = vadd.f32 %v1677_v34, %v1657_v30  ;;  %v2306_v9 = vld [vmem:[#allocation4 + $0x1558] sm:$0xff]  ;;  %v2303_v12 = vld [vmem:[#allocation4 + $0x1540] sm:$0xff]  ;;  %v2272_v30 = vld [vmem:[#allocation4 + $0x1448] sm:$0xff] }
 0x1a8   : > { %2367 = vmatpush.msra.mxu3 %v2325_v11  ;;  %2427 = vmatpush.msra.mxu0 %v2326_v61  ;;  %v2338_v11 = vld [vmem:[#allocation4 + $0x1658] sm:$0xff]  ;;  %v2304_v61 = vld [vmem:[#allocation4 + $0x1548] sm:$0xff] }
 0x1a9   : > { %2351 = vmatpush.msrb.mxu1 %v2285_v18  ;;  %2408 = vmatpush.msra.mxu2 %v2292_v46  ;;  %v6394_v48 = vadd.f32 %v1697_v33, %v1678_v41  ;;  %v2336_v18 = vld [vmem:[#allocation4 + $0x1648] sm:$0xff]  ;;  %v4999_v46 = vld [vmem:[#allocation4 + $0x670] sm:$0xff]  ;;  %v5001_v34 = vld [vmem:[#allocation4 + $0x578] sm:$0xff] }
 0x1aa   : > { %2368 = vmatpush.msra.mxu3 %v2323_v31  ;;  %2428 = vmatpush.msra.mxu0 %v2324_v37  ;;  %v4998_v31 = vld [vmem:[#allocation4 + $0x570] sm:$0xff]  ;;  %v5002_v37 = vld [vmem:[#allocation4 + $0x560] sm:$0xff] }
 0x1ab   : > { %2352 = vmatpush.msrb.mxu1 %v2283_v40  ;;  %2409 = vmatpush.msra.mxu2 %v2290_v43  ;;  %v5000_v33 = vld [vmem:[#allocation4 + $0x6b0] sm:$0xff]  ;;  %v5003_v40 = vld [vmem:[#allocation4 + $0x660] sm:$0xff] }
 0x1ac   : > { %2369 = vmatpush.msra.mxu3 %v2321_v5  ;;  %2429 = vmatpush.msra.mxu0 %v2322_v23  ;;  %v5004_v41 = vld [vmem:[#allocation4 + $0x6a0] sm:$0xff]  ;;  %v5005_v5 = vld [vmem:[#allocation4 + $0x568] sm:$0xff]  ;;  %v5006_v23 = vld [vmem:[#allocation4 + $0x550] sm:$0xff] }
 0x1ad   : > { %2353 = vmatpush.msrb.mxu1 %v2281_v47  ;;  %2410 = vmatpush.msra.mxu2 %v2288_v53  ;;  %v5007_v47 = vld [vmem:[#allocation4 + $0x650] sm:$0xff] }
 0x1ae   : > { %2370 = vmatpush.msra.mxu3 %v2319_v51  ;;  %2430 = vmatpush.msra.mxu0 %v2320_v36  ;;  %v5008_v53 = vld [vmem:[#allocation4 + $0x690] sm:$0xff]  ;;  %v5009_v36 = vld [vmem:[#allocation4 + $0x558] sm:$0xff] }
 0x1af   : > { %2354 = vmatpush.msrb.mxu1 %v2279_v54  ;;  %2411 = vmatpush.msra.mxu2 %v2286_v56  ;;  %v5010_v54 = vld [vmem:[#allocation4 + $0x540] sm:$0xff] }
 0x1b0   : > { %2371 = vmatpush.msra.mxu3 %v2317_v55  ;;  %v1717_v6 = vpop.f32.mrf.mxu2  ;;  %2431 = vmatpush.msra.mxu0 %v2318_v42  ;;  %v5011_v55 = vld [vmem:[#allocation4 + $0x640] sm:$0xff] }
 0x1b1   : > { %2355 = vmatpush.msrb.mxu1 %v2277_v58  ;;  %v1737_v32 = vpop.f32.mrf.mxu0  ;;  %2412 = vmatpush.msra.mxu2 %v2284_v60  ;;  %v5012_v56 = vld [vmem:[#allocation4 + $0x680] sm:$0xff]  ;;  %v5013_v58 = vld [vmem:[#allocation4 + $0x548] sm:$0xff] }
 0x1b2   : > { %2372 = vmatpush.msra.mxu3 %v2315_v59  ;;  %v1738_v10 = vadd.f32 %v1737_v32, %v1717_v6  ;;  %2432 = vmatpush.msra.mxu0 %v2316_v62  ;;  %v5014_v59 = vld [vmem:[#allocation4 + $0x678] sm:$0xff]  ;;  %v5015_v62 = vld [vmem:[#allocation4 + $0x530] sm:$0xff]  ;;  %v5019_v32 = vld [vmem:[#allocation4 + $0x520] sm:$0xff] }
 0x1b3   : > { %2356 = vmatpush.msrb.mxu1 %v2275_v63  ;;  %v1757_v3 = vpop.f32.mrf.mxu1  ;;  %2413 = vmatpush.msra.mxu2 %v2282_v1  ;;  %v5016_v6 = vld [vmem:[#allocation4 + $0x630] sm:$0xff]  ;;  %v5018_v1 = vld [vmem:[#allocation4 + $0x668] sm:$0xff] }
 0x1b4   : > { %2373 = vmatpush.msra.mxu3 %v2313_v14  ;;  %v6396_v17 = vadd.f32 %v1757_v3, %v1738_v10  ;;  %2433 = vmatpush.msra.mxu0 %v2314_v38  ;;  %v5017_v14 = vld [vmem:[#allocation4 + $0x538] sm:$0xff]  ;;  %v5020_v38 = vld [vmem:[#allocation4 + $0x620] sm:$0xff]  ;;  %v5024_v3 = vld [vmem:[#allocation4 + $0x610] sm:$0xff] }
 0x1b5   : > { %2357 = vmatpush.msrb.mxu1 %v2273_v8  ;;  %2414 = vmatpush.msra.mxu2 %v2280_v15  ;;  %v5021_v8 = vld [vmem:[#allocation4 + $0x528] sm:$0xff]  ;;  %v5022_v10 = vld [vmem:[#allocation4 + $0x658] sm:$0xff] }
 0x1b6   : > { %2374 = vmatpush.msra.mxu3 %v2311_v13  ;;  %2434 = vmatpush.msra.mxu0 %v2312_v0  ;;  %v5023_v13 = vld [vmem:[#allocation4 + $0x510] sm:$0xff] }
 0x1b7   : > { %2358 = vmatpush.msrb.mxu1 %v2271_v16  ;;  %2415 = vmatpush.msra.mxu2 %v2278_v57  ;;  %v5026_v16 = vld [vmem:[#allocation4 + $0x648] sm:$0xff] }
 0x1b8   : > { %2375 = vmatpush.msra.mxu3 %v2309_v19  ;;  %2435 = vmatpush.msra.mxu0 %v2310_v20  ;;  %v5028_v19 = vld [vmem:[#allocation4 + $0x600] sm:$0xff]  ;;  %v5029_v57 = vld [vmem:[#allocation4 + $0x508] sm:$0xff] }
 0x1b9   : > { %2455 = vmatpush.msra.mxu1 %v2342_v44  ;;  %2416 = vmatpush.msra.mxu2 %v2276_v26  ;;  %v5030_v44 = vld [vmem:[#allocation4 + $0x638] sm:$0xff] }
 0x1ba   : > { %2376 = vmatpush.msra.mxu3 %v2307_v25  ;;  %2436 = vmatpush.msra.mxu0 %v2308_v28  ;;  %v5031_v25 = vld [vmem:[#allocation4 + $0x4f0] sm:$0xff] }
 0x1bb   : > { %2456 = vmatpush.msra.mxu1 %v2340_v29  ;;  %2417 = vmatpush.msra.mxu2 %v2274_v49  ;;  %v5032_v28 = vld [vmem:[#allocation4 + $0x5f0] sm:$0xff]  ;;  %v5033_v29 = vld [vmem:[#allocation4 + $0x4f8] sm:$0xff]  ;;  %v5034_v49 = vld [vmem:[#allocation4 + $0x628] sm:$0xff] }
 0x1bc   : > { %2377 = vmatpush.msra.mxu3 %v2305_v27  ;;  %2437 = vmatpush.msra.mxu0 %v2306_v9  ;;  %v5035_v9 = vld [vmem:[#allocation4 + $0x4e0] sm:$0xff] }
 0x1bd   : > { %2457 = vmatpush.msra.mxu1 %v2338_v11  ;;  %4815 = vmatmul.msk.f32.vlgmr.msrb.gmra.mxu0 %vm610_vm0, %v6282_v2  ;;  %v5036_v11 = vld [vmem:[#allocation4 + $0x5e0] sm:$0xff] }
 0x1be   : > { %2378 = vmatpush.msra.mxu3 %v2303_v12  ;;  %2418 = vmatpush.msra.mxu2 %v2272_v30  ;;  %v5037_v12 = vld [vmem:[#allocation4 + $0x4e8] sm:$0xff] }
 0x1bf   : > { %2438 = vmatpush.msra.mxu0 %v2304_v61  ;;  %2458 = vmatpush.msra.mxu1 %v2336_v18  ;;  %v5038_v61 = vld [vmem:[#allocation4 + $0x618] sm:$0xff]  ;;  %v5039_v18 = vld [vmem:[#allocation4 + $0x4d0] sm:$0xff] }
 0x1c0   : > { %2379 = vmatmul.f32.vlgmr.msra.gmra.mxu3 %v6293_v21  ;;  %2359 = vmatmul.f32.vlgmr.msrb.gmra.mxu1 %v6285_v4 }
 0x1c1   : > { %2419 = vmatmul.f32.vlgmr.msra.gmra.mxu2 %v6285_v4  ;;  %2465 = vmatpush.msrb.mxu3 %v4998_v31 }
 0x1c2   : > { %2485 = vmatpush.msrb.mxu1 %v4999_v46  ;;  %2517 = vmatpush.msrb.mxu2 %v5000_v33  ;;  %v5040_v46 = vld [vmem:[#allocation4 + $0x5d0] sm:$0xff]  ;;  %v5041_v33 = vld [vmem:[#allocation4 + $0x4d8] sm:$0xff] }
 0x1c3   : > { %2525 = vmatpush.msrb.mxu0 %v5001_v34  ;;  %2466 = vmatpush.msrb.mxu3 %v5002_v37  ;;  %v5042_v34 = vld [vmem:[#allocation4 + $0x608] sm:$0xff]  ;;  %v5043_v37 = vld [vmem:[#allocation4 + $0x4c0] sm:$0xff] }
 0x1c4   : > { %2486 = vmatpush.msrb.mxu1 %v5003_v40  ;;  %2518 = vmatpush.msrb.mxu2 %v5004_v41  ;;  %v1837_v43 = vpop.f32.mrf.mxu0  ;;  %v5044_v40 = vld [vmem:[#allocation4 + $0x5c0] sm:$0xff]  ;;  %v5045_v41 = vld [vmem:[#allocation4 + $0x4c8] sm:$0xff] }
 0x1c5   : > { %2526 = vmatpush.msrb.mxu0 %v5005_v5  ;;  %2467 = vmatpush.msrb.mxu3 %v5006_v23  ;;  %v1838_v51 = vadd.f32 %v1837_v43, %v6396_v17  ;;  %v5027_v17 = vld [vmem:[#allocation4 + $0x500] sm:$0xff]  ;;  %v5046_v5 = vld [vmem:[#allocation4 + $0x5f8] sm:$0xff]  ;;  %v5047_v43 = vld [vmem:[#allocation4 + $0x4b0] sm:$0xff] }
 0x1c6   : > { %2487 = vmatpush.msrb.mxu1 %v5007_v47  ;;  %2519 = vmatpush.msrb.mxu2 %v5008_v53  ;;  %v5048_v23 = vld [vmem:[#allocation4 + $0x5b0] sm:$0xff]  ;;  %v5049_v47 = vld [vmem:[#allocation4 + $0x4b8] sm:$0xff]  ;;  %v5051_v53 = vld [vmem:[#allocation4 + $0x4a0] sm:$0xff] }
 0x1c7   : > { %2527 = vmatpush.msrb.mxu0 %v5009_v36  ;;  %2468 = vmatpush.msrb.mxu3 %v5010_v54  ;;  %v5052_v36 = vld [vmem:[#allocation4 + $0x5a0] sm:$0xff]  ;;  %v5053_v54 = vld [vmem:[#allocation4 + $0x4a8] sm:$0xff] }
 0x1c8   : > { %2439 = vmatmul.f32.vlgmr.msra.gmra.mxu0 %v6293_v21  ;;  %2488 = vmatpush.msrb.mxu1 %v5011_v55  ;;  %v5054_v55 = vld [vmem:[#allocation4 + $0x5d8] sm:$0xff] }
 0x1c9   : > { %2520 = vmatpush.msrb.mxu2 %v5012_v56  ;;  %v1817_v42 = vpop.f32.mrf.mxu2  ;;  %2528 = vmatpush.msrb.mxu0 %v5013_v58  ;;  %v5055_v56 = vld [vmem:[#allocation4 + $0x490] sm:$0xff]  ;;  %v5057_v58 = vld [vmem:[#allocation4 + $0x498] sm:$0xff] }
 0x1ca   : > { %v1777_v60 = vpop.f32.mrf.mxu3  ;;  %4816 = vmatmul.msk.f32.vlgmr.msra.gmra.mxu1 %vm610_vm0, %v6282_v2  ;;  %2469 = vmatpush.msrb.mxu3 %v5015_v62  ;;  %v5060_v62 = vld [vmem:[#allocation4 + $0x580] sm:$0xff] }
 0x1cb   : > { %2545 = vmatpush.msra.mxu2 %v5014_v59  ;;  %v1778_v63 = vadd.f32 %v1777_v60, %v6394_v48  ;;  %2489 = vmatpush.msrb.mxu1 %v5016_v6  ;;  %v5025_v48 = vld [vmem:[#allocation4 + $0x518] sm:$0xff]  ;;  %v5058_v59 = vld [vmem:[#allocation4 + $0x5c8] sm:$0xff]  ;;  %v5059_v60 = vld [vmem:[#allocation4 + $0x480] sm:$0xff] }
 0x1cc   : > { %2529 = vmatpush.msrb.mxu0 %v5017_v14  ;;  %2470 = vmatpush.msrb.mxu3 %v5019_v32  ;;  %v5062_v6 = vld [vmem:[#allocation4 + $0x5b8] sm:$0xff]  ;;  %v5065_v32 = vld [vmem:[#allocation4 + $0x230] sm:$0xff] }
 0x1cd   : > { %2546 = vmatpush.msra.mxu2 %v5018_v1  ;;  %2490 = vmatpush.msrb.mxu1 %v5020_v38  ;;  %v5063_v14 = vld [vmem:[#allocation4 + $0x6b8] sm:$0xff]  ;;  %v5064_v1 = vld [vmem:[#allocation4 + $0xf0] sm:$0xff]  ;;  %v5066_v38 = vld [vmem:[#allocation4 + $0x5a8] sm:$0xff] }
 0x1ce   : > { %2530 = vmatpush.msrb.mxu0 %v5021_v8  ;;  %2471 = vmatpush.msrb.mxu3 %v5023_v13  ;;  %v5067_v8 = vld [vmem:[#allocation4 + $0x6a8] sm:$0xff]  ;;  %v5069_v13 = vld [vmem:[#allocation4 + $0x220] sm:$0xff] }
 0x1cf   : > { %2547 = vmatpush.msra.mxu2 %v5022_v10  ;;  %v1797_v15 = vpop.f32.mrf.mxu1  ;;  %2491 = vmatpush.msrb.mxu1 %v5024_v3  ;;  %v5068_v10 = vld [vmem:[#allocation4 + $0xe0] sm:$0xff]  ;;  %v5071_v3 = vld [vmem:[#allocation4 + $0x698] sm:$0xff] }
 0x1d0   : > { %2531 = vmatpush.msrb.mxu0 %v5025_v48  ;;  %v1798_v0 = vadd.f32 %v1797_v15, %v1778_v63  ;;  %2472 = vmatpush.msrb.mxu3 %v5027_v17  ;;  %v5061_v63 = vld [vmem:[#allocation4 + $0x488] sm:$0xff]  ;;  %v5070_v15 = vld [vmem:[#allocation4 + $0x598] sm:$0xff]  ;;  %v5072_v48 = vld [vmem:[#allocation4 + $0xd0] sm:$0xff] }
 0x1d1   : > { %2548 = vmatpush.msra.mxu2 %v5026_v16  ;;  %2492 = vmatpush.msrb.mxu1 %v5028_v19  ;;  %v5074_v16 = vld [vmem:[#allocation4 + $0x588] sm:$0xff]  ;;  %v5076_v19 = vld [vmem:[#allocation4 + $0xc0] sm:$0xff] }
 0x1d2   : > { %2532 = vmatpush.msrb.mxu0 %v5029_v57  ;;  %v6408_v20 = vadd.f32 %v1817_v42, %v1798_v0  ;;  %2473 = vmatpush.msrb.mxu3 %v5031_v25  ;;  %v5056_v42 = vld [vmem:[#allocation4 + $0x590] sm:$0xff]  ;;  %v5075_v17 = vld [vmem:[#allocation4 + $0x688] sm:$0xff]  ;;  %v5077_v57 = vld [vmem:[#allocation4 + $0x200] sm:$0xff] }
 0x1d3   : > { %2549 = vmatpush.msra.mxu2 %v5030_v44  ;;  %v1857_v26 = vpop.f32.mrf.mxu2  ;;  %2493 = vmatpush.msrb.mxu1 %v5032_v28  ;;  %v5073_v0 = vld [vmem:[#allocation4 + $0x210] sm:$0xff]  ;;  %v5079_v25 = vld [vmem:[#allocation4 + $0xf8] sm:$0xff] }
 0x1d4   : > { %2533 = vmatpush.msrb.mxu0 %v5033_v29  ;;  %v1858_v27 = vadd.f32 %v1857_v26, %v1838_v51  ;;  %2474 = vmatpush.msrb.mxu3 %v5035_v9  ;;  %v5050_v51 = vld [vmem:[#allocation4 + $0x5e8] sm:$0xff]  ;;  %v5078_v44 = vld [vmem:[#allocation4 + $0x1f0] sm:$0xff]  ;;  %v5080_v28 = vld [vmem:[#allocation4 + $0x1f8] sm:$0xff] }
 0x1d5   : > { %2550 = vmatpush.msra.mxu2 %v5034_v49  ;;  %2494 = vmatpush.msrb.mxu1 %v5036_v11  ;;  %v1877_v30 = vpop.f32.mrf.mxu3  ;;  %v5081_v29 = vld [vmem:[#allocation4 + $0xb0] sm:$0xff]  ;;  %v5083_v49 = vld [vmem:[#allocation4 + $0x1e0] sm:$0xff]  ;;  %v5084_v9 = vld [vmem:[#allocation4 + $0x1e8] sm:$0xff] }
 0x1d6   : > { %2534 = vmatpush.msrb.mxu0 %v5037_v12  ;;  %2475 = vmatpush.msrb.mxu3 %v5039_v18  ;;  %v6410_v31 = vadd.f32 %v1877_v30, %v1858_v27  ;;  %v5082_v27 = vld [vmem:[#allocation4 + $0xe8] sm:$0xff]  ;;  %v5085_v12 = vld [vmem:[#allocation4 + $0xa0] sm:$0xff]  ;;  %v5086_v30 = vld [vmem:[#allocation4 + $0xd8] sm:$0xff] }
 0x1d7   : > { %2551 = vmatpush.msra.mxu2 %v5038_v61  ;;  %2495 = vmatpush.msrb.mxu1 %v5040_v46  ;;  %v5087_v61 = vld [vmem:[#allocation4 + $0x1d0] sm:$0xff]  ;;  %v5088_v18 = vld [vmem:[#allocation4 + $0x1d8] sm:$0xff] }
 0x1d8   : > { %2535 = vmatpush.msrb.mxu0 %v5041_v33  ;;  %2476 = vmatpush.msrb.mxu3 %v5043_v37  ;;  %v5089_v46 = vld [vmem:[#allocation4 + $0x90] sm:$0xff]  ;;  %v5090_v33 = vld [vmem:[#allocation4 + $0x1c0] sm:$0xff]  ;;  %v5092_v37 = vld [vmem:[#allocation4 + $0x1c8] sm:$0xff] }
 0x1d9   : > { %2552 = vmatpush.msra.mxu2 %v5042_v34  ;;  %2496 = vmatpush.msrb.mxu1 %v5044_v40  ;;  %v5091_v34 = vld [vmem:[#allocation4 + $0xc8] sm:$0xff]  ;;  %v5093_v40 = vld [vmem:[#allocation4 + $0x80] sm:$0xff] }
 0x1da   : > { %2536 = vmatpush.msrb.mxu0 %v5045_v41  ;;  %2477 = vmatpush.msrb.mxu3 %v5047_v43  ;;  %v5095_v43 = vld [vmem:[#allocation4 + $0xb8] sm:$0xff] }
 0x1db   : > { %2553 = vmatpush.msra.mxu2 %v5046_v5  ;;  %2497 = vmatpush.msrb.mxu1 %v5048_v23  ;;  %v5094_v5 = vld [vmem:[#allocation4 + $0x1b0] sm:$0xff] }
 0x1dc   : > { %2537 = vmatpush.msrb.mxu0 %v5049_v47  ;;  %2478 = vmatpush.msrb.mxu3 %v5051_v53  ;;  %v5097_v53 = vld [vmem:[#allocation4 + $0x70] sm:$0xff] }
 0x1dd   : > { %2554 = vmatpush.msra.mxu2 %v5050_v51  ;;  %2498 = vmatpush.msrb.mxu1 %v5052_v36  ;;  %v5096_v51 = vld [vmem:[#allocation4 + $0x1b8] sm:$0xff] }
 0x1de   : > { %2538 = vmatpush.msrb.mxu0 %v5053_v54  ;;  %2479 = vmatpush.msrb.mxu3 %v5055_v56  ;;  %v5098_v54 = vld [vmem:[#allocation4 + $0x1a0] sm:$0xff] }
 0x1df   : > { %2555 = vmatpush.msra.mxu2 %v5054_v55  ;;  %2499 = vmatpush.msrb.mxu1 %v5056_v42  ;;  %v5099_v55 = vld [vmem:[#allocation4 + $0xa8] sm:$0xff] }
 0x1e0   : > { %2539 = vmatpush.msrb.mxu0 %v5057_v58  ;;  %2480 = vmatpush.msrb.mxu3 %v5059_v60  ;;  %v5100_v58 = vld [vmem:[#allocation4 + $0x1a8] sm:$0xff]  ;;  %v5102_v60 = vld [vmem:[#allocation4 + $0x190] sm:$0xff] }
 0x1e1   : > { %2556 = vmatpush.msra.mxu2 %v5058_v59  ;;  %2500 = vmatpush.msrb.mxu1 %v5060_v62  ;;  %v5101_v59 = vld [vmem:[#allocation4 + $0x60] sm:$0xff]  ;;  %v5103_v62 = vld [vmem:[#allocation4 + $0x98] sm:$0xff] }
 0x1e2   : > { %4817 = vmatmul.msk.f32.vlgmr.msrb.gmra.mxu2 %vm610_vm0, %v6245_v22  ;;  %2540 = vmatpush.msrb.mxu0 %v5061_v63 }
 0x1e3   : > { %2557 = vmatpush.msra.mxu2 %v5062_v6  ;;  %2577 = vmatpush.msra.mxu3 %v5063_v14  ;;  %v5104_v14 = vld [vmem:[#allocation4 + $0x198] sm:$0xff] }
 0x1e4   : > { %2585 = vmatpush.msra.mxu1 %v5064_v1  ;;  %2637 = vmatpush.msra.mxu0 %v5065_v32  ;;  %v5105_v1 = vld [vmem:[#allocation4 + $0x50] sm:$0xff] }
 0x1e5   : > { %2481 = vmatmul.f32.vlgmr.msrb.gmra.mxu3 %v6247_v24  ;;  %2558 = vmatpush.msra.mxu2 %v5066_v38  ;;  %v5106_v38 = vld [vmem:[#allocation4 + $0x180] sm:$0xff] }
 0x1e6   : > { %2578 = vmatpush.msra.mxu3 %v5067_v8  ;;  %2586 = vmatpush.msra.mxu1 %v5068_v10  ;;  %v5107_v8 = vld [vmem:[#allocation4 + $0x88] sm:$0xff] }
 0x1e7   : > { %2638 = vmatpush.msra.mxu0 %v5069_v13  ;;  %2559 = vmatpush.msra.mxu2 %v5070_v15  ;;  %v5108_v10 = vld [vmem:[#allocation4 + $0x188] sm:$0xff]  ;;  %v5109_v13 = vld [vmem:[#allocation4 + $0x40] sm:$0xff] }
 0x1e8   : > { %2579 = vmatpush.msra.mxu3 %v5071_v3  ;;  %2587 = vmatpush.msra.mxu1 %v5072_v48  ;;  %v5110_v3 = vld [vmem:[#allocation4 + $0x170] sm:$0xff]  ;;  %v5112_v48 = vld [vmem:[#allocation4 + $0x178] sm:$0xff] }
 0x1e9   : > { %2639 = vmatpush.msra.mxu0 %v5073_v0  ;;  %2560 = vmatpush.msra.mxu2 %v5074_v16  ;;  %v5113_v0 = vld [vmem:[#allocation4 + $0x30] sm:$0xff]  ;;  %v5114_v16 = vld [vmem:[#allocation4 + $0x160] sm:$0xff] }
 0x1ea   : > { %2580 = vmatpush.msra.mxu3 %v5075_v17  ;;  %2588 = vmatpush.msra.mxu1 %v5076_v19  ;;  %v5115_v17 = vld [vmem:[#allocation4 + $0x68] sm:$0xff] }
 0x1eb   : > { %2640 = vmatpush.msra.mxu0 %v5077_v57  ;;  %2561 = vmatmul.f32.vlgmr.msra.gmra.mxu2 %v6253_v39  ;;  %v5116_v19 = vld [vmem:[#allocation4 + $0x168] sm:$0xff]  ;;  %v5117_v57 = vld [vmem:[#allocation4 + $0x20] sm:$0xff] }
 0x1ec   : > { %2541 = vmatmul.f32.vlgmr.msrb.gmra.mxu0 %v6247_v24  ;;  %2605 = vmatpush.msrb.mxu3 %v5078_v44  ;;  %v2010_v26 = vpop.f32.mrf.mxu0  ;;  %v5118_v44 = vld [vmem:[#allocation4 + $0x150] sm:$0xff] }
 0x1ed   : > { %2645 = vmatpush.msrb.mxu2 %v5079_v25  ;;  %2665 = vmatpush.msrb.mxu0 %v5080_v28  ;;  %v5120_v25 = vld [vmem:[#allocation4 + $0x158] sm:$0xff]  ;;  %v5122_v28 = vld [vmem:[#allocation4 + $0x140] sm:$0xff] }
 0x1ee   : > { %2589 = vmatpush.msra.mxu1 %v5081_v29  ;;  %4818 = vmatmul.msk.f32.vlgmr.msra.gmra.mxu3 %vm610_vm0, %v6245_v22  ;;  %v5123_v29 = vld [vmem:[#allocation4 + $0x48] sm:$0xff] }
 0x1ef   : > { %2646 = vmatpush.msrb.mxu2 %v5082_v27  ;;  %2606 = vmatpush.msrb.mxu3 %v5083_v49  ;;  %v1970_v11 = vpop.f32.mrf.mxu1  ;;  %v5124_v27 = vld [vmem:[#allocation4 + $0x148] sm:$0xff]  ;;  %v5125_v49 = vld [vmem:[#allocation4] sm:$0xff] }
 0x1f0   : > { %2666 = vmatpush.msrb.mxu0 %v5084_v9  ;;  %2590 = vmatpush.msra.mxu1 %v5085_v12  ;;  %v6427_v9 = vld [vmem:[%s6224_s28] sm:$0x7f] }
 0x1f1   : > { %2647 = vmatpush.msrb.mxu2 %v5086_v30  ;;  %2501 = vmatmul.f32.vlgmr.msrb.gmra.mxu1 %v6253_v39  ;;  %v5128_v12 = vld [vmem:[#allocation4 + $0x38] sm:$0xff] }
 0x1f2   : > { %2607 = vmatpush.msrb.mxu3 %v5087_v61  ;;  %2667 = vmatpush.msrb.mxu0 %v5088_v18  ;;  %v5129_v30 = vld [vmem:[#allocation4 + $0x138] sm:$0xff]  ;;  %v5130_v61 = vld [vmem:[#allocation4 + $0x120] sm:$0xff] }
 0x1f3   : > { %2591 = vmatpush.msra.mxu1 %v5089_v46  ;;  %2648 = vmatpush.msrb.mxu2 %v5091_v34  ;;  %v5131_v18 = vld [vmem:[#allocation4 + $0x238] sm:$0xff]  ;;  %v5132_v46 = vld [vmem:[#allocation4 + $0x28] sm:$0xff]  ;;  %v5134_v34 = vld [vmem:[#allocation4 + $0x110] sm:$0xff] }
 0x1f4   : > { %2608 = vmatpush.msrb.mxu3 %v5090_v33  ;;  %2668 = vmatpush.msrb.mxu0 %v5092_v37  ;;  %v5133_v33 = vld [vmem:[#allocation4 + $0x128] sm:$0xff] }
 0x1f5   : > { %2592 = vmatpush.msra.mxu1 %v5093_v40  ;;  %v1990_v41 = vpop.f32.mrf.mxu3  ;;  %2649 = vmatpush.msrb.mxu2 %v5095_v43  ;;  %v6431_v37 = vld [vmem:[%s6224_s28 + $0x10] sm:$0x7f]  ;;  %v5136_v40 = vld [vmem:[#allocation4 + $0x18] sm:$0xff] }
 0x1f6   : > { %2609 = vmatpush.msrb.mxu3 %v5094_v5  ;;  %v1991_v23 = vadd.f32 %v1990_v41, %v1970_v11  ;;  %v2030_v47 = vpop.f32.mrf.mxu2  ;;  %2669 = vmatpush.msrb.mxu0 %v5096_v51  ;;  %v5127_v11 = vld [vmem:[#allocation4 + $0x130] sm:$0xff]  ;;  %v5137_v41 = vld [vmem:[#allocation4 + $0x118] sm:$0xff]  ;;  %v5138_v5 = vld [vmem:[#allocation4 + $0x100] sm:$0xff] }
 0x1f7   : > { %2593 = vmatpush.msra.mxu1 %v5097_v53  ;;  %v2050_v36 = vpop.f32.mrf.mxu0  ;;  %2650 = vmatpush.msrb.mxu2 %v5099_v55  ;;  %v5139_v43 = vld [vmem:[#allocation4 + $0x228] sm:$0xff]  ;;  %v5143_v53 = vld [vmem:[#allocation4 + $0x9f0] sm:$0xff]  ;;  %v5146_v55 = vld [vmem:[#allocation4 + $0x218] sm:$0xff] }
 0x1f8   : > { %2610 = vmatpush.msrb.mxu3 %v5098_v54  ;;  %v2011_v56 = vadd.f32 %v2010_v26, %v1991_v23  ;;  %v2051_v42 = vadd.f32 %v2050_v36, %v2030_v47  ;;  %2670 = vmatpush.msrb.mxu0 %v5100_v58  ;;  %v5121_v26 = vld [vmem:[#allocation4 + $0x10] sm:$0xff]  ;;  %v5140_v23 = vld [vmem:[#allocation4 + $0x8] sm:$0xff]  ;;  %v5145_v54 = vld [vmem:[#allocation4 + $0x9f8] sm:$0xff] }
 0x1f9   : > { %2594 = vmatpush.msra.mxu1 %v5101_v59  ;;  %2651 = vmatpush.msrb.mxu2 %v5103_v62  ;;  %v2070_v6 = vpop.f32.mrf.mxu1  ;;  %v5141_v47 = vld [vmem:[#allocation4 + $0x108] sm:$0xff]  ;;  %v5144_v36 = vld [vmem:[#allocation4 + $0xb30] sm:$0xff] }
 0x1fa   : > { %2611 = vmatpush.msrb.mxu3 %v5102_v60  ;;  %v6421_v63 = vadd.f32 %v2011_v56, %v6408_v20  ;;  %2671 = vmatpush.msrb.mxu0 %v5104_v14  ;;  %v2071_v32 = vadd.f32 %v2070_v6, %v2051_v42  ;;  %v5111_v20 = vld [vmem:[#allocation4 + $0x78] sm:$0xff]  ;;  %v6436_v51 = vld [vmem:[%s6224_s28 + $0x8] sm:$0x7f]  ;;  %v5151_v60 = vld [vmem:[#allocation4 + $0x9d0] sm:$0xff] }
 0x1fb   : > { %2595 = vmatpush.msra.mxu1 %v5105_v1  ;;  %2652 = vmatpush.msrb.mxu2 %v5107_v8  ;;  %v5147_v56 = vld [vmem:[#allocation4 + $0x9e0] sm:$0xff]  ;;  %v5149_v58 = vld [vmem:[#allocation4 + $0x9e8] sm:$0xff]  ;;  %v5152_v62 = vld [vmem:[#allocation4 + $0xb10] sm:$0xff] }
 0x1fc   : > { %2612 = vmatpush.msrb.mxu3 %v5106_v38  ;;  %2672 = vmatpush.msrb.mxu0 %v5108_v10  ;;  %v6424_v15 = vadd.f32 %v2071_v32, %v6410_v31  ;;  %v5119_v31 = vld [vmem:[#allocation4 + $0x58] sm:$0xff]  ;;  %v5148_v42 = vld [vmem:[#allocation4 + $0xb20] sm:$0xff]  ;;  %v5150_v59 = vld [vmem:[#allocation4 + $0x208] sm:$0xff] }
 0x1fd   : > { %2596 = vmatpush.msra.mxu1 %v5109_v13  ;;  %2653 = vmatpush.msrb.mxu2 %v5111_v20  ;;  %v5153_v6 = vld [vmem:[#allocation4 + $0x9d8] sm:$0xff]  ;;  %v5154_v14 = vld [vmem:[#allocation4 + $0xaf0] sm:$0xff]  ;;  %v5155_v1 = vld [vmem:[#allocation4 + $0x9c0] sm:$0xff] }
 0x1fe   : > { %2613 = vmatpush.msrb.mxu3 %v5110_v3  ;;  %2673 = vmatpush.msrb.mxu0 %v5112_v48  ;;  %v5156_v32 = vld [vmem:[#allocation4 + $0xb00] sm:$0xff]  ;;  %v5157_v38 = vld [vmem:[#allocation4 + $0x9c8] sm:$0xff]  ;;  %v5158_v8 = vld [vmem:[#allocation4 + $0xaf8] sm:$0xff] }
 0x1ff   : > { %2597 = vmatpush.msra.mxu1 %v5113_v0  ;;  %2654 = vmatpush.msrb.mxu2 %v5115_v17  ;;  %v5159_v10 = vld [vmem:[#allocation4 + $0x9b0] sm:$0xff]  ;;  %v5160_v3 = vld [vmem:[#allocation4 + $0xae0] sm:$0xff]  ;;  %v5161_v20 = vld [vmem:[#allocation4 + $0x9b8] sm:$0xff] }
 0x200   : > { %2614 = vmatpush.msrb.mxu3 %v5114_v16  ;;  %2674 = vmatpush.msrb.mxu0 %v5116_v19  ;;  %v5162_v0 = vld [vmem:[#allocation4 + $0xae8] sm:$0xff]  ;;  %v5163_v17 = vld [vmem:[#allocation4 + $0x9a0] sm:$0xff]  ;;  %v5164_v19 = vld [vmem:[#allocation4 + $0xad0] sm:$0xff] }
 0x201   : > { %2598 = vmatpush.msra.mxu1 %v5117_v57  ;;  %2655 = vmatpush.msrb.mxu2 %v5119_v31  ;;  %v5166_v31 = vld [vmem:[#allocation4 + $0xad8] sm:$0xff] }
 0x202   : > { %2615 = vmatpush.msrb.mxu3 %v5118_v44  ;;  %2675 = vmatpush.msrb.mxu0 %v5120_v25  ;;  %v5165_v44 = vld [vmem:[#allocation4 + $0x9a8] sm:$0xff]  ;;  %v5167_v25 = vld [vmem:[#allocation4 + $0x990] sm:$0xff] }
 0x203   : > { %2599 = vmatpush.msra.mxu1 %v5121_v26  ;;  %2656 = vmatpush.msrb.mxu2 %v5123_v29  ;;  %v5168_v26 = vld [vmem:[#allocation4 + $0xac0] sm:$0xff]  ;;  %v5169_v29 = vld [vmem:[#allocation4 + $0x998] sm:$0xff] }
 0x204   : > { %2616 = vmatpush.msrb.mxu3 %v5122_v28  ;;  %2676 = vmatpush.msrb.mxu0 %v5124_v27  ;;  %v5170_v27 = vld [vmem:[#allocation4 + $0xac8] sm:$0xff] }
 0x205   : > { %2600 = vmatpush.msra.mxu1 %v5125_v49  ;;  %2657 = vmatpush.msrb.mxu2 %v5128_v12  ;;  %v5171_v49 = vld [vmem:[#allocation4 + $0x980] sm:$0xff] }
 0x206   : > { %2601 = vmatmul.f32.vlgmr.msra.gmra.mxu1 %v6427_v9  ;;  %2617 = vmatpush.msrb.mxu3 %v5127_v11  ;;  %v5172_v11 = vld [vmem:[#allocation4 + $0xab0] sm:$0xff] }
 0x207   : > { %2677 = vmatpush.msrb.mxu0 %v5129_v30  ;;  %2697 = vmatpush.msrb.mxu1 %v5131_v18  ;;  %v5173_v30 = vld [vmem:[#allocation4 + $0x988] sm:$0xff] }
 0x208   : > { %2618 = vmatpush.msrb.mxu3 %v5130_v61  ;;  %2658 = vmatpush.msrb.mxu2 %v5132_v46  ;;  %v5174_v61 = vld [vmem:[#allocation4 + $0xab8] sm:$0xff]  ;;  %v5175_v46 = vld [vmem:[#allocation4 + $0x970] sm:$0xff] }
 0x209   : > { %2678 = vmatpush.msrb.mxu0 %v5133_v33  ;;  %2698 = vmatpush.msrb.mxu1 %v5139_v43  ;;  %v5176_v33 = vld [vmem:[#allocation4 + $0xaa0] sm:$0xff]  ;;  %v5180_v43 = vld [vmem:[#allocation4 + $0xa90] sm:$0xff] }
 0x20a   : > { %2619 = vmatpush.msrb.mxu3 %v5134_v34  ;;  %4819 = vmatmul.msk.f32.vlgmr.msra.gmra.mxu0 %vm610_vm0, %v6431_v37  ;;  %v5177_v34 = vld [vmem:[#allocation4 + $0x978] sm:$0xff] }
 0x20b   : > { %2659 = vmatpush.msrb.mxu2 %v5136_v40  ;;  %2679 = vmatpush.msrb.mxu0 %v5137_v41  ;;  %v5178_v40 = vld [vmem:[#allocation4 + $0xaa8] sm:$0xff] }
 0x20c   : > { %2620 = vmatpush.msrb.mxu3 %v5138_v5  ;;  %2699 = vmatpush.msrb.mxu1 %v5146_v55  ;;  %v5179_v5 = vld [vmem:[#allocation4 + $0x960] sm:$0xff]  ;;  %v5185_v55 = vld [vmem:[#allocation4 + $0x958] sm:$0xff] }
 0x20d   : > { %2660 = vmatpush.msrb.mxu2 %v5140_v23  ;;  %2680 = vmatpush.msrb.mxu0 %v5141_v47  ;;  %v5181_v23 = vld [vmem:[#allocation4 + $0x968] sm:$0xff]  ;;  %v5182_v47 = vld [vmem:[#allocation4 + $0xa98] sm:$0xff] }
 0x20e   : > { %2621 = vmatmul.f32.vlgmr.msrb.gmra.mxu3 %v6436_v51  ;;  %2661 = vmatmul.f32.vlgmr.msrb.gmra.mxu2 %v6427_v9 }
 0x20f   : > { %2705 = vmatpush.msra.mxu3 %v5143_v53  ;;  %2757 = vmatpush.msra.mxu2 %v5144_v36  ;;  %v5183_v53 = vld [vmem:[#allocation4 + $0x950] sm:$0xff]  ;;  %v5184_v36 = vld [vmem:[#allocation4 + $0xa80] sm:$0xff] }
 0x210   : > { %2765 = vmatpush.msra.mxu0 %v5145_v54  ;;  %2700 = vmatpush.msrb.mxu1 %v5150_v59  ;;  %v5188_v59 = vld [vmem:[#allocation4 + $0xa70] sm:$0xff] }
 0x211   : > { %2706 = vmatpush.msra.mxu3 %v5147_v56  ;;  %2758 = vmatpush.msra.mxu2 %v5148_v42  ;;  %v5186_v56 = vld [vmem:[#allocation4 + $0xa88] sm:$0xff] }
 0x212   : > { %2766 = vmatpush.msra.mxu0 %v5149_v58  ;;  %2725 = vmatpush.msra.mxu1 %v5154_v14  ;;  %v5187_v58 = vld [vmem:[#allocation4 + $0x940] sm:$0xff]  ;;  %v5191_v14 = vld [vmem:[#allocation4 + $0x930] sm:$0xff] }
 0x213   : > { %2707 = vmatpush.msra.mxu3 %v5151_v60  ;;  %2759 = vmatpush.msra.mxu2 %v5152_v62  ;;  %v5189_v60 = vld [vmem:[#allocation4 + $0x948] sm:$0xff]  ;;  %v5190_v62 = vld [vmem:[#allocation4 + $0xa78] sm:$0xff] }
 0x214   : > { %2767 = vmatpush.msra.mxu0 %v5153_v6  ;;  %2726 = vmatpush.msra.mxu1 %v5160_v3  ;;  %v5198_v3 = vld [vmem:[#allocation4 + $0xa58] sm:$0xff] }
 0x215   : > { %2708 = vmatpush.msra.mxu3 %v5155_v1  ;;  %2760 = vmatpush.msra.mxu2 %v5156_v32  ;;  %v5192_v1 = vld [vmem:[#allocation4 + $0xa60] sm:$0xff]  ;;  %v5193_v32 = vld [vmem:[#allocation4 + $0x938] sm:$0xff] }
 0x216   : > { %2768 = vmatpush.msra.mxu0 %v5157_v38  ;;  %4820 = vmatmul.msk.f32.vlgmr.msrb.gmra.mxu1 %vm610_vm0, %v6431_v37  ;;  %v5194_v38 = vld [vmem:[#allocation4 + $0xa68] sm:$0xff] }
 0x217   : > { %2785 = vmatpush.msrb.mxu2 %v5158_v8  ;;  %2681 = vmatmul.f32.vlgmr.msrb.gmra.mxu0 %v6436_v51  ;;  %v2205_v13 = vpop.f32.mrf.mxu2  ;;  %v5195_v8 = vld [vmem:[#allocation4 + $0x920] sm:$0xff] }
 0x218   : > { %2709 = vmatpush.msra.mxu3 %v5159_v10  ;;  %2769 = vmatpush.msra.mxu0 %v5161_v20  ;;  %v2165_v48 = vpop.f32.mrf.mxu3  ;;  %v2185_v16 = vpop.f32.mrf.mxu1  ;;  %v5196_v10 = vld [vmem:[#allocation4 + $0xa50] sm:$0xff] }
 0x219   : > { %2786 = vmatpush.msrb.mxu2 %v5162_v0  ;;  %2727 = vmatpush.msra.mxu1 %v5164_v19  ;;  %v2186_v57 = vadd.f32 %v2185_v16, %v2165_v48  ;;  %v5199_v20 = vld [vmem:[#allocation4 + $0x910] sm:$0xff]  ;;  %v5201_v48 = vld [vmem:[#allocation4 + $0x918] sm:$0xff]  ;;  %v5202_v0 = vld [vmem:[#allocation4 + $0xa48] sm:$0xff] }
 0x21a   : > { %2710 = vmatpush.msra.mxu3 %v5163_v17  ;;  %2770 = vmatpush.msra.mxu0 %v5165_v44  ;;  %v5203_v16 = vld [vmem:[#allocation4 + $0x900] sm:$0xff]  ;;  %v5204_v17 = vld [vmem:[#allocation4 + $0xa30] sm:$0xff]  ;;  %v5205_v19 = vld [vmem:[#allocation4 + $0x908] sm:$0xff] }
 0x21b   : > { %2787 = vmatpush.msrb.mxu2 %v5166_v31  ;;  %2728 = vmatpush.msra.mxu1 %v5168_v26  ;;  %v2206_v28 = vadd.f32 %v2205_v13, %v2186_v57  ;;  %v2225_v18 = vpop.f32.mrf.mxu0  ;;  %v5197_v13 = vld [vmem:[#allocation4 + $0x928] sm:$0xff]  ;;  %v5206_v57 = vld [vmem:[#allocation4 + $0xa38] sm:$0xff]  ;;  %v5208_v31 = vld [vmem:[#allocation4 + $0xfb0] sm:$0xff] }
 0x21c   : > { %2711 = vmatpush.msra.mxu3 %v5167_v25  ;;  %2771 = vmatpush.msra.mxu0 %v5169_v29  ;;  %v5207_v44 = vld [vmem:[#allocation4 + $0xb38] sm:$0xff]  ;;  %v5209_v25 = vld [vmem:[#allocation4 + $0xa20] sm:$0xff]  ;;  %v5210_v26 = vld [vmem:[#allocation4 + $0xa28] sm:$0xff] }
 0x21d   : > { %2788 = vmatpush.msrb.mxu2 %v5170_v27  ;;  %2729 = vmatpush.msra.mxu1 %v5172_v11  ;;  %v6444_v12 = vadd.f32 %v2206_v28, %v6421_v63  ;;  %v5211_v28 = vld [vmem:[#allocation4 + $0xb28] sm:$0xff]  ;;  %v5212_v29 = vld [vmem:[#allocation4 + $0xfa0] sm:$0xff]  ;;  %v5213_v27 = vld [vmem:[#allocation4 + $0xa10] sm:$0xff] }
 0x21e   : > { %2712 = vmatpush.msra.mxu3 %v5171_v49  ;;  %2772 = vmatpush.msra.mxu0 %v5173_v30  ;;  %v5214_v49 = vld [vmem:[#allocation4 + $0xa18] sm:$0xff]  ;;  %v5216_v30 = vld [vmem:[#allocation4 + $0xf90] sm:$0xff] }
 0x21f   : > { %2789 = vmatpush.msrb.mxu2 %v5174_v61  ;;  %2730 = vmatpush.msra.mxu1 %v5176_v33  ;;  %v5215_v11 = vld [vmem:[#allocation4 + $0xb18] sm:$0xff]  ;;  %v5217_v61 = vld [vmem:[#allocation4 + $0xa00] sm:$0xff]  ;;  %v5220_v33 = vld [vmem:[#allocation4 + $0xe70] sm:$0xff] }
 0x220   : > { %2713 = vmatpush.msra.mxu3 %v5175_v46  ;;  %2773 = vmatpush.msra.mxu0 %v5177_v34  ;;  %v5219_v46 = vld [vmem:[#allocation4 + $0xb08] sm:$0xff]  ;;  %v5221_v34 = vld [vmem:[#allocation4 + $0xf80] sm:$0xff] }
 0x221   : > { %2790 = vmatpush.msrb.mxu2 %v5178_v40  ;;  %v2245_v41 = vpop.f32.mrf.mxu2  ;;  %2731 = vmatpush.msra.mxu1 %v5180_v43  ;;  %v5222_v40 = vld [vmem:[#allocation4 + $0xf70] sm:$0xff]  ;;  %v5225_v43 = vld [vmem:[#allocation4 + $0xe60] sm:$0xff] }
 0x222   : > { %2714 = vmatpush.msra.mxu3 %v5179_v5  ;;  %v2246_v63 = vadd.f32 %v2245_v41, %v2225_v18  ;;  %2774 = vmatpush.msra.mxu0 %v5181_v23  ;;  %v5218_v18 = vld [vmem:[#allocation4 + $0xa08] sm:$0xff]  ;;  %v5223_v41 = vld [vmem:[#allocation4 + $0xe78] sm:$0xff] }
 0x223   : > { %2791 = vmatpush.msrb.mxu2 %v5182_v47  ;;  %2732 = vmatpush.msra.mxu1 %v5184_v36  ;;  %v5224_v5 = vld [vmem:[#allocation4 + $0xf78] sm:$0xff]  ;;  %v5226_v23 = vld [vmem:[#allocation4 + $0xe68] sm:$0xff]  ;;  %v5227_v47 = vld [vmem:[#allocation4 + $0xf60] sm:$0xff] }
 0x224   : > { %2715 = vmatpush.msra.mxu3 %v5183_v53  ;;  %v2265_v54 = vpop.f32.mrf.mxu3  ;;  %2775 = vmatpush.msra.mxu0 %v5185_v55  ;;  %v5228_v53 = vld [vmem:[#allocation4 + $0xf68] sm:$0xff]  ;;  %v5229_v36 = vld [vmem:[#allocation4 + $0xe50] sm:$0xff] }
 0x225   : > { %2792 = vmatpush.msrb.mxu2 %v5186_v56  ;;  %v2266_v42 = vadd.f32 %v2265_v54, %v2246_v63  ;;  %2733 = vmatpush.msra.mxu1 %v5188_v59  ;;  %v5230_v54 = vld [vmem:[#allocation4 + $0xe58] sm:$0xff]  ;;  %v5231_v56 = vld [vmem:[#allocation4 + $0xf50] sm:$0xff]  ;;  %v5234_v59 = vld [vmem:[#allocation4 + $0xe48] sm:$0xff] }
 0x226   : > { %2716 = vmatpush.msra.mxu3 %v5187_v58  ;;  %2776 = vmatpush.msra.mxu0 %v5189_v60  ;;  %v5233_v58 = vld [vmem:[#allocation4 + $0xe40] sm:$0xff] }
 0x227   : > { %2793 = vmatpush.msrb.mxu2 %v5190_v62  ;;  %v6447_v6 = vadd.f32 %v2266_v42, %v6424_v15  ;;  %2734 = vmatpush.msra.mxu1 %v5192_v1  ;;  %v5200_v15 = vld [vmem:[#allocation4 + $0xa40] sm:$0xff]  ;;  %v5232_v42 = vld [vmem:[#allocation4 + $0xf58] sm:$0xff]  ;;  %v5236_v62 = vld [vmem:[#allocation4 + $0xf48] sm:$0xff] }
 0x228   : > { %2717 = vmatpush.msra.mxu3 %v5191_v14  ;;  %2777 = vmatpush.msra.mxu0 %v5193_v32  ;;  %v5235_v60 = vld [vmem:[#allocation4 + $0xf40] sm:$0xff]  ;;  %v5237_v14 = vld [vmem:[#allocation4 + $0xe30] sm:$0xff]  ;;  %v5238_v1 = vld [vmem:[#allocation4 + $0xe38] sm:$0xff] }
 0x229   : > { %2794 = vmatpush.msrb.mxu2 %v5194_v38  ;;  %2735 = vmatpush.msra.mxu1 %v5196_v10  ;;  %v5239_v32 = vld [vmem:[#allocation4 + $0xf30] sm:$0xff]  ;;  %v5240_v38 = vld [vmem:[#allocation4 + $0xf38] sm:$0xff]  ;;  %v5241_v10 = vld [vmem:[#allocation4 + $0xe20] sm:$0xff] }
 0x22a   : > { %2718 = vmatpush.msra.mxu3 %v5195_v8  ;;  %2778 = vmatpush.msra.mxu0 %v5197_v13  ;;  %v5242_v13 = vld [vmem:[#allocation4 + $0xe28] sm:$0xff] }
 0x22b   : > { %2795 = vmatpush.msrb.mxu2 %v5198_v3  ;;  %2736 = vmatpush.msra.mxu1 %v5200_v15  ;;  %v5243_v15 = vld [vmem:[#allocation4 + $0xf20] sm:$0xff] }
 0x22c   : > { %2719 = vmatpush.msra.mxu3 %v5199_v20  ;;  %2779 = vmatpush.msra.mxu0 %v5201_v48  ;;  %v5244_v48 = vld [vmem:[#allocation4 + $0xf28] sm:$0xff] }
 0x22d   : > { %2796 = vmatpush.msrb.mxu2 %v5202_v0  ;;  %2737 = vmatpush.msra.mxu1 %v5204_v17  ;;  %v5246_v17 = vld [vmem:[#allocation4 + $0xe18] sm:$0xff] }
 0x22e   : > { %2720 = vmatpush.msra.mxu3 %v5203_v16  ;;  %4821 = vmatmul.msk.f32.vlgmr.msra.gmra.mxu2 %vm610_vm0, %v6262_v45  ;;  %v5245_v16 = vld [vmem:[#allocation4 + $0xe10] sm:$0xff] }
 0x22f   : > { %2780 = vmatpush.msra.mxu0 %v5205_v19  ;;  %2721 = vmatmul.f32.vlgmr.msra.gmra.mxu3 %v6267_v52 }
 0x230   : > { %2797 = vmatpush.msrb.mxu2 %v5206_v57  ;;  %2817 = vmatpush.msrb.mxu3 %v5207_v44  ;;  %v5247_v44 = vld [vmem:[#allocation4 + $0xf10] sm:$0xff] }
 0x231   : > { %2879 = vmatpush.msrb.mxu0 %v5208_v31  ;;  %2738 = vmatpush.msra.mxu1 %v5209_v25  ;;  %v5248_v31 = vld [vmem:[#allocation4 + $0xf18] sm:$0xff]  ;;  %v5249_v25 = vld [vmem:[#allocation4 + $0xe00] sm:$0xff] }
 0x232   : > { %2798 = vmatpush.msrb.mxu2 %v5210_v26  ;;  %2818 = vmatpush.msrb.mxu3 %v5211_v28  ;;  %v5250_v26 = vld [vmem:[#allocation4 + $0xe08] sm:$0xff] }
 0x233   : > { %2880 = vmatpush.msrb.mxu0 %v5212_v29  ;;  %2739 = vmatpush.msra.mxu1 %v5213_v27  ;;  %v5251_v27 = vld [vmem:[#allocation4 + $0xf00] sm:$0xff] }
 0x234   : > { %2799 = vmatpush.msrb.mxu2 %v5214_v49  ;;  %2819 = vmatpush.msrb.mxu3 %v5215_v11  ;;  %v5252_v49 = vld [vmem:[#allocation4 + $0xf08] sm:$0xff] }
 0x235   : > { %2881 = vmatpush.msrb.mxu0 %v5216_v30  ;;  %2740 = vmatpush.msra.mxu1 %v5217_v61  ;;  %v5253_v30 = vld [vmem:[#allocation4 + $0xdf0] sm:$0xff]  ;;  %v5254_v61 = vld [vmem:[#allocation4 + $0xdf8] sm:$0xff] }
 0x236   : > { %2800 = vmatpush.msrb.mxu2 %v5218_v18  ;;  %2741 = vmatmul.f32.vlgmr.msra.gmra.mxu1 %v6265_v50  ;;  %v5255_v18 = vld [vmem:[#allocation4 + $0xef0] sm:$0xff] }
 0x237   : > { %2820 = vmatpush.msrb.mxu3 %v5219_v46  ;;  %2827 = vmatpush.msrb.mxu1 %v5220_v33  ;;  %v5256_v46 = vld [vmem:[#allocation4 + $0xef8] sm:$0xff] }
 0x238   : > { %2882 = vmatpush.msrb.mxu0 %v5221_v34  ;;  %2801 = vmatmul.f32.vlgmr.msrb.gmra.mxu2 %v6265_v50  ;;  %v5257_v34 = vld [vmem:[#allocation4 + $0xde0] sm:$0xff] }
 0x239   : > { %2781 = vmatmul.f32.vlgmr.msra.gmra.mxu0 %v6267_v52  ;;  %2847 = vmatpush.msra.mxu3 %v5222_v40  ;;  %v5259_v40 = vld [vmem:[#allocation4 + $0xee0] sm:$0xff] }
 0x23a   : > { %2887 = vmatpush.msra.mxu2 %v5223_v41  ;;  %2907 = vmatpush.msra.mxu0 %v5224_v5  ;;  %v2400_v63 = vpop.f32.mrf.mxu0  ;;  %v5260_v41 = vld [vmem:[#allocation4 + $0xee8] sm:$0xff]  ;;  %v5261_v5 = vld [vmem:[#allocation4 + $0xdd0] sm:$0xff] }
 0x23b   : > { %2828 = vmatpush.msrb.mxu1 %v5225_v43  ;;  %4822 = vmatmul.msk.f32.vlgmr.msrb.gmra.mxu3 %vm610_vm0, %v6262_v45  ;;  %v5262_v43 = vld [vmem:[#allocation4 + $0xdd8] sm:$0xff] }
 0x23c   : > { %2888 = vmatpush.msra.mxu2 %v5226_v23  ;;  %2848 = vmatpush.msra.mxu3 %v5227_v47  ;;  %v5264_v23 = vld [vmem:[#allocation4 + $0xed8] sm:$0xff]  ;;  %v5265_v47 = vld [vmem:[#allocation4 + $0xdc0] sm:$0xff] }
 0x23d   : > { %2908 = vmatpush.msra.mxu0 %v5228_v53  ;;  %2829 = vmatpush.msrb.mxu1 %v5229_v36  ;;  %v2360_v55 = vpop.f32.mrf.mxu1  ;;  %v5267_v53 = vld [vmem:[#allocation4 + $0xec0] sm:$0xff]  ;;  %v5268_v36 = vld [vmem:[#allocation4 + $0xec8] sm:$0xff] }
 0x23e   : > { %2889 = vmatpush.msra.mxu2 %v5230_v54  ;;  %2849 = vmatpush.msra.mxu3 %v5231_v56  ;;  %v5269_v54 = vld [vmem:[#allocation4 + $0xdb0] sm:$0xff] }
 0x23f   : > { %2909 = vmatpush.msra.mxu0 %v5232_v42  ;;  %2830 = vmatpush.msrb.mxu1 %v5233_v58  ;;  %v5271_v56 = vld [vmem:[#allocation4 + $0xeb0] sm:$0xff]  ;;  %v5272_v42 = vld [vmem:[#allocation4 + $0xeb8] sm:$0xff]  ;;  %v5273_v58 = vld [vmem:[#allocation4 + $0xda0] sm:$0xff] }
 0x240   : > { %2890 = vmatpush.msra.mxu2 %v5234_v59  ;;  %2850 = vmatpush.msra.mxu3 %v5235_v60  ;;  %v5274_v59 = vld [vmem:[#allocation4 + $0xda8] sm:$0xff]  ;;  %v5275_v60 = vld [vmem:[#allocation4 + $0xea0] sm:$0xff] }
 0x241   : > { %2910 = vmatpush.msra.mxu0 %v5236_v62  ;;  %2831 = vmatpush.msrb.mxu1 %v5237_v14  ;;  %v5276_v62 = vld [vmem:[#allocation4 + $0xea8] sm:$0xff]  ;;  %v5277_v14 = vld [vmem:[#allocation4 + $0xd90] sm:$0xff] }
 0x242   : > { %2891 = vmatpush.msra.mxu2 %v5238_v1  ;;  %2851 = vmatpush.msra.mxu3 %v5239_v32  ;;  %v5278_v1 = vld [vmem:[#allocation4 + $0xd98] sm:$0xff]  ;;  %v5279_v32 = vld [vmem:[#allocation4 + $0xe90] sm:$0xff] }
 0x243   : > { %2911 = vmatpush.msra.mxu0 %v5240_v38  ;;  %v2380_v8 = vpop.f32.mrf.mxu3  ;;  %2832 = vmatpush.msrb.mxu1 %v5241_v10  ;;  %v5280_v38 = vld [vmem:[#allocation4 + $0xe98] sm:$0xff]  ;;  %v5282_v10 = vld [vmem:[#allocation4 + $0xe80] sm:$0xff] }
 0x244   : > { %2892 = vmatpush.msra.mxu2 %v5242_v13  ;;  %v2381_v3 = vadd.f32 %v2380_v8, %v2360_v55  ;;  %v2420_v20 = vpop.f32.mrf.mxu2  ;;  %2852 = vmatpush.msra.mxu3 %v5243_v15  ;;  %v5270_v55 = vld [vmem:[#allocation4 + $0xdb8] sm:$0xff]  ;;  %v5281_v8 = vld [vmem:[#allocation4 + $0xd80] sm:$0xff]  ;;  %v5283_v13 = vld [vmem:[#allocation4 + $0xd88] sm:$0xff] }
 0x245   : > { %2912 = vmatpush.msra.mxu0 %v5244_v48  ;;  %v2440_v0 = vpop.f32.mrf.mxu0  ;;  %2833 = vmatpush.msrb.mxu1 %v5245_v16  ;;  %v5286_v15 = vld [vmem:[#allocation4 + $0x12f0] sm:$0xff]  ;;  %v5289_v16 = vld [vmem:[#allocation4 + $0xfa8] sm:$0xff] }
 0x246   : > { %2893 = vmatpush.msra.mxu2 %v5246_v17  ;;  %v2401_v19 = vadd.f32 %v2400_v63, %v2381_v3  ;;  %v2441_v57 = vadd.f32 %v2440_v0, %v2420_v20  ;;  %2853 = vmatpush.msra.mxu3 %v5247_v44  ;;  %v5263_v63 = vld [vmem:[#allocation4 + $0xed0] sm:$0xff]  ;;  %v5284_v3 = vld [vmem:[#allocation4 + $0xe88] sm:$0xff]  ;;  %v5285_v20 = vld [vmem:[#allocation4 + $0xfb8] sm:$0xff] }
 0x247   : > { %2913 = vmatpush.msra.mxu0 %v5248_v31  ;;  %2834 = vmatpush.msrb.mxu1 %v5249_v25  ;;  %v2460_v29 = vpop.f32.mrf.mxu1  ;;  %v5287_v48 = vld [vmem:[#allocation4 + $0x1430] sm:$0xff]  ;;  %v5288_v0 = vld [vmem:[#allocation4 + $0x12f8] sm:$0xff]  ;;  %v5290_v17 = vld [vmem:[#allocation4 + $0x12e0] sm:$0xff] }
 0x248   : > { %2894 = vmatpush.msra.mxu2 %v5250_v26  ;;  %v6458_v28 = vadd.f32 %v2401_v19, %v6444_v12  ;;  %2854 = vmatpush.msra.mxu3 %v5251_v27  ;;  %v2461_v11 = vadd.f32 %v2460_v29, %v2441_v57  ;;  %v5258_v12 = vld [vmem:[#allocation4 + $0xde8] sm:$0xff]  ;;  %v5291_v19 = vld [vmem:[#allocation4 + $0x1420] sm:$0xff]  ;;  %v5293_v44 = vld [vmem:[#allocation4 + $0xf98] sm:$0xff] }
 0x249   : > { %2914 = vmatpush.msra.mxu0 %v5252_v49  ;;  %2835 = vmatpush.msrb.mxu1 %v5253_v30  ;;  %v5292_v57 = vld [vmem:[#allocation4 + $0x12e8] sm:$0xff]  ;;  %v5294_v31 = vld [vmem:[#allocation4 + $0x12d0] sm:$0xff]  ;;  %v5296_v26 = vld [vmem:[#allocation4 + $0x12d8] sm:$0xff] }
 0x24a   : > { %2895 = vmatpush.msra.mxu2 %v5254_v61  ;;  %2855 = vmatpush.msra.mxu3 %v5255_v18  ;;  %v6461_v33 = vadd.f32 %v2461_v11, %v6447_v6  ;;  %v5266_v6 = vld [vmem:[#allocation4 + $0xdc8] sm:$0xff]  ;;  %v5295_v25 = vld [vmem:[#allocation4 + $0x1410] sm:$0xff]  ;;  %v5298_v27 = vld [vmem:[#allocation4 + $0x12c0] sm:$0xff] }
 0x24b   : > { %2915 = vmatpush.msra.mxu0 %v5256_v46  ;;  %2836 = vmatpush.msrb.mxu1 %v5257_v34  ;;  %v5297_v29 = vld [vmem:[#allocation4 + $0xf88] sm:$0xff]  ;;  %v5299_v49 = vld [vmem:[#allocation4 + $0x13f0] sm:$0xff]  ;;  %v5300_v11 = vld [vmem:[#allocation4 + $0x1400] sm:$0xff] }
 0x24c   : > { %2896 = vmatpush.msra.mxu2 %v5258_v12  ;;  %2856 = vmatpush.msra.mxu3 %v5259_v40  ;;  %v5301_v30 = vld [vmem:[#allocation4 + $0x12c8] sm:$0xff]  ;;  %v5302_v61 = vld [vmem:[#allocation4 + $0x13f8] sm:$0xff]  ;;  %v5303_v46 = vld [vmem:[#allocation4 + $0x12b0] sm:$0xff] }
 0x24d   : > { %2916 = vmatpush.msra.mxu0 %v5260_v41  ;;  %2837 = vmatpush.msrb.mxu1 %v5261_v5  ;;  %v5304_v34 = vld [vmem:[#allocation4 + $0x13e0] sm:$0xff]  ;;  %v5305_v12 = vld [vmem:[#allocation4 + $0x12b8] sm:$0xff]  ;;  %v5306_v40 = vld [vmem:[#allocation4 + $0x13e8] sm:$0xff] }
 0x24e   : > { %2897 = vmatpush.msra.mxu2 %v5262_v43  ;;  %2857 = vmatpush.msra.mxu3 %v5263_v63  ;;  %v5307_v41 = vld [vmem:[#allocation4 + $0x12a0] sm:$0xff]  ;;  %v5308_v5 = vld [vmem:[#allocation4 + $0x13d0] sm:$0xff]  ;;  %v5309_v63 = vld [vmem:[#allocation4 + $0x12a8] sm:$0xff] }
 0x24f   : > { %2917 = vmatpush.msra.mxu0 %v5264_v23  ;;  %2838 = vmatpush.msrb.mxu1 %v5265_v47  ;;  %v5310_v23 = vld [vmem:[#allocation4 + $0x13d8] sm:$0xff]  ;;  %v5311_v47 = vld [vmem:[#allocation4 + $0x1290] sm:$0xff] }
 0x250   : > { %2898 = vmatpush.msra.mxu2 %v5266_v6  ;;  %2858 = vmatpush.msra.mxu3 %v5267_v53  ;;  %v5312_v6 = vld [vmem:[#allocation4 + $0x13c0] sm:$0xff]  ;;  %v5313_v53 = vld [vmem:[#allocation4 + $0x1298] sm:$0xff] }
 0x251   : > { %2918 = vmatpush.msra.mxu0 %v5268_v36  ;;  %2839 = vmatpush.msrb.mxu1 %v5269_v54  ;;  %v5314_v36 = vld [vmem:[#allocation4 + $0x13c8] sm:$0xff]  ;;  %v5315_v54 = vld [vmem:[#allocation4 + $0x1280] sm:$0xff] }
 0x252   : > { %2899 = vmatpush.msra.mxu2 %v5270_v55  ;;  %2859 = vmatpush.msra.mxu3 %v5271_v56  ;;  %v5316_v55 = vld [vmem:[#allocation4 + $0x13b0] sm:$0xff]  ;;  %v5317_v56 = vld [vmem:[#allocation4 + $0x1288] sm:$0xff] }
 0x253   : > { %2919 = vmatpush.msra.mxu0 %v5272_v42  ;;  %2840 = vmatpush.msrb.mxu1 %v5273_v58  ;;  %v5318_v42 = vld [vmem:[#allocation4 + $0x13b8] sm:$0xff] }
 0x254   : > { %2900 = vmatpush.msra.mxu2 %v5274_v59  ;;  %2860 = vmatpush.msra.mxu3 %v5275_v60  ;;  %v5319_v59 = vld [vmem:[#allocation4 + $0x1270] sm:$0xff]  ;;  %v5320_v60 = vld [vmem:[#allocation4 + $0x13a0] sm:$0xff] }
 0x255   : > { %2920 = vmatpush.msra.mxu0 %v5276_v62  ;;  %2841 = vmatpush.msrb.mxu1 %v5277_v14  ;;  %v5321_v62 = vld [vmem:[#allocation4 + $0x1278] sm:$0xff]  ;;  %v5322_v14 = vld [vmem:[#allocation4 + $0x13a8] sm:$0xff] }
 0x256   : > { %2901 = vmatpush.msra.mxu2 %v5278_v1  ;;  %2861 = vmatpush.msra.mxu3 %v5279_v32 }
 0x257   : > { %2921 = vmatpush.msra.mxu0 %v5280_v38  ;;  %2842 = vmatpush.msrb.mxu1 %v5281_v8  ;;  %v5323_v38 = vld [vmem:[#allocation4 + $0x1260] sm:$0xff]  ;;  %v5324_v8 = vld [vmem:[#allocation4 + $0x1390] sm:$0xff] }
 0x258   : > { %4823 = vmatmul.msk.f32.vlgmr.msrb.gmra.mxu0 %vm610_vm0, %v6282_v2  ;;  %2862 = vmatpush.msra.mxu3 %v5282_v10 }
 0x259   : > { %2902 = vmatpush.msra.mxu2 %v5283_v13  ;;  %2922 = vmatpush.msra.mxu0 %v5284_v3  ;;  %v5325_v3 = vld [vmem:[#allocation4 + $0x1268] sm:$0xff] }
 0x25a   : > { %2939 = vmatpush.msra.mxu1 %v5285_v20  ;;  %2863 = vmatmul.f32.vlgmr.msra.gmra.mxu3 %v6293_v21  ;;  %v5326_v20 = vld [vmem:[#allocation4 + $0x1398] sm:$0xff] }
 0x25b   : > { %2843 = vmatmul.f32.vlgmr.msrb.gmra.mxu1 %v6285_v4  ;;  %2903 = vmatmul.f32.vlgmr.msra.gmra.mxu2 %v6285_v4 }
 0x25c   : > { %2974 = vmatpush.msrb.mxu3 %v5286_v15  ;;  %3026 = vmatpush.msrb.mxu2 %v5287_v48  ;;  %v5327_v15 = vld [vmem:[#allocation4 + $0x1250] sm:$0xff]  ;;  %v5328_v48 = vld [vmem:[#allocation4 + $0x1380] sm:$0xff] }
 0x25d   : > { %3034 = vmatpush.msrb.mxu0 %v5288_v0  ;;  %2940 = vmatpush.msra.mxu1 %v5289_v16 }
 0x25e   : > { %2975 = vmatpush.msrb.mxu3 %v5290_v17  ;;  %3027 = vmatpush.msrb.mxu2 %v5291_v19  ;;  %v5329_v17 = vld [vmem:[#allocation4 + $0x1258] sm:$0xff]  ;;  %v5330_v19 = vld [vmem:[#allocation4 + $0x1388] sm:$0xff] }
 0x25f   : > { %3035 = vmatpush.msrb.mxu0 %v5292_v57  ;;  %2941 = vmatpush.msra.mxu1 %v5293_v44  ;;  %v2951_v57 = vld [vmem:[%s6224_s28 + $0x10] sm:$0xfc]  ;;  %v2954_v44 = vld [vmem:[%s6224_s28 + $0x28] sm:$0x1] }
 0x260   : > { %2976 = vmatpush.msrb.mxu3 %v5294_v31  ;;  %3028 = vmatpush.msrb.mxu2 %v5295_v25  ;;  %v5331_v25 = vld [vmem:[#allocation4 + $0x1240] sm:$0xff] }
 0x261   : > { %3036 = vmatpush.msrb.mxu0 %v5296_v26  ;;  %2942 = vmatpush.msra.mxu1 %v5297_v29  ;;  %v5332_v26 = vld [vmem:[#allocation4 + $0x1370] sm:$0xff]  ;;  %v2949_v29 = vld [vmem:[%s6224_s28] sm:$0xfc] }
 0x262   : > { %2923 = vmatmul.f32.vlgmr.msra.gmra.mxu0 %v6293_v21  ;;  %2977 = vmatpush.msrb.mxu3 %v5298_v27  ;;  %v2952_v27 = vld [vmem:[%s6224_s28 + $0x18] sm:$0x1] }
 0x263   : > { %2994 = vmatpush.msrb.mxu1 %v5299_v49  ;;  %3029 = vmatpush.msrb.mxu2 %v5300_v11  ;;  %v5333_v49 = vld [vmem:[#allocation4 + $0x1248] sm:$0xff]  ;;  %v5334_v11 = vld [vmem:[#allocation4 + $0x1378] sm:$0xff] }
 0x264   : > { %3037 = vmatpush.msrb.mxu0 %v5301_v30  ;;  %4824 = vmatmul.msk.f32.vlgmr.msra.gmra.mxu1 %vm610_vm0, %v6282_v2  ;;  %v5335_v30 = vld [vmem:[#allocation4 + $0x1230] sm:$0xff] }
 0x265   : > { %3054 = vmatpush.msra.mxu2 %v5302_v61  ;;  %v2522_v18 = vpop.f32.mrf.mxu2  ;;  %2978 = vmatpush.msrb.mxu3 %v5303_v46  ;;  %v5336_v61 = vld [vmem:[#allocation4 + $0x1360] sm:$0xff]  ;;  %v2968_v46 = vrot.slane %v2954_v44, 2  ;;  %v5362_v44 = vld [vmem:[#allocation4 + $0x1308] sm:$0xff] }
 0x266   : > { %2995 = vmatpush.msrb.mxu1 %v5304_v34  ;;  %3038 = vmatpush.msrb.mxu0 %v5305_v12  ;;  %v5337_v34 = vld [vmem:[#allocation4 + $0x1238] sm:$0xff]  ;;  %v5338_v12 = vld [vmem:[#allocation4 + $0x1368] sm:$0xff] }
 0x267   : > { %3055 = vmatpush.msra.mxu2 %v5306_v40  ;;  %2979 = vmatpush.msrb.mxu3 %v5307_v41  ;;  %v2961_v40 = vrot.slane %v2949_v29, 2  ;;  %v2962_v41 = vrot.slane %v2952_v27, 2  ;;  %v5364_v29 = vld [vmem:[#allocation4 + $0x7b0] sm:$0xff]  ;;  %v5365_v27 = vld [vmem:[#allocation4 + $0x8c0] sm:$0xff] }
 0x268   : > { %2996 = vmatpush.msrb.mxu1 %v5308_v5  ;;  %v2482_v43 = vpop.f32.mrf.mxu3  ;;  %3039 = vmatpush.msrb.mxu0 %v5309_v63  ;;  %v5339_v5 = vld [vmem:[#allocation4 + $0x1220] sm:$0xff]  ;;  %v5341_v63 = vld [vmem:[#allocation4 + $0x1228] sm:$0xff] }
 0x269   : > { %3056 = vmatpush.msra.mxu2 %v5310_v23  ;;  %2980 = vmatpush.msrb.mxu3 %v5311_v47  ;;  %v2542_v58 = vpop.f32.mrf.mxu0  ;;  %v5342_v23 = vld [vmem:[#allocation4 + $0x1358] sm:$0xff]  ;;  %v5343_v47 = vld [vmem:[#allocation4 + $0x1210] sm:$0xff] }
 0x26a   : > { %2997 = vmatpush.msrb.mxu1 %v5312_v6  ;;  %3040 = vmatpush.msrb.mxu0 %v5313_v53  ;;  %v5344_v6 = vld [vmem:[#allocation4 + $0x1340] sm:$0xff] }
 0x26b   : > { %3057 = vmatpush.msra.mxu2 %v5314_v36  ;;  %2981 = vmatpush.msrb.mxu3 %v5315_v54  ;;  %v5345_v36 = vld [vmem:[#allocation4 + $0x1218] sm:$0xff]  ;;  %v5346_v54 = vld [vmem:[#allocation4 + $0x1348] sm:$0xff] }
 0x26c   : > { %2998 = vmatpush.msrb.mxu1 %v5316_v55  ;;  %3041 = vmatpush.msrb.mxu0 %v5317_v56  ;;  %v6483_v55 = vsel %vm1358_vm1, %v2961_v40, %v2962_v41  ;;  %v2950_v56 = vld [vmem:[%s6224_s28 + $0x8] sm:$0xfc]  ;;  %v5374_v40 = vld [vmem:[#allocation4 + $0x798] sm:$0xff]  ;;  %v5375_v41 = vld [vmem:[#allocation4 + $0x890] sm:$0xff] }
 0x26d   : > { %3058 = vmatpush.msra.mxu2 %v5318_v42  ;;  %2982 = vmatpush.msrb.mxu3 %v5319_v59  ;;  %v2953_v42 = vld [vmem:[%s6224_s28 + $0x20] sm:$0x1]  ;;  %v5348_v59 = vld [vmem:[#allocation4 + $0x1330] sm:$0xff] }
 0x26e   : > { %2999 = vmatpush.msrb.mxu1 %v5320_v60  ;;  %3042 = vmatpush.msrb.mxu0 %v5321_v62  ;;  %v2502_v1 = vpop.f32.mrf.mxu1  ;;  %v2562_v32 = vpop.f32.mrf.mxu2  ;;  %v5349_v60 = vld [vmem:[#allocation4 + $0x1208] sm:$0xff]  ;;  %v5350_v62 = vld [vmem:[#allocation4 + $0x1338] sm:$0xff] }
 0x26f   : > { %3059 = vmatpush.msra.mxu2 %v5322_v14  ;;  %2983 = vmatpush.msrb.mxu3 %v5323_v38  ;;  %v2503_v10 = vadd.f32 %v2502_v1, %v2482_v43  ;;  %v2563_v13 = vadd.f32 %v2562_v32, %v2542_v58  ;;  %v5340_v43 = vld [vmem:[#allocation4 + $0x1350] sm:$0xff]  ;;  %v5347_v58 = vld [vmem:[#allocation4 + $0x1200] sm:$0xff]  ;;  %v2964_v14 = vrot.slane %v2950_v56, 2  ;;  %v2965_v1 = vrot.slane %v2953_v42, 2  ;;  %v5351_v32 = vld [vmem:[#allocation4 + $0x1438] sm:$0xff] }
 0x270   : > { %3000 = vmatpush.msrb.mxu1 %v5324_v8  ;;  %3043 = vmatpush.msrb.mxu0 %v5325_v3  ;;  %v5352_v38 = vld [vmem:[#allocation4 + $0x8f0] sm:$0xff]  ;;  %v5353_v8 = vld [vmem:[#allocation4 + $0x1320] sm:$0xff]  ;;  %v5384_v56 = vld [vmem:[#allocation4 + $0x878] sm:$0xff] }
 0x271   : > { %3060 = vmatpush.msra.mxu2 %v5326_v20  ;;  %2984 = vmatpush.msrb.mxu3 %v5327_v15  ;;  %v2582_v0 = vpop.f32.mrf.mxu3  ;;  %v6471_v16 = vadd.f32 %v2522_v18, %v2503_v10  ;;  %v2967_v18 = vrot.slane %v2951_v57, 2  ;;  %v5354_v10 = vld [vmem:[#allocation4 + $0x1328] sm:$0xff]  ;;  %v5356_v3 = vld [vmem:[#allocation4 + $0x8e0] sm:$0xff]  ;;  %v5357_v20 = vld [vmem:[#allocation4 + $0x1310] sm:$0xff] }
 0x272   : > { %3001 = vmatpush.msrb.mxu1 %v5328_v48  ;;  %3044 = vmatpush.msrb.mxu0 %v5329_v17  ;;  %v6475_v31 = vadd.f32 %v2582_v0, %v2563_v13  ;;  %v5355_v13 = vld [vmem:[#allocation4 + $0x1428] sm:$0xff]  ;;  %v5358_v15 = vld [vmem:[#allocation4 + $0x1318] sm:$0xff]  ;;  %v6491_v48 = vsel %vm1358_vm1, %v2964_v14, %v2965_v1  ;;  %v5360_v17 = vld [vmem:[#allocation4 + $0x8d0] sm:$0xff] }
 0x273   : > { %3061 = vmatpush.msra.mxu2 %v5330_v19  ;;  %2985 = vmatpush.msrb.mxu3 %v5331_v25  ;;  %v6480_v53 = vsel %vm1358_vm1, %v2967_v18, %v2968_v46  ;;  %v5359_v0 = vld [vmem:[#allocation4 + $0x1418] sm:$0xff]  ;;  %v5361_v57 = vld [vmem:[#allocation4 + $0x1300] sm:$0xff] }
 0x274   : > { %3002 = vmatpush.msrb.mxu1 %v5332_v26  ;;  %3045 = vmatpush.msrb.mxu0 %v5333_v49  ;;  %v5363_v26 = vld [vmem:[#allocation4 + $0x1408] sm:$0xff]  ;;  %v5366_v49 = vld [vmem:[#allocation4 + $0x8b0] sm:$0xff]  ;;  %v5371_v46 = vld [vmem:[#allocation4 + $0x8a0] sm:$0xff] }
 0x275   : > { %3062 = vmatpush.msra.mxu2 %v5334_v11  ;;  %2986 = vmatpush.msrb.mxu3 %v5335_v30  ;;  %v5367_v11 = vld [vmem:[#allocation4 + $0x7b8] sm:$0xff]  ;;  %v5387_v1 = vld [vmem:[#allocation4 + $0x860] sm:$0xff] }
 0x276   : > { %3003 = vmatpush.msrb.mxu1 %v5336_v61  ;;  %3046 = vmatpush.msrb.mxu0 %v5337_v34  ;;  %v5368_v30 = vld [vmem:[#allocation4 + $0x8b8] sm:$0xff]  ;;  %v5369_v61 = vld [vmem:[#allocation4 + $0x7a0] sm:$0xff]  ;;  %v5372_v34 = vld [vmem:[#allocation4 + $0x8a8] sm:$0xff] }
 0x277   : > { %3063 = vmatpush.msra.mxu2 %v5338_v12  ;;  %2987 = vmatpush.msrb.mxu3 %v5339_v5  ;;  %v5373_v12 = vld [vmem:[#allocation4 + $0x790] sm:$0xff]  ;;  %v5376_v5 = vld [vmem:[#allocation4 + $0x898] sm:$0xff] }
 0x278   : > { %3004 = vmatpush.msrb.mxu1 %v5340_v43  ;;  %3047 = vmatpush.msrb.mxu0 %v5341_v63  ;;  %v5377_v43 = vld [vmem:[#allocation4 + $0x780] sm:$0xff]  ;;  %v5378_v63 = vld [vmem:[#allocation4 + $0x788] sm:$0xff] }
 0x279   : > { %3064 = vmatpush.msra.mxu2 %v5342_v23  ;;  %2988 = vmatpush.msrb.mxu3 %v5343_v47  ;;  %v5379_v23 = vld [vmem:[#allocation4 + $0x880] sm:$0xff]  ;;  %v5380_v47 = vld [vmem:[#allocation4 + $0x888] sm:$0xff] }
 0x27a   : > { %3005 = vmatpush.msrb.mxu1 %v5344_v6  ;;  %3048 = vmatpush.msrb.mxu0 %v5345_v36  ;;  %v5381_v6 = vld [vmem:[#allocation4 + $0x770] sm:$0xff]  ;;  %v5382_v36 = vld [vmem:[#allocation4 + $0x778] sm:$0xff] }
 0x27b   : > { %3065 = vmatpush.msra.mxu2 %v5346_v54  ;;  %2989 = vmatpush.msrb.mxu3 %v5347_v58  ;;  %v5383_v54 = vld [vmem:[#allocation4 + $0x870] sm:$0xff] }
 0x27c   : > { %3006 = vmatpush.msrb.mxu1 %v5348_v59  ;;  %4825 = vmatmul.msk.f32.vlgmr.msrb.gmra.mxu2 %vm610_vm0, %v6480_v53  ;;  %v5385_v59 = vld [vmem:[#allocation4 + $0x760] sm:$0xff] }
 0x27d   : > { %3049 = vmatpush.msrb.mxu0 %v5349_v60  ;;  %2990 = vmatmul.f32.vlgmr.msrb.gmra.mxu3 %v6483_v55  ;;  %v5386_v60 = vld [vmem:[#allocation4 + $0x768] sm:$0xff] }
 0x27e   : > { %3066 = vmatpush.msra.mxu2 %v5350_v62  ;;  %3086 = vmatpush.msra.mxu3 %v5351_v32  ;;  %v5388_v32 = vld [vmem:[#allocation4 + $0x868] sm:$0xff] }
 0x27f   : > { %3148 = vmatpush.msra.mxu0 %v5352_v38  ;;  %3007 = vmatpush.msrb.mxu1 %v5353_v8  ;;  %v5389_v38 = vld [vmem:[#allocation4 + $0x750] sm:$0xff]  ;;  %v5390_v8 = vld [vmem:[#allocation4 + $0x758] sm:$0xff] }
 0x280   : > { %3067 = vmatpush.msra.mxu2 %v5354_v10  ;;  %3087 = vmatpush.msra.mxu3 %v5355_v13 }
 0x281   : > { %3149 = vmatpush.msra.mxu0 %v5356_v3  ;;  %3008 = vmatpush.msrb.mxu1 %v5357_v20  ;;  %v5391_v3 = vld [vmem:[#allocation4 + $0x850] sm:$0xff]  ;;  %v5392_v20 = vld [vmem:[#allocation4 + $0x858] sm:$0xff] }
 0x282   : > { %3068 = vmatpush.msra.mxu2 %v5358_v15  ;;  %3088 = vmatpush.msra.mxu3 %v5359_v0  ;;  %v5393_v0 = vld [vmem:[#allocation4 + $0x740] sm:$0xff] }
 0x283   : > { %3150 = vmatpush.msra.mxu0 %v5360_v17  ;;  %v2602_v19 = vpop.f32.mrf.mxu1  ;;  %3009 = vmatpush.msrb.mxu1 %v5361_v57  ;;  %v5394_v17 = vld [vmem:[#allocation4 + $0x748] sm:$0xff] }
 0x284   : > { %3069 = vmatpush.msra.mxu2 %v5362_v44  ;;  %v2603_v25 = vadd.f32 %v2602_v19, %v6471_v16  ;;  %3010 = vmatmul.f32.vlgmr.msrb.gmra.mxu1 %v6491_v48  ;;  %v5370_v16 = vld [vmem:[#allocation4 + $0x7a8] sm:$0xff]  ;;  %v5395_v19 = vld [vmem:[#allocation4 + $0x840] sm:$0xff] }
 0x285   : > { %3089 = vmatpush.msra.mxu3 %v5363_v26  ;;  %3096 = vmatpush.msra.mxu1 %v5364_v29  ;;  %v5396_v57 = vld [vmem:[#allocation4 + $0x848] sm:$0xff]  ;;  %v5398_v26 = vld [vmem:[#allocation4 + $0x738] sm:$0xff]  ;;  %v5399_v29 = vld [vmem:[#allocation4 + $0x830] sm:$0xff] }
 0x286   : > { %3151 = vmatpush.msra.mxu0 %v5365_v27  ;;  %3070 = vmatmul.f32.vlgmr.msra.gmra.mxu2 %v6491_v48  ;;  %v5400_v27 = vld [vmem:[#allocation4 + $0x838] sm:$0xff] }
 0x287   : > { %3050 = vmatmul.f32.vlgmr.msrb.gmra.mxu0 %v6483_v55  ;;  %3116 = vmatpush.msrb.mxu3 %v5366_v49  ;;  %v2642_v18 = vpop.f32.mrf.mxu0  ;;  %v5401_v49 = vld [vmem:[#allocation4 + $0x720] sm:$0xff] }
 0x288   : > { %3156 = vmatpush.msrb.mxu2 %v5367_v11  ;;  %3176 = vmatpush.msrb.mxu0 %v5368_v30  ;;  %v5402_v11 = vld [vmem:[#allocation4 + $0x728] sm:$0xff]  ;;  %v5403_v30 = vld [vmem:[#allocation4 + $0x820] sm:$0xff] }
 0x289   : > { %3097 = vmatpush.msra.mxu1 %v5369_v61  ;;  %4826 = vmatmul.msk.f32.vlgmr.msra.gmra.mxu3 %vm610_vm0, %v6480_v53  ;;  %v5404_v61 = vld [vmem:[#allocation4 + $0x828] sm:$0xff] }
 0x28a   : > { %3157 = vmatpush.msrb.mxu2 %v5370_v16  ;;  %3117 = vmatpush.msrb.mxu3 %v5371_v46  ;;  %v5405_v16 = vld [vmem:[#allocation4 + $0x710] sm:$0xff] }
 0x28b   : > { %3177 = vmatpush.msrb.mxu0 %v5372_v34  ;;  %3098 = vmatpush.msra.mxu1 %v5373_v12  ;;  %v5407_v46 = vld [vmem:[#allocation4 + $0x810] sm:$0xff]  ;;  %v5408_v34 = vld [vmem:[#allocation4 + $0x818] sm:$0xff]  ;;  %v5409_v12 = vld [vmem:[#allocation4 + $0x700] sm:$0xff] }
 0x28c   : > { %3158 = vmatpush.msrb.mxu2 %v5374_v40  ;;  %3118 = vmatpush.msrb.mxu3 %v5375_v41  ;;  %v5410_v40 = vld [vmem:[#allocation4 + $0x708] sm:$0xff]  ;;  %v5411_v41 = vld [vmem:[#allocation4 + $0x800] sm:$0xff] }
 0x28d   : > { %3178 = vmatpush.msrb.mxu0 %v5376_v5  ;;  %3099 = vmatpush.msra.mxu1 %v5377_v43  ;;  %v5412_v5 = vld [vmem:[#allocation4 + $0x808] sm:$0xff]  ;;  %v5413_v43 = vld [vmem:[#allocation4 + $0x6f0] sm:$0xff] }
 0x28e   : > { %3159 = vmatpush.msrb.mxu2 %v5378_v63  ;;  %3119 = vmatpush.msrb.mxu3 %v5379_v23  ;;  %v5414_v63 = vld [vmem:[#allocation4 + $0x6f8] sm:$0xff]  ;;  %v5415_v23 = vld [vmem:[#allocation4 + $0x7f0] sm:$0xff] }
 0x28f   : > { %3179 = vmatpush.msrb.mxu0 %v5380_v47  ;;  %3100 = vmatpush.msra.mxu1 %v5381_v6  ;;  %v5416_v47 = vld [vmem:[#allocation4 + $0x7f8] sm:$0xff]  ;;  %v5417_v6 = vld [vmem:[#allocation4 + $0x6e0] sm:$0xff] }
 0x290   : > { %3160 = vmatpush.msrb.mxu2 %v5382_v36  ;;  %3120 = vmatpush.msrb.mxu3 %v5383_v54  ;;  %v5418_v36 = vld [vmem:[#allocation4 + $0x6e8] sm:$0xff]  ;;  %v5419_v54 = vld [vmem:[#allocation4 + $0x7e0] sm:$0xff] }
 0x291   : > { %3180 = vmatpush.msrb.mxu0 %v5384_v56  ;;  %v2622_v42 = vpop.f32.mrf.mxu3  ;;  %v2662_v58 = vpop.f32.mrf.mxu2  ;;  %3101 = vmatpush.msra.mxu1 %v5385_v59  ;;  %v5420_v56 = vld [vmem:[#allocation4 + $0x7e8] sm:$0xff]  ;;  %v5423_v59 = vld [vmem:[#allocation4 + $0x7d0] sm:$0xff] }
 0x292   : > { %3161 = vmatpush.msrb.mxu2 %v5386_v60  ;;  %v2623_v62 = vadd.f32 %v2622_v42, %v2603_v25  ;;  %v2663_v14 = vadd.f32 %v2662_v58, %v6475_v31  ;;  %3121 = vmatpush.msrb.mxu3 %v5387_v1  ;;  %v5397_v25 = vld [vmem:[#allocation4 + $0x730] sm:$0xff]  ;;  %v5422_v58 = vld [vmem:[#allocation4 + $0x6d8] sm:$0xff]  ;;  %v5427_v1 = vld [vmem:[#allocation4 + $0x7c0] sm:$0xff] }
 0x293   : > { %3181 = vmatpush.msrb.mxu0 %v5388_v32  ;;  %3102 = vmatpush.msra.mxu1 %v5389_v38  ;;  %v2702_v31 = vpop.f32.mrf.mxu1  ;;  %v5421_v42 = vld [vmem:[#allocation4 + $0x6d0] sm:$0xff]  ;;  %v5424_v60 = vld [vmem:[#allocation4 + $0x7d8] sm:$0xff]  ;;  %v5428_v32 = vld [vmem:[#allocation4 + $0x7c8] sm:$0xff] }
 0x294   : > { %3162 = vmatpush.msrb.mxu2 %v5390_v8  ;;  %v6500_v10 = vadd.f32 %v2642_v18, %v2623_v62  ;;  %v2682_v13 = vpop.f32.mrf.mxu0  ;;  %3122 = vmatpush.msrb.mxu3 %v5391_v3  ;;  %v5406_v18 = vld [vmem:[#allocation4 + $0x718] sm:$0xff]  ;;  %v5425_v62 = vld [vmem:[#allocation4 + $0x6c0] sm:$0xff]  ;;  %v5430_v8 = vld [vmem:[#allocation4 + $0x330] sm:$0xff] }
 0x295   : > { %3182 = vmatpush.msrb.mxu0 %v5392_v20  ;;  %v2683_v15 = vadd.f32 %v2682_v13, %v2663_v14  ;;  %3103 = vmatpush.msra.mxu1 %v5393_v0  ;;  %v5426_v14 = vld [vmem:[#allocation4 + $0x6c8] sm:$0xff]  ;;  %v5429_v38 = vld [vmem:[#allocation4 + $0x8f8] sm:$0xff]  ;;  %v5431_v13 = vld [vmem:[#allocation4 + $0x470] sm:$0xff] }
 0x296   : > { %3163 = vmatpush.msrb.mxu2 %v5394_v17  ;;  %3123 = vmatpush.msrb.mxu3 %v5395_v19  ;;  %v5432_v3 = vld [vmem:[#allocation4 + $0x338] sm:$0xff]  ;;  %v5433_v20 = vld [vmem:[#allocation4 + $0x8e8] sm:$0xff]  ;;  %v5435_v0 = vld [vmem:[#allocation4 + $0x460] sm:$0xff] }
 0x297   : > { %3183 = vmatpush.msrb.mxu0 %v5396_v57  ;;  %v6502_v44 = vadd.f32 %v2702_v31, %v2683_v15  ;;  %3104 = vmatpush.msra.mxu1 %v5397_v25  ;;  %v5434_v15 = vld [vmem:[#allocation4 + $0x320] sm:$0xff]  ;;  %v5436_v17 = vld [vmem:[#allocation4 + $0x328] sm:$0xff]  ;;  %v5437_v31 = vld [vmem:[#allocation4 + $0x8d8] sm:$0xff] }
 0x298   : > { %3164 = vmatpush.msrb.mxu2 %v5398_v26  ;;  %3124 = vmatpush.msrb.mxu3 %v5399_v29  ;;  %v5438_v19 = vld [vmem:[#allocation4 + $0x310] sm:$0xff]  ;;  %v5440_v25 = vld [vmem:[#allocation4 + $0x318] sm:$0xff]  ;;  %v5441_v26 = vld [vmem:[#allocation4 + $0x8c8] sm:$0xff] }
 0x299   : > { %3184 = vmatpush.msrb.mxu0 %v5400_v27  ;;  %3105 = vmatpush.msra.mxu1 %v5401_v49  ;;  %v5439_v57 = vld [vmem:[#allocation4 + $0x450] sm:$0xff]  ;;  %v5442_v29 = vld [vmem:[#allocation4 + $0x300] sm:$0xff] }
 0x29a   : > { %3165 = vmatpush.msrb.mxu2 %v5402_v11  ;;  %3125 = vmatpush.msrb.mxu3 %v5403_v30  ;;  %v5443_v27 = vld [vmem:[#allocation4 + $0x440] sm:$0xff]  ;;  %v5444_v49 = vld [vmem:[#allocation4 + $0x430] sm:$0xff]  ;;  %v5445_v11 = vld [vmem:[#allocation4 + $0x308] sm:$0xff] }
 0x29b   : > { %3185 = vmatpush.msrb.mxu0 %v5404_v61  ;;  %3106 = vmatpush.msra.mxu1 %v5405_v16  ;;  %v5446_v30 = vld [vmem:[#allocation4 + $0x2f0] sm:$0xff]  ;;  %v5447_v16 = vld [vmem:[#allocation4 + $0x438] sm:$0xff] }
 0x29c   : > { %3166 = vmatpush.msrb.mxu2 %v5406_v18  ;;  %3126 = vmatpush.msrb.mxu3 %v5407_v46  ;;  %v5448_v18 = vld [vmem:[#allocation4 + $0x420] sm:$0xff] }
 0x29d   : > { %3186 = vmatpush.msrb.mxu0 %v5408_v34  ;;  %3107 = vmatpush.msra.mxu1 %v5409_v12  ;;  %v5449_v34 = vld [vmem:[#allocation4 + $0x2f8] sm:$0xff]  ;;  %v5450_v12 = vld [vmem:[#allocation4 + $0x2e0] sm:$0xff] }
 0x29e   : > { %3167 = vmatpush.msrb.mxu2 %v5410_v40  ;;  %3127 = vmatpush.msrb.mxu3 %v5411_v41  ;;  %v5451_v41 = vld [vmem:[#allocation4 + $0x428] sm:$0xff] }
 0x29f   : > { %3187 = vmatpush.msrb.mxu0 %v5412_v5  ;;  %3108 = vmatpush.msra.mxu1 %v5413_v43  ;;  %v5452_v5 = vld [vmem:[#allocation4 + $0x410] sm:$0xff] }
 0x2a0   : > { %3168 = vmatpush.msrb.mxu2 %v5414_v63  ;;  %3128 = vmatpush.msrb.mxu3 %v5415_v23  ;;  %v5453_v63 = vld [vmem:[#allocation4 + $0x2e8] sm:$0xff]  ;;  %v5455_v23 = vld [vmem:[#allocation4 + $0x418] sm:$0xff] }
 0x2a1   : > { %3188 = vmatpush.msrb.mxu0 %v5416_v47  ;;  %3109 = vmatpush.msra.mxu1 %v5417_v6  ;;  %v5456_v47 = vld [vmem:[#allocation4 + $0x400] sm:$0xff] }
 0x2a2   : > { %3169 = vmatpush.msrb.mxu2 %v5418_v36  ;;  %3129 = vmatpush.msrb.mxu3 %v5419_v54  ;;  %v5457_v36 = vld [vmem:[#allocation4 + $0x2d8] sm:$0xff]  ;;  %v5458_v54 = vld [vmem:[#allocation4 + $0x2c0] sm:$0xff] }
 0x2a3   : > { %3189 = vmatpush.msrb.mxu0 %v5420_v56  ;;  %3110 = vmatpush.msra.mxu1 %v5421_v42  ;;  %v5459_v56 = vld [vmem:[#allocation4 + $0x408] sm:$0xff] }
 0x2a4   : > { %3170 = vmatpush.msrb.mxu2 %v5422_v58  ;;  %3130 = vmatpush.msrb.mxu3 %v5423_v59  ;;  %v5460_v58 = vld [vmem:[#allocation4 + $0x3f0] sm:$0xff]  ;;  %v5461_v59 = vld [vmem:[#allocation4 + $0x2c8] sm:$0xff] }
 0x2a5   : > { %3190 = vmatpush.msrb.mxu0 %v5424_v60  ;;  %3111 = vmatpush.msra.mxu1 %v5425_v62  ;;  %v5462_v62 = vld [vmem:[#allocation4 + $0x3f8] sm:$0xff] }
 0x2a6   : > { %3171 = vmatpush.msrb.mxu2 %v5426_v14  ;;  %3131 = vmatpush.msrb.mxu3 %v5427_v1  ;;  %v5463_v14 = vld [vmem:[#allocation4 + $0x2b0] sm:$0xff]  ;;  %v5464_v1 = vld [vmem:[#allocation4 + $0x3e0] sm:$0xff] }
 0x2a7   : > { %3191 = vmatpush.msrb.mxu0 %v5428_v32  ;;  %3208 = vmatpush.msrb.mxu1 %v5429_v38  ;;  %v5465_v32 = vld [vmem:[#allocation4 + $0x2b8] sm:$0xff]  ;;  %v5466_v38 = vld [vmem:[#allocation4 + $0x3e8] sm:$0xff] }
 0x2a8   : > { %3132 = vmatmul.f32.vlgmr.msrb.gmra.mxu3 %v6253_v39  ;;  %4827 = vmatmul.msk.f32.vlgmr.msra.gmra.mxu0 %vm610_vm0, %v6245_v22 }
 0x2a9   : > { %3216 = vmatpush.msra.mxu3 %v5430_v8  ;;  %3268 = vmatpush.msra.mxu2 %v5431_v13  ;;  %v5467_v8 = vld [vmem:[#allocation4 + $0x2a0] sm:$0xff]  ;;  %v5468_v13 = vld [vmem:[#allocation4 + $0x3d0] sm:$0xff] }
 0x2aa   : > { %3276 = vmatpush.msra.mxu0 %v5432_v3  ;;  %3209 = vmatpush.msrb.mxu1 %v5433_v20  ;;  %v5469_v3 = vld [vmem:[#allocation4 + $0x2a8] sm:$0xff]  ;;  %v5470_v20 = vld [vmem:[#allocation4 + $0x3d8] sm:$0xff] }
 0x2ab   : > { %3217 = vmatpush.msra.mxu3 %v5434_v15  ;;  %3269 = vmatpush.msra.mxu2 %v5435_v0  ;;  %v5471_v15 = vld [vmem:[#allocation4 + $0x290] sm:$0xff]  ;;  %v5472_v0 = vld [vmem:[#allocation4 + $0x3c0] sm:$0xff] }
 0x2ac   : > { %3277 = vmatpush.msra.mxu0 %v5436_v17  ;;  %3210 = vmatpush.msrb.mxu1 %v5437_v31  ;;  %v5473_v31 = vld [vmem:[#allocation4 + $0x298] sm:$0xff] }
 0x2ad   : > { %3218 = vmatpush.msra.mxu3 %v5438_v19  ;;  %3270 = vmatpush.msra.mxu2 %v5439_v57  ;;  %v5474_v19 = vld [vmem:[#allocation4 + $0x3c8] sm:$0xff]  ;;  %v5475_v57 = vld [vmem:[#allocation4 + $0x280] sm:$0xff] }
 0x2ae   : > { %3278 = vmatpush.msra.mxu0 %v5440_v25  ;;  %3211 = vmatpush.msrb.mxu1 %v5441_v26  ;;  %v5476_v25 = vld [vmem:[#allocation4 + $0x3b0] sm:$0xff] }
 0x2af   : > { %3219 = vmatpush.msra.mxu3 %v5442_v29  ;;  %3112 = vmatmul.f32.vlgmr.msra.gmra.mxu1 %v6247_v24  ;;  %v5477_v29 = vld [vmem:[#allocation4 + $0x288] sm:$0xff] }
 0x2b0   : > { %3271 = vmatpush.msra.mxu2 %v5443_v27  ;;  %3236 = vmatpush.msra.mxu1 %v5444_v49  ;;  %v5478_v27 = vld [vmem:[#allocation4 + $0x3b8] sm:$0xff]  ;;  %v5479_v49 = vld [vmem:[#allocation4 + $0x270] sm:$0xff] }
 0x2b1   : > { %3279 = vmatpush.msra.mxu0 %v5445_v11  ;;  %3172 = vmatmul.f32.vlgmr.msrb.gmra.mxu2 %v6247_v24  ;;  %v2762_v61 = vpop.f32.mrf.mxu2  ;;  %v5454_v24 = vld [vmem:[#allocation4 + $0x2d0] sm:$0xff]  ;;  %v5480_v11 = vld [vmem:[#allocation4 + $0x3a0] sm:$0xff] }
 0x2b2   : > { %3220 = vmatpush.msra.mxu3 %v5446_v30  ;;  %3296 = vmatpush.msrb.mxu2 %v5447_v16  ;;  %v2722_v46 = vpop.f32.mrf.mxu3  ;;  %v5481_v30 = vld [vmem:[#allocation4 + $0x278] sm:$0xff]  ;;  %v5483_v16 = vld [vmem:[#allocation4 + $0x260] sm:$0xff] }
 0x2b3   : > { %3237 = vmatpush.msra.mxu1 %v5448_v18  ;;  %3280 = vmatpush.msra.mxu0 %v5449_v34  ;;  %v2742_v40 = vpop.f32.mrf.mxu1  ;;  %v5484_v18 = vld [vmem:[#allocation4 + $0x390] sm:$0xff] }
 0x2b4   : > { %3221 = vmatpush.msra.mxu3 %v5450_v12  ;;  %3297 = vmatpush.msrb.mxu2 %v5451_v41  ;;  %v2743_v43 = vadd.f32 %v2742_v40, %v2722_v46  ;;  %v5485_v46 = vld [vmem:[#allocation4 + $0x268] sm:$0xff]  ;;  %v5487_v34 = vld [vmem:[#allocation4 + $0x250] sm:$0xff]  ;;  %v5488_v12 = vld [vmem:[#allocation4 + $0x380] sm:$0xff] }
 0x2b5   : > { %3238 = vmatpush.msra.mxu1 %v5452_v5  ;;  %3281 = vmatpush.msra.mxu0 %v5453_v63  ;;  %v5489_v40 = vld [vmem:[#allocation4 + $0x258] sm:$0xff]  ;;  %v5490_v41 = vld [vmem:[#allocation4 + $0x388] sm:$0xff]  ;;  %v5491_v5 = vld [vmem:[#allocation4 + $0x240] sm:$0xff] }
 0x2b6   : > { %3222 = vmatpush.msra.mxu3 %v5454_v24  ;;  %3298 = vmatpush.msrb.mxu2 %v5455_v23  ;;  %v2763_v6 = vadd.f32 %v2762_v61, %v2743_v43  ;;  %v2782_v60 = vpop.f32.mrf.mxu0  ;;  %v5482_v61 = vld [vmem:[#allocation4 + $0x3a8] sm:$0xff]  ;;  %v5492_v43 = vld [vmem:[#allocation4 + $0x370] sm:$0xff]  ;;  %v5494_v24 = vld [vmem:[#allocation4 + $0x378] sm:$0xff] }
 0x2b7   : > { %3239 = vmatpush.msra.mxu1 %v5456_v47  ;;  %3282 = vmatpush.msra.mxu0 %v5457_v36  ;;  %v5493_v63 = vld [vmem:[#allocation4 + $0x248] sm:$0xff]  ;;  %v5495_v23 = vld [vmem:[#allocation4 + $0x478] sm:$0xff]  ;;  %v5496_v47 = vld [vmem:[#allocation4 + $0x360] sm:$0xff] }
 0x2b8   : > { %3223 = vmatpush.msra.mxu3 %v5458_v54  ;;  %3192 = vmatmul.f32.vlgmr.msrb.gmra.mxu0 %v6253_v39  ;;  %v6511_v42 = vadd.f32 %v2763_v6, %v6500_v10  ;;  %v5497_v6 = vld [vmem:[#allocation4 + $0xd70] sm:$0xff]  ;;  %v5498_v36 = vld [vmem:[#allocation4 + $0x368] sm:$0xff] }
 0x2b9   : > { %3299 = vmatpush.msrb.mxu2 %v5459_v56  ;;  %3240 = vmatpush.msra.mxu1 %v5460_v58  ;;  %v5499_v54 = vld [vmem:[#allocation4 + $0x468] sm:$0xff]  ;;  %v5500_v56 = vld [vmem:[#allocation4 + $0x350] sm:$0xff]  ;;  %v5501_v58 = vld [vmem:[#allocation4 + $0xd60] sm:$0xff] }
 0x2ba   : > { %3283 = vmatpush.msra.mxu0 %v5461_v59  ;;  %4828 = vmatmul.msk.f32.vlgmr.msrb.gmra.mxu1 %vm610_vm0, %v6245_v22  ;;  %v5502_v59 = vld [vmem:[#allocation4 + $0x358] sm:$0xff] }
 0x2bb   : > { %3300 = vmatpush.msrb.mxu2 %v5462_v62  ;;  %3224 = vmatpush.msra.mxu3 %v5463_v14  ;;  %v2802_v39 = vpop.f32.mrf.mxu2  ;;  %v5505_v62 = vld [vmem:[#allocation4 + $0xd50] sm:$0xff]  ;;  %v5506_v14 = vld [vmem:[#allocation4 + $0x348] sm:$0xff] }
 0x2bc   : > { %3241 = vmatpush.msra.mxu1 %v5464_v1  ;;  %3284 = vmatpush.msra.mxu0 %v5465_v32  ;;  %v2803_v10 = vadd.f32 %v2802_v39, %v2782_v60  ;;  %v5503_v60 = vld [vmem:[#allocation4 + $0x458] sm:$0xff]  ;;  %v5507_v1 = vld [vmem:[#allocation4 + $0x448] sm:$0xff]  ;;  %v5508_v39 = vld [vmem:[#allocation4 + $0xc30] sm:$0xff] }
 0x2bd   : > { %3301 = vmatpush.msrb.mxu2 %v5466_v38  ;;  %3225 = vmatpush.msra.mxu3 %v5467_v8  ;;  %v5509_v32 = vld [vmem:[#allocation4 + $0xd30] sm:$0xff]  ;;  %v5510_v38 = vld [vmem:[#allocation4 + $0xc38] sm:$0xff]  ;;  %v5511_v8 = vld [vmem:[#allocation4 + $0xc20] sm:$0xff] }
 0x2be   : > { %3242 = vmatpush.msra.mxu1 %v5468_v13  ;;  %3285 = vmatpush.msra.mxu0 %v5469_v3  ;;  %v2822_v22 = vpop.f32.mrf.mxu3  ;;  %v5512_v13 = vld [vmem:[#allocation4 + $0xd20] sm:$0xff]  ;;  %v5513_v3 = vld [vmem:[#allocation4 + $0xc28] sm:$0xff] }
 0x2bf   : > { %3302 = vmatpush.msrb.mxu2 %v5470_v20  ;;  %3226 = vmatpush.msra.mxu3 %v5471_v15  ;;  %v2823_v17 = vadd.f32 %v2822_v22, %v2803_v10  ;;  %v5514_v20 = vld [vmem:[#allocation4 + $0xd40] sm:$0xff]  ;;  %v5515_v15 = vld [vmem:[#allocation4 + $0xc10] sm:$0xff] }
 0x2c0   : > { %3243 = vmatpush.msra.mxu1 %v5472_v0  ;;  %3286 = vmatpush.msra.mxu0 %v5473_v31  ;;  %v5516_v0 = vld [vmem:[#allocation4 + $0xd10] sm:$0xff]  ;;  %v5518_v31 = vld [vmem:[#allocation4 + $0xd38] sm:$0xff] }
 0x2c1   : > { %3303 = vmatpush.msrb.mxu2 %v5474_v19  ;;  %3227 = vmatpush.msra.mxu3 %v5475_v57  ;;  %v6516_v26 = vadd.f32 %v2823_v17, %v6502_v44  ;;  %v5486_v44 = vld [vmem:[#allocation4 + $0x398] sm:$0xff]  ;;  %v5521_v19 = vld [vmem:[#allocation4 + $0xc08] sm:$0xff] }
 0x2c2   : > { %3244 = vmatpush.msra.mxu1 %v5476_v25  ;;  %3287 = vmatpush.msra.mxu0 %v5477_v29  ;;  %v5517_v17 = vld [vmem:[#allocation4 + $0xc18] sm:$0xff]  ;;  %v5522_v57 = vld [vmem:[#allocation4 + $0xd28] sm:$0xff]  ;;  %v5523_v25 = vld [vmem:[#allocation4 + $0xbf0] sm:$0xff] }
 0x2c3   : > { %3304 = vmatpush.msrb.mxu2 %v5478_v27  ;;  %3228 = vmatpush.msra.mxu3 %v5479_v49  ;;  %v5524_v29 = vld [vmem:[#allocation4 + $0xcf0] sm:$0xff]  ;;  %v5525_v27 = vld [vmem:[#allocation4 + $0xbf8] sm:$0xff] }
 0x2c4   : > { %3245 = vmatpush.msra.mxu1 %v5480_v11  ;;  %3288 = vmatpush.msra.mxu0 %v5481_v30  ;;  %v5526_v49 = vld [vmem:[#allocation4 + $0xd18] sm:$0xff]  ;;  %v5527_v30 = vld [vmem:[#allocation4 + $0xbe0] sm:$0xff] }
 0x2c5   : > { %3305 = vmatpush.msrb.mxu2 %v5482_v61  ;;  %3229 = vmatpush.msra.mxu3 %v5483_v16  ;;  %v5528_v61 = vld [vmem:[#allocation4 + $0xce0] sm:$0xff] }
 0x2c6   : > { %3246 = vmatpush.msra.mxu1 %v5484_v18  ;;  %3289 = vmatpush.msra.mxu0 %v5485_v46 }
 0x2c7   : > { %3306 = vmatpush.msrb.mxu2 %v5486_v44  ;;  %3230 = vmatpush.msra.mxu3 %v5487_v34  ;;  %v5529_v44 = vld [vmem:[#allocation4 + $0xbe8] sm:$0xff] }
 0x2c8   : > { %3247 = vmatpush.msra.mxu1 %v5488_v12  ;;  %3290 = vmatpush.msra.mxu0 %v5489_v40  ;;  %v5530_v34 = vld [vmem:[#allocation4 + $0xd08] sm:$0xff]  ;;  %v5531_v40 = vld [vmem:[#allocation4 + $0xbd0] sm:$0xff] }
 0x2c9   : > { %3307 = vmatpush.msrb.mxu2 %v5490_v41  ;;  %3231 = vmatpush.msra.mxu3 %v5491_v5  ;;  %v5532_v41 = vld [vmem:[#allocation4 + $0xcd0] sm:$0xff] }
 0x2ca   : > { %3248 = vmatpush.msra.mxu1 %v5492_v43  ;;  %4829 = vmatmul.msk.f32.vlgmr.msra.gmra.mxu2 %vm610_vm0, %v6431_v37  ;;  %v5533_v43 = vld [vmem:[#allocation4 + $0xbd8] sm:$0xff] }
 0x2cb   : > { %3291 = vmatpush.msra.mxu0 %v5493_v63  ;;  %3232 = vmatmul.f32.vlgmr.msra.gmra.mxu3 %v6427_v9  ;;  %v5534_v63 = vld [vmem:[#allocation4 + $0xcf8] sm:$0xff] }
 0x2cc   : > { %3292 = vmatmul.f32.vlgmr.msra.gmra.mxu0 %v6427_v9  ;;  %3308 = vmatpush.msrb.mxu2 %v5494_v24  ;;  %v5504_v9 = vld [vmem:[#allocation4 + $0x340] sm:$0xff] }
 0x2cd   : > { %3328 = vmatpush.msrb.mxu3 %v5495_v23  ;;  %3249 = vmatpush.msra.mxu1 %v5496_v47  ;;  %v5535_v23 = vld [vmem:[#allocation4 + $0xbc0] sm:$0xff] }
 0x2ce   : > { %3388 = vmatpush.msrb.mxu0 %v5497_v6  ;;  %3309 = vmatpush.msrb.mxu2 %v5498_v36  ;;  %v5536_v47 = vld [vmem:[#allocation4 + $0xcc0] sm:$0xff] }
 0x2cf   : > { %3329 = vmatpush.msrb.mxu3 %v5499_v54  ;;  %3250 = vmatpush.msra.mxu1 %v5500_v56  ;;  %v5537_v54 = vld [vmem:[#allocation4 + $0xbc8] sm:$0xff] }
 0x2d0   : > { %3389 = vmatpush.msrb.mxu0 %v5501_v58  ;;  %3310 = vmatpush.msrb.mxu2 %v5502_v59  ;;  %v5538_v56 = vld [vmem:[#allocation4 + $0xce8] sm:$0xff]  ;;  %v5539_v58 = vld [vmem:[#allocation4 + $0xbb0] sm:$0xff] }
 0x2d1   : > { %3330 = vmatpush.msrb.mxu3 %v5503_v60  ;;  %3251 = vmatpush.msra.mxu1 %v5504_v9  ;;  %v5540_v59 = vld [vmem:[#allocation4 + $0xcb0] sm:$0xff]  ;;  %v5541_v9 = vld [vmem:[#allocation4 + $0xbb8] sm:$0xff] }
 0x2d2   : > { %3390 = vmatpush.msrb.mxu0 %v5505_v62  ;;  %3311 = vmatpush.msrb.mxu2 %v5506_v14  ;;  %v5542_v62 = vld [vmem:[#allocation4 + $0xcd8] sm:$0xff]  ;;  %v5543_v14 = vld [vmem:[#allocation4 + $0xba0] sm:$0xff] }
 0x2d3   : > { %3331 = vmatpush.msrb.mxu3 %v5507_v1  ;;  %3336 = vmatpush.msrb.mxu1 %v5508_v39  ;;  %v5545_v1 = vld [vmem:[#allocation4 + $0xba8] sm:$0xff] }
 0x2d4   : > { %3312 = vmatmul.f32.vlgmr.msrb.gmra.mxu2 %v6436_v51  ;;  %3252 = vmatmul.f32.vlgmr.msra.gmra.mxu1 %v6436_v51  ;;  %v5519_v51 = vld [vmem:[#allocation4 + $0xc00] sm:$0xff]  ;;  %v5546_v39 = vld [vmem:[#allocation4 + $0xcc8] sm:$0xff] }
 0x2d5   : > { %3356 = vmatpush.msra.mxu3 %v5509_v32  ;;  %3396 = vmatpush.msra.mxu2 %v5510_v38  ;;  %v2884_v10 = vpop.f32.mrf.mxu0  ;;  %v5547_v32 = vld [vmem:[#allocation4 + $0xb90] sm:$0xff] }
 0x2d6   : > { %4830 = vmatmul.msk.f32.vlgmr.msrb.gmra.mxu3 %vm610_vm0, %v6431_v37  ;;  %3337 = vmatpush.msrb.mxu1 %v5511_v8  ;;  %v5520_v37 = vld [vmem:[#allocation4 + $0xd00] sm:$0xff]  ;;  %v5548_v38 = vld [vmem:[#allocation4 + $0xc90] sm:$0xff] }
 0x2d7   : > { %3357 = vmatpush.msra.mxu3 %v5512_v13  ;;  %3397 = vmatpush.msra.mxu2 %v5513_v3  ;;  %v5551_v8 = vld [vmem:[#allocation4 + $0xb80] sm:$0xff]  ;;  %v5553_v3 = vld [vmem:[#allocation4 + $0xb88] sm:$0xff] }
 0x2d8   : > { %3391 = vmatpush.msrb.mxu0 %v5514_v20  ;;  %v2844_v22 = vpop.f32.mrf.mxu1  ;;  %3338 = vmatpush.msrb.mxu1 %v5515_v15  ;;  %v5552_v13 = vld [vmem:[#allocation4 + $0xc80] sm:$0xff]  ;;  %v5554_v20 = vld [vmem:[#allocation4 + $0xca8] sm:$0xff]  ;;  %v5556_v15 = vld [vmem:[#allocation4 + $0xc70] sm:$0xff] }
 0x2d9   : > { %3358 = vmatpush.msra.mxu3 %v5516_v0  ;;  %3398 = vmatpush.msra.mxu2 %v5517_v17  ;;  %v5557_v0 = vld [vmem:[#allocation4 + $0xb78] sm:$0xff] }
 0x2da   : > { %3416 = vmatpush.msra.mxu0 %v5518_v31  ;;  %3339 = vmatpush.msrb.mxu1 %v5519_v51  ;;  %v5558_v17 = vld [vmem:[#allocation4 + $0xc98] sm:$0xff]  ;;  %v5559_v31 = vld [vmem:[#allocation4 + $0xb60] sm:$0xff] }
 0x2db   : > { %3359 = vmatpush.msra.mxu3 %v5520_v37  ;;  %3399 = vmatpush.msra.mxu2 %v5521_v19  ;;  %v5560_v51 = vld [vmem:[#allocation4 + $0xc60] sm:$0xff]  ;;  %v5561_v37 = vld [vmem:[#allocation4 + $0xb68] sm:$0xff] }
 0x2dc   : > { %3417 = vmatpush.msra.mxu0 %v5522_v57  ;;  %3340 = vmatpush.msrb.mxu1 %v5523_v25  ;;  %v5562_v19 = vld [vmem:[#allocation4 + $0xc88] sm:$0xff]  ;;  %v5563_v57 = vld [vmem:[#allocation4 + $0xb50] sm:$0xff] }
 0x2dd   : > { %3360 = vmatpush.msra.mxu3 %v5524_v29  ;;  %3400 = vmatpush.msra.mxu2 %v5525_v27  ;;  %v2864_v11 = vpop.f32.mrf.mxu3  ;;  %v5564_v25 = vld [vmem:[#allocation4 + $0xc50] sm:$0xff]  ;;  %v5565_v29 = vld [vmem:[#allocation4 + $0xb58] sm:$0xff]  ;;  %v5566_v27 = vld [vmem:[#allocation4 + $0xb40] sm:$0xff] }
 0x2de   : > { %3418 = vmatpush.msra.mxu0 %v5526_v49  ;;  %3341 = vmatpush.msrb.mxu1 %v5527_v30  ;;  %v2865_v16 = vadd.f32 %v2864_v11, %v2844_v22  ;;  %v2904_v18 = vpop.f32.mrf.mxu2  ;;  %v5555_v22 = vld [vmem:[#allocation4 + $0xb70] sm:$0xff]  ;;  %v5567_v49 = vld [vmem:[#allocation4 + $0xc40] sm:$0xff]  ;;  %v5568_v11 = vld [vmem:[#allocation4 + $0xb48] sm:$0xff] }
 0x2df   : > { %3361 = vmatpush.msra.mxu3 %v5528_v61  ;;  %v2924_v46 = vpop.f32.mrf.mxu0  ;;  %3401 = vmatpush.msra.mxu2 %v5529_v44  ;;  %v5569_v30 = vld [vmem:[#allocation4 + $0xc78] sm:$0xff]  ;;  %v5574_v44 = vld [vmem:[#allocation4 + $0xd68] sm:$0xff] }
 0x2e0   : > { %3419 = vmatpush.msra.mxu0 %v5530_v34  ;;  %v2925_v12 = vadd.f32 %v2924_v46, %v2904_v18  ;;  %3342 = vmatpush.msrb.mxu1 %v5531_v40  ;;  %v2885_v5 = vadd.f32 %v2884_v10, %v2865_v16  ;;  %v5549_v10 = vld [vmem:[#allocation4 + $0xb98] sm:$0xff]  ;;  %v5571_v16 = vld [vmem:[#allocation4 + $0x10b0] sm:$0xff]  ;;  %v5573_v46 = vld [vmem:[#allocation4 + $0xc68] sm:$0xff] }
 0x2e1   : > { %3362 = vmatpush.msra.mxu3 %v5532_v41  ;;  %3402 = vmatpush.msra.mxu2 %v5533_v43  ;;  %v2944_v24 = vpop.f32.mrf.mxu1  ;;  %v5570_v61 = vld [vmem:[#allocation4 + $0xd78] sm:$0xff]  ;;  %v5572_v18 = vld [vmem:[#allocation4 + $0x11f0] sm:$0xff]  ;;  %v5575_v34 = vld [vmem:[#allocation4 + $0x10a0] sm:$0xff] }
 0x2e2   : > { %3420 = vmatpush.msra.mxu0 %v5534_v63  ;;  %3343 = vmatpush.msrb.mxu1 %v5535_v23  ;;  %v6527_v6 = vadd.f32 %v2885_v5, %v6511_v42  ;;  %v2945_v36 = vadd.f32 %v2944_v24, %v2925_v12  ;;  %v5544_v42 = vld [vmem:[#allocation4 + $0xca0] sm:$0xff]  ;;  %v5577_v40 = vld [vmem:[#allocation4 + $0xc58] sm:$0xff]  ;;  %v5579_v5 = vld [vmem:[#allocation4 + $0x1090] sm:$0xff] }
 0x2e3   : > { %3363 = vmatpush.msra.mxu3 %v5536_v47  ;;  %3403 = vmatpush.msra.mxu2 %v5537_v54  ;;  %v5576_v12 = vld [vmem:[#allocation4 + $0x11e0] sm:$0xff]  ;;  %v5578_v41 = vld [vmem:[#allocation4 + $0xd58] sm:$0xff]  ;;  %v5580_v43 = vld [vmem:[#allocation4 + $0x11d0] sm:$0xff] }
 0x2e4   : > { %3421 = vmatpush.msra.mxu0 %v5538_v56  ;;  %3344 = vmatpush.msrb.mxu1 %v5539_v58  ;;  %v6530_v60 = vadd.f32 %v2945_v36, %v6516_v26  ;;  %v5550_v26 = vld [vmem:[#allocation4 + $0xcb8] sm:$0xff]  ;;  %v5582_v63 = vld [vmem:[#allocation4 + $0xd48] sm:$0xff]  ;;  %v5583_v24 = vld [vmem:[#allocation4 + $0x1080] sm:$0xff] }
 0x2e5   : > { %3364 = vmatpush.msra.mxu3 %v5540_v59  ;;  %3404 = vmatpush.msra.mxu2 %v5541_v9  ;;  %v5584_v23 = vld [vmem:[#allocation4 + $0x11b0] sm:$0xff]  ;;  %v5585_v47 = vld [vmem:[#allocation4 + $0x11c0] sm:$0xff]  ;;  %v5586_v36 = vld [vmem:[#allocation4 + $0x10b8] sm:$0xff] }
 0x2e6   : > { %3422 = vmatpush.msra.mxu0 %v5542_v62  ;;  %3345 = vmatpush.msrb.mxu1 %v5543_v14  ;;  %v5587_v54 = vld [vmem:[#allocation4 + $0x11b8] sm:$0xff]  ;;  %v5588_v56 = vld [vmem:[#allocation4 + $0x1070] sm:$0xff]  ;;  %v5589_v59 = vld [vmem:[#allocation4 + $0x11a0] sm:$0xff] }
 0x2e7   : > { %3365 = vmatpush.msra.mxu3 %v5544_v42  ;;  %3405 = vmatpush.msra.mxu2 %v5545_v1  ;;  %v5590_v9 = vld [vmem:[#allocation4 + $0x10a8] sm:$0xff]  ;;  %v5592_v14 = vld [vmem:[#allocation4 + $0x1060] sm:$0xff]  ;;  %v5593_v1 = vld [vmem:[#allocation4 + $0x1190] sm:$0xff] }
 0x2e8   : > { %3423 = vmatpush.msra.mxu0 %v5546_v39  ;;  %3346 = vmatpush.msrb.mxu1 %v5547_v32  ;;  %v5591_v62 = vld [vmem:[#allocation4 + $0x11a8] sm:$0xff]  ;;  %v5594_v39 = vld [vmem:[#allocation4 + $0x1098] sm:$0xff] }
 0x2e9   : > { %3366 = vmatpush.msra.mxu3 %v5548_v38  ;;  %3406 = vmatpush.msra.mxu2 %v5549_v10  ;;  %v5595_v38 = vld [vmem:[#allocation4 + $0x1198] sm:$0xff]  ;;  %v5597_v10 = vld [vmem:[#allocation4 + $0x1180] sm:$0xff] }
 0x2ea   : > { %3424 = vmatpush.msra.mxu0 %v5550_v26  ;;  %3347 = vmatpush.msrb.mxu1 %v5551_v8  ;;  %v5598_v26 = vld [vmem:[#allocation4 + $0x1088] sm:$0xff] }
 0x2eb   : > { %3367 = vmatpush.msra.mxu3 %v5552_v13  ;;  %3407 = vmatpush.msra.mxu2 %v5553_v3  ;;  %v5599_v13 = vld [vmem:[#allocation4 + $0x1188] sm:$0xff]  ;;  %v5600_v3 = vld [vmem:[#allocation4 + $0x1040] sm:$0xff] }
 0x2ec   : > { %3425 = vmatpush.msra.mxu0 %v5554_v20  ;;  %3348 = vmatpush.msrb.mxu1 %v5555_v22  ;;  %v5601_v20 = vld [vmem:[#allocation4 + $0x1170] sm:$0xff]  ;;  %v5602_v22 = vld [vmem:[#allocation4 + $0x1078] sm:$0xff] }
 0x2ed   : > { %3368 = vmatpush.msra.mxu3 %v5556_v15  ;;  %3408 = vmatpush.msra.mxu2 %v5557_v0  ;;  %v5603_v0 = vld [vmem:[#allocation4 + $0x1178] sm:$0xff] }
 0x2ee   : > { %3426 = vmatpush.msra.mxu0 %v5558_v17  ;;  %3349 = vmatpush.msrb.mxu1 %v5559_v31  ;;  %v5604_v17 = vld [vmem:[#allocation4 + $0x1030] sm:$0xff] }
 0x2ef   : > { %3369 = vmatpush.msra.mxu3 %v5560_v51  ;;  %3409 = vmatpush.msra.mxu2 %v5561_v37  ;;  %v5605_v51 = vld [vmem:[#allocation4 + $0x1160] sm:$0xff]  ;;  %v5606_v37 = vld [vmem:[#allocation4 + $0x1068] sm:$0xff] }
 0x2f0   : > { %3427 = vmatpush.msra.mxu0 %v5562_v19  ;;  %3350 = vmatpush.msrb.mxu1 %v5563_v57  ;;  %v5607_v19 = vld [vmem:[#allocation4 + $0x1168] sm:$0xff]  ;;  %v5608_v57 = vld [vmem:[#allocation4 + $0x1020] sm:$0xff] }
 0x2f1   : > { %3370 = vmatpush.msra.mxu3 %v5564_v25  ;;  %3410 = vmatpush.msra.mxu2 %v5565_v29  ;;  %v5609_v29 = vld [vmem:[#allocation4 + $0x1150] sm:$0xff] }
 0x2f2   : > { %4831 = vmatmul.msk.f32.vlgmr.msrb.gmra.mxu0 %vm610_vm0, %v6262_v45  ;;  %3351 = vmatpush.msrb.mxu1 %v5566_v27  ;;  %v5610_v27 = vld [vmem:[#allocation4 + $0x1058] sm:$0xff] }
 0x2f3   : > { %3371 = vmatpush.msra.mxu3 %v5567_v49  ;;  %3411 = vmatpush.msra.mxu2 %v5568_v11  ;;  %v5611_v49 = vld [vmem:[#allocation4 + $0x1158] sm:$0xff]  ;;  %v5612_v11 = vld [vmem:[#allocation4 + $0x1010] sm:$0xff] }
 0x2f4   : > { %3428 = vmatpush.msra.mxu0 %v5569_v30  ;;  %3448 = vmatpush.msra.mxu1 %v5570_v61  ;;  %v5613_v30 = vld [vmem:[#allocation4 + $0x1140] sm:$0xff]  ;;  %v5614_v61 = vld [vmem:[#allocation4 + $0x1048] sm:$0xff] }
 0x2f5   : > { %3372 = vmatmul.f32.vlgmr.msra.gmra.mxu3 %v6265_v50  ;;  %3352 = vmatmul.f32.vlgmr.msrb.gmra.mxu1 %v6267_v52 }
 0x2f6   : > { %3412 = vmatmul.f32.vlgmr.msra.gmra.mxu2 %v6267_v52  ;;  %3458 = vmatpush.msrb.mxu3 %v5571_v16  ;;  %v5581_v52 = vld [vmem:[#allocation4 + $0xc48] sm:$0xff] }
 0x2f7   : > { %3510 = vmatpush.msrb.mxu2 %v5572_v18  ;;  %3429 = vmatpush.msra.mxu0 %v5573_v46  ;;  %v5615_v18 = vld [vmem:[#allocation4 + $0x1148] sm:$0xff]  ;;  %v5616_v46 = vld [vmem:[#allocation4 + $0x1000] sm:$0xff] }
 0x2f8   : > { %3449 = vmatpush.msra.mxu1 %v5574_v44  ;;  %3459 = vmatpush.msrb.mxu3 %v5575_v34  ;;  %v5617_v34 = vld [vmem:[#allocation4 + $0x1130] sm:$0xff] }
 0x2f9   : > { %3511 = vmatpush.msrb.mxu2 %v5576_v12  ;;  %3430 = vmatpush.msra.mxu0 %v5577_v40  ;;  %v5618_v12 = vld [vmem:[#allocation4 + $0x1038] sm:$0xff] }
 0x2fa   : > { %3450 = vmatpush.msra.mxu1 %v5578_v41  ;;  %3460 = vmatpush.msrb.mxu3 %v5579_v5  ;;  %v5619_v40 = vld [vmem:[#allocation4 + $0x1138] sm:$0xff]  ;;  %v5620_v41 = vld [vmem:[#allocation4 + $0xff0] sm:$0xff] }
 0x2fb   : > { %3512 = vmatpush.msrb.mxu2 %v5580_v43  ;;  %3431 = vmatpush.msra.mxu0 %v5581_v52  ;;  %v5621_v43 = vld [vmem:[#allocation4 + $0x1120] sm:$0xff]  ;;  %v5622_v52 = vld [vmem:[#allocation4 + $0x1028] sm:$0xff] }
 0x2fc   : > { %3451 = vmatpush.msra.mxu1 %v5582_v63  ;;  %3432 = vmatmul.f32.vlgmr.msra.gmra.mxu0 %v6265_v50  ;;  %v5623_v63 = vld [vmem:[#allocation4 + $0x1128] sm:$0xff] }
 0x2fd   : > { %3461 = vmatpush.msrb.mxu3 %v5583_v24  ;;  %3513 = vmatpush.msrb.mxu2 %v5585_v47  ;;  %v5624_v24 = vld [vmem:[#allocation4 + $0xfe0] sm:$0xff]  ;;  %v5626_v47 = vld [vmem:[#allocation4 + $0x1018] sm:$0xff] }
 0x2fe   : > { %3478 = vmatpush.msrb.mxu1 %v5584_v23  ;;  %3518 = vmatpush.msrb.mxu0 %v5586_v36  ;;  %v5625_v23 = vld [vmem:[#allocation4 + $0x1110] sm:$0xff]  ;;  %v5627_v36 = vld [vmem:[#allocation4 + $0x1118] sm:$0xff] }
 0x2ff   : > { %3538 = vmatpush.msra.mxu2 %v5587_v54  ;;  %4832 = vmatmul.msk.f32.vlgmr.msra.gmra.mxu1 %vm610_vm0, %v6262_v45  ;;  %v3031_v58 = vpop.f32.mrf.mxu2  ;;  %v5596_v45 = vld [vmem:[#allocation4 + $0x1050] sm:$0xff] }
 0x300   : > { %3462 = vmatpush.msrb.mxu3 %v5588_v56  ;;  %3479 = vmatpush.msrb.mxu1 %v5589_v59  ;;  %v2991_v50 = vpop.f32.mrf.mxu3  ;;  %v5628_v54 = vld [vmem:[#allocation4 + $0xfd0] sm:$0xff]  ;;  %v5629_v56 = vld [vmem:[#allocation4 + $0x1100] sm:$0xff] }
 0x301   : > { %3519 = vmatpush.msrb.mxu0 %v5590_v9  ;;  %3539 = vmatpush.msra.mxu2 %v5591_v62  ;;  %v3011_v42 = vpop.f32.mrf.mxu1  ;;  %v5632_v59 = vld [vmem:[#allocation4 + $0xfc0] sm:$0xff]  ;;  %v5633_v9 = vld [vmem:[#allocation4 + $0x10f0] sm:$0xff]  ;;  %v5635_v62 = vld [vmem:[#allocation4 + $0x10f8] sm:$0xff] }
 0x302   : > { %3463 = vmatpush.msrb.mxu3 %v5592_v14  ;;  %3480 = vmatpush.msrb.mxu1 %v5593_v1  ;;  %v3012_v32 = vadd.f32 %v3011_v42, %v2991_v50  ;;  %v5634_v50 = vld [vmem:[#allocation4 + $0xff8] sm:$0xff]  ;;  %v5637_v42 = vld [vmem:[#allocation4 + $0x10e0] sm:$0xff]  ;;  %v5638_v1 = vld [vmem:[#allocation4 + $0xfe8] sm:$0xff] }
 0x303   : > { %3520 = vmatpush.msrb.mxu0 %v5594_v39  ;;  %3540 = vmatpush.msra.mxu2 %v5595_v38  ;;  %v5636_v14 = vld [vmem:[#allocation4 + $0x11f8] sm:$0xff]  ;;  %v5639_v39 = vld [vmem:[#allocation4 + $0x10e8] sm:$0xff]  ;;  %v5641_v38 = vld [vmem:[#allocation4 + $0x10d0] sm:$0xff] }
 0x304   : > { %3464 = vmatpush.msrb.mxu3 %v5596_v45  ;;  %3481 = vmatpush.msrb.mxu1 %v5597_v10  ;;  %v3032_v8 = vadd.f32 %v3031_v58, %v3012_v32  ;;  %v3051_v31 = vpop.f32.mrf.mxu0  ;;  %v5631_v58 = vld [vmem:[#allocation4 + $0x1108] sm:$0xff]  ;;  %v5642_v45 = vld [vmem:[#allocation4 + $0xfd8] sm:$0xff] }
 0x305   : > { %3521 = vmatpush.msrb.mxu0 %v5598_v26  ;;  %3541 = vmatpush.msra.mxu2 %v5599_v13  ;;  %v5640_v32 = vld [vmem:[#allocation4 + $0x11e8] sm:$0xff]  ;;  %v5643_v10 = vld [vmem:[#allocation4 + $0x10d8] sm:$0xff] }
 0x306   : > { %3465 = vmatpush.msrb.mxu3 %v5600_v3  ;;  %3482 = vmatpush.msrb.mxu1 %v5601_v20  ;;  %v6541_v15 = vadd.f32 %v3032_v8, %v6527_v6  ;;  %v5644_v26 = vld [vmem:[#allocation4 + $0x11d8] sm:$0xff]  ;;  %v5645_v8 = vld [vmem:[#allocation4 + $0x10c0] sm:$0xff]  ;;  %v5646_v13 = vld [vmem:[#allocation4 + $0xfc8] sm:$0xff] }
 0x307   : > { %3522 = vmatpush.msrb.mxu0 %v5602_v22  ;;  %3542 = vmatpush.msra.mxu2 %v5603_v0  ;;  %v5647_v3 = vld [vmem:[#allocation4 + $0x10c8] sm:$0xff]  ;;  %v5649_v22 = vld [vmem:[#allocation4 + $0x1670] sm:$0xff] }
 0x308   : > { %3466 = vmatpush.msrb.mxu3 %v5604_v17  ;;  %3483 = vmatpush.msrb.mxu1 %v5605_v51  ;;  %v5648_v20 = vld [vmem:[#allocation4 + $0x11c8] sm:$0xff]  ;;  %v5650_v0 = vld [vmem:[#allocation4 + $0x1530] sm:$0xff]  ;;  %v5653_v51 = vld [vmem:[#allocation4 + $0x1660] sm:$0xff] }
 0x309   : > { %3523 = vmatpush.msrb.mxu0 %v5606_v37  ;;  %3543 = vmatpush.msra.mxu2 %v5607_v19  ;;  %v3071_v25 = vpop.f32.mrf.mxu2  ;;  %v5651_v17 = vld [vmem:[#allocation4 + $0x1630] sm:$0xff]  ;;  %v5654_v37 = vld [vmem:[#allocation4 + $0x1520] sm:$0xff] }
 0x30a   : > { %3467 = vmatpush.msrb.mxu3 %v5608_v57  ;;  %3484 = vmatpush.msrb.mxu1 %v5609_v29  ;;  %v3072_v6 = vadd.f32 %v3071_v25, %v3051_v31  ;;  %v5652_v31 = vld [vmem:[#allocation4 + $0x1538] sm:$0xff]  ;;  %v5655_v19 = vld [vmem:[#allocation4 + $0x1620] sm:$0xff]  ;;  %v5656_v57 = vld [vmem:[#allocation4 + $0x1528] sm:$0xff] }
 0x30b   : > { %3524 = vmatpush.msrb.mxu0 %v5610_v27  ;;  %3544 = vmatpush.msra.mxu2 %v5611_v49  ;;  %v5657_v25 = vld [vmem:[#allocation4 + $0x1650] sm:$0xff]  ;;  %v5660_v27 = vld [vmem:[#allocation4 + $0x1518] sm:$0xff]  ;;  %v5662_v49 = vld [vmem:[#allocation4 + $0x1500] sm:$0xff] }
 0x30c   : > { %3468 = vmatpush.msrb.mxu3 %v5612_v11  ;;  %3485 = vmatpush.msrb.mxu1 %v5613_v30  ;;  %v3091_v16 = vpop.f32.mrf.mxu3  ;;  %v5659_v29 = vld [vmem:[#allocation4 + $0x1610] sm:$0xff]  ;;  %v5664_v11 = vld [vmem:[#allocation4 + $0x1508] sm:$0xff]  ;;  %v5665_v30 = vld [vmem:[#allocation4 + $0x1638] sm:$0xff] }
 0x30d   : > { %3525 = vmatpush.msrb.mxu0 %v5614_v61  ;;  %3545 = vmatpush.msra.mxu2 %v5615_v18  ;;  %v3092_v44 = vadd.f32 %v3091_v16, %v3072_v6  ;;  %v5661_v6 = vld [vmem:[#allocation4 + $0x1640] sm:$0xff]  ;;  %v5666_v61 = vld [vmem:[#allocation4 + $0x14f0] sm:$0xff]  ;;  %v5668_v18 = vld [vmem:[#allocation4 + $0x14f8] sm:$0xff] }
 0x30e   : > { %3469 = vmatpush.msrb.mxu3 %v5616_v46  ;;  %3486 = vmatpush.msrb.mxu1 %v5617_v34  ;;  %v5667_v16 = vld [vmem:[#allocation4 + $0x15f0] sm:$0xff]  ;;  %v5669_v46 = vld [vmem:[#allocation4 + $0x1628] sm:$0xff]  ;;  %v5671_v34 = vld [vmem:[#allocation4 + $0x15e0] sm:$0xff] }
 0x30f   : > { %3526 = vmatpush.msrb.mxu0 %v5618_v12  ;;  %3546 = vmatpush.msra.mxu2 %v5619_v40  ;;  %v6544_v5 = vadd.f32 %v3092_v44, %v6530_v60  ;;  %v5630_v60 = vld [vmem:[#allocation4 + $0x1008] sm:$0xff]  ;;  %v5670_v44 = vld [vmem:[#allocation4 + $0x14e0] sm:$0xff]  ;;  %v5673_v12 = vld [vmem:[#allocation4 + $0x1618] sm:$0xff] }
 0x310   : > { %3470 = vmatpush.msrb.mxu3 %v5620_v41  ;;  %3487 = vmatpush.msrb.mxu1 %v5621_v43  ;;  %v5674_v40 = vld [vmem:[#allocation4 + $0x14d0] sm:$0xff]  ;;  %v5676_v43 = vld [vmem:[#allocation4 + $0x14d8] sm:$0xff] }
 0x311   : > { %3527 = vmatpush.msrb.mxu0 %v5622_v52  ;;  %3547 = vmatpush.msra.mxu2 %v5623_v63  ;;  %v5675_v41 = vld [vmem:[#allocation4 + $0x15d0] sm:$0xff]  ;;  %v5677_v52 = vld [vmem:[#allocation4 + $0x1608] sm:$0xff]  ;;  %v5678_v63 = vld [vmem:[#allocation4 + $0x14c0] sm:$0xff] }
 0x312   : > { %3471 = vmatpush.msrb.mxu3 %v5624_v24  ;;  %3488 = vmatpush.msrb.mxu1 %v5625_v23  ;;  %v5679_v24 = vld [vmem:[#allocation4 + $0x15c0] sm:$0xff]  ;;  %v5680_v23 = vld [vmem:[#allocation4 + $0x14c8] sm:$0xff] }
 0x313   : > { %3528 = vmatpush.msrb.mxu0 %v5626_v47  ;;  %3548 = vmatpush.msra.mxu2 %v5627_v36  ;;  %v5681_v47 = vld [vmem:[#allocation4 + $0x15f8] sm:$0xff]  ;;  %v5682_v36 = vld [vmem:[#allocation4 + $0x14b0] sm:$0xff] }
 0x314   : > { %3472 = vmatpush.msrb.mxu3 %v5628_v54  ;;  %3489 = vmatpush.msrb.mxu1 %v5629_v56  ;;  %v5683_v54 = vld [vmem:[#allocation4 + $0x15b0] sm:$0xff]  ;;  %v5684_v56 = vld [vmem:[#allocation4 + $0x14b8] sm:$0xff] }
 0x315   : > { %3529 = vmatpush.msrb.mxu0 %v5630_v60  ;;  %3549 = vmatpush.msra.mxu2 %v5631_v58  ;;  %v5685_v60 = vld [vmem:[#allocation4 + $0x15e8] sm:$0xff]  ;;  %v5686_v58 = vld [vmem:[#allocation4 + $0x14a0] sm:$0xff] }
 0x316   : > { %3473 = vmatpush.msrb.mxu3 %v5632_v59  ;;  %3490 = vmatpush.msrb.mxu1 %v5633_v9  ;;  %v5687_v59 = vld [vmem:[#allocation4 + $0x15a0] sm:$0xff]  ;;  %v5688_v9 = vld [vmem:[#allocation4 + $0x14a8] sm:$0xff] }
 0x317   : > { %4833 = vmatmul.msk.f32.vlgmr.msrb.gmra.mxu2 %vm610_vm0, %v6282_v2  ;;  %3530 = vmatpush.msrb.mxu0 %v5634_v50  ;;  %v5689_v50 = vld [vmem:[#allocation4 + $0x15d8] sm:$0xff] }
 0x318   : > { %3474 = vmatmul.f32.vlgmr.msrb.gmra.mxu3 %v6285_v4  ;;  %3550 = vmatpush.msra.mxu2 %v5635_v62  ;;  %v5690_v62 = vld [vmem:[#allocation4 + $0x1490] sm:$0xff] }
 0x319   : > { %3570 = vmatpush.msra.mxu3 %v5636_v14  ;;  %3491 = vmatpush.msrb.mxu1 %v5637_v42  ;;  %v5691_v14 = vld [vmem:[#allocation4 + $0x1590] sm:$0xff]  ;;  %v5692_v42 = vld [vmem:[#allocation4 + $0x1498] sm:$0xff] }
 0x31a   : > { %3531 = vmatpush.msrb.mxu0 %v5638_v1  ;;  %3551 = vmatpush.msra.mxu2 %v5639_v39  ;;  %v5693_v1 = vld [vmem:[#allocation4 + $0x15c8] sm:$0xff]  ;;  %v5694_v39 = vld [vmem:[#allocation4 + $0x1480] sm:$0xff] }
 0x31b   : > { %3571 = vmatpush.msra.mxu3 %v5640_v32  ;;  %3492 = vmatpush.msrb.mxu1 %v5641_v38  ;;  %v5695_v32 = vld [vmem:[#allocation4 + $0x1580] sm:$0xff]  ;;  %v5696_v38 = vld [vmem:[#allocation4 + $0x1488] sm:$0xff] }
 0x31c   : > { %3532 = vmatpush.msrb.mxu0 %v5642_v45  ;;  %3552 = vmatpush.msra.mxu2 %v5643_v10  ;;  %v5697_v45 = vld [vmem:[#allocation4 + $0x15b8] sm:$0xff]  ;;  %v5698_v10 = vld [vmem:[#allocation4 + $0x1470] sm:$0xff] }
 0x31d   : > { %3572 = vmatpush.msra.mxu3 %v5644_v26  ;;  %3493 = vmatpush.msrb.mxu1 %v5645_v8  ;;  %v5699_v26 = vld [vmem:[#allocation4 + $0x1570] sm:$0xff]  ;;  %v5700_v8 = vld [vmem:[#allocation4 + $0x1478] sm:$0xff] }
 0x31e   : > { %3533 = vmatpush.msrb.mxu0 %v5646_v13  ;;  %3494 = vmatmul.f32.vlgmr.msrb.gmra.mxu1 %v6293_v21  ;;  %v5701_v13 = vld [vmem:[#allocation4 + $0x15a8] sm:$0xff] }
 0x31f   : > { %3553 = vmatpush.msra.mxu2 %v5647_v3  ;;  %3573 = vmatpush.msra.mxu3 %v5648_v20  ;;  %v5702_v3 = vld [vmem:[#allocation4 + $0x1460] sm:$0xff] }
 0x320   : > { %3632 = vmatpush.msra.mxu0 %v5649_v22  ;;  %3554 = vmatmul.f32.vlgmr.msra.gmra.mxu2 %v6293_v21  ;;  %v5658_v21 = vld [vmem:[#allocation4 + $0x1510] sm:$0xff]  ;;  %v5703_v20 = vld [vmem:[#allocation4 + $0x1560] sm:$0xff]  ;;  %v5704_v22 = vld [vmem:[#allocation4 + $0x1468] sm:$0xff] }
 0x321   : > { %3580 = vmatpush.msra.mxu1 %v5650_v0  ;;  %3600 = vmatpush.msrb.mxu3 %v5651_v17  ;;  %v5705_v0 = vld [vmem:[#allocation4 + $0x1598] sm:$0xff]  ;;  %v5706_v17 = vld [vmem:[#allocation4 + $0x1450] sm:$0xff] }
 0x322   : > { %3640 = vmatpush.msrb.mxu2 %v5652_v31  ;;  %3633 = vmatpush.msra.mxu0 %v5653_v51  ;;  %v5707_v31 = vld [vmem:[#allocation4 + $0x1550] sm:$0xff]  ;;  %v5708_v51 = vld [vmem:[#allocation4 + $0x1458] sm:$0xff] }
 0x323   : > { %4834 = vmatmul.msk.f32.vlgmr.msra.gmra.mxu3 %vm610_vm0, %v6282_v2  ;;  %3581 = vmatpush.msra.mxu1 %v5654_v37  ;;  %v5663_v2 = vld [vmem:[#allocation4 + $0x1600] sm:$0xff]  ;;  %v5709_v37 = vld [vmem:[#allocation4 + $0x1588] sm:$0xff] }
 0x324   : > { %3601 = vmatpush.msrb.mxu3 %v5655_v19  ;;  %3641 = vmatpush.msrb.mxu2 %v5656_v57  ;;  %v5710_v19 = vld [vmem:[#allocation4 + $0x1440] sm:$0xff] }
 0x325   : > { %3634 = vmatpush.msra.mxu0 %v5657_v25  ;;  %3582 = vmatpush.msra.mxu1 %v5658_v21  ;;  %v5711_v57 = vld [vmem:[#allocation4 + $0x1540] sm:$0xff]  ;;  %v5712_v25 = vld [vmem:[#allocation4 + $0x1448] sm:$0xff]  ;;  %v5713_v21 = vld [vmem:[#allocation4 + $0x1578] sm:$0xff] }
 0x326   : > { %3602 = vmatpush.msrb.mxu3 %v5659_v29  ;;  %3642 = vmatpush.msrb.mxu2 %v5660_v27  ;;  %v5714_v29 = vld [vmem:[#allocation4 + $0x1678] sm:$0xff]  ;;  %v5715_v27 = vld [vmem:[#allocation4 + $0x1568] sm:$0xff] }
 0x327   : > { %3635 = vmatpush.msra.mxu0 %v5661_v6  ;;  %3583 = vmatpush.msra.mxu1 %v5662_v49  ;;  %v5716_v6 = vld [vmem:[#allocation4 + $0x1668] sm:$0xff]  ;;  %v5717_v49 = vld [vmem:[#allocation4 + $0x1558] sm:$0xff] }
 0x328   : > { %3534 = vmatmul.f32.vlgmr.msrb.gmra.mxu0 %v6285_v4  ;;  %3603 = vmatpush.msrb.mxu3 %v5663_v2  ;;  %v5672_v4 = vld [vmem:[#allocation4 + $0x14e8] sm:$0xff]  ;;  %v5718_v2 = vld [vmem:[#allocation4 + $0x1658] sm:$0xff] }
 0x329   : > { %3643 = vmatpush.msrb.mxu2 %v5664_v11  ;;  %3660 = vmatpush.msrb.mxu0 %v5665_v30  ;;  %v5719_v11 = vld [vmem:[#allocation4 + $0x1548] sm:$0xff] }
 0x32a   : > { %3584 = vmatpush.msra.mxu1 %v5666_v61  ;;  %3604 = vmatpush.msrb.mxu3 %v5667_v16  ;;  %v5720_v30 = vld [vmem:[#allocation4 + $0x1648] sm:$0xff] }
 0x32b   : > { %3644 = vmatpush.msrb.mxu2 %v5668_v18  ;;  %3661 = vmatpush.msrb.mxu0 %v5669_v46  ;;  %v3133_v16 = vpop.f32.mrf.mxu3 }
 0x32c   : > { %3585 = vmatpush.msra.mxu1 %v5670_v44  ;;  %3605 = vmatpush.msrb.mxu3 %v5671_v34  ;;  %v3113_v61 = vpop.f32.mrf.mxu1 }
 0x32d   : > { %3645 = vmatpush.msrb.mxu2 %v5672_v4  ;;  %3662 = vmatpush.msrb.mxu0 %v5673_v12 }
 0x32e   : > { %3586 = vmatpush.msra.mxu1 %v5674_v40  ;;  %3606 = vmatpush.msrb.mxu3 %v5675_v41 }
 0x32f   : > { %3646 = vmatpush.msrb.mxu2 %v5676_v43  ;;  %3663 = vmatpush.msrb.mxu0 %v5677_v52 }
 0x330   : > { %3587 = vmatpush.msra.mxu1 %v5678_v63  ;;  %3607 = vmatpush.msrb.mxu3 %v5679_v24 }
 0x331   : > { %3647 = vmatpush.msrb.mxu2 %v5680_v23  ;;  %3664 = vmatpush.msrb.mxu0 %v5681_v47 }
 0x332   : > { %3588 = vmatpush.msra.mxu1 %v5682_v36  ;;  %3608 = vmatpush.msrb.mxu3 %v5683_v54 }
 0x333   : > { %3648 = vmatpush.msrb.mxu2 %v5684_v56  ;;  %3665 = vmatpush.msrb.mxu0 %v5685_v60  ;;  %v3134_v56 = vadd.f32 %v3133_v16, %v3113_v61 }
 0x334   : > { %3589 = vmatpush.msra.mxu1 %v5686_v58  ;;  %3609 = vmatpush.msrb.mxu3 %v5687_v59  ;;  %v3173_v18 = vpop.f32.mrf.mxu2 }
 0x335   : > { %3649 = vmatpush.msrb.mxu2 %v5688_v9  ;;  %3666 = vmatpush.msrb.mxu0 %v5689_v50 }
 0x336   : > { %3590 = vmatpush.msra.mxu1 %v5690_v62  ;;  %3610 = vmatpush.msrb.mxu3 %v5691_v14 }
 0x337   : > { %3650 = vmatpush.msrb.mxu2 %v5692_v42  ;;  %3667 = vmatpush.msrb.mxu0 %v5693_v1  ;;  %v3213_v44 = vpop.f32.mrf.mxu1 }
 0x338   : > { %3591 = vmatpush.msra.mxu1 %v5694_v39  ;;  %3611 = vmatpush.msrb.mxu3 %v5695_v32 }
 0x339   : > { %3651 = vmatpush.msrb.mxu2 %v5696_v38  ;;  %3668 = vmatpush.msrb.mxu0 %v5697_v45 }
 0x33a   : > { %3592 = vmatpush.msra.mxu1 %v5698_v10  ;;  %3612 = vmatpush.msrb.mxu3 %v5699_v26 }
 0x33b   : > { %3652 = vmatpush.msrb.mxu2 %v5700_v8  ;;  %3669 = vmatpush.msrb.mxu0 %v5701_v13 }
 0x33c   : > { %3593 = vmatpush.msra.mxu1 %v5702_v3  ;;  %3613 = vmatpush.msrb.mxu3 %v5703_v20 }
 0x33d   : > { %3653 = vmatpush.msrb.mxu2 %v5704_v22  ;;  %3670 = vmatpush.msrb.mxu0 %v5705_v0 }
 0x33e   : > { %3594 = vmatpush.msra.mxu1 %v5706_v17  ;;  %3614 = vmatpush.msrb.mxu3 %v5707_v31 }
 0x33f   : > { %3654 = vmatpush.msrb.mxu2 %v5708_v51  ;;  %3671 = vmatpush.msrb.mxu0 %v5709_v37 }
 0x340   : > { %3595 = vmatpush.msra.mxu1 %v5710_v19  ;;  %4835 = vmatmul.msk.f32.vlgmr.msra.gmra.mxu0 %vm610_vm0, %v6480_v53 }
 0x341   : > { %3615 = vmatpush.msrb.mxu3 %v5711_v57  ;;  %3655 = vmatpush.msrb.mxu2 %v5712_v25 }
 0x342   : > { %3672 = vmatpush.msrb.mxu0 %v5713_v21  ;;  %3596 = vmatmul.f32.vlgmr.msra.gmra.mxu1 %v6483_v55 }
 0x343   : > { %3616 = vmatmul.f32.vlgmr.msrb.gmra.mxu3 %v6491_v48  ;;  %3656 = vmatmul.f32.vlgmr.msrb.gmra.mxu2 %v6483_v55  ;;  %v3153_v55 = vpop.f32.mrf.mxu0 }
 0x344   : > { %3692 = vmatpush.msrb.mxu1 %v5714_v29  ;;  %3673 = vmatpush.msrb.mxu0 %v5715_v27  ;;  %v3154_v59 = vadd.f32 %v3153_v55, %v3134_v56 }
 0x346   : > { %3693 = vmatpush.msrb.mxu1 %v5716_v6  ;;  %3674 = vmatpush.msrb.mxu0 %v5717_v49 }
 0x348   : > { %3694 = vmatpush.msrb.mxu1 %v5718_v2  ;;  %3675 = vmatpush.msrb.mxu0 %v5719_v11 }
 0x349   : > { %3676 = vmatmul.f32.vlgmr.msrb.gmra.mxu0 %v6491_v48 }
 0x34a   : > { %3695 = vmatpush.msrb.mxu1 %v5720_v30 }
 0x34b   : > { %4836 = vmatmul.msk.f32.vlgmr.msrb.gmra.mxu1 %vm610_vm0, %v6480_v53  ;;  %v3193_v46 = vpop.f32.mrf.mxu0 }
 0x34c   : > { %v3194_v58 = vadd.f32 %v3193_v46, %v3173_v18 }
 0x34d   : > { %v3273_v48 = vpop.f32.mrf.mxu2 }
 0x34e   : > { %v3233_v34 = vpop.f32.mrf.mxu3  ;;  %v3214_v50 = vadd.f32 %v3213_v44, %v3194_v58 }
 0x34f   : > { %v3234_v9 = vadd.f32 %v3233_v34, %v3154_v59 }
 0x351   : > { %v3253_v12 = vpop.f32.mrf.mxu1 }
 0x352   : > { %v3254_v45 = vadd.f32 %v3253_v12, %v3234_v9 }
 0x353   : > { %v3293_v4 = vpop.f32.mrf.mxu0 }
 0x354   : > { %v3294_v39 = vadd.f32 %v3293_v4, %v3214_v50  ;;  %v3274_v20 = vadd.f32 %v3273_v48, %v3254_v45 }
 0x357   : > { %v3313_v43 = vpop.f32.mrf.mxu2 }
 0x358   : > { %v3314_v26 = vadd.f32 %v3313_v43, %v3294_v39 }
 0x359   : > { %v3333_v40 = vpop.f32.mrf.mxu3 }
 0x35a   : > { %v3334_v0 = vadd.f32 %v3333_v40, %v3314_v26 }
 0x36f   : > { %v3393_v41 = vpop.f32.mrf.mxu0 }
 0x372   : > { %v3353_v52 = vpop.f32.mrf.mxu1 }
 0x378   : > { %v3373_v53 = vpop.f32.mrf.mxu3 }
 0x379   : > { %v3413_v63 = vpop.f32.mrf.mxu2  ;;  %v3433_v24 = vpop.f32.mrf.mxu0  ;;  %v3374_v42 = vadd.f32 %v3373_v53, %v3353_v52 }
 0x37a   : > { %v3434_v32 = vadd.f32 %v3433_v24, %v3413_v63 }
 0x37b   : > { %v3394_v13 = vadd.f32 %v3393_v41, %v3374_v42 }
 0x37c   : > { %v3453_v23 = vpop.f32.mrf.mxu1 }
 0x37d   : > { %v3454_v3 = vadd.f32 %v3453_v23, %v3434_v32  ;;  %v3456_v51 = vadd.f32 %v3394_v13, %v3274_v20 }
 0x37f   : > { %v3457_v25 = vadd.f32 %v3454_v3, %v3334_v0 }
 0x39a   : > { %v3515_v36 = vpop.f32.mrf.mxu2 }
 0x39b   : > { %v3475_v47 = vpop.f32.mrf.mxu3  ;;  %v3495_v60 = vpop.f32.mrf.mxu1 }
 0x39c   : > { %v3496_v10 = vadd.f32 %v3495_v60, %v3475_v47 }
 0x39e   : > { %v3516_v22 = vadd.f32 %v3515_v36, %v3496_v10 }
 0x3a0   : > { %v3578_v27 = vadd.f32 %v3516_v22, %v3456_v51 }
 0x3a3   : > { %v3555_v1 = vpop.f32.mrf.mxu2 }
 0x3a5   : > { %v3535_v54 = vpop.f32.mrf.mxu0 }
 0x3a6   : > { %v3575_v62 = vpop.f32.mrf.mxu3  ;;  %v3556_v8 = vadd.f32 %v3555_v1, %v3535_v54 }
 0x3a8   : > { %v3576_v17 = vadd.f32 %v3575_v62, %v3556_v8 }
 0x3aa   : > { %v3579_v49 = vadd.f32 %v3576_v17, %v3457_v25 }
 0x3bd   : > { %v3637_v14 = vpop.f32.mrf.mxu0 }
 0x3bf   : > { %v3597_v38 = vpop.f32.mrf.mxu1 }
 0x3c6   : > { %v3617_v31 = vpop.f32.mrf.mxu3  ;;  %v3657_v19 = vpop.f32.mrf.mxu2 }
 0x3c7   : > { %v3618_v37 = vadd.f32 %v3617_v31, %v3597_v38  ;;  %v3677_v57 = vpop.f32.mrf.mxu0 }
 0x3c8   : > { %v3678_v21 = vadd.f32 %v3677_v57, %v3657_v19  ;;  %v3697_v29 = vpop.f32.mrf.mxu1  ;;  %3707 = sbr.rel (%p6566_p4) target bundleno = 975 (0x3cf), region = 84 }
 0x3c9   : > { %v3638_v6 = vadd.f32 %v3637_v14, %v3618_v37 }
 0x3ca   : > { %v3698_v2 = vadd.f32 %v3697_v29, %v3678_v21 }
 0x3cb   : > { %v6570_v11 = vadd.f32 %v3638_v6, %v3578_v27 }
 0x3cc   : > { %v6572_v30 = vadd.f32 %v3698_v2, %v3579_v49 }
 0x3cd   : > { %vm3708_vm2 = vcmask 254976   ;;  %v6025_v55 = vmov 0.0  }
 0x3ce   : > { %3709 = vst.msk [vmem:[#allocation2] sm:$0x3] %vm3708_vm2, %v6025_v55 }
 0x3cf PF: > { %p4837_p5 = scmp.ne.s32.totalorder %s6001_s13, 0 }
 0x3d1   : > { %3712 = sbr.rel (%p4837_p5) target bundleno = 1151 (0x47f), region = 88 }
 0x3d6   : > { %v3855_v61 = vld [vmem:[%s6784_s3 + $0x78] sm:$0xff]  ;;  %v3854_v16 = vld [vmem:[%s6784_s3 + $0x70] sm:$0xff]  ;;  %v3713_v18 = vmul.f32 %v6379_v7, %v6379_v7  ;;  %v3717_v46 = vmul.f32 %v6458_v28, %v6458_v28  ;;  %v3723_v44 = vmul.f32 %v6541_v15, %v6541_v15  ;;  %v3714_v48 = vmul.f32 %v6384_v35, %v6384_v35  ;;  %v3853_v40 = vld [vmem:[%s6784_s3 + $0x68] sm:$0xff] }
 0x3d7   : > { %3871 = vmatpush.msra.mxu2 %v3855_v61  ;;  %3782 = vmatpush.msra.mxu0 %v3855_v61  ;;  %v3867_v34 = vld [vmem:[%s6784_s3 + $0xd8] sm:$0xff]  ;;  %v3718_v4 = vmul.f32 %v6461_v33, %v6461_v33  ;;  %v3724_v12 = vmul.f32 %v6544_v5, %v6544_v5  ;;  %v3866_v41 = vld [vmem:[%s6784_s3 + $0xd0] sm:$0xff]  ;;  %v3729_v52 = vmul.f32 %v6570_v11, %v6570_v11  ;;  %v3865_v63 = vld [vmem:[%s6784_s3 + $0xc8] sm:$0xff]  ;;  %vm3734_vm3 = vcmask 1046528  }
 0x3d8   : > { %3895 = vmatpush.msra.mxu3 %v3867_v34  ;;  %3806 = vmatpush.msra.mxu1 %v3867_v34  ;;  %v3719_v43 = vadd.f32 %v3717_v46, %v3713_v18  ;;  %v3730_v53 = vmul.f32 %v6572_v30, %v6572_v30  ;;  %v3715_v23 = vadd.f32 %v6458_v28, %v6379_v7  ;;  %v3852_v36 = vld [vmem:[%s6784_s3 + $0x60] sm:$0xff]  ;;  %v3851_v9 = vld [vmem:[%s6784_s3 + $0x58] sm:$0xff]  ;;  %vm3742_vm4 = vcmask 784384   ;;  %v3850_v39 = vld [vmem:[%s6784_s3 + $0x50] sm:$0xff] }
 0x3d9   : > { %3872 = vmatpush.msra.mxu2 %v3854_v16  ;;  %3783 = vmatpush.msra.mxu0 %v3854_v16  ;;  %v3720_v24 = vadd.f32 %v3718_v4, %v3714_v48  ;;  %v3716_v47 = vadd.f32 %v6461_v33, %v6384_v35  ;;  %v3864_v56 = vld [vmem:[%s6784_s3 + $0xc0] sm:$0xff]  ;;  %v3863_v62 = vld [vmem:[%s6784_s3 + $0xb8] sm:$0xff]  ;;  %v3862_v38 = vld [vmem:[%s6784_s3 + $0xb0] sm:$0xff]  ;;  %vm3778_vm5 = vcmask 785408   ;;  %vm3823_vm6 = vcmask 253952  }
 0x3da   : > { %3896 = vmatpush.msra.mxu3 %v3866_v41  ;;  %3807 = vmatpush.msra.mxu1 %v3866_v41  ;;  %v3725_v54 = vadd.f32 %v3723_v44, %v3719_v43  ;;  %v3721_v58 = vadd.f32 %v3715_v23, %v6541_v15  ;;  %v3849_v13 = vld [vmem:[%s6784_s3 + $0x48] sm:$0xff]  ;;  %v3848_v31 = vld [vmem:[%s6784_s3 + $0x40] sm:$0xff]  ;;  %v3847_v25 = vld [vmem:[%s6784_s3 + $0x38] sm:$0xff] }
 0x3db   : > { %3873 = vmatpush.msra.mxu2 %v3853_v40  ;;  %3784 = vmatpush.msra.mxu0 %v3853_v40  ;;  %v3726_v60 = vadd.f32 %v3724_v12, %v3720_v24  ;;  %v3722_v59 = vadd.f32 %v3716_v47, %v6544_v5  ;;  %v3861_v0 = vld [vmem:[%s6784_s3 + $0xa8] sm:$0xff]  ;;  %v3860_v57 = vld [vmem:[%s6784_s3 + $0xa0] sm:$0xff]  ;;  %v3859_v27 = vld [vmem:[%s6784_s3 + $0x98] sm:$0xff] }
 0x3dc   : > { %3897 = vmatpush.msra.mxu3 %v3865_v63  ;;  %3808 = vmatpush.msra.mxu1 %v3865_v63  ;;  %v3731_v50 = vadd.f32 %v3729_v52, %v3725_v54  ;;  %v3727_v42 = vadd.f32 %v3721_v58, %v6570_v11  ;;  %v3846_v6 = vld [vmem:[%s6784_s3 + $0x30] sm:$0xff]  ;;  %v3845_v18 = vld [vmem:[%s6784_s3 + $0x28] sm:$0xff]  ;;  %v3844_v48 = vld [vmem:[%s6784_s3 + $0x20] sm:$0xff] }
 0x3dd   : > { %3874 = vmatpush.msra.mxu2 %v3852_v36  ;;  %3785 = vmatpush.msra.mxu0 %v3852_v36  ;;  %v3732_v14 = vadd.f32 %v3730_v53, %v3726_v60  ;;  %v3728_v1 = vadd.f32 %v3722_v59, %v6572_v30  ;;  %v3858_v16 = vld [vmem:[%s6784_s3 + $0x90] sm:$0xff]  ;;  %v3857_v34 = vld [vmem:[%s6784_s3 + $0x88] sm:$0xff]  ;;  %v3856_v40 = vld [vmem:[%s6784_s3 + $0x80] sm:$0xff] }
 0x3de   : > { %3898 = vmatpush.msra.mxu3 %v3864_v56  ;;  %3809 = vmatpush.msra.mxu1 %v3864_v56  ;;  %v3826_v32 = vsel %vm3734_vm3, %v3731_v50, 0.0  ;;  %v3735_v26 = vsel %vm3734_vm3, %v3727_v42, 0.0  ;;  %v3843_v41 = vld [vmem:[%s6784_s3 + $0x18] sm:$0xff]  ;;  %v3842_v53 = vld [vmem:[%s6784_s3 + $0x10] sm:$0xff]  ;;  %v3841_v23 = vld [vmem:[%s6784_s3 + $0x8] sm:$0xff] }
 0x3df   : > { %3875 = vmatpush.msra.mxu2 %v3851_v9  ;;  %3786 = vmatpush.msra.mxu0 %v3851_v9  ;;  %v3827_v45 = vrot.slane %v3826_v32, 4  ;;  %v3833_v10 = vsel %vm3742_vm4, %v3732_v14, 0.0  ;;  %v3743_v8 = vsel %vm3742_vm4, %v3728_v1, 0.0  ;;  %v3736_v20 = vrot.slane %v3735_v26, 4  ;;  %v3840_v47 = vld [vmem:[%s6784_s3] sm:$0xff] }
 0x3e0   : > { %3899 = vmatpush.msra.mxu3 %v3863_v62  ;;  %3810 = vmatpush.msra.mxu1 %v3863_v62  ;;  %v3834_v3 = vrot.slane %v3833_v10, 4  ;;  %v3744_v22 = vrot.slane %v3743_v8, 4  ;;  %v3733_v58 = vld [vmem:[#allocation2] sm:$0x1]  ;;  %v3825_v14 = vld [vmem:[#allocation2 + $0x1] sm:$0x1] }
 0x3e1   : > { %3876 = vmatpush.msra.mxu2 %v3850_v39  ;;  %3787 = vmatpush.msra.mxu0 %v3850_v39  ;;  %v3828_v17 = vadd.f32 %v3827_v45, %v3826_v32  ;;  %v3737_v37 = vadd.f32 %v3736_v20, %v3735_v26 }
 0x3e2   : > { %3900 = vmatpush.msra.mxu3 %v3862_v38  ;;  %3811 = vmatpush.msra.mxu1 %v3862_v38  ;;  %v3835_v51 = vadd.f32 %v3834_v3, %v3833_v10  ;;  %v3745_v19 = vadd.f32 %v3744_v22, %v3743_v8 }
 0x3e3   : > { %3877 = vmatpush.msra.mxu2 %v3849_v13  ;;  %3788 = vmatpush.msra.mxu0 %v3849_v13  ;;  %v3829_v49 = vrot.slane %v3828_v17, 2  ;;  %v3738_v55 = vrot.slane %v3737_v37, 2 }
 0x3e4   : > { %3901 = vmatpush.msra.mxu3 %v3861_v0  ;;  %3812 = vmatpush.msra.mxu1 %v3861_v0  ;;  %v3836_v21 = vrot.slane %v3835_v51, 2  ;;  %v3746_v29 = vrot.slane %v3745_v19, 2 }
 0x3e5   : > { %3878 = vmatpush.msra.mxu2 %v3848_v31  ;;  %3789 = vmatpush.msra.mxu0 %v3848_v31  ;;  %v3830_v4 = vadd.f32 %v3829_v49, %v3828_v17  ;;  %v3739_v12 = vadd.f32 %v3738_v55, %v3737_v37 }
 0x3e6   : > { %3902 = vmatpush.msra.mxu3 %v3860_v57  ;;  %3813 = vmatpush.msra.mxu1 %v3860_v57  ;;  %v3837_v2 = vadd.f32 %v3836_v21, %v3835_v51  ;;  %v3747_v61 = vadd.f32 %v3746_v29, %v3745_v19 }
 0x3e7   : > { %3879 = vmatpush.msra.mxu2 %v3847_v25  ;;  %3790 = vmatpush.msra.mxu0 %v3847_v25  ;;  %v3831_v63 = vrot.slane %v3830_v4, 1  ;;  %v3740_v24 = vrot.slane %v3739_v12, 1 }
 0x3e8   : > { %3903 = vmatpush.msra.mxu3 %v3859_v27  ;;  %3814 = vmatpush.msra.mxu1 %v3859_v27  ;;  %v3838_v46 = vrot.slane %v3837_v2, 1  ;;  %v3748_v44 = vrot.slane %v3747_v61, 1 }
 0x3e9   : > { %3880 = vmatpush.msra.mxu2 %v3846_v6  ;;  %3791 = vmatpush.msra.mxu0 %v3846_v6  ;;  %v3832_v36 = vadd.f32 %v3831_v63, %v3830_v4  ;;  %v3741_v54 = vadd.f32 %v3740_v24, %v3739_v12 }
 0x3ea   : > { %3904 = vmatpush.msra.mxu3 %v3858_v16  ;;  %3815 = vmatpush.msra.mxu1 %v3858_v16  ;;  %v3839_v43 = vadd.f32 %v3838_v46, %v3837_v2  ;;  %v3749_v52 = vadd.f32 %v3748_v44, %v3747_v61 }
 0x3eb   : > { %3881 = vmatpush.msra.mxu2 %v3845_v18  ;;  %3792 = vmatpush.msra.mxu0 %v3845_v18 }
 0x3ec   : > { %3905 = vmatpush.msra.mxu3 %v3857_v34  ;;  %3816 = vmatpush.msra.mxu1 %v3857_v34 }
 0x3ed   : > { %3882 = vmatpush.msra.mxu2 %v3844_v48  ;;  %3793 = vmatpush.msra.mxu0 %v3844_v48 }
 0x3ee   : > { %3906 = vmatpush.msra.mxu3 %v3856_v40  ;;  %3817 = vmatpush.msra.mxu1 %v3856_v40 }
 0x3ef   : > { %3883 = vmatpush.msra.mxu2 %v3843_v41  ;;  %3794 = vmatpush.msra.mxu0 %v3843_v41 }
 0x3f0   : > { %4839 = vmatmul.msk.f32.vlgmr.msra.gmra.mxu3 %vm3778_vm5, %v3839_v43  ;;  %4838 = vmatmul.msk.f32.vlgmr.msra.gmra.mxu1 %vm3778_vm5, %v3749_v52 }
 0x3f1   : > { %3884 = vmatpush.msra.mxu2 %v3842_v53  ;;  %3795 = vmatpush.msra.mxu0 %v3842_v53 }
 0x3f3   : > { %3885 = vmatpush.msra.mxu2 %v3841_v23  ;;  %3796 = vmatpush.msra.mxu0 %v3841_v23 }
 0x3f5   : > { %3886 = vmatpush.msra.mxu2 %v3840_v47  ;;  %3797 = vmatpush.msra.mxu0 %v3840_v47 }
 0x3f6   : > { %3887 = vmatmul.f32.vlgmr.msra.gmra.mxu2 %v3832_v36  ;;  %3798 = vmatmul.f32.vlgmr.msra.gmra.mxu0 %v3741_v54 }
 0x46d   : > { %v3819_v56 = vpop.f32.mrf.mxu1 }
 0x473   : > { %v3799_v60 = vpop.f32.mrf.mxu0  ;;  %v3908_v50 = vpop.f32.mrf.mxu3 }
 0x474   : > { %v3820_v59 = vadd.f32 %v3819_v56, %v3799_v60 }
 0x476   : > { %v3822_v9 = vadd.f32 %v3820_v59, %v3733_v58 }
 0x478   : > { %3824 = vst.msk [vmem:[#allocation2] sm:$0x1] %vm3823_vm6, %v3822_v9 }
 0x479   : > { %v3888_v62 = vpop.f32.mrf.mxu2 }
 0x47a   : > { %v3909_v42 = vadd.f32 %v3908_v50, %v3888_v62 }
 0x47c   : > { %v3911_v1 = vadd.f32 %v3909_v42, %v3825_v14 }
 0x47e   : > { %3912 = vst.msk [vmem:[#allocation2 + $0x1] sm:$0x1] %vm3823_vm6, %v3911_v1 }
 0x47f PF: > { %p3913_p7 = scmp.eq.s32.totalorder %s6001_s13, 1 }
 0x481   : > { %p3914_p9 = pnand %p3913_p7, %p3703_p3 }
 0x483   : > { %3917 = sbr.rel (%p3914_p9) target bundleno = 1331 (0x533), region = 92 }
 0x488   : > { %v4009_v39 = vld [vmem:[#allocation7 + $0x38] sm:$0xff]  ;;  %v4008_v32 = vld [vmem:[#allocation7 + $0x30] sm:$0xff]  ;;  %v4007_v38 = vld [vmem:[#allocation7 + $0x28] sm:$0xff]  ;;  %v3997_v16 = vlaneseq  ;;  %vm3994_vm10 = vcmask 1040384  }
 0x489   : > { %4045 = vmatpush.msra.mxu3 %v4009_v39  ;;  %4025 = vmatpush.msra.mxu2 %v4008_v32  ;;  %v4006_v45 = vld [vmem:[#allocation7 + $0x20] sm:$0xff]  ;;  %v4005_v10 = vld [vmem:[#allocation7 + $0x18] sm:$0xff]  ;;  %v4004_v26 = vld [vmem:[#allocation7 + $0x10] sm:$0xff] }
 0x48a   : > { %3983 = vmatpush.msra.mxu1 %v4009_v39  ;;  %v3918_v8 = vld [vmem:[#allocation2] sm:$0x1]  ;;  %v3920_v13 = vld [vmem:[#allocation2 + $0x1] sm:$0x1]  ;;  %3963 = vmatpush.msra.mxu0 %v4008_v32  ;;  %v4003_v22 = vld [vmem:[#allocation7 + $0x8] sm:$0xff]  ;;  %vm3999_vm11 = vcmp.lt.s32.totalorder %v3997_v16, 224 }
 0x48b   : > { %4046 = vmatpush.msra.mxu3 %v4007_v38  ;;  %4026 = vmatpush.msra.mxu2 %v4006_v45  ;;  %v3919_v3 = vmul.f32 0.0025510204, %v3918_v8  ;;  %v3921_v20 = vmul.f32 0.0025510204, %v3920_v13  ;;  %v4002_v0 = vld [vmem:[#allocation7] sm:$0xff] }
 0x48c   : > { %3984 = vmatpush.msra.mxu1 %v4007_v38  ;;  %3964 = vmatpush.msra.mxu0 %v4006_v45  ;;  %v3924_v29 = vld [vmem:[#allocation9] sm:$0x1]  ;;  %v3937_v2 = vld [vmem:[#allocation10] sm:$0x1] }
 0x48d   : > { %4047 = vmatpush.msra.mxu3 %v4005_v10  ;;  %4027 = vmatpush.msra.mxu2 %v4004_v26  ;;  %v3922_v17 = vmul.f32 %v3919_v3, %v3919_v3 }
 0x48e   : > { %3985 = vmatpush.msra.mxu1 %v4005_v10  ;;  %3965 = vmatpush.msra.mxu0 %v4004_v26 }
 0x48f   : > { %4048 = vmatpush.msra.mxu3 %v4003_v22  ;;  %v3923_v31 = vsub.f32 %v3921_v20, %v3922_v17  ;;  %4028 = vmatpush.msra.mxu2 %v4002_v0 }
 0x490   : > { %3986 = vmatpush.msra.mxu1 %v4003_v22  ;;  %3966 = vmatpush.msra.mxu0 %v4002_v0 }
 0x491   : > { %v3925_v51 = vadd.f32 1e-05, %v3923_v31 }
 0x493   : > { %5721 = vrsqrt.f32 %v3925_v51  ;;  %vm3932_vm7 = vweird.f32 %v3925_v51 }
 0x499   : > { %v5722_v37 = vpop.eup %5721 }
 0x49a   : > { %v3927_v19 = vmul.f32 %v5722_v37, %v3925_v51  ;;  %vm3933_vm8 = vweird.f32 %v5722_v37 }
 0x49b   : > { %vm3934_vm9 = vmor %vm3932_vm7, %vm3933_vm8 }
 0x49c   : > { %v3928_v57 = vmul.f32 %v5722_v37, %v3927_v19 }
 0x49e   : > { %v3929_v25 = vmul.f32 0.5, %v3928_v57 }
 0x4a0   : > { %v3930_v21 = vsub.f32 1.5, %v3929_v25 }
 0x4a2   : > { %v3931_v27 = vmul.f32 %v5722_v37, %v3930_v21 }
 0x4a4   : > { %v3935_v6 = vsel %vm3934_vm9, %v5722_v37, %v3931_v27 }
 0x4a5   : > { %v3936_v49 = vmul.f32 %v3935_v6, %v3924_v29 }
 0x4a7   : > { %v3938_v55 = vmul.f32 %v3936_v49, %v3919_v3  ;;  %4841 = vmatmul.msk.f32.vlgmr.msra.gmra.mxu1 %vm610_vm0, %v3936_v49  ;;  %4840 = vmatmul.msk.f32.vlgmr.msra.gmra.mxu0 %vm610_vm0, %v3936_v49 }
 0x4a9   : > { %v3939_v61 = vsub.f32 %v3937_v2, %v3938_v55 }
 0x4ab   : > { %4843 = vmatmul.msk.f32.vlgmr.msra.gmra.mxu3 %vm610_vm0, %v3939_v61  ;;  %4842 = vmatmul.msk.f32.vlgmr.msra.gmra.mxu2 %vm610_vm0, %v3939_v61 }
 0x524   : > { %v3988_v18 = vpop.f32.mrf.mxu1  ;;  %v3968_v46 = vpop.f32.mrf.mxu0 }
 0x525   : > { %v3993_v44 = vrot.slane %v3988_v18, 7 }
 0x527   : > { %v3995_v34 = vsel %vm3994_vm10, %v3968_v46, %v3993_v44 }
 0x528   : > { %4001 = vst.msk [vmem:[#allocation3] ss:$2 sm:$0x3] %vm3999_vm11, %v3995_v34 }
 0x52e   : > { %v4050_v48 = vpop.f32.mrf.mxu3  ;;  %v4030_v4 = vpop.f32.mrf.mxu2 }
 0x52f   : > { %v4055_v12 = vrot.slane %v4050_v48, 7 }
 0x531   : > { %v4056_v40 = vsel %vm3994_vm10, %v4030_v4, %v4055_v12 }
 0x532   : > { %4059 = vst.msk [vmem:[#allocation3 + $0x1] ss:$2 sm:$0x3] %vm3999_vm11, %v4056_v40 }
 0x533 PF: > { %p4844_p10 = scmp.ne.s32.totalorder %s6001_s13, 1 }
 0x535   : > { %4062 = sbr.rel (%p4844_p10) target bundleno = 1586 (0x632), region = 96 }
 0x53a   : > { %v4116_v41 = vld [vmem:[#allocation12 + $0x78] sm:$0xff]  ;;  %v4115_v63 = vld [vmem:[#allocation12 + $0x70] sm:$0xff]  ;;  %v4114_v36 = vld [vmem:[#allocation12 + $0x68] sm:$0xff]  ;;  %vm4129_vm12 = vcmask 785408  }
 0x53b   : > { %v4128_v43 = vld [vmem:[#allocation12 + $0xd8] sm:$0xff]  ;;  %4133 = vmatpush.msra.mxu0 %v4116_v41  ;;  %v4127_v24 = vld [vmem:[#allocation12 + $0xd0] sm:$0xff]  ;;  %v4126_v54 = vld [vmem:[#allocation12 + $0xc8] sm:$0xff] }
 0x53c   : > { %v4190_v52 = vld [vmem:[#allocation12 + $0x158] sm:$0xff]  ;;  %4157 = vmatpush.msra.mxu1 %v4128_v43  ;;  %v4189_v23 = vld [vmem:[#allocation12 + $0x150] sm:$0xff]  ;;  %v4188_v56 = vld [vmem:[#allocation12 + $0x148] sm:$0xff] }
 0x53d   : > { %v4202_v53 = vld [vmem:[#allocation12 + $0x1b8] sm:$0xff]  ;;  %4209 = vmatpush.msra.mxu2 %v4190_v52  ;;  %v4201_v47 = vld [vmem:[#allocation12 + $0x1b0] sm:$0xff]  ;;  %4134 = vmatpush.msra.mxu0 %v4115_v63  ;;  %v4200_v60 = vld [vmem:[#allocation12 + $0x1a8] sm:$0xff] }
 0x53e   : > { %4233 = vmatpush.msra.mxu3 %v4202_v53  ;;  %4158 = vmatpush.msra.mxu1 %v4127_v24  ;;  %v4113_v58 = vld [vmem:[#allocation12 + $0x60] sm:$0xff]  ;;  %v4112_v62 = vld [vmem:[#allocation12 + $0x58] sm:$0xff]  ;;  %v4111_v39 = vld [vmem:[#allocation12 + $0x50] sm:$0xff] }
 0x53f   : > { %4210 = vmatpush.msra.mxu2 %v4189_v23  ;;  %v4125_v59 = vld [vmem:[#allocation12 + $0xc0] sm:$0xff]  ;;  %4135 = vmatpush.msra.mxu0 %v4114_v36  ;;  %v4124_v14 = vld [vmem:[#allocation12 + $0xb8] sm:$0xff]  ;;  %v4123_v32 = vld [vmem:[#allocation12 + $0xb0] sm:$0xff] }
 0x540   : > { %4234 = vmatpush.msra.mxu3 %v4201_v47  ;;  %4159 = vmatpush.msra.mxu1 %v4126_v54  ;;  %v4187_v9 = vld [vmem:[#allocation12 + $0x140] sm:$0xff]  ;;  %v4186_v42 = vld [vmem:[#allocation12 + $0x138] sm:$0xff]  ;;  %v4185_v38 = vld [vmem:[#allocation12 + $0x130] sm:$0xff] }
 0x541   : > { %v4199_v50 = vld [vmem:[#allocation12 + $0x1a0] sm:$0xff]  ;;  %4211 = vmatpush.msra.mxu2 %v4188_v56  ;;  %4136 = vmatpush.msra.mxu0 %v4113_v58  ;;  %v4198_v1 = vld [vmem:[#allocation12 + $0x198] sm:$0xff]  ;;  %v4197_v45 = vld [vmem:[#allocation12 + $0x190] sm:$0xff] }
 0x542   : > { %4235 = vmatpush.msra.mxu3 %v4200_v60  ;;  %4160 = vmatpush.msra.mxu1 %v4125_v59  ;;  %v4110_v10 = vld [vmem:[#allocation12 + $0x48] sm:$0xff]  ;;  %v4109_v3 = vld [vmem:[#allocation12 + $0x40] sm:$0xff]  ;;  %v4108_v17 = vld [vmem:[#allocation12 + $0x38] sm:$0xff] }
 0x543   : > { %4212 = vmatpush.msra.mxu2 %v4187_v9  ;;  %4137 = vmatpush.msra.mxu0 %v4112_v62  ;;  %v4122_v26 = vld [vmem:[#allocation12 + $0xa8] sm:$0xff]  ;;  %v4121_v20 = vld [vmem:[#allocation12 + $0xa0] sm:$0xff]  ;;  %v4120_v31 = vld [vmem:[#allocation12 + $0x98] sm:$0xff] }
 0x544   : > { %4236 = vmatpush.msra.mxu3 %v4199_v50  ;;  %4161 = vmatpush.msra.mxu1 %v4124_v14  ;;  %v4184_v8 = vld [vmem:[#allocation12 + $0x128] sm:$0xff]  ;;  %v4183_v22 = vld [vmem:[#allocation12 + $0x120] sm:$0xff]  ;;  %v4182_v51 = vld [vmem:[#allocation12 + $0x118] sm:$0xff] }
 0x545   : > { %4213 = vmatpush.msra.mxu2 %v4186_v42  ;;  %4138 = vmatpush.msra.mxu0 %v4111_v39  ;;  %v4196_v13 = vld [vmem:[#allocation12 + $0x188] sm:$0xff]  ;;  %v4195_v0 = vld [vmem:[#allocation12 + $0x180] sm:$0xff]  ;;  %v4194_v37 = vld [vmem:[#allocation12 + $0x178] sm:$0xff] }
 0x546   : > { %4237 = vmatpush.msra.mxu3 %v4198_v1  ;;  %4162 = vmatpush.msra.mxu1 %v4123_v32  ;;  %v4107_v19 = vld [vmem:[#allocation12 + $0x30] sm:$0xff]  ;;  %v4106_v29 = vld [vmem:[#allocation12 + $0x28] sm:$0xff]  ;;  %v4105_v2 = vld [vmem:[#allocation12 + $0x20] sm:$0xff] }
 0x547   : > { %4214 = vmatpush.msra.mxu2 %v4185_v38  ;;  %4139 = vmatpush.msra.mxu0 %v4110_v10  ;;  %v4119_v57 = vld [vmem:[#allocation12 + $0x90] sm:$0xff]  ;;  %v4118_v27 = vld [vmem:[#allocation12 + $0x88] sm:$0xff]  ;;  %v4117_v55 = vld [vmem:[#allocation12 + $0x80] sm:$0xff] }
 0x548   : > { %4238 = vmatpush.msra.mxu3 %v4197_v45  ;;  %4163 = vmatpush.msra.mxu1 %v4122_v26  ;;  %v4181_v25 = vld [vmem:[#allocation12 + $0x110] sm:$0xff]  ;;  %v4180_v6 = vld [vmem:[#allocation12 + $0x108] sm:$0xff]  ;;  %v4179_v61 = vld [vmem:[#allocation12 + $0x100] sm:$0xff] }
 0x549   : > { %4215 = vmatpush.msra.mxu2 %v4184_v8  ;;  %4140 = vmatpush.msra.mxu0 %v4109_v3  ;;  %v4193_v21 = vld [vmem:[#allocation12 + $0x170] sm:$0xff]  ;;  %v4192_v49 = vld [vmem:[#allocation12 + $0x168] sm:$0xff]  ;;  %v4191_v16 = vld [vmem:[#allocation12 + $0x160] sm:$0xff] }
 0x54a   : > { %4239 = vmatpush.msra.mxu3 %v4196_v13  ;;  %4164 = vmatpush.msra.mxu1 %v4121_v20  ;;  %v4266_v18 = vld [vmem:[#allocation12 + $0x238] sm:$0xff]  ;;  %v4265_v48 = vld [vmem:[#allocation12 + $0x230] sm:$0xff]  ;;  %v4264_v41 = vld [vmem:[#allocation12 + $0x228] sm:$0xff] }
 0x54b   : > { %4216 = vmatpush.msra.mxu2 %v4183_v22  ;;  %4141 = vmatpush.msra.mxu0 %v4108_v17  ;;  %v4278_v46 = vld [vmem:[#allocation12 + $0x298] sm:$0xff]  ;;  %v4277_v4 = vld [vmem:[#allocation12 + $0x290] sm:$0xff]  ;;  %v4276_v43 = vld [vmem:[#allocation12 + $0x288] sm:$0xff] }
 0x54c   : > { %4240 = vmatpush.msra.mxu3 %v4195_v0  ;;  %4165 = vmatpush.msra.mxu1 %v4120_v31  ;;  %v4104_v44 = vld [vmem:[#allocation12 + $0x18] sm:$0xff]  ;;  %v4103_v12 = vld [vmem:[#allocation12 + $0x10] sm:$0xff]  ;;  %v4102_v52 = vld [vmem:[#allocation12 + $0x8] sm:$0xff] }
 0x54d   : > { %4217 = vmatpush.msra.mxu2 %v4182_v51  ;;  %4142 = vmatpush.msra.mxu0 %v4107_v19  ;;  %v4178_v34 = vld [vmem:[#allocation12 + $0xf8] sm:$0xff]  ;;  %v4177_v40 = vld [vmem:[#allocation12 + $0xf0] sm:$0xff]  ;;  %v4176_v53 = vld [vmem:[#allocation12 + $0xe8] sm:$0xff] }
 0x54e   : > { %4241 = vmatpush.msra.mxu3 %v4194_v37  ;;  %4166 = vmatpush.msra.mxu1 %v4119_v57  ;;  %v4263_v63 = vld [vmem:[#allocation12 + $0x220] sm:$0xff]  ;;  %v4063_v36 = vld [vmem:[#allocation3] ss:$2 sm:$0x3]  ;;  %v4261_v42 = vld [vmem:[#allocation12 + $0x210] sm:$0xff] }
 0x54f   : > { %4218 = vmatpush.msra.mxu2 %v4181_v25  ;;  %4143 = vmatpush.msra.mxu0 %v4106_v29  ;;  %v4275_v24 = vld [vmem:[#allocation12 + $0x280] sm:$0xff]  ;;  %v4262_v54 = vld [vmem:[#allocation12 + $0x218] sm:$0xff]  ;;  %v4068_v58 = vperm.slane %v4063_v36, 1  ;;  %v4067_v62 = vperm.slane %v4063_v36, 0  ;;  %v4273_v1 = vld [vmem:[#allocation12 + $0x270] sm:$0xff] }
 0x550   : > { %4242 = vmatpush.msra.mxu3 %v4193_v21  ;;  %4167 = vmatpush.msra.mxu1 %v4118_v27  ;;  %v4101_v23 = vld [vmem:[#allocation12] sm:$0xff]  ;;  %v4274_v56 = vld [vmem:[#allocation12 + $0x278] sm:$0xff]  ;;  %v4340_v45 = vld [vmem:[#allocation12 + $0x310] sm:$0xff] }
 0x551   : > { %4219 = vmatpush.msra.mxu2 %v4180_v6  ;;  %4144 = vmatpush.msra.mxu0 %v4105_v2  ;;  %v4175_v47 = vld [vmem:[#allocation12 + $0xe0] sm:$0xff]  ;;  %v4065_v60 = vld [vmem:[#allocation3 + $0x1] ss:$2 sm:$0x3]  ;;  %v4072_v39 = vmul.f32 %v4068_v58, %v6384_v35  ;;  %v4081_v32 = vmul.f32 %v4068_v58, %v6461_v33  ;;  %v4085_v38 = vmul.f32 %v4068_v58, %v6544_v5  ;;  %v4352_v10 = vld [vmem:[#allocation12 + $0x370] sm:$0xff] }
 0x552   : > { %4243 = vmatpush.msra.mxu3 %v4192_v49  ;;  %4168 = vmatpush.msra.mxu1 %v4117_v55  ;;  %v4341_v59 = vld [vmem:[#allocation12 + $0x318] sm:$0xff]  ;;  %v4075_v50 = vperm.slane %v4065_v60, 1  ;;  %v4074_v14 = vperm.slane %v4065_v60, 0  ;;  %v4089_v26 = vmul.f32 %v4068_v58, %v6572_v30  ;;  %v4071_v8 = vmul.f32 %v4067_v62, %v6379_v7  ;;  %v4260_v3 = vld [vmem:[#allocation12 + $0x208] sm:$0xff]  ;;  %v4259_v30 = vld [vmem:[#allocation12 + $0x200] sm:$0xff] }
 0x553   : > { %4220 = vmatpush.msra.mxu2 %v4179_v61  ;;  %4145 = vmatpush.msra.mxu0 %v4104_v44  ;;  %v4353_v9 = vld [vmem:[#allocation12 + $0x378] sm:$0xff]  ;;  %v4080_v13 = vmul.f32 %v4067_v62, %v6458_v28  ;;  %v4272_v20 = vld [vmem:[#allocation12 + $0x268] sm:$0xff]  ;;  %v4271_v7 = vld [vmem:[#allocation12 + $0x260] sm:$0xff]  ;;  %v4084_v28 = vmul.f32 %v4067_v62, %v6541_v15  ;;  %v4088_v19 = vmul.f32 %v4067_v62, %v6570_v11 }
 0x554   : > { %4244 = vmatpush.msra.mxu3 %v4191_v16  ;;  %4284 = vmatpush.msrb.mxu1 %v4266_v18  ;;  %v4079_v22 = vadd.f32 %v4075_v50, %v4072_v39  ;;  %v4083_v35 = vadd.f32 %v4081_v32, %v4075_v50  ;;  %v4087_v0 = vadd.f32 %v4085_v38, %v4075_v50  ;;  %v4339_v33 = vld [vmem:[#allocation12 + $0x308] sm:$0xff]  ;;  %v4338_v57 = vld [vmem:[#allocation12 + $0x300] sm:$0xff]  ;;  %v4258_v29 = vld [vmem:[#allocation12 + $0x1f8] sm:$0xff] }
 0x555   : > { %4221 = vmatpush.msra.mxu2 %v4178_v34  ;;  %4146 = vmatpush.msra.mxu0 %v4103_v12  ;;  %v4351_v5 = vld [vmem:[#allocation12 + $0x368] sm:$0xff]  ;;  %v4091_v17 = vadd.f32 %v4089_v26, %v4075_v50  ;;  %v4078_v31 = vadd.f32 %v4074_v14, %v4071_v8  ;;  %v4082_v51 = vadd.f32 %v4080_v13, %v4074_v14  ;;  %v4350_v25 = vld [vmem:[#allocation12 + $0x360] sm:$0xff]  ;;  %v4270_v27 = vld [vmem:[#allocation12 + $0x258] sm:$0xff] }
 0x556   : > { %4308 = vmatpush.msrb.mxu3 %v4278_v46  ;;  %4285 = vmatpush.msrb.mxu1 %v4265_v48  ;;  %v4093_v37 = vmax.f32 %v4079_v22, %v4083_v35  ;;  %v4086_v6 = vadd.f32 %v4084_v28, %v4074_v14  ;;  %v4090_v49 = vadd.f32 %v4088_v19, %v4074_v14  ;;  %v4337_v55 = vld [vmem:[#allocation12 + $0x2f8] sm:$0xff]  ;;  %v4257_v15 = vld [vmem:[#allocation12 + $0x1f0] sm:$0xff]  ;;  %v4256_v48 = vld [vmem:[#allocation12 + $0x1e8] sm:$0xff] }
 0x557   : > { %4222 = vmatpush.msra.mxu2 %v4177_v40  ;;  %4147 = vmatpush.msra.mxu0 %v4102_v52  ;;  %v4095_v21 = vmax.f32 %v4087_v0, %v4091_v17  ;;  %v4092_v2 = vmax.f32 %v4078_v31, %v4082_v51  ;;  %v4349_v61 = vld [vmem:[#allocation12 + $0x358] sm:$0xff]  ;;  %v4269_v11 = vld [vmem:[#allocation12 + $0x250] sm:$0xff]  ;;  %v4268_v40 = vld [vmem:[#allocation12 + $0x248] sm:$0xff] }
 0x558   : > { %4309 = vmatpush.msrb.mxu3 %v4277_v4  ;;  %4286 = vmatpush.msrb.mxu1 %v4264_v41  ;;  %v4094_v18 = vmax.f32 %v4086_v6, %v4090_v49  ;;  %v4336_v46 = vld [vmem:[#allocation12 + $0x2f0] sm:$0xff]  ;;  %v4335_v41 = vld [vmem:[#allocation12 + $0x2e8] sm:$0xff]  ;;  %v4255_v52 = vld [vmem:[#allocation12 + $0x1e0] sm:$0xff] }
 0x559   : > { %4223 = vmatpush.msra.mxu2 %v4176_v53  ;;  %4148 = vmatpush.msra.mxu0 %v4101_v23  ;;  %v4097_v16 = vmax.f32 %v4093_v37, %v4095_v21  ;;  %v4348_v44 = vld [vmem:[#allocation12 + $0x350] sm:$0xff]  ;;  %v4346_v23 = vld [vmem:[#allocation12 + $0x340] sm:$0xff]  ;;  %v4254_v36 = vld [vmem:[#allocation12 + $0x1d8] sm:$0xff] }
 0x55a   : > { %4310 = vmatpush.msrb.mxu3 %v4276_v43  ;;  %4287 = vmatpush.msrb.mxu1 %v4263_v63  ;;  %v4096_v4 = vmax.f32 %v4092_v2, %v4094_v18  ;;  %v4347_v43 = vld [vmem:[#allocation12 + $0x348] sm:$0xff]  ;;  %v4267_v63 = vld [vmem:[#allocation12 + $0x240] sm:$0xff]  ;;  %v4415_v58 = vld [vmem:[#allocation12 + $0x3f0] sm:$0xff] }
 0x55b   : > { %4224 = vmatpush.msra.mxu2 %v4175_v47  ;;  %4359 = vmatpush.msrb.mxu0 %v4341_v59  ;;  %v6709_v34 = vmax.f32 %v4097_v16, 0.0  ;;  %v4416_v47 = vld [vmem:[#allocation12 + $0x3f8] sm:$0xff]  ;;  %v4253_v59 = vld [vmem:[#allocation12 + $0x1d0] sm:$0xff]  ;;  %v4414_v14 = vld [vmem:[#allocation12 + $0x3e8] sm:$0xff] }
 0x55c   : > { %4311 = vmatpush.msrb.mxu3 %v4275_v24  ;;  %4288 = vmatpush.msrb.mxu1 %v4262_v54  ;;  %v6712_v53 = vmax.f32 %v4096_v4, 0.0  ;;  %v4334_v24 = vld [vmem:[#allocation12 + $0x2e0] sm:$0xff]  ;;  %v4333_v54 = vld [vmem:[#allocation12 + $0x2d8] sm:$0xff]  ;;  %v4344_v62 = vld [vmem:[#allocation12 + $0x330] sm:$0xff] }
 0x55d   : > { %4383 = vmatpush.msrb.mxu2 %v4353_v9  ;;  %4360 = vmatpush.msrb.mxu0 %v4340_v45  ;;  %v4205_v12 = vrot.slane %v6709_v34, 1  ;;  %v4332_v9 = vld [vmem:[#allocation12 + $0x2d0] sm:$0xff]  ;;  %v4280_v50 = vrot.slane %v6709_v34, 2  ;;  %v4343_v39 = vld [vmem:[#allocation12 + $0x328] sm:$0xff]  ;;  %v4413_v32 = vld [vmem:[#allocation12 + $0x3e0] sm:$0xff]  ;;  %v4355_v22 = vrot.slane %v6709_v34, 3 }
 0x55e   : > { %4312 = vmatpush.msrb.mxu3 %v4274_v56  ;;  %4289 = vmatpush.msrb.mxu1 %v4261_v42  ;;  %v4345_v56 = vld [vmem:[#allocation12 + $0x338] sm:$0xff]  ;;  %v4204_v60 = vrot.slane %v6712_v53, 1  ;;  %v4252_v42 = vld [vmem:[#allocation12 + $0x1c8] sm:$0xff]  ;;  %v4251_v38 = vld [vmem:[#allocation12 + $0x1c0] sm:$0xff] }
 0x55f   : > { %4384 = vmatpush.msrb.mxu2 %v4352_v10  ;;  %4361 = vmatpush.msrb.mxu0 %v4339_v33  ;;  %v4330_v45 = vld [vmem:[#allocation12 + $0x2c0] sm:$0xff]  ;;  %v4412_v26 = vld [vmem:[#allocation12 + $0x3d8] sm:$0xff]  ;;  %v4411_v35 = vld [vmem:[#allocation12 + $0x3d0] sm:$0xff] }
 0x560   : > { %4313 = vmatpush.msrb.mxu3 %v4273_v1  ;;  %4290 = vmatpush.msrb.mxu1 %v4260_v3  ;;  %v4331_v1 = vld [vmem:[#allocation12 + $0x2c8] sm:$0xff]  ;;  %v4342_v10 = vld [vmem:[#allocation12 + $0x320] sm:$0xff]  ;;  %v4428_v8 = vld [vmem:[#allocation12 + $0x458] sm:$0xff]  ;;  %v4279_v3 = vrot.slane %v6712_v53, 2 }
 0x561   : > { %4385 = vmatpush.msrb.mxu2 %v4351_v5  ;;  %4362 = vmatpush.msrb.mxu0 %v4338_v57  ;;  %v4491_v13 = vld [vmem:[#allocation12 + $0x4d8] sm:$0xff]  ;;  %v4427_v0 = vld [vmem:[#allocation12 + $0x450] sm:$0xff]  ;;  %v4410_v17 = vld [vmem:[#allocation12 + $0x3c8] sm:$0xff]  ;;  %v4354_v57 = vrot.slane %v6712_v53, 3 }
 0x562   : > { %4314 = vmatpush.msrb.mxu3 %v4272_v20  ;;  %4291 = vmatpush.msrb.mxu1 %v4259_v30  ;;  %v4329_v20 = vld [vmem:[#allocation12 + $0x2b8] sm:$0xff]  ;;  %v4490_v33 = vld [vmem:[#allocation12 + $0x4d0] sm:$0xff]  ;;  %v4426_v31 = vld [vmem:[#allocation12 + $0x448] sm:$0xff] }
 0x563   : > { %4386 = vmatpush.msrb.mxu2 %v4350_v25  ;;  %4363 = vmatpush.msrb.mxu0 %v4337_v55  ;;  %v4328_v5 = vld [vmem:[#allocation12 + $0x2b0] sm:$0xff]  ;;  %v4489_v51 = vld [vmem:[#allocation12 + $0x4c8] sm:$0xff]  ;;  %v4425_v37 = vld [vmem:[#allocation12 + $0x440] sm:$0xff] }
 0x564   : > { %4315 = vmatpush.msrb.mxu3 %v4271_v7  ;;  %4292 = vmatpush.msrb.mxu1 %v4258_v29  ;;  %v4327_v30 = vld [vmem:[#allocation12 + $0x2a8] sm:$0xff]  ;;  %v4409_v7 = vld [vmem:[#allocation12 + $0x3c0] sm:$0xff]  ;;  %v4408_v25 = vld [vmem:[#allocation12 + $0x3b8] sm:$0xff] }
 0x565   : > { %4387 = vmatpush.msrb.mxu2 %v4349_v61  ;;  %4364 = vmatpush.msrb.mxu0 %v4336_v46  ;;  %v4488_v28 = vld [vmem:[#allocation12 + $0x4c0] sm:$0xff]  ;;  %v4424_v21 = vld [vmem:[#allocation12 + $0x438] sm:$0xff]  ;;  %v4423_v6 = vld [vmem:[#allocation12 + $0x430] sm:$0xff] }
 0x566   : > { %4316 = vmatpush.msrb.mxu3 %v4270_v27  ;;  %4293 = vmatpush.msrb.mxu1 %v4257_v15  ;;  %v4326_v19 = vld [vmem:[#allocation12 + $0x2a0] sm:$0xff]  ;;  %v4487_v29 = vld [vmem:[#allocation12 + $0x4b8] sm:$0xff]  ;;  %v4407_v27 = vld [vmem:[#allocation12 + $0x3b0] sm:$0xff] }
 0x567   : > { %4388 = vmatpush.msrb.mxu2 %v4348_v44  ;;  %4846 = vmatmul.msk.f32.vlgmr.msra.gmra.mxu3 %vm4129_vm12, %v4205_v12  ;;  %v4503_v49 = vld [vmem:[#allocation12 + $0x538] sm:$0xff]  ;;  %v4486_v2 = vld [vmem:[#allocation12 + $0x4b0] sm:$0xff]  ;;  %v4406_v55 = vld [vmem:[#allocation12 + $0x3a8] sm:$0xff] }
 0x568   : > { %4317 = vmatpush.msrb.mxu3 %v4269_v11  ;;  %4294 = vmatpush.msrb.mxu1 %v4256_v48  ;;  %v4422_v61 = vld [vmem:[#allocation12 + $0x428] sm:$0xff]  ;;  %v4502_v16 = vld [vmem:[#allocation12 + $0x530] sm:$0xff]  ;;  %v4405_v11 = vld [vmem:[#allocation12 + $0x3a0] sm:$0xff] }
 0x569   : > { %4365 = vmatpush.msrb.mxu0 %v4335_v41  ;;  %4389 = vmatpush.msrb.mxu2 %v4347_v43  ;;  %v4485_v15 = vld [vmem:[#allocation12 + $0x4a8] sm:$0xff]  ;;  %v4421_v18 = vld [vmem:[#allocation12 + $0x420] sm:$0xff]  ;;  %v4404_v48 = vld [vmem:[#allocation12 + $0x398] sm:$0xff] }
 0x56a   : > { %4318 = vmatpush.msrb.mxu3 %v4268_v40  ;;  %4295 = vmatpush.msrb.mxu1 %v4255_v52  ;;  %v4501_v46 = vld [vmem:[#allocation12 + $0x528] sm:$0xff]  ;;  %v4484_v44 = vld [vmem:[#allocation12 + $0x4a0] sm:$0xff]  ;;  %v4420_v4 = vld [vmem:[#allocation12 + $0x418] sm:$0xff] }
 0x56b   : > { %4366 = vmatpush.msrb.mxu0 %v4334_v24  ;;  %4390 = vmatpush.msrb.mxu2 %v4346_v23  ;;  %v4500_v12 = vld [vmem:[#allocation12 + $0x520] sm:$0xff]  ;;  %v4483_v40 = vld [vmem:[#allocation12 + $0x498] sm:$0xff]  ;;  %v4403_v41 = vld [vmem:[#allocation12 + $0x390] sm:$0xff] }
 0x56c   : > { %4319 = vmatpush.msrb.mxu3 %v4267_v63  ;;  %4296 = vmatpush.msrb.mxu1 %v4254_v36  ;;  %v4419_v43 = vld [vmem:[#allocation12 + $0x410] sm:$0xff]  ;;  %v4499_v52 = vld [vmem:[#allocation12 + $0x518] sm:$0xff]  ;;  %v4402_v24 = vld [vmem:[#allocation12 + $0x388] sm:$0xff] }
 0x56d   : > { %4367 = vmatpush.msrb.mxu0 %v4333_v54  ;;  %4391 = vmatpush.msrb.mxu2 %v4345_v56  ;;  %v4482_v63 = vld [vmem:[#allocation12 + $0x490] sm:$0xff]  ;;  %v4418_v23 = vld [vmem:[#allocation12 + $0x408] sm:$0xff]  ;;  %v4401_v54 = vld [vmem:[#allocation12 + $0x380] sm:$0xff]  ;;  %v4429_v56 = vrot.slane %v6712_v53, 4 }
 0x56e   : > { %4434 = vmatpush.msra.mxu3 %v4416_v47  ;;  %4845 = vmatmul.msk.f32.vlgmr.msra.gmra.mxu1 %vm4129_vm12, %v6709_v34  ;;  %v4498_v47 = vld [vmem:[#allocation12 + $0x510] sm:$0xff]  ;;  %v4481_v36 = vld [vmem:[#allocation12 + $0x488] sm:$0xff] }
 0x56f   : > { %4225 = vmatmul.f32.vlgmr.msra.gmra.mxu2 %v4204_v60  ;;  %4297 = vmatpush.msrb.mxu1 %v4253_v59  ;;  %v4417_v60 = vld [vmem:[#allocation12 + $0x400] sm:$0xff]  ;;  %v4566_v59 = vld [vmem:[#allocation12 + $0x5b8] sm:$0xff] }
 0x570   : > { %4435 = vmatpush.msra.mxu3 %v4415_v58  ;;  %4368 = vmatpush.msrb.mxu0 %v4332_v9  ;;  %v4480_v58 = vld [vmem:[#allocation12 + $0x480] sm:$0xff]  ;;  %v4578_v9 = vld [vmem:[#allocation12 + $0x618] sm:$0xff] }
 0x571   : > { %4392 = vmatpush.msrb.mxu2 %v4344_v62  ;;  %4847 = vmatmul.msk.f32.vlgmr.msrb.gmra.mxu3 %vm4129_vm12, %v4280_v50  ;;  %v4497_v50 = vld [vmem:[#allocation12 + $0x508] sm:$0xff]  ;;  %v4479_v62 = vld [vmem:[#allocation12 + $0x478] sm:$0xff] }
 0x572   : > { %4436 = vmatpush.msra.mxu3 %v4414_v14  ;;  %4298 = vmatpush.msrb.mxu1 %v4252_v42  ;;  %v4565_v14 = vld [vmem:[#allocation12 + $0x5b0] sm:$0xff] }
 0x573   : > { %4369 = vmatpush.msrb.mxu0 %v4331_v1  ;;  %4393 = vmatpush.msrb.mxu2 %v4343_v39  ;;  %v4577_v42 = vld [vmem:[#allocation12 + $0x610] sm:$0xff]  ;;  %v4496_v1 = vld [vmem:[#allocation12 + $0x500] sm:$0xff] }
 0x574   : > { %4149 = vmatmul.f32.vlgmr.msra.gmra.mxu0 %v6712_v53  ;;  %4437 = vmatpush.msra.mxu3 %v4413_v32  ;;  %v4478_v39 = vld [vmem:[#allocation12 + $0x470] sm:$0xff]  ;;  %v4564_v32 = vld [vmem:[#allocation12 + $0x5a8] sm:$0xff] }
 0x575   : > { %4299 = vmatpush.msrb.mxu1 %v4251_v38  ;;  %4370 = vmatpush.msrb.mxu0 %v4330_v45  ;;  %v4430_v38 = vrot.slane %v6709_v34, 4  ;;  %v4576_v45 = vld [vmem:[#allocation12 + $0x608] sm:$0xff] }
 0x576   : > { %4394 = vmatpush.msrb.mxu2 %v4342_v10  ;;  %4438 = vmatpush.msra.mxu3 %v4412_v26  ;;  %v4477_v10 = vld [vmem:[#allocation12 + $0x468] sm:$0xff]  ;;  %v4563_v26 = vld [vmem:[#allocation12 + $0x5a0] sm:$0xff] }
 0x577   : > { %4458 = vmatpush.msra.mxu1 %v4428_v8  ;;  %4371 = vmatpush.msrb.mxu0 %v4329_v20  ;;  %v4495_v8 = vld [vmem:[#allocation12 + $0x4f8] sm:$0xff]  ;;  %v4504_v20 = vrot.slane %v6712_v53, 5 }
 0x578   : > { %4509 = vmatpush.msra.mxu2 %v4491_v13  ;;  %4300 = vmatmul.f32.vlgmr.msrb.gmra.mxu1 %v4279_v3  ;;  %v4575_v13 = vld [vmem:[#allocation12 + $0x600] sm:$0xff] }
 0x579   : > { %4848 = vmatmul.msk.f32.vlgmr.msrb.gmra.mxu2 %vm4129_vm12, %v4355_v22  ;;  %4439 = vmatpush.msra.mxu3 %v4411_v35  ;;  %v4476_v3 = vld [vmem:[#allocation12 + $0x460] sm:$0xff]  ;;  %v4562_v22 = vld [vmem:[#allocation12 + $0x598] sm:$0xff]  ;;  %v4494_v35 = vld [vmem:[#allocation12 + $0x4f0] sm:$0xff] }
 0x57a   : > { %4459 = vmatpush.msra.mxu1 %v4427_v0  ;;  %4510 = vmatpush.msra.mxu2 %v4490_v33  ;;  %v4561_v0 = vld [vmem:[#allocation12 + $0x590] sm:$0xff]  ;;  %v4574_v33 = vld [vmem:[#allocation12 + $0x5f8] sm:$0xff] }
 0x57b   : > { %4372 = vmatpush.msrb.mxu0 %v4328_v5  ;;  %4440 = vmatpush.msra.mxu3 %v4410_v17  ;;  %v4493_v5 = vld [vmem:[#allocation12 + $0x4e8] sm:$0xff] }
 0x57c   : > { %4460 = vmatpush.msra.mxu1 %v4426_v31  ;;  %4511 = vmatpush.msra.mxu2 %v4489_v51  ;;  %v4560_v17 = vld [vmem:[#allocation12 + $0x588] sm:$0xff]  ;;  %v4573_v31 = vld [vmem:[#allocation12 + $0x5f0] sm:$0xff]  ;;  %v4492_v51 = vld [vmem:[#allocation12 + $0x4e0] sm:$0xff] }
 0x57d   : > { %4373 = vmatpush.msrb.mxu0 %v4327_v30  ;;  %4441 = vmatpush.msra.mxu3 %v4409_v7  ;;  %v4505_v30 = vrot.slane %v6709_v34, 5  ;;  %v4559_v7 = vld [vmem:[#allocation12 + $0x580] sm:$0xff] }
 0x57e   : > { %4461 = vmatpush.msra.mxu1 %v4425_v37  ;;  %4512 = vmatpush.msra.mxu2 %v4488_v28  ;;  %v4572_v37 = vld [vmem:[#allocation12 + $0x5e8] sm:$0xff]  ;;  %v4558_v28 = vld [vmem:[#allocation12 + $0x578] sm:$0xff] }
 0x57f   : > { %4374 = vmatpush.msrb.mxu0 %v4326_v19  ;;  %4442 = vmatpush.msra.mxu3 %v4408_v25  ;;  %v4571_v19 = vld [vmem:[#allocation12 + $0x5e0] sm:$0xff]  ;;  %v4570_v25 = vld [vmem:[#allocation12 + $0x5d8] sm:$0xff] }
 0x580   : > { %4375 = vmatmul.f32.vlgmr.msrb.gmra.mxu0 %v4354_v57  ;;  %4462 = vmatpush.msra.mxu1 %v4424_v21  ;;  %v4557_v57 = vld [vmem:[#allocation12 + $0x570] sm:$0xff]  ;;  %v4556_v21 = vld [vmem:[#allocation12 + $0x568] sm:$0xff] }
 0x581   : > { %4513 = vmatpush.msra.mxu2 %v4487_v29  ;;  %4443 = vmatpush.msra.mxu3 %v4407_v27  ;;  %v4569_v29 = vld [vmem:[#allocation12 + $0x5d0] sm:$0xff]  ;;  %v4555_v27 = vld [vmem:[#allocation12 + $0x560] sm:$0xff] }
 0x582   : > { %4463 = vmatpush.msra.mxu1 %v4423_v6  ;;  %4533 = vmatpush.msra.mxu0 %v4503_v49  ;;  %v4568_v6 = vld [vmem:[#allocation12 + $0x5c8] sm:$0xff]  ;;  %v4554_v49 = vld [vmem:[#allocation12 + $0x558] sm:$0xff] }
 0x583   : > { %4514 = vmatpush.msra.mxu2 %v4486_v2  ;;  %4444 = vmatpush.msra.mxu3 %v4406_v55  ;;  %v4567_v2 = vld [vmem:[#allocation12 + $0x5c0] sm:$0xff]  ;;  %v4580_v55 = vrot.slane %v6709_v34, 6 }
 0x584   : > { %4464 = vmatpush.msra.mxu1 %v4422_v61  ;;  %4534 = vmatpush.msra.mxu0 %v4502_v16  ;;  %v4553_v61 = vld [vmem:[#allocation12 + $0x550] sm:$0xff]  ;;  %v4552_v16 = vld [vmem:[#allocation12 + $0x548] sm:$0xff] }
 0x585   : > { %4515 = vmatpush.msra.mxu2 %v4485_v15  ;;  %4445 = vmatpush.msra.mxu3 %v4405_v11  ;;  %v4551_v15 = vld [vmem:[#allocation12 + $0x540] sm:$0xff]  ;;  %v4579_v11 = vrot.slane %v6712_v53, 6 }
 0x586   : > { %4465 = vmatpush.msra.mxu1 %v4421_v18  ;;  %4535 = vmatpush.msra.mxu0 %v4501_v46 }
 0x587   : > { %4516 = vmatpush.msra.mxu2 %v4484_v44  ;;  %4446 = vmatpush.msra.mxu3 %v4404_v48 }
 0x588   : > { %4466 = vmatpush.msra.mxu1 %v4420_v4  ;;  %4536 = vmatpush.msra.mxu0 %v4500_v12  ;;  %v4100_v12 = vld [vmem:[#allocation13] sm:$0x1] }
 0x589   : > { %4517 = vmatpush.msra.mxu2 %v4483_v40  ;;  %4447 = vmatpush.msra.mxu3 %v4403_v41 }
 0x58a   : > { %4467 = vmatpush.msra.mxu1 %v4419_v43  ;;  %4537 = vmatpush.msra.mxu0 %v4499_v52 }
 0x58b   : > { %4518 = vmatpush.msra.mxu2 %v4482_v63  ;;  %4448 = vmatpush.msra.mxu3 %v4402_v24 }
 0x58c   : > { %4468 = vmatpush.msra.mxu1 %v4418_v23  ;;  %4538 = vmatpush.msra.mxu0 %v4498_v47 }
 0x58d   : > { %4519 = vmatpush.msra.mxu2 %v4481_v36  ;;  %4449 = vmatpush.msra.mxu3 %v4401_v54 }
 0x58e   : > { %4469 = vmatpush.msra.mxu1 %v4417_v60  ;;  %4450 = vmatmul.f32.vlgmr.msra.gmra.mxu3 %v4429_v56 }
 0x58f   : > { %4520 = vmatpush.msra.mxu2 %v4480_v58  ;;  %4608 = vmatpush.msrb.mxu3 %v4578_v9 }
 0x590   : > { %4584 = vmatpush.msrb.mxu1 %v4566_v59  ;;  %4539 = vmatpush.msra.mxu0 %v4497_v50 }
 0x591   : > { %4521 = vmatpush.msra.mxu2 %v4479_v62  ;;  %4609 = vmatpush.msrb.mxu3 %v4577_v42 }
 0x592   : > { %4585 = vmatpush.msrb.mxu1 %v4565_v14  ;;  %4540 = vmatpush.msra.mxu0 %v4496_v1 }
 0x593   : > { %4522 = vmatpush.msra.mxu2 %v4478_v39  ;;  %4849 = vmatmul.msk.f32.vlgmr.msra.gmra.mxu1 %vm4129_vm12, %v4430_v38 }
 0x594   : > { %4586 = vmatpush.msrb.mxu1 %v4564_v32  ;;  %4610 = vmatpush.msrb.mxu3 %v4576_v45 }
 0x595   : > { %4523 = vmatpush.msra.mxu2 %v4477_v10  ;;  %4541 = vmatpush.msra.mxu0 %v4495_v8 }
 0x596   : > { %4587 = vmatpush.msrb.mxu1 %v4563_v26  ;;  %4611 = vmatpush.msrb.mxu3 %v4575_v13 }
 0x597   : > { %4524 = vmatpush.msra.mxu2 %v4476_v3  ;;  %4542 = vmatpush.msra.mxu0 %v4494_v35 }
 0x598   : > { %4588 = vmatpush.msrb.mxu1 %v4562_v22  ;;  %4525 = vmatmul.f32.vlgmr.msra.gmra.mxu2 %v4504_v20 }
 0x599   : > { %4612 = vmatpush.msrb.mxu3 %v4574_v33  ;;  %4543 = vmatpush.msra.mxu0 %v4493_v5 }
 0x59a   : > { %4589 = vmatpush.msrb.mxu1 %v4561_v0 }
 0x59b   : > { %4613 = vmatpush.msrb.mxu3 %v4573_v31  ;;  %4544 = vmatpush.msra.mxu0 %v4492_v51 }
 0x59c   : > { %4590 = vmatpush.msrb.mxu1 %v4560_v17  ;;  %4850 = vmatmul.msk.f32.vlgmr.msra.gmra.mxu0 %vm4129_vm12, %v4505_v30 }
 0x59d   : > { %4614 = vmatpush.msrb.mxu3 %v4572_v37 }
 0x59e   : > { %4591 = vmatpush.msrb.mxu1 %v4559_v7 }
 0x59f   : > { %4615 = vmatpush.msrb.mxu3 %v4571_v19 }
 0x5a0   : > { %4592 = vmatpush.msrb.mxu1 %v4558_v28 }
 0x5a1   : > { %4616 = vmatpush.msrb.mxu3 %v4570_v25 }
 0x5a2   : > { %4593 = vmatpush.msrb.mxu1 %v4557_v57 }
 0x5a3   : > { %4617 = vmatpush.msrb.mxu3 %v4569_v29 }
 0x5a4   : > { %4594 = vmatpush.msrb.mxu1 %v4556_v21 }
 0x5a5   : > { %4618 = vmatpush.msrb.mxu3 %v4568_v6 }
 0x5a6   : > { %4595 = vmatpush.msrb.mxu1 %v4555_v27 }
 0x5a7   : > { %4619 = vmatpush.msrb.mxu3 %v4567_v2 }
 0x5a8   : > { %4596 = vmatpush.msrb.mxu1 %v4554_v49  ;;  %4851 = vmatmul.msk.f32.vlgmr.msrb.gmra.mxu3 %vm4129_vm12, %v4580_v55 }
 0x5aa   : > { %4597 = vmatpush.msrb.mxu1 %v4553_v61 }
 0x5ac   : > { %4598 = vmatpush.msrb.mxu1 %v4552_v16 }
 0x5ae   : > { %4599 = vmatpush.msrb.mxu1 %v4551_v15 }
 0x5af   : > { %4600 = vmatmul.f32.vlgmr.msrb.gmra.mxu1 %v4579_v11 }
 0x5ea   : > { %v4246_v46 = vpop.f32.mrf.mxu3 }
 0x5eb   : > { %v4170_v18 = vpop.f32.mrf.mxu1 }
 0x5f1   : > { %v4150_v48 = vpop.f32.mrf.mxu0 }
 0x5f2   : > { %v4226_v44 = vpop.f32.mrf.mxu2  ;;  %v4171_v4 = vadd.f32 %v4170_v18, %v4150_v48 }
 0x5f3   : > { %v4247_v63 = vadd.f32 %v4246_v46, %v4226_v44 }
 0x5f4   : > { %v4321_v40 = vpop.f32.mrf.mxu3  ;;  %v4173_v52 = vadd.f32 %v4171_v4, %v4100_v12 }
 0x5f5   : > { %v4301_v34 = vpop.f32.mrf.mxu1 }
 0x5f6   : > { %v4249_v24 = vadd.f32 %v4247_v63, %v4173_v52  ;;  %v4322_v23 = vadd.f32 %v4321_v40, %v4301_v34 }
 0x5f8   : > { %v4324_v60 = vadd.f32 %v4322_v23, %v4249_v24 }
 0x5fc   : > { %v4396_v43 = vpop.f32.mrf.mxu2 }
 0x5fd   : > { %v4376_v41 = vpop.f32.mrf.mxu0 }
 0x5fe   : > { %v4397_v36 = vadd.f32 %v4396_v43, %v4376_v41 }
 0x600   : > { %v4399_v59 = vadd.f32 %v4397_v36, %v4324_v60 }
 0x610   : > { %v4471_v47 = vpop.f32.mrf.mxu1 }
 0x611   : > { %v4451_v53 = vpop.f32.mrf.mxu3 }
 0x612   : > { %v4472_v58 = vadd.f32 %v4471_v47, %v4451_v53 }
 0x614   : > { %v4474_v50 = vadd.f32 %v4472_v58, %v4399_v59 }
 0x619   : > { %v4546_v56 = vpop.f32.mrf.mxu0 }
 0x61b   : > { %v4526_v54 = vpop.f32.mrf.mxu2 }
 0x61c   : > { %v4547_v9 = vadd.f32 %v4546_v56, %v4526_v54 }
 0x61e   : > { %v4549_v42 = vadd.f32 %v4547_v9, %v4474_v50 }
 0x62b   : > { %v4621_v14 = vpop.f32.mrf.mxu3 }
 0x62c   : > { %v4601_v62 = vpop.f32.mrf.mxu1 }
 0x62d   : > { %v4622_v1 = vadd.f32 %v4621_v14, %v4601_v62 }
 0x62f   : > { %v4624_v39 = vadd.f32 %v4622_v1, %v4549_v42 }
 0x631   : > { %4625 = vst [vmem:[%s6576_s18] sm:$0x1] %v4624_v39 }
 0x632 PF: > { %s4633_s26 = smul.u32 %s5997_s12, %s6001_s13  ;;  %s4638_s27 = sshll.u32 %s6576_s18, 4  ;;  %s4639_s27 = int_to_ptr.vmem [resolvable:$true] %s4638_s27 }
 0x633   : > { %s4627_s11 = scalar_lea.sflag [#allocation6], %s446_s30  ;;  %s5923_s12 = scalar_lea.hbm %s6790_s9, 2 }
 0x634   : > { %s4636_s4 = scalar_lea.hbm %s6790_s9, %s4633_s26 }
 0x635   : > { %s4640_s21 = sshll.u32 %s4636_s4, 4  ;;  %s4641_s21 = int_to_ptr.hbm [resolvable:$true] %s4640_s21 }
 0x636   : > { %s5917_s14 = sshra.s32 %s4641_s21, 4  ;;  %s5918_s14 = int_to_ptr.hbm [resolvable:$true] %s5917_s14 }
 0x637   : > { %s5919_s6 = scalar_lea.hbm %s5918_s14, 1  ;;  %p5924_p0 = scmp.lt.s32.totalorder %s5918_s14, %s6790_s9 }
 0x638   : > { %p5920_p11 = scmp.ne.s32.totalorder %s5918_s14, %s5919_s6  ;;  %p5925_p1 = scmp.lt.s32.totalorder %s5923_s12, %s5919_s6 }
 0x63a   : > { %p5921_p12 = pnand %p5920_p11, %p6130_p6  ;;  %p5926_p2 = por %p5925_p1, %p5924_p0 }
 0x63c   : > { %p5922_p13 = pneg %p5921_p12 }
 0x63e   : > { %p5927_p3 = pnand %p5926_p2, %p5922_p13 }
 0x640   : > { %5930 = shalt.err (!%p5927_p3)
}
 0x641   : > { %4879 = dma.vmem_to_hbm [thread:$0]  (%p6130_p6), %s4639_s27, 16, %s4641_s21, %s4627_s11  }
 0x642 PF: > { %s6816_s30 = sld [smem:[#allocation21_spill]]  ;;  %p4916_p4 = scmp.ge.s32.totalorder %s6013_s16, 2 }
 0x644   : > { %p4901_p5 = pnand %p4916_p4, %p6137_p8 }
 0x646   : > { %p4902_p7 = pneg %p4901_p5 }
 0x648   : > { %s4652_s22 = sand.u32 1, %s6816_s30  }
 0x649   : > { %s4653_s19 = scalar_lea.sflag [#allocation6], %s4652_s22 }
 0x64a   : > { %5980 = dma.done.wait (%p4902_p7), %s4653_s19, 16  }
 0x64b   : > { %5982 = vsyncadd (%p4902_p7), %s4653_s19, 4294967280  ;;  %s26_s16 = sadd.s32 1, %s6013_s16   ;;  %s6818_s25 = sld [smem:[#allocation22_spill]] }
 0x64c   : > { %p23_p9 = scmp.ge.s32.totalorder %s26_s16, 6   ;;  %s6819_s11 = sld [smem:[#allocation28_spill]] }
 0x64d   : > { %s6820_s12 = sld [smem:[#allocation23_spill]]  ;;  %s6824_s30 = smov %s5989_s10 }
 0x64e   : > { %s6821_s13 = sld [smem:[#allocation24_spill]]  ;;  %25 = sbr.rel (!%p23_p9) target bundleno = 12 (0xc), region = 152 }
 0x64f   : > { %s6822_s14 = sld [smem:[#allocation25_spill]] }
 0x650   : > { %s6823_s15 = sld [smem:[#allocation26_spill]] }
 0x651   : > { %s6825_s10 = smov %s6818_s25 }
 0x653   :  { %4658 = vsyncpa [#allocation5], 1 }
 0x654   :  { %4660 = vsyncpa [#allocation5 + $0x1], 1 }
 0x655   :  { %4661 = vsyncpa [#allocation8], 1 }
 0x656   :  { %4662 = vsyncpa [#allocation11], 1 }
 0x657   :  { %4663 = vsyncpa [#allocation14], 1 }
 0x658   :  { %4664 = vsyncpa [#allocation6], 1 }
 0x659   :  { %4666 = vsyncpa [#allocation6 + $0x1], 1 }

</bundles_post_ra>
